<compile_context>
chip_gen: v5e
topology: v5e:2x2
jax: 0.10.0
libtpu: 0.0.40
codegen_flags: <defaults>
</compile_context>

<pallas_src>
import math

import jax
import jax.numpy as jnp
from jax import lax
from jax.experimental import pallas as pl
from jax.experimental.pallas import tpu as pltpu

# ----------------------- model hyper-parameters -----------------------------
INPUT_SIZE = 16      # input feature dim
D_MODEL = 32
N_HEADS = 4
D_HEAD = D_MODEL // N_HEADS
D_FF = 64
N_ENC_LAYERS = 2
N_DEC_LAYERS = 2
VOCAB = 11
VPAD = 128           # vocab padded to a lane-dense width
BLANK_ID = 0
SOS = 1
EOS = 2
IGNORE_ID = -1
CTC_WEIGHT = 0.5
LSM_WEIGHT = 0.0
EPS_LN = 1e-12
NEG = -1e30
SQRT_D = math.sqrt(D_MODEL)
ATT_SCALE = 1.0 / math.sqrt(D_HEAD)


# --------------------------- in-kernel helpers -------------------------------
def _ln(x, g, b):
    # x (T,D), g/b (1,D)
    mu = jnp.mean(x, axis=-1, keepdims=True)
    var = jnp.mean(jnp.square(x - mu), axis=-1, keepdims=True)
    return (x - mu) * lax.rsqrt(var + EPS_LN) * g + b


def _mha(xq, xkv, wq, bq, wk, bk, wv, bv, wo, bo, mask):
    # xq (Tq,D), xkv (Tk,D), w* (D,D), b* (1,D), mask (Tq,Tk) bool
    q = jnp.dot(xq, wq, preferred_element_type=jnp.float32) + bq
    k = jnp.dot(xkv, wk, preferred_element_type=jnp.float32) + bk
    v = jnp.dot(xkv, wv, preferred_element_type=jnp.float32) + bv
    Tq = xq.shape[0]
    out = jnp.zeros((Tq, D_MODEL), jnp.float32)
    for h in range(N_HEADS):
        lo, hi = h * D_HEAD, (h + 1) * D_HEAD
        qh = q[:, lo:hi]
        kh = k[:, lo:hi]
        vh = v[:, lo:hi]
        s = lax.dot_general(qh, kh, (((1,), (1,)), ((), ())),
                            preferred_element_type=jnp.float32) * ATT_SCALE
        s = jnp.where(mask, s, jnp.float32(NEG))
        m = jnp.max(s, axis=-1, keepdims=True)
        p = jnp.exp(s - m)
        p = p / jnp.sum(p, axis=-1, keepdims=True)
        ctx = jnp.dot(p, vh, preferred_element_type=jnp.float32)       # (Tq,dh)
        out = out + jnp.dot(ctx, wo[lo:hi, :],
                            preferred_element_type=jnp.float32)        # fold Wo
    return out + bo


def _ffn(x, w1, b1, w2, b2):
    h = jnp.dot(x, w1, preferred_element_type=jnp.float32) + b1
    h = jnp.maximum(h, 0.0)
    return jnp.dot(h, w2, preferred_element_type=jnp.float32) + b2


def _logits_logsoftmax(x, w, b):
    # w (D,VPAD) with zero pad cols, b (1,VPAD) with NEG pad cols
    logits = jnp.dot(x, w, preferred_element_type=jnp.float32) + b
    m = jnp.max(logits, axis=-1, keepdims=True)
    s = logits - m
    return s - jnp.log(jnp.sum(jnp.exp(s), axis=-1, keepdims=True))


# ---------------------------- fused encoder kernel ---------------------------
def _encoder_kernel(lens_ref,                       # scalar prefetch (SMEM)
                    speech_ref, pe_ref,
                    embed_w_ref, embed_b_ref, eln_g_ref, eln_b_ref,
                    qkvo_w_ref, qkvo_b_ref, ln_g_ref, ln_b_ref,
                    w1_ref, b1_ref, w2_ref, b2_ref,
                    aft_g_ref, aft_b_ref, ctc_w_ref, ctc_b_ref,
                    enc_out_ref, ctc_logp_ref):
    b = pl.program_id(0)
    slen = lens_ref[b]

    # ----- input layer: Linear -> LayerNorm -> ReLU -> scale + PosEnc -----
    x = jnp.dot(speech_ref[0], embed_w_ref[...],
                preferred_element_type=jnp.float32) + embed_b_ref[...]
    x = _ln(x, eln_g_ref[...], eln_b_ref[...])
    x = jnp.maximum(x, 0.0)
    x = x * SQRT_D + pe_ref[...]

    T = x.shape[0]
    key_mask = lax.broadcasted_iota(jnp.int32, (T, T), 1) < slen    # (T,T)

    for l in range(N_ENC_LAYERS):
        g = ln_g_ref[l]          # (2,D)
        bb = ln_b_ref[l]
        ab = qkvo_b_ref[l]       # (4,D)
        xn = _ln(x, g[0:1], bb[0:1])
        x = x + _mha(xn, xn,
                     qkvo_w_ref[l, 0], ab[0:1], qkvo_w_ref[l, 1], ab[1:2],
                     qkvo_w_ref[l, 2], ab[2:3], qkvo_w_ref[l, 3], ab[3:4],
                     key_mask)
        xn = _ln(x, g[1:2], bb[1:2])
        x = x + _ffn(xn, w1_ref[l], b1_ref[l], w2_ref[l], b2_ref[l])

    x = _ln(x, aft_g_ref[...], aft_b_ref[...])
    enc_out_ref[0] = x
    # fused CTC head (lane-dense, padded vocab)
    ctc_logp_ref[0] = _logits_logsoftmax(x, ctc_w_ref[...], ctc_b_ref[...])


def encoder_ctc_forward(params, speech, speech_lengths):
    B, T, Fdim = speech.shape
    pe = sinusoidal_pe(T, D_MODEL)
    cmap2 = lambda b, *_: (0, 0)
    cmap3 = lambda b, *_: (0, 0, 0)
    cmap4 = lambda b, *_: (0, 0, 0, 0)
    grid_spec = pltpu.PrefetchScalarGridSpec(
        num_scalar_prefetch=1,
        grid=(B,),
        in_specs=[
            pl.BlockSpec((1, T, Fdim), lambda b, *_: (b, 0, 0)),
            pl.BlockSpec((T, D_MODEL), cmap2),
            pl.BlockSpec((Fdim, D_MODEL), cmap2),
            pl.BlockSpec((1, D_MODEL), cmap2),
            pl.BlockSpec((1, D_MODEL), cmap2),
            pl.BlockSpec((1, D_MODEL), cmap2),
            pl.BlockSpec((N_ENC_LAYERS, 4, D_MODEL, D_MODEL), cmap4),
            pl.BlockSpec((N_ENC_LAYERS, 4, D_MODEL), cmap3),
            pl.BlockSpec((N_ENC_LAYERS, 2, D_MODEL), cmap3),
            pl.BlockSpec((N_ENC_LAYERS, 2, D_MODEL), cmap3),
            pl.BlockSpec((N_ENC_LAYERS, D_MODEL, D_FF), cmap3),
            pl.BlockSpec((N_ENC_LAYERS, 1, D_FF), cmap3),
            pl.BlockSpec((N_ENC_LAYERS, D_FF, D_MODEL), cmap3),
            pl.BlockSpec((N_ENC_LAYERS, 1, D_MODEL), cmap3),
            pl.BlockSpec((1, D_MODEL), cmap2),
            pl.BlockSpec((1, D_MODEL), cmap2),
            pl.BlockSpec((D_MODEL, VPAD), cmap2),
            pl.BlockSpec((1, VPAD), cmap2),
        ],
        out_specs=(
            pl.BlockSpec((1, T, D_MODEL), lambda b, *_: (b, 0, 0)),
            pl.BlockSpec((1, T, VPAD), lambda b, *_: (b, 0, 0)),
        ),
    )
    enc_out, ctc_logp = pl.pallas_call(
        _encoder_kernel,
        grid_spec=grid_spec,
        out_shape=(jax.ShapeDtypeStruct((B, T, D_MODEL), jnp.float32),
                   jax.ShapeDtypeStruct((B, T, VPAD), jnp.float32)),
        compiler_params=pltpu.CompilerParams(dimension_semantics=("parallel",)),
    )(speech_lengths, speech, pe,
      params["embed_w"], params["embed_b"], params["embed_ln_g"], params["embed_ln_b"],
      params["enc_qkvo_w"], params["enc_qkvo_b"], params["enc_ln_g"], params["enc_ln_b"],
      params["enc_ffn_w1"], params["enc_ffn_b1"], params["enc_ffn_w2"], params["enc_ffn_b2"],
      params["enc_after_g"], params["enc_after_b"], params["ctc_w_pad"], params["ctc_b_pad"])
    return enc_out, ctc_logp, speech_lengths


# ---------------------------- fused decoder kernel ---------------------------
def _decoder_kernel(mlens_ref, tlens_ref,            # scalar prefetch (SMEM)
                    x0_ref, mem_ref, pe_ref,
                    self_w_ref, self_b_ref, src_w_ref, src_b_ref,
                    ln_g_ref, ln_b_ref,
                    w1_ref, b1_ref, w2_ref, b2_ref,
                    aft_g_ref, aft_b_ref, out_w_ref, out_b_ref,
                    logp_ref):
    b = pl.program_id(0)
    mlen = mlens_ref[b]
    tlen = tlens_ref[b]

    x = x0_ref[0] * SQRT_D + pe_ref[...]
    mem = mem_ref[0]
    L = x.shape[0]
    Tm = mem.shape[0]

    qi = lax.broadcasted_iota(jnp.int32, (L, L), 0)
    kj = lax.broadcasted_iota(jnp.int32, (L, L), 1)
    tgt_mask = (kj <= qi) & (kj < tlen)                              # causal & non-pad
    mem_mask = lax.broadcasted_iota(jnp.int32, (L, Tm), 1) < mlen    # key non-pad

    for l in range(N_DEC_LAYERS):
        g = ln_g_ref[l]          # (3,D)
        bb = ln_b_ref[l]
        sb = self_b_ref[l]       # (4,D)
        cb = src_b_ref[l]
        xn = _ln(x, g[0:1], bb[0:1])
        x = x + _mha(xn, xn,
                     self_w_ref[l, 0], sb[0:1], self_w_ref[l, 1], sb[1:2],
                     self_w_ref[l, 2], sb[2:3], self_w_ref[l, 3], sb[3:4],
                     tgt_mask)
        xn = _ln(x, g[1:2], bb[1:2])
        x = x + _mha(xn, mem,
                     src_w_ref[l, 0], cb[0:1], src_w_ref[l, 1], cb[1:2],
                     src_w_ref[l, 2], cb[2:3], src_w_ref[l, 3], cb[3:4],
                     mem_mask)
        xn = _ln(x, g[2:3], bb[2:3])
        x = x + _ffn(xn, w1_ref[l], b1_ref[l], w2_ref[l], b2_ref[l])

    x = _ln(x, aft_g_ref[...], aft_b_ref[...])
    logp_ref[0] = _logits_logsoftmax(x, out_w_ref[...], out_b_ref[...])


def decoder_forward(params, memory, memory_lens, ys_in_pad, ys_in_lens):
    B, L = ys_in_pad.shape
    Tm = memory.shape[1]
    x0 = params["dec_embed"][ys_in_pad]          # host-side embedding gather
    pe = sinusoidal_pe(L, D_MODEL)
    cmap2 = lambda b, *_: (0, 0)
    cmap3 = lambda b, *_: (0, 0, 0)
    cmap4 = lambda b, *_: (0, 0, 0, 0)
    grid_spec = pltpu.PrefetchScalarGridSpec(
        num_scalar_prefetch=2,
        grid=(B,),
        in_specs=[
            pl.BlockSpec((1, L, D_MODEL), lambda b, *_: (b, 0, 0)),
            pl.BlockSpec((1, Tm, D_MODEL), lambda b, *_: (b, 0, 0)),
            pl.BlockSpec((L, D_MODEL), cmap2),
            pl.BlockSpec((N_DEC_LAYERS, 4, D_MODEL, D_MODEL), cmap4),
            pl.BlockSpec((N_DEC_LAYERS, 4, D_MODEL), cmap3),
            pl.BlockSpec((N_DEC_LAYERS, 4, D_MODEL, D_MODEL), cmap4),
            pl.BlockSpec((N_DEC_LAYERS, 4, D_MODEL), cmap3),
            pl.BlockSpec((N_DEC_LAYERS, 3, D_MODEL), cmap3),
            pl.BlockSpec((N_DEC_LAYERS, 3, D_MODEL), cmap3),
            pl.BlockSpec((N_DEC_LAYERS, D_MODEL, D_FF), cmap3),
            pl.BlockSpec((N_DEC_LAYERS, 1, D_FF), cmap3),
            pl.BlockSpec((N_DEC_LAYERS, D_FF, D_MODEL), cmap3),
            pl.BlockSpec((N_DEC_LAYERS, 1, D_MODEL), cmap3),
            pl.BlockSpec((1, D_MODEL), cmap2),
            pl.BlockSpec((1, D_MODEL), cmap2),
            pl.BlockSpec((D_MODEL, VPAD), cmap2),
            pl.BlockSpec((1, VPAD), cmap2),
        ],
        out_specs=pl.BlockSpec((1, L, VPAD), lambda b, *_: (b, 0, 0)),
    )
    logp = pl.pallas_call(
        _decoder_kernel,
        grid_spec=grid_spec,
        out_shape=jax.ShapeDtypeStruct((B, L, VPAD), jnp.float32),
        compiler_params=pltpu.CompilerParams(dimension_semantics=("parallel",)),
    )(memory_lens, ys_in_lens, x0, memory, pe,
      params["dec_self_w"], params["dec_self_b"], params["dec_src_w"], params["dec_src_b"],
      params["dec_ln_g"], params["dec_ln_b"],
      params["dec_ffn_w1"], params["dec_ffn_b1"], params["dec_ffn_w2"], params["dec_ffn_b2"],
      params["dec_after_g"], params["dec_after_b"], params["out_w_pad"], params["out_b_pad"])
    return logp                                   # (B, L, VPAD) log-probs


# ------------------------------- model pieces --------------------------------
def sinusoidal_pe(T, d):
    pos = jnp.arange(T, dtype=jnp.float32)[:, None]
    div = jnp.exp(jnp.arange(0, d, 2, dtype=jnp.float32) * (-math.log(10000.0) / d))
    pe = jnp.zeros((T, d), jnp.float32)
    pe = pe.at[:, 0::2].set(jnp.sin(pos * div))
    pe = pe.at[:, 1::2].set(jnp.cos(pos * div))
    return pe


def add_sos_eos(ys_pad, lengths, sos, eos, ignore_id):
    B, L = ys_pad.shape
    Lp = L + 1
    pos = jnp.arange(Lp)[None, :]
    ys_shift = jnp.pad(ys_pad, ((0, 0), (1, 0)))[:, :Lp]
    valid_in = (pos >= 1) & (pos <= lengths[:, None])
    ys_in = jnp.where(pos == 0, sos, jnp.where(valid_in, ys_shift, eos))
    ys_full = jnp.pad(ys_pad, ((0, 0), (0, 1)), constant_values=ignore_id)
    ys_out = jnp.where(
        pos < lengths[:, None],
        ys_full,
        jnp.where(pos == lengths[:, None], eos, ignore_id),
    )
    return ys_in.astype(jnp.int32), ys_out.astype(jnp.int32)


def label_smoothing_loss(logp, targets, vocab, padding_idx, smoothing, normalize_length):
    # logp: (B, L, vocab) log-probabilities (log_softmax already fused in-kernel)
    B = logp.shape[0]
    x = logp.reshape(-1, vocab)
    t = targets.reshape(-1)
    ignore = t == padding_idx
    t_clamped = jnp.where(ignore, 0, t)
    confidence = 1.0 - smoothing
    low = smoothing / (vocab - 1)
    true_dist = jnp.full((x.shape[0], vocab), low, jnp.float32)
    true_dist = true_dist.at[jnp.arange(x.shape[0]), t_clamped].set(confidence)
    safe_td = jnp.where(true_dist > 0, true_dist, 1.0)
    kl = jnp.where(true_dist > 0, true_dist * (jnp.log(safe_td) - x), 0.0)
    kl = jnp.where(ignore[:, None], 0.0, kl)
    total = jnp.sum(jnp.logical_not(ignore))
    denom = total if normalize_length else B
    return jnp.sum(kl) / denom


def th_accuracy(logp, targets, ignore_label):
    pred = jnp.argmax(logp, axis=-1)
    mask = targets != ignore_label
    num = jnp.sum(jnp.where(mask, pred == targets, False))
    den = jnp.sum(mask)
    return num.astype(jnp.float32) / den.astype(jnp.float32)


# TODO(synk): CTC forward DP is an inherently sequential recursion over time;
# it is implemented in plain JAX (lax.scan) rather than a Pallas kernel.
def ctc_loss(logp, ilens, targets, tlens, blank=0):
    # logp: (B, T, Vpad) log-probabilities (pad columns are ~ -inf, never indexed)
    B, T, _ = logp.shape
    U = targets.shape[1]
    S = 2 * U + 1
    tgt = jnp.where(targets < 0, blank, targets).astype(jnp.int32)
    ext = jnp.full((B, S), blank, jnp.int32).at[:, 1::2].set(tgt)
    prev2 = jnp.pad(ext, ((0, 0), (2, 0)), constant_values=blank)[:, :S]
    sidx = jnp.arange(S)
    allow_skip = (ext != blank) & (ext != prev2) & (sidx[None, :] >= 2)
    emit = jnp.take_along_axis(
        logp, jnp.broadcast_to(ext[:, None, :], (B, T, S)), axis=2
    )  # (B, T, S)

    alpha0 = jnp.full((B, S), NEG, jnp.float32)
    alpha0 = alpha0.at[:, 0].set(emit[:, 0, 0])
    alpha0 = alpha0.at[:, 1].set(jnp.where(tlens > 0, emit[:, 0, 1], NEG))

    def lse3(a, b, c):
        m = jnp.maximum(jnp.maximum(a, b), c)
        return m + jnp.log(jnp.exp(a - m) + jnp.exp(b - m) + jnp.exp(c - m))

    def step(alpha, t):
        a1 = alpha
        a2 = jnp.pad(alpha, ((0, 0), (1, 0)), constant_values=NEG)[:, :S]
        a3 = jnp.pad(alpha, ((0, 0), (2, 0)), constant_values=NEG)[:, :S]
        a3 = jnp.where(allow_skip, a3, NEG)
        new = lse3(a1, a2, a3) + emit[:, t, :]
        alpha_new = jnp.where((t < ilens)[:, None], new, alpha)
        return alpha_new, None

    alpha, _ = lax.scan(step, alpha0, jnp.arange(1, T))
    send = 2 * tlens
    last1 = jnp.take_along_axis(alpha, send[:, None], axis=1)[:, 0]
    last2 = jnp.take_along_axis(alpha, jnp.maximum(send - 1, 0)[:, None], axis=1)[:, 0]
    m = jnp.maximum(last1, last2)
    ll = m + jnp.log(jnp.exp(last1 - m) + jnp.exp(last2 - m))
    return jnp.sum(-ll) / B


def forward(params, speech, speech_lengths, text, text_lengths):
    """Encoder + Decoder + Calc loss (mirrors Transformer.forward)."""
    batch_size = speech.shape[0]

    # fused encoder + CTC head (2 pallas_calls total for the whole model)
    encoder_out, ctc_logp, encoder_out_lens = encoder_ctc_forward(
        params, speech, speech_lengths)

    loss_ctc = ctc_loss(ctc_logp, encoder_out_lens, text, text_lengths, blank=BLANK_ID)

    ys_in_pad, ys_out_pad = add_sos_eos(text, text_lengths, SOS, EOS, IGNORE_ID)
    ys_in_lens = (text_lengths + 1).astype(jnp.int32)
    dec_logp_pad = decoder_forward(params, encoder_out, encoder_out_lens,
                                   ys_in_pad, ys_in_lens)
    dec_logp = dec_logp_pad[..., :VOCAB]
    loss_att = label_smoothing_loss(dec_logp, ys_out_pad, VOCAB, IGNORE_ID,
                                    LSM_WEIGHT, False)
    acc_att = th_accuracy(dec_logp, ys_out_pad, IGNORE_ID)

    loss = CTC_WEIGHT * loss_ctc + (1.0 - CTC_WEIGHT) * loss_att
    stats = dict(loss_ctc=loss_ctc, loss_att=loss_att, acc=acc_att, loss=loss)
    weight = jnp.asarray(batch_size, jnp.float32)
    return loss, stats, weight


# ------------------------------- parameter init ------------------------------
def init_params(key):
    keys = iter(jax.random.split(key, 64))
    nk = lambda: next(keys)

    def dense_w(k, fi, fo):
        return jax.random.normal(k, (fi, fo), jnp.float32) * (1.0 / math.sqrt(fi))

    def attn_stack(n_layers):
        w = jnp.stack([jnp.stack([dense_w(nk(), D_MODEL, D_MODEL) for _ in range(4)])
                       for _ in range(n_layers)])
        b = jnp.zeros((n_layers, 4, D_MODEL), jnp.float32)
        return w, b

    def ffn_stack(n_layers):
        w1 = jnp.stack([dense_w(nk(), D_MODEL, D_FF) for _ in range(n_layers)])
        w2 = jnp.stack([dense_w(nk(), D_FF, D_MODEL) for _ in range(n_layers)])
        b1 = jnp.zeros((n_layers, 1, D_FF), jnp.float32)
        b2 = jnp.zeros((n_layers, 1, D_MODEL), jnp.float32)
        return w1, b1, w2, b2

    def pad_head(w, b):
        w_pad = jnp.zeros((D_MODEL, VPAD), jnp.float32).at[:, :VOCAB].set(w)
        b_pad = jnp.full((1, VPAD), NEG, jnp.float32).at[:, :VOCAB].set(b)
        return w_pad, b_pad

    embed_w = dense_w(nk(), INPUT_SIZE, D_MODEL)
    enc_qkvo_w, enc_qkvo_b = attn_stack(N_ENC_LAYERS)
    enc_ffn_w1, enc_ffn_b1, enc_ffn_w2, enc_ffn_b2 = ffn_stack(N_ENC_LAYERS)

    dec_embed = jax.random.normal(nk(), (VOCAB, D_MODEL), jnp.float32) * (1.0 / math.sqrt(D_MODEL))
    dec_self_w, dec_self_b = attn_stack(N_DEC_LAYERS)
    dec_src_w, dec_src_b = attn_stack(N_DEC_LAYERS)
    dec_ffn_w1, dec_ffn_b1, dec_ffn_w2, dec_ffn_b2 = ffn_stack(N_DEC_LAYERS)

    ctc_w_pad, ctc_b_pad = pad_head(dense_w(nk(), D_MODEL, VOCAB),
                                    jnp.zeros((VOCAB,), jnp.float32))
    out_w_pad, out_b_pad = pad_head(dense_w(nk(), D_MODEL, VOCAB),
                                    jnp.zeros((VOCAB,), jnp.float32))

    ones2 = lambda: jnp.ones((1, D_MODEL), jnp.float32)
    zeros2 = lambda: jnp.zeros((1, D_MODEL), jnp.float32)

    return dict(
        embed_w=embed_w, embed_b=zeros2(),
        embed_ln_g=ones2(), embed_ln_b=zeros2(),
        enc_qkvo_w=enc_qkvo_w, enc_qkvo_b=enc_qkvo_b,
        enc_ln_g=jnp.ones((N_ENC_LAYERS, 2, D_MODEL), jnp.float32),
        enc_ln_b=jnp.zeros((N_ENC_LAYERS, 2, D_MODEL), jnp.float32),
        enc_ffn_w1=enc_ffn_w1, enc_ffn_b1=enc_ffn_b1,
        enc_ffn_w2=enc_ffn_w2, enc_ffn_b2=enc_ffn_b2,
        enc_after_g=ones2(), enc_after_b=zeros2(),
        ctc_w_pad=ctc_w_pad, ctc_b_pad=ctc_b_pad,
        dec_embed=dec_embed,
        dec_self_w=dec_self_w, dec_self_b=dec_self_b,
        dec_src_w=dec_src_w, dec_src_b=dec_src_b,
        dec_ln_g=jnp.ones((N_DEC_LAYERS, 3, D_MODEL), jnp.float32),
        dec_ln_b=jnp.zeros((N_DEC_LAYERS, 3, D_MODEL), jnp.float32),
        dec_ffn_w1=dec_ffn_w1, dec_ffn_b1=dec_ffn_b1,
        dec_ffn_w2=dec_ffn_w2, dec_ffn_b2=dec_ffn_b2,
        dec_after_g=ones2(), dec_after_b=zeros2(),
        out_w_pad=out_w_pad, out_b_pad=out_b_pad,
    )


# ------------------------------------ main ------------------------------------
if __name__ == "__main__":
    key = jax.random.PRNGKey(0)
    kspeech, ktext, kparams = jax.random.split(key, 3)

    B, T, F = 2, 12, INPUT_SIZE
    Ltxt = 6
    speech = jax.random.normal(kspeech, (B, T, F), jnp.float32)
    speech_lengths = jnp.array([12, 10], jnp.int32)
    text_lengths = jnp.array([6, 4], jnp.int32)
    text_raw = jax.random.randint(ktext, (B, Ltxt), 3, VOCAB, dtype=jnp.int32)
    text = jnp.where(jnp.arange(Ltxt)[None, :] < text_lengths[:, None], text_raw, IGNORE_ID)

    params = init_params(kparams)

    loss, stats, weight = jax.jit(forward)(params, speech, speech_lengths, text, text_lengths)
    jax.block_until_ready(loss)
    print("KERNEL_OK")
</pallas_src>

<mosaic_0001>
module attributes {stable_mosaic.version = 11 : i64} {
  func.func @_encoder_kernel(%arg0: i32, %arg1: memref<2xi32, #tpu.memory_space<smem>>, %arg2: memref<1x12x16xf32, #tpu.memory_space<vmem>>, %arg3: memref<12x32xf32, #tpu.memory_space<vmem>>, %arg4: memref<16x32xf32, #tpu.memory_space<vmem>>, %arg5: memref<1x32xf32, #tpu.memory_space<vmem>>, %arg6: memref<1x32xf32, #tpu.memory_space<vmem>>, %arg7: memref<1x32xf32, #tpu.memory_space<vmem>>, %arg8: memref<2x4x32x32xf32, #tpu.memory_space<vmem>>, %arg9: memref<2x4x32xf32, #tpu.memory_space<vmem>>, %arg10: memref<2x2x32xf32, #tpu.memory_space<vmem>>, %arg11: memref<2x2x32xf32, #tpu.memory_space<vmem>>, %arg12: memref<2x32x64xf32, #tpu.memory_space<vmem>>, %arg13: memref<2x1x64xf32, #tpu.memory_space<vmem>>, %arg14: memref<2x64x32xf32, #tpu.memory_space<vmem>>, %arg15: memref<2x1x32xf32, #tpu.memory_space<vmem>>, %arg16: memref<1x32xf32, #tpu.memory_space<vmem>>, %arg17: memref<1x32xf32, #tpu.memory_space<vmem>>, %arg18: memref<32x128xf32, #tpu.memory_space<vmem>>, %arg19: memref<1x128xf32, #tpu.memory_space<vmem>>, %arg20: memref<1x12x32xf32, #tpu.memory_space<vmem>>, %arg21: memref<1x12x128xf32, #tpu.memory_space<vmem>>) attributes {dimension_semantics = [#tpu.dimension_semantics<parallel>], iteration_bounds = array<i64: 2>, scalar_prefetch = 1 : i64, scratch_operands = 0 : i64, tpu.core_type = #tpu.core_type<tc>, window_params = [{transform_indices = @transform_0, window_bounds = array<i64: 1, 12, 16>}, {pipeline_mode = #tpu.pipeline_mode<synchronous>, transform_indices = @transform_1, window_bounds = array<i64: 12, 32>}, {pipeline_mode = #tpu.pipeline_mode<synchronous>, transform_indices = @transform_2, window_bounds = array<i64: 16, 32>}, {pipeline_mode = #tpu.pipeline_mode<synchronous>, transform_indices = @transform_3, window_bounds = array<i64: 1, 32>}, {pipeline_mode = #tpu.pipeline_mode<synchronous>, transform_indices = @transform_4, window_bounds = array<i64: 1, 32>}, {pipeline_mode = #tpu.pipeline_mode<synchronous>, transform_indices = @transform_5, window_bounds = array<i64: 1, 32>}, {pipeline_mode = #tpu.pipeline_mode<synchronous>, transform_indices = @transform_6, window_bounds = array<i64: 2, 4, 32, 32>}, {pipeline_mode = #tpu.pipeline_mode<synchronous>, transform_indices = @transform_7, window_bounds = array<i64: 2, 4, 32>}, {pipeline_mode = #tpu.pipeline_mode<synchronous>, transform_indices = @transform_8, window_bounds = array<i64: 2, 2, 32>}, {pipeline_mode = #tpu.pipeline_mode<synchronous>, transform_indices = @transform_9, window_bounds = array<i64: 2, 2, 32>}, {pipeline_mode = #tpu.pipeline_mode<synchronous>, transform_indices = @transform_10, window_bounds = array<i64: 2, 32, 64>}, {pipeline_mode = #tpu.pipeline_mode<synchronous>, transform_indices = @transform_11, window_bounds = array<i64: 2, 1, 64>}, {pipeline_mode = #tpu.pipeline_mode<synchronous>, transform_indices = @transform_12, window_bounds = array<i64: 2, 64, 32>}, {pipeline_mode = #tpu.pipeline_mode<synchronous>, transform_indices = @transform_13, window_bounds = array<i64: 2, 1, 32>}, {pipeline_mode = #tpu.pipeline_mode<synchronous>, transform_indices = @transform_14, window_bounds = array<i64: 1, 32>}, {pipeline_mode = #tpu.pipeline_mode<synchronous>, transform_indices = @transform_15, window_bounds = array<i64: 1, 32>}, {pipeline_mode = #tpu.pipeline_mode<synchronous>, transform_indices = @transform_16, window_bounds = array<i64: 32, 128>}, {pipeline_mode = #tpu.pipeline_mode<synchronous>, transform_indices = @transform_17, window_bounds = array<i64: 1, 128>}, {transform_indices = @transform_18, window_bounds = array<i64: 1, 12, 32>}, {transform_indices = @transform_19, window_bounds = array<i64: 1, 12, 128>}]} {
    %0 = arith.index_cast %arg0 : i32 to index
    %1 = memref.load %arg1[%0] : memref<2xi32, #tpu.memory_space<smem>>
    %c0 = arith.constant 0 : index
    %c0_0 = arith.constant 0 : index
    %c0_1 = arith.constant 0 : index
    %2 = vector.load %arg2[%c0, %c0_0, %c0_1] : memref<1x12x16xf32, #tpu.memory_space<vmem>>, vector<1x12x16xf32>
    %3 = vector.shape_cast %2 : vector<1x12x16xf32> to vector<12x16xf32>
    %c0_2 = arith.constant 0 : index
    %c0_3 = arith.constant 0 : index
    %4 = vector.load %arg4[%c0_2, %c0_3] : memref<16x32xf32, #tpu.memory_space<vmem>>, vector<16x32xf32>
    %cst = arith.constant dense<0.000000e+00> : vector<12x32xf32>
    %5 = tpu.matmul %3, %4, %cst {dimension_numbers = #tpu.dot_dimension_numbers<[1], [0], [0], [1], [0, 0, 1, 1], [], []>} : vector<12x16xf32>, vector<16x32xf32>, vector<12x32xf32> -> vector<12x32xf32>
    %c0_4 = arith.constant 0 : index
    %c0_5 = arith.constant 0 : index
    %6 = vector.load %arg5[%c0_4, %c0_5] : memref<1x32xf32, #tpu.memory_space<vmem>>, vector<1x32xf32>
    %7 = vector.broadcast %6 : vector<1x32xf32> to vector<12x32xf32>
    %8 = arith.addf %5, %7 : vector<12x32xf32>
    %c0_6 = arith.constant 0 : index
    %c0_7 = arith.constant 0 : index
    %9 = vector.load %arg6[%c0_6, %c0_7] : memref<1x32xf32, #tpu.memory_space<vmem>>, vector<1x32xf32>
    %c0_8 = arith.constant 0 : index
    %c0_9 = arith.constant 0 : index
    %10 = vector.load %arg7[%c0_8, %c0_9] : memref<1x32xf32, #tpu.memory_space<vmem>>, vector<1x32xf32>
    %cst_10 = arith.constant dense<0.000000e+00> : vector<12xf32>
    %11 = vector.multi_reduction <add>, %8, %cst_10 [1] : vector<12x32xf32> to vector<12xf32>
    %12 = vector.shape_cast %11 : vector<12xf32> to vector<12x1xf32>
    %cst_11 = arith.constant 3.200000e+01 : f32
    %13 = vector.broadcast %cst_11 : f32 to vector<12x1xf32>
    %14 = arith.divf %12, %13 : vector<12x1xf32>
    %15 = vector.broadcast %14 : vector<12x1xf32> to vector<12x32xf32>
    %16 = arith.subf %8, %15 : vector<12x32xf32>
    %17 = arith.mulf %16, %16 : vector<12x32xf32>
    %cst_12 = arith.constant dense<0.000000e+00> : vector<12xf32>
    %18 = vector.multi_reduction <add>, %17, %cst_12 [1] : vector<12x32xf32> to vector<12xf32>
    %19 = vector.shape_cast %18 : vector<12xf32> to vector<12x1xf32>
    %cst_13 = arith.constant 3.200000e+01 : f32
    %20 = vector.broadcast %cst_13 : f32 to vector<12x1xf32>
    %21 = arith.divf %19, %20 : vector<12x1xf32>
    %22 = vector.broadcast %14 : vector<12x1xf32> to vector<12x32xf32>
    %23 = arith.subf %8, %22 : vector<12x32xf32>
    %cst_14 = arith.constant 9.99999996E-13 : f32
    %24 = vector.broadcast %cst_14 : f32 to vector<12x1xf32>
    %25 = arith.addf %21, %24 : vector<12x1xf32>
    %26 = math.rsqrt %25 : vector<12x1xf32>
    %27 = vector.broadcast %26 : vector<12x1xf32> to vector<12x32xf32>
    %28 = arith.mulf %23, %27 : vector<12x32xf32>
    %29 = vector.broadcast %9 : vector<1x32xf32> to vector<12x32xf32>
    %30 = arith.mulf %28, %29 : vector<12x32xf32>
    %31 = vector.broadcast %10 : vector<1x32xf32> to vector<12x32xf32>
    %32 = arith.addf %30, %31 : vector<12x32xf32>
    %cst_15 = arith.constant 0.000000e+00 : f32
    %33 = vector.broadcast %cst_15 : f32 to vector<12x32xf32>
    %34 = arith.maximumf %32, %33 : vector<12x32xf32>
    %cst_16 = arith.constant 5.65685415 : f32
    %35 = vector.broadcast %cst_16 : f32 to vector<12x32xf32>
    %36 = arith.mulf %34, %35 : vector<12x32xf32>
    %c0_17 = arith.constant 0 : index
    %c0_18 = arith.constant 0 : index
    %37 = vector.load %arg3[%c0_17, %c0_18] : memref<12x32xf32, #tpu.memory_space<vmem>>, vector<12x32xf32>
    %38 = arith.addf %36, %37 : vector<12x32xf32>
    %39 = tpu.iota {dimensions = array<i32: 1>} : vector<12x12xi32>
    %40 = vector.broadcast %1 : i32 to vector<12x12xi32>
    %41 = arith.cmpi slt, %39, %40 : vector<12x12xi32>
    %c0_19 = arith.constant 0 : index
    %c0_20 = arith.constant 0 : index
    %c0_21 = arith.constant 0 : index
    %42 = vector.load %arg10[%c0_19, %c0_20, %c0_21] : memref<2x2x32xf32, #tpu.memory_space<vmem>>, vector<1x2x32xf32>
    %43 = vector.shape_cast %42 : vector<1x2x32xf32> to vector<2x32xf32>
    %c0_22 = arith.constant 0 : index
    %c0_23 = arith.constant 0 : index
    %c0_24 = arith.constant 0 : index
    %44 = vector.load %arg11[%c0_22, %c0_23, %c0_24] : memref<2x2x32xf32, #tpu.memory_space<vmem>>, vector<1x2x32xf32>
    %45 = vector.shape_cast %44 : vector<1x2x32xf32> to vector<2x32xf32>
    %c0_25 = arith.constant 0 : index
    %c0_26 = arith.constant 0 : index
    %c0_27 = arith.constant 0 : index
    %46 = vector.load %arg9[%c0_25, %c0_26, %c0_27] : memref<2x4x32xf32, #tpu.memory_space<vmem>>, vector<1x4x32xf32>
    %47 = vector.shape_cast %46 : vector<1x4x32xf32> to vector<4x32xf32>
    %48 = vector.extract_strided_slice %43 {offsets = [0, 0], sizes = [1, 32], strides = [1, 1]} : vector<2x32xf32> to vector<1x32xf32>
    %49 = vector.extract_strided_slice %45 {offsets = [0, 0], sizes = [1, 32], strides = [1, 1]} : vector<2x32xf32> to vector<1x32xf32>
    %cst_28 = arith.constant dense<0.000000e+00> : vector<12xf32>
    %50 = vector.multi_reduction <add>, %38, %cst_28 [1] : vector<12x32xf32> to vector<12xf32>
    %51 = vector.shape_cast %50 : vector<12xf32> to vector<12x1xf32>
    %cst_29 = arith.constant 3.200000e+01 : f32
    %52 = vector.broadcast %cst_29 : f32 to vector<12x1xf32>
    %53 = arith.divf %51, %52 : vector<12x1xf32>
    %54 = vector.broadcast %53 : vector<12x1xf32> to vector<12x32xf32>
    %55 = arith.subf %38, %54 : vector<12x32xf32>
    %56 = arith.mulf %55, %55 : vector<12x32xf32>
    %cst_30 = arith.constant dense<0.000000e+00> : vector<12xf32>
    %57 = vector.multi_reduction <add>, %56, %cst_30 [1] : vector<12x32xf32> to vector<12xf32>
    %58 = vector.shape_cast %57 : vector<12xf32> to vector<12x1xf32>
    %cst_31 = arith.constant 3.200000e+01 : f32
    %59 = vector.broadcast %cst_31 : f32 to vector<12x1xf32>
    %60 = arith.divf %58, %59 : vector<12x1xf32>
    %61 = vector.broadcast %53 : vector<12x1xf32> to vector<12x32xf32>
    %62 = arith.subf %38, %61 : vector<12x32xf32>
    %cst_32 = arith.constant 9.99999996E-13 : f32
    %63 = vector.broadcast %cst_32 : f32 to vector<12x1xf32>
    %64 = arith.addf %60, %63 : vector<12x1xf32>
    %65 = math.rsqrt %64 : vector<12x1xf32>
    %66 = vector.broadcast %65 : vector<12x1xf32> to vector<12x32xf32>
    %67 = arith.mulf %62, %66 : vector<12x32xf32>
    %68 = vector.broadcast %48 : vector<1x32xf32> to vector<12x32xf32>
    %69 = arith.mulf %67, %68 : vector<12x32xf32>
    %70 = vector.broadcast %49 : vector<1x32xf32> to vector<12x32xf32>
    %71 = arith.addf %69, %70 : vector<12x32xf32>
    %c0_33 = arith.constant 0 : index
    %c0_34 = arith.constant 0 : index
    %c0_35 = arith.constant 0 : index
    %c0_36 = arith.constant 0 : index
    %72 = vector.load %arg8[%c0_33, %c0_34, %c0_35, %c0_36] : memref<2x4x32x32xf32, #tpu.memory_space<vmem>>, vector<1x1x32x32xf32>
    %73 = vector.shape_cast %72 : vector<1x1x32x32xf32> to vector<32x32xf32>
    %74 = vector.extract_strided_slice %47 {offsets = [0, 0], sizes = [1, 32], strides = [1, 1]} : vector<4x32xf32> to vector<1x32xf32>
    %c0_37 = arith.constant 0 : index
    %c1 = arith.constant 1 : index
    %c0_38 = arith.constant 0 : index
    %c0_39 = arith.constant 0 : index
    %75 = vector.load %arg8[%c0_37, %c1, %c0_38, %c0_39] : memref<2x4x32x32xf32, #tpu.memory_space<vmem>>, vector<1x1x32x32xf32>
    %76 = vector.shape_cast %75 : vector<1x1x32x32xf32> to vector<32x32xf32>
    %77 = vector.extract_strided_slice %47 {offsets = [1, 0], sizes = [1, 32], strides = [1, 1]} : vector<4x32xf32> to vector<1x32xf32>
    %c0_40 = arith.constant 0 : index
    %c2 = arith.constant 2 : index
    %c0_41 = arith.constant 0 : index
    %c0_42 = arith.constant 0 : index
    %78 = vector.load %arg8[%c0_40, %c2, %c0_41, %c0_42] : memref<2x4x32x32xf32, #tpu.memory_space<vmem>>, vector<1x1x32x32xf32>
    %79 = vector.shape_cast %78 : vector<1x1x32x32xf32> to vector<32x32xf32>
    %80 = vector.extract_strided_slice %47 {offsets = [2, 0], sizes = [1, 32], strides = [1, 1]} : vector<4x32xf32> to vector<1x32xf32>
    %c0_43 = arith.constant 0 : index
    %c3 = arith.constant 3 : index
    %c0_44 = arith.constant 0 : index
    %c0_45 = arith.constant 0 : index
    %81 = vector.load %arg8[%c0_43, %c3, %c0_44, %c0_45] : memref<2x4x32x32xf32, #tpu.memory_space<vmem>>, vector<1x1x32x32xf32>
    %82 = vector.shape_cast %81 : vector<1x1x32x32xf32> to vector<32x32xf32>
    %83 = vector.extract_strided_slice %47 {offsets = [3, 0], sizes = [1, 32], strides = [1, 1]} : vector<4x32xf32> to vector<1x32xf32>
    %cst_46 = arith.constant dense<0.000000e+00> : vector<12x32xf32>
    %84 = tpu.matmul %71, %73, %cst_46 {dimension_numbers = #tpu.dot_dimension_numbers<[1], [0], [0], [1], [0, 0, 1, 1], [], []>} : vector<12x32xf32>, vector<32x32xf32>, vector<12x32xf32> -> vector<12x32xf32>
    %85 = vector.broadcast %74 : vector<1x32xf32> to vector<12x32xf32>
    %86 = arith.addf %84, %85 : vector<12x32xf32>
    %cst_47 = arith.constant dense<0.000000e+00> : vector<12x32xf32>
    %87 = tpu.matmul %71, %76, %cst_47 {dimension_numbers = #tpu.dot_dimension_numbers<[1], [0], [0], [1], [0, 0, 1, 1], [], []>} : vector<12x32xf32>, vector<32x32xf32>, vector<12x32xf32> -> vector<12x32xf32>
    %88 = vector.broadcast %77 : vector<1x32xf32> to vector<12x32xf32>
    %89 = arith.addf %87, %88 : vector<12x32xf32>
    %cst_48 = arith.constant dense<0.000000e+00> : vector<12x32xf32>
    %90 = tpu.matmul %71, %79, %cst_48 {dimension_numbers = #tpu.dot_dimension_numbers<[1], [0], [0], [1], [0, 0, 1, 1], [], []>} : vector<12x32xf32>, vector<32x32xf32>, vector<12x32xf32> -> vector<12x32xf32>
    %91 = vector.broadcast %80 : vector<1x32xf32> to vector<12x32xf32>
    %92 = arith.addf %90, %91 : vector<12x32xf32>
    %cst_49 = arith.constant 0.000000e+00 : f32
    %93 = vector.broadcast %cst_49 : f32 to vector<12x32xf32>
    %94 = vector.extract_strided_slice %86 {offsets = [0, 0], sizes = [12, 8], strides = [1, 1]} : vector<12x32xf32> to vector<12x8xf32>
    %95 = vector.extract_strided_slice %89 {offsets = [0, 0], sizes = [12, 8], strides = [1, 1]} : vector<12x32xf32> to vector<12x8xf32>
    %96 = vector.extract_strided_slice %92 {offsets = [0, 0], sizes = [12, 8], strides = [1, 1]} : vector<12x32xf32> to vector<12x8xf32>
    %cst_50 = arith.constant dense<0.000000e+00> : vector<12x12xf32>
    %97 = tpu.matmul %94, %95, %cst_50 {dimension_numbers = #tpu.dot_dimension_numbers<[1], [1], [0], [0], [0, 0, 1, 0], [], []>} : vector<12x8xf32>, vector<12x8xf32>, vector<12x12xf32> -> vector<12x12xf32>
    %cst_51 = arith.constant 0.353553385 : f32
    %98 = vector.broadcast %cst_51 : f32 to vector<12x12xf32>
    %99 = arith.mulf %97, %98 : vector<12x12xf32>
    %cst_52 = arith.constant -1.000000e+30 : f32
    %100 = vector.broadcast %cst_52 : f32 to vector<12x12xf32>
    %101 = arith.select %41, %99, %100 : vector<12x12xi1>, vector<12x12xf32>
    %cst_53 = arith.constant dense<0xFF800000> : vector<12xf32>
    %102 = vector.multi_reduction <maximumf>, %101, %cst_53 [1] : vector<12x12xf32> to vector<12xf32>
    %103 = vector.shape_cast %102 : vector<12xf32> to vector<12x1xf32>
    %104 = vector.broadcast %103 : vector<12x1xf32> to vector<12x12xf32>
    %105 = arith.subf %101, %104 : vector<12x12xf32>
    %106 = math.exp %105 : vector<12x12xf32>
    %cst_54 = arith.constant dense<0.000000e+00> : vector<12xf32>
    %107 = vector.multi_reduction <add>, %106, %cst_54 [1] : vector<12x12xf32> to vector<12xf32>
    %108 = vector.shape_cast %107 : vector<12xf32> to vector<12x1xf32>
    %109 = vector.broadcast %108 : vector<12x1xf32> to vector<12x12xf32>
    %110 = arith.divf %106, %109 : vector<12x12xf32>
    %cst_55 = arith.constant dense<0.000000e+00> : vector<12x8xf32>
    %111 = tpu.matmul %110, %96, %cst_55 {dimension_numbers = #tpu.dot_dimension_numbers<[1], [0], [0], [1], [0, 0, 1, 1], [], []>} : vector<12x12xf32>, vector<12x8xf32>, vector<12x8xf32> -> vector<12x8xf32>
    %112 = vector.extract_strided_slice %82 {offsets = [0, 0], sizes = [8, 32], strides = [1, 1]} : vector<32x32xf32> to vector<8x32xf32>
    %cst_56 = arith.constant dense<0.000000e+00> : vector<12x32xf32>
    %113 = tpu.matmul %111, %112, %cst_56 {dimension_numbers = #tpu.dot_dimension_numbers<[1], [0], [0], [1], [0, 0, 1, 1], [], []>} : vector<12x8xf32>, vector<8x32xf32>, vector<12x32xf32> -> vector<12x32xf32>
    %114 = arith.addf %93, %113 : vector<12x32xf32>
    %115 = vector.extract_strided_slice %86 {offsets = [0, 8], sizes = [12, 8], strides = [1, 1]} : vector<12x32xf32> to vector<12x8xf32>
    %116 = vector.extract_strided_slice %89 {offsets = [0, 8], sizes = [12, 8], strides = [1, 1]} : vector<12x32xf32> to vector<12x8xf32>
    %117 = vector.extract_strided_slice %92 {offsets = [0, 8], sizes = [12, 8], strides = [1, 1]} : vector<12x32xf32> to vector<12x8xf32>
    %cst_57 = arith.constant dense<0.000000e+00> : vector<12x12xf32>
    %118 = tpu.matmul %115, %116, %cst_57 {dimension_numbers = #tpu.dot_dimension_numbers<[1], [1], [0], [0], [0, 0, 1, 0], [], []>} : vector<12x8xf32>, vector<12x8xf32>, vector<12x12xf32> -> vector<12x12xf32>
    %cst_58 = arith.constant 0.353553385 : f32
    %119 = vector.broadcast %cst_58 : f32 to vector<12x12xf32>
    %120 = arith.mulf %118, %119 : vector<12x12xf32>
    %cst_59 = arith.constant -1.000000e+30 : f32
    %121 = vector.broadcast %cst_59 : f32 to vector<12x12xf32>
    %122 = arith.select %41, %120, %121 : vector<12x12xi1>, vector<12x12xf32>
    %cst_60 = arith.constant dense<0xFF800000> : vector<12xf32>
    %123 = vector.multi_reduction <maximumf>, %122, %cst_60 [1] : vector<12x12xf32> to vector<12xf32>
    %124 = vector.shape_cast %123 : vector<12xf32> to vector<12x1xf32>
    %125 = vector.broadcast %124 : vector<12x1xf32> to vector<12x12xf32>
    %126 = arith.subf %122, %125 : vector<12x12xf32>
    %127 = math.exp %126 : vector<12x12xf32>
    %cst_61 = arith.constant dense<0.000000e+00> : vector<12xf32>
    %128 = vector.multi_reduction <add>, %127, %cst_61 [1] : vector<12x12xf32> to vector<12xf32>
    %129 = vector.shape_cast %128 : vector<12xf32> to vector<12x1xf32>
    %130 = vector.broadcast %129 : vector<12x1xf32> to vector<12x12xf32>
    %131 = arith.divf %127, %130 : vector<12x12xf32>
    %cst_62 = arith.constant dense<0.000000e+00> : vector<12x8xf32>
    %132 = tpu.matmul %131, %117, %cst_62 {dimension_numbers = #tpu.dot_dimension_numbers<[1], [0], [0], [1], [0, 0, 1, 1], [], []>} : vector<12x12xf32>, vector<12x8xf32>, vector<12x8xf32> -> vector<12x8xf32>
    %133 = vector.extract_strided_slice %82 {offsets = [8, 0], sizes = [8, 32], strides = [1, 1]} : vector<32x32xf32> to vector<8x32xf32>
    %cst_63 = arith.constant dense<0.000000e+00> : vector<12x32xf32>
    %134 = tpu.matmul %132, %133, %cst_63 {dimension_numbers = #tpu.dot_dimension_numbers<[1], [0], [0], [1], [0, 0, 1, 1], [], []>} : vector<12x8xf32>, vector<8x32xf32>, vector<12x32xf32> -> vector<12x32xf32>
    %135 = arith.addf %114, %134 : vector<12x32xf32>
    %136 = vector.extract_strided_slice %86 {offsets = [0, 16], sizes = [12, 8], strides = [1, 1]} : vector<12x32xf32> to vector<12x8xf32>
    %137 = vector.extract_strided_slice %89 {offsets = [0, 16], sizes = [12, 8], strides = [1, 1]} : vector<12x32xf32> to vector<12x8xf32>
    %138 = vector.extract_strided_slice %92 {offsets = [0, 16], sizes = [12, 8], strides = [1, 1]} : vector<12x32xf32> to vector<12x8xf32>
    %cst_64 = arith.constant dense<0.000000e+00> : vector<12x12xf32>
    %139 = tpu.matmul %136, %137, %cst_64 {dimension_numbers = #tpu.dot_dimension_numbers<[1], [1], [0], [0], [0, 0, 1, 0], [], []>} : vector<12x8xf32>, vector<12x8xf32>, vector<12x12xf32> -> vector<12x12xf32>
    %cst_65 = arith.constant 0.353553385 : f32
    %140 = vector.broadcast %cst_65 : f32 to vector<12x12xf32>
    %141 = arith.mulf %139, %140 : vector<12x12xf32>
    %cst_66 = arith.constant -1.000000e+30 : f32
    %142 = vector.broadcast %cst_66 : f32 to vector<12x12xf32>
    %143 = arith.select %41, %141, %142 : vector<12x12xi1>, vector<12x12xf32>
    %cst_67 = arith.constant dense<0xFF800000> : vector<12xf32>
    %144 = vector.multi_reduction <maximumf>, %143, %cst_67 [1] : vector<12x12xf32> to vector<12xf32>
    %145 = vector.shape_cast %144 : vector<12xf32> to vector<12x1xf32>
    %146 = vector.broadcast %145 : vector<12x1xf32> to vector<12x12xf32>
    %147 = arith.subf %143, %146 : vector<12x12xf32>
    %148 = math.exp %147 : vector<12x12xf32>
    %cst_68 = arith.constant dense<0.000000e+00> : vector<12xf32>
    %149 = vector.multi_reduction <add>, %148, %cst_68 [1] : vector<12x12xf32> to vector<12xf32>
    %150 = vector.shape_cast %149 : vector<12xf32> to vector<12x1xf32>
    %151 = vector.broadcast %150 : vector<12x1xf32> to vector<12x12xf32>
    %152 = arith.divf %148, %151 : vector<12x12xf32>
    %cst_69 = arith.constant dense<0.000000e+00> : vector<12x8xf32>
    %153 = tpu.matmul %152, %138, %cst_69 {dimension_numbers = #tpu.dot_dimension_numbers<[1], [0], [0], [1], [0, 0, 1, 1], [], []>} : vector<12x12xf32>, vector<12x8xf32>, vector<12x8xf32> -> vector<12x8xf32>
    %154 = vector.extract_strided_slice %82 {offsets = [16, 0], sizes = [8, 32], strides = [1, 1]} : vector<32x32xf32> to vector<8x32xf32>
    %cst_70 = arith.constant dense<0.000000e+00> : vector<12x32xf32>
    %155 = tpu.matmul %153, %154, %cst_70 {dimension_numbers = #tpu.dot_dimension_numbers<[1], [0], [0], [1], [0, 0, 1, 1], [], []>} : vector<12x8xf32>, vector<8x32xf32>, vector<12x32xf32> -> vector<12x32xf32>
    %156 = arith.addf %135, %155 : vector<12x32xf32>
    %157 = vector.extract_strided_slice %86 {offsets = [0, 24], sizes = [12, 8], strides = [1, 1]} : vector<12x32xf32> to vector<12x8xf32>
    %158 = vector.extract_strided_slice %89 {offsets = [0, 24], sizes = [12, 8], strides = [1, 1]} : vector<12x32xf32> to vector<12x8xf32>
    %159 = vector.extract_strided_slice %92 {offsets = [0, 24], sizes = [12, 8], strides = [1, 1]} : vector<12x32xf32> to vector<12x8xf32>
    %cst_71 = arith.constant dense<0.000000e+00> : vector<12x12xf32>
    %160 = tpu.matmul %157, %158, %cst_71 {dimension_numbers = #tpu.dot_dimension_numbers<[1], [1], [0], [0], [0, 0, 1, 0], [], []>} : vector<12x8xf32>, vector<12x8xf32>, vector<12x12xf32> -> vector<12x12xf32>
    %cst_72 = arith.constant 0.353553385 : f32
    %161 = vector.broadcast %cst_72 : f32 to vector<12x12xf32>
    %162 = arith.mulf %160, %161 : vector<12x12xf32>
    %cst_73 = arith.constant -1.000000e+30 : f32
    %163 = vector.broadcast %cst_73 : f32 to vector<12x12xf32>
    %164 = arith.select %41, %162, %163 : vector<12x12xi1>, vector<12x12xf32>
    %cst_74 = arith.constant dense<0xFF800000> : vector<12xf32>
    %165 = vector.multi_reduction <maximumf>, %164, %cst_74 [1] : vector<12x12xf32> to vector<12xf32>
    %166 = vector.shape_cast %165 : vector<12xf32> to vector<12x1xf32>
    %167 = vector.broadcast %166 : vector<12x1xf32> to vector<12x12xf32>
    %168 = arith.subf %164, %167 : vector<12x12xf32>
    %169 = math.exp %168 : vector<12x12xf32>
    %cst_75 = arith.constant dense<0.000000e+00> : vector<12xf32>
    %170 = vector.multi_reduction <add>, %169, %cst_75 [1] : vector<12x12xf32> to vector<12xf32>
    %171 = vector.shape_cast %170 : vector<12xf32> to vector<12x1xf32>
    %172 = vector.broadcast %171 : vector<12x1xf32> to vector<12x12xf32>
    %173 = arith.divf %169, %172 : vector<12x12xf32>
    %cst_76 = arith.constant dense<0.000000e+00> : vector<12x8xf32>
    %174 = tpu.matmul %173, %159, %cst_76 {dimension_numbers = #tpu.dot_dimension_numbers<[1], [0], [0], [1], [0, 0, 1, 1], [], []>} : vector<12x12xf32>, vector<12x8xf32>, vector<12x8xf32> -> vector<12x8xf32>
    %175 = vector.extract_strided_slice %82 {offsets = [24, 0], sizes = [8, 32], strides = [1, 1]} : vector<32x32xf32> to vector<8x32xf32>
    %cst_77 = arith.constant dense<0.000000e+00> : vector<12x32xf32>
    %176 = tpu.matmul %174, %175, %cst_77 {dimension_numbers = #tpu.dot_dimension_numbers<[1], [0], [0], [1], [0, 0, 1, 1], [], []>} : vector<12x8xf32>, vector<8x32xf32>, vector<12x32xf32> -> vector<12x32xf32>
    %177 = arith.addf %156, %176 : vector<12x32xf32>
    %178 = vector.broadcast %83 : vector<1x32xf32> to vector<12x32xf32>
    %179 = arith.addf %177, %178 : vector<12x32xf32>
    %180 = arith.addf %38, %179 : vector<12x32xf32>
    %181 = vector.extract_strided_slice %43 {offsets = [1, 0], sizes = [1, 32], strides = [1, 1]} : vector<2x32xf32> to vector<1x32xf32>
    %182 = vector.extract_strided_slice %45 {offsets = [1, 0], sizes = [1, 32], strides = [1, 1]} : vector<2x32xf32> to vector<1x32xf32>
    %cst_78 = arith.constant dense<0.000000e+00> : vector<12xf32>
    %183 = vector.multi_reduction <add>, %180, %cst_78 [1] : vector<12x32xf32> to vector<12xf32>
    %184 = vector.shape_cast %183 : vector<12xf32> to vector<12x1xf32>
    %cst_79 = arith.constant 3.200000e+01 : f32
    %185 = vector.broadcast %cst_79 : f32 to vector<12x1xf32>
    %186 = arith.divf %184, %185 : vector<12x1xf32>
    %187 = vector.broadcast %186 : vector<12x1xf32> to vector<12x32xf32>
    %188 = arith.subf %180, %187 : vector<12x32xf32>
    %189 = arith.mulf %188, %188 : vector<12x32xf32>
    %cst_80 = arith.constant dense<0.000000e+00> : vector<12xf32>
    %190 = vector.multi_reduction <add>, %189, %cst_80 [1] : vector<12x32xf32> to vector<12xf32>
    %191 = vector.shape_cast %190 : vector<12xf32> to vector<12x1xf32>
    %cst_81 = arith.constant 3.200000e+01 : f32
    %192 = vector.broadcast %cst_81 : f32 to vector<12x1xf32>
    %193 = arith.divf %191, %192 : vector<12x1xf32>
    %194 = vector.broadcast %186 : vector<12x1xf32> to vector<12x32xf32>
    %195 = arith.subf %180, %194 : vector<12x32xf32>
    %cst_82 = arith.constant 9.99999996E-13 : f32
    %196 = vector.broadcast %cst_82 : f32 to vector<12x1xf32>
    %197 = arith.addf %193, %196 : vector<12x1xf32>
    %198 = math.rsqrt %197 : vector<12x1xf32>
    %199 = vector.broadcast %198 : vector<12x1xf32> to vector<12x32xf32>
    %200 = arith.mulf %195, %199 : vector<12x32xf32>
    %201 = vector.broadcast %181 : vector<1x32xf32> to vector<12x32xf32>
    %202 = arith.mulf %200, %201 : vector<12x32xf32>
    %203 = vector.broadcast %182 : vector<1x32xf32> to vector<12x32xf32>
    %204 = arith.addf %202, %203 : vector<12x32xf32>
    %c0_83 = arith.constant 0 : index
    %c0_84 = arith.constant 0 : index
    %c0_85 = arith.constant 0 : index
    %205 = vector.load %arg12[%c0_83, %c0_84, %c0_85] : memref<2x32x64xf32, #tpu.memory_space<vmem>>, vector<1x32x64xf32>
    %206 = vector.shape_cast %205 : vector<1x32x64xf32> to vector<32x64xf32>
    %c0_86 = arith.constant 0 : index
    %c0_87 = arith.constant 0 : index
    %c0_88 = arith.constant 0 : index
    %207 = vector.load %arg13[%c0_86, %c0_87, %c0_88] : memref<2x1x64xf32, #tpu.memory_space<vmem>>, vector<1x1x64xf32>
    %208 = vector.shape_cast %207 : vector<1x1x64xf32> to vector<1x64xf32>
    %c0_89 = arith.constant 0 : index
    %c0_90 = arith.constant 0 : index
    %c0_91 = arith.constant 0 : index
    %209 = vector.load %arg14[%c0_89, %c0_90, %c0_91] : memref<2x64x32xf32, #tpu.memory_space<vmem>>, vector<1x64x32xf32>
    %210 = vector.shape_cast %209 : vector<1x64x32xf32> to vector<64x32xf32>
    %c0_92 = arith.constant 0 : index
    %c0_93 = arith.constant 0 : index
    %c0_94 = arith.constant 0 : index
    %211 = vector.load %arg15[%c0_92, %c0_93, %c0_94] : memref<2x1x32xf32, #tpu.memory_space<vmem>>, vector<1x1x32xf32>
    %212 = vector.shape_cast %211 : vector<1x1x32xf32> to vector<1x32xf32>
    %cst_95 = arith.constant dense<0.000000e+00> : vector<12x64xf32>
    %213 = tpu.matmul %204, %206, %cst_95 {dimension_numbers = #tpu.dot_dimension_numbers<[1], [0], [0], [1], [0, 0, 1, 1], [], []>} : vector<12x32xf32>, vector<32x64xf32>, vector<12x64xf32> -> vector<12x64xf32>
    %214 = vector.broadcast %208 : vector<1x64xf32> to vector<12x64xf32>
    %215 = arith.addf %213, %214 : vector<12x64xf32>
    %cst_96 = arith.constant 0.000000e+00 : f32
    %216 = vector.broadcast %cst_96 : f32 to vector<12x64xf32>
    %217 = arith.maximumf %215, %216 : vector<12x64xf32>
    %cst_97 = arith.constant dense<0.000000e+00> : vector<12x32xf32>
    %218 = tpu.matmul %217, %210, %cst_97 {dimension_numbers = #tpu.dot_dimension_numbers<[1], [0], [0], [1], [0, 0, 1, 1], [], []>} : vector<12x64xf32>, vector<64x32xf32>, vector<12x32xf32> -> vector<12x32xf32>
    %219 = vector.broadcast %212 : vector<1x32xf32> to vector<12x32xf32>
    %220 = arith.addf %218, %219 : vector<12x32xf32>
    %221 = arith.addf %180, %220 : vector<12x32xf32>
    %c1_98 = arith.constant 1 : index
    %c0_99 = arith.constant 0 : index
    %c0_100 = arith.constant 0 : index
    %222 = vector.load %arg10[%c1_98, %c0_99, %c0_100] : memref<2x2x32xf32, #tpu.memory_space<vmem>>, vector<1x2x32xf32>
    %223 = vector.shape_cast %222 : vector<1x2x32xf32> to vector<2x32xf32>
    %c1_101 = arith.constant 1 : index
    %c0_102 = arith.constant 0 : index
    %c0_103 = arith.constant 0 : index
    %224 = vector.load %arg11[%c1_101, %c0_102, %c0_103] : memref<2x2x32xf32, #tpu.memory_space<vmem>>, vector<1x2x32xf32>
    %225 = vector.shape_cast %224 : vector<1x2x32xf32> to vector<2x32xf32>
    %c1_104 = arith.constant 1 : index
    %c0_105 = arith.constant 0 : index
    %c0_106 = arith.constant 0 : index
    %226 = vector.load %arg9[%c1_104, %c0_105, %c0_106] : memref<2x4x32xf32, #tpu.memory_space<vmem>>, vector<1x4x32xf32>
    %227 = vector.shape_cast %226 : vector<1x4x32xf32> to vector<4x32xf32>
    %228 = vector.extract_strided_slice %223 {offsets = [0, 0], sizes = [1, 32], strides = [1, 1]} : vector<2x32xf32> to vector<1x32xf32>
    %229 = vector.extract_strided_slice %225 {offsets = [0, 0], sizes = [1, 32], strides = [1, 1]} : vector<2x32xf32> to vector<1x32xf32>
    %cst_107 = arith.constant dense<0.000000e+00> : vector<12xf32>
    %230 = vector.multi_reduction <add>, %221, %cst_107 [1] : vector<12x32xf32> to vector<12xf32>
    %231 = vector.shape_cast %230 : vector<12xf32> to vector<12x1xf32>
    %cst_108 = arith.constant 3.200000e+01 : f32
    %232 = vector.broadcast %cst_108 : f32 to vector<12x1xf32>
    %233 = arith.divf %231, %232 : vector<12x1xf32>
    %234 = vector.broadcast %233 : vector<12x1xf32> to vector<12x32xf32>
    %235 = arith.subf %221, %234 : vector<12x32xf32>
    %236 = arith.mulf %235, %235 : vector<12x32xf32>
    %cst_109 = arith.constant dense<0.000000e+00> : vector<12xf32>
    %237 = vector.multi_reduction <add>, %236, %cst_109 [1] : vector<12x32xf32> to vector<12xf32>
    %238 = vector.shape_cast %237 : vector<12xf32> to vector<12x1xf32>
    %cst_110 = arith.constant 3.200000e+01 : f32
    %239 = vector.broadcast %cst_110 : f32 to vector<12x1xf32>
    %240 = arith.divf %238, %239 : vector<12x1xf32>
    %241 = vector.broadcast %233 : vector<12x1xf32> to vector<12x32xf32>
    %242 = arith.subf %221, %241 : vector<12x32xf32>
    %cst_111 = arith.constant 9.99999996E-13 : f32
    %243 = vector.broadcast %cst_111 : f32 to vector<12x1xf32>
    %244 = arith.addf %240, %243 : vector<12x1xf32>
    %245 = math.rsqrt %244 : vector<12x1xf32>
    %246 = vector.broadcast %245 : vector<12x1xf32> to vector<12x32xf32>
    %247 = arith.mulf %242, %246 : vector<12x32xf32>
    %248 = vector.broadcast %228 : vector<1x32xf32> to vector<12x32xf32>
    %249 = arith.mulf %247, %248 : vector<12x32xf32>
    %250 = vector.broadcast %229 : vector<1x32xf32> to vector<12x32xf32>
    %251 = arith.addf %249, %250 : vector<12x32xf32>
    %c1_112 = arith.constant 1 : index
    %c0_113 = arith.constant 0 : index
    %c0_114 = arith.constant 0 : index
    %c0_115 = arith.constant 0 : index
    %252 = vector.load %arg8[%c1_112, %c0_113, %c0_114, %c0_115] : memref<2x4x32x32xf32, #tpu.memory_space<vmem>>, vector<1x1x32x32xf32>
    %253 = vector.shape_cast %252 : vector<1x1x32x32xf32> to vector<32x32xf32>
    %254 = vector.extract_strided_slice %227 {offsets = [0, 0], sizes = [1, 32], strides = [1, 1]} : vector<4x32xf32> to vector<1x32xf32>
    %c1_116 = arith.constant 1 : index
    %c1_117 = arith.constant 1 : index
    %c0_118 = arith.constant 0 : index
    %c0_119 = arith.constant 0 : index
    %255 = vector.load %arg8[%c1_116, %c1_117, %c0_118, %c0_119] : memref<2x4x32x32xf32, #tpu.memory_space<vmem>>, vector<1x1x32x32xf32>
    %256 = vector.shape_cast %255 : vector<1x1x32x32xf32> to vector<32x32xf32>
    %257 = vector.extract_strided_slice %227 {offsets = [1, 0], sizes = [1, 32], strides = [1, 1]} : vector<4x32xf32> to vector<1x32xf32>
    %c1_120 = arith.constant 1 : index
    %c2_121 = arith.constant 2 : index
    %c0_122 = arith.constant 0 : index
    %c0_123 = arith.constant 0 : index
    %258 = vector.load %arg8[%c1_120, %c2_121, %c0_122, %c0_123] : memref<2x4x32x32xf32, #tpu.memory_space<vmem>>, vector<1x1x32x32xf32>
    %259 = vector.shape_cast %258 : vector<1x1x32x32xf32> to vector<32x32xf32>
    %260 = vector.extract_strided_slice %227 {offsets = [2, 0], sizes = [1, 32], strides = [1, 1]} : vector<4x32xf32> to vector<1x32xf32>
    %c1_124 = arith.constant 1 : index
    %c3_125 = arith.constant 3 : index
    %c0_126 = arith.constant 0 : index
    %c0_127 = arith.constant 0 : index
    %261 = vector.load %arg8[%c1_124, %c3_125, %c0_126, %c0_127] : memref<2x4x32x32xf32, #tpu.memory_space<vmem>>, vector<1x1x32x32xf32>
    %262 = vector.shape_cast %261 : vector<1x1x32x32xf32> to vector<32x32xf32>
    %263 = vector.extract_strided_slice %227 {offsets = [3, 0], sizes = [1, 32], strides = [1, 1]} : vector<4x32xf32> to vector<1x32xf32>
    %cst_128 = arith.constant dense<0.000000e+00> : vector<12x32xf32>
    %264 = tpu.matmul %251, %253, %cst_128 {dimension_numbers = #tpu.dot_dimension_numbers<[1], [0], [0], [1], [0, 0, 1, 1], [], []>} : vector<12x32xf32>, vector<32x32xf32>, vector<12x32xf32> -> vector<12x32xf32>
    %265 = vector.broadcast %254 : vector<1x32xf32> to vector<12x32xf32>
    %266 = arith.addf %264, %265 : vector<12x32xf32>
    %cst_129 = arith.constant dense<0.000000e+00> : vector<12x32xf32>
    %267 = tpu.matmul %251, %256, %cst_129 {dimension_numbers = #tpu.dot_dimension_numbers<[1], [0], [0], [1], [0, 0, 1, 1], [], []>} : vector<12x32xf32>, vector<32x32xf32>, vector<12x32xf32> -> vector<12x32xf32>
    %268 = vector.broadcast %257 : vector<1x32xf32> to vector<12x32xf32>
    %269 = arith.addf %267, %268 : vector<12x32xf32>
    %cst_130 = arith.constant dense<0.000000e+00> : vector<12x32xf32>
    %270 = tpu.matmul %251, %259, %cst_130 {dimension_numbers = #tpu.dot_dimension_numbers<[1], [0], [0], [1], [0, 0, 1, 1], [], []>} : vector<12x32xf32>, vector<32x32xf32>, vector<12x32xf32> -> vector<12x32xf32>
    %271 = vector.broadcast %260 : vector<1x32xf32> to vector<12x32xf32>
    %272 = arith.addf %270, %271 : vector<12x32xf32>
    %cst_131 = arith.constant 0.000000e+00 : f32
    %273 = vector.broadcast %cst_131 : f32 to vector<12x32xf32>
    %274 = vector.extract_strided_slice %266 {offsets = [0, 0], sizes = [12, 8], strides = [1, 1]} : vector<12x32xf32> to vector<12x8xf32>
    %275 = vector.extract_strided_slice %269 {offsets = [0, 0], sizes = [12, 8], strides = [1, 1]} : vector<12x32xf32> to vector<12x8xf32>
    %276 = vector.extract_strided_slice %272 {offsets = [0, 0], sizes = [12, 8], strides = [1, 1]} : vector<12x32xf32> to vector<12x8xf32>
    %cst_132 = arith.constant dense<0.000000e+00> : vector<12x12xf32>
    %277 = tpu.matmul %274, %275, %cst_132 {dimension_numbers = #tpu.dot_dimension_numbers<[1], [1], [0], [0], [0, 0, 1, 0], [], []>} : vector<12x8xf32>, vector<12x8xf32>, vector<12x12xf32> -> vector<12x12xf32>
    %cst_133 = arith.constant 0.353553385 : f32
    %278 = vector.broadcast %cst_133 : f32 to vector<12x12xf32>
    %279 = arith.mulf %277, %278 : vector<12x12xf32>
    %cst_134 = arith.constant -1.000000e+30 : f32
    %280 = vector.broadcast %cst_134 : f32 to vector<12x12xf32>
    %281 = arith.select %41, %279, %280 : vector<12x12xi1>, vector<12x12xf32>
    %cst_135 = arith.constant dense<0xFF800000> : vector<12xf32>
    %282 = vector.multi_reduction <maximumf>, %281, %cst_135 [1] : vector<12x12xf32> to vector<12xf32>
    %283 = vector.shape_cast %282 : vector<12xf32> to vector<12x1xf32>
    %284 = vector.broadcast %283 : vector<12x1xf32> to vector<12x12xf32>
    %285 = arith.subf %281, %284 : vector<12x12xf32>
    %286 = math.exp %285 : vector<12x12xf32>
    %cst_136 = arith.constant dense<0.000000e+00> : vector<12xf32>
    %287 = vector.multi_reduction <add>, %286, %cst_136 [1] : vector<12x12xf32> to vector<12xf32>
    %288 = vector.shape_cast %287 : vector<12xf32> to vector<12x1xf32>
    %289 = vector.broadcast %288 : vector<12x1xf32> to vector<12x12xf32>
    %290 = arith.divf %286, %289 : vector<12x12xf32>
    %cst_137 = arith.constant dense<0.000000e+00> : vector<12x8xf32>
    %291 = tpu.matmul %290, %276, %cst_137 {dimension_numbers = #tpu.dot_dimension_numbers<[1], [0], [0], [1], [0, 0, 1, 1], [], []>} : vector<12x12xf32>, vector<12x8xf32>, vector<12x8xf32> -> vector<12x8xf32>
    %292 = vector.extract_strided_slice %262 {offsets = [0, 0], sizes = [8, 32], strides = [1, 1]} : vector<32x32xf32> to vector<8x32xf32>
    %cst_138 = arith.constant dense<0.000000e+00> : vector<12x32xf32>
    %293 = tpu.matmul %291, %292, %cst_138 {dimension_numbers = #tpu.dot_dimension_numbers<[1], [0], [0], [1], [0, 0, 1, 1], [], []>} : vector<12x8xf32>, vector<8x32xf32>, vector<12x32xf32> -> vector<12x32xf32>
    %294 = arith.addf %273, %293 : vector<12x32xf32>
    %295 = vector.extract_strided_slice %266 {offsets = [0, 8], sizes = [12, 8], strides = [1, 1]} : vector<12x32xf32> to vector<12x8xf32>
    %296 = vector.extract_strided_slice %269 {offsets = [0, 8], sizes = [12, 8], strides = [1, 1]} : vector<12x32xf32> to vector<12x8xf32>
    %297 = vector.extract_strided_slice %272 {offsets = [0, 8], sizes = [12, 8], strides = [1, 1]} : vector<12x32xf32> to vector<12x8xf32>
    %cst_139 = arith.constant dense<0.000000e+00> : vector<12x12xf32>
    %298 = tpu.matmul %295, %296, %cst_139 {dimension_numbers = #tpu.dot_dimension_numbers<[1], [1], [0], [0], [0, 0, 1, 0], [], []>} : vector<12x8xf32>, vector<12x8xf32>, vector<12x12xf32> -> vector<12x12xf32>
    %cst_140 = arith.constant 0.353553385 : f32
    %299 = vector.broadcast %cst_140 : f32 to vector<12x12xf32>
    %300 = arith.mulf %298, %299 : vector<12x12xf32>
    %cst_141 = arith.constant -1.000000e+30 : f32
    %301 = vector.broadcast %cst_141 : f32 to vector<12x12xf32>
    %302 = arith.select %41, %300, %301 : vector<12x12xi1>, vector<12x12xf32>
    %cst_142 = arith.constant dense<0xFF800000> : vector<12xf32>
    %303 = vector.multi_reduction <maximumf>, %302, %cst_142 [1] : vector<12x12xf32> to vector<12xf32>
    %304 = vector.shape_cast %303 : vector<12xf32> to vector<12x1xf32>
    %305 = vector.broadcast %304 : vector<12x1xf32> to vector<12x12xf32>
    %306 = arith.subf %302, %305 : vector<12x12xf32>
    %307 = math.exp %306 : vector<12x12xf32>
    %cst_143 = arith.constant dense<0.000000e+00> : vector<12xf32>
    %308 = vector.multi_reduction <add>, %307, %cst_143 [1] : vector<12x12xf32> to vector<12xf32>
    %309 = vector.shape_cast %308 : vector<12xf32> to vector<12x1xf32>
    %310 = vector.broadcast %309 : vector<12x1xf32> to vector<12x12xf32>
    %311 = arith.divf %307, %310 : vector<12x12xf32>
    %cst_144 = arith.constant dense<0.000000e+00> : vector<12x8xf32>
    %312 = tpu.matmul %311, %297, %cst_144 {dimension_numbers = #tpu.dot_dimension_numbers<[1], [0], [0], [1], [0, 0, 1, 1], [], []>} : vector<12x12xf32>, vector<12x8xf32>, vector<12x8xf32> -> vector<12x8xf32>
    %313 = vector.extract_strided_slice %262 {offsets = [8, 0], sizes = [8, 32], strides = [1, 1]} : vector<32x32xf32> to vector<8x32xf32>
    %cst_145 = arith.constant dense<0.000000e+00> : vector<12x32xf32>
    %314 = tpu.matmul %312, %313, %cst_145 {dimension_numbers = #tpu.dot_dimension_numbers<[1], [0], [0], [1], [0, 0, 1, 1], [], []>} : vector<12x8xf32>, vector<8x32xf32>, vector<12x32xf32> -> vector<12x32xf32>
    %315 = arith.addf %294, %314 : vector<12x32xf32>
    %316 = vector.extract_strided_slice %266 {offsets = [0, 16], sizes = [12, 8], strides = [1, 1]} : vector<12x32xf32> to vector<12x8xf32>
    %317 = vector.extract_strided_slice %269 {offsets = [0, 16], sizes = [12, 8], strides = [1, 1]} : vector<12x32xf32> to vector<12x8xf32>
    %318 = vector.extract_strided_slice %272 {offsets = [0, 16], sizes = [12, 8], strides = [1, 1]} : vector<12x32xf32> to vector<12x8xf32>
    %cst_146 = arith.constant dense<0.000000e+00> : vector<12x12xf32>
    %319 = tpu.matmul %316, %317, %cst_146 {dimension_numbers = #tpu.dot_dimension_numbers<[1], [1], [0], [0], [0, 0, 1, 0], [], []>} : vector<12x8xf32>, vector<12x8xf32>, vector<12x12xf32> -> vector<12x12xf32>
    %cst_147 = arith.constant 0.353553385 : f32
    %320 = vector.broadcast %cst_147 : f32 to vector<12x12xf32>
    %321 = arith.mulf %319, %320 : vector<12x12xf32>
    %cst_148 = arith.constant -1.000000e+30 : f32
    %322 = vector.broadcast %cst_148 : f32 to vector<12x12xf32>
    %323 = arith.select %41, %321, %322 : vector<12x12xi1>, vector<12x12xf32>
    %cst_149 = arith.constant dense<0xFF800000> : vector<12xf32>
    %324 = vector.multi_reduction <maximumf>, %323, %cst_149 [1] : vector<12x12xf32> to vector<12xf32>
    %325 = vector.shape_cast %324 : vector<12xf32> to vector<12x1xf32>
    %326 = vector.broadcast %325 : vector<12x1xf32> to vector<12x12xf32>
    %327 = arith.subf %323, %326 : vector<12x12xf32>
    %328 = math.exp %327 : vector<12x12xf32>
    %cst_150 = arith.constant dense<0.000000e+00> : vector<12xf32>
    %329 = vector.multi_reduction <add>, %328, %cst_150 [1] : vector<12x12xf32> to vector<12xf32>
    %330 = vector.shape_cast %329 : vector<12xf32> to vector<12x1xf32>
    %331 = vector.broadcast %330 : vector<12x1xf32> to vector<12x12xf32>
    %332 = arith.divf %328, %331 : vector<12x12xf32>
    %cst_151 = arith.constant dense<0.000000e+00> : vector<12x8xf32>
    %333 = tpu.matmul %332, %318, %cst_151 {dimension_numbers = #tpu.dot_dimension_numbers<[1], [0], [0], [1], [0, 0, 1, 1], [], []>} : vector<12x12xf32>, vector<12x8xf32>, vector<12x8xf32> -> vector<12x8xf32>
    %334 = vector.extract_strided_slice %262 {offsets = [16, 0], sizes = [8, 32], strides = [1, 1]} : vector<32x32xf32> to vector<8x32xf32>
    %cst_152 = arith.constant dense<0.000000e+00> : vector<12x32xf32>
    %335 = tpu.matmul %333, %334, %cst_152 {dimension_numbers = #tpu.dot_dimension_numbers<[1], [0], [0], [1], [0, 0, 1, 1], [], []>} : vector<12x8xf32>, vector<8x32xf32>, vector<12x32xf32> -> vector<12x32xf32>
    %336 = arith.addf %315, %335 : vector<12x32xf32>
    %337 = vector.extract_strided_slice %266 {offsets = [0, 24], sizes = [12, 8], strides = [1, 1]} : vector<12x32xf32> to vector<12x8xf32>
    %338 = vector.extract_strided_slice %269 {offsets = [0, 24], sizes = [12, 8], strides = [1, 1]} : vector<12x32xf32> to vector<12x8xf32>
    %339 = vector.extract_strided_slice %272 {offsets = [0, 24], sizes = [12, 8], strides = [1, 1]} : vector<12x32xf32> to vector<12x8xf32>
    %cst_153 = arith.constant dense<0.000000e+00> : vector<12x12xf32>
    %340 = tpu.matmul %337, %338, %cst_153 {dimension_numbers = #tpu.dot_dimension_numbers<[1], [1], [0], [0], [0, 0, 1, 0], [], []>} : vector<12x8xf32>, vector<12x8xf32>, vector<12x12xf32> -> vector<12x12xf32>
    %cst_154 = arith.constant 0.353553385 : f32
    %341 = vector.broadcast %cst_154 : f32 to vector<12x12xf32>
    %342 = arith.mulf %340, %341 : vector<12x12xf32>
    %cst_155 = arith.constant -1.000000e+30 : f32
    %343 = vector.broadcast %cst_155 : f32 to vector<12x12xf32>
    %344 = arith.select %41, %342, %343 : vector<12x12xi1>, vector<12x12xf32>
    %cst_156 = arith.constant dense<0xFF800000> : vector<12xf32>
    %345 = vector.multi_reduction <maximumf>, %344, %cst_156 [1] : vector<12x12xf32> to vector<12xf32>
    %346 = vector.shape_cast %345 : vector<12xf32> to vector<12x1xf32>
    %347 = vector.broadcast %346 : vector<12x1xf32> to vector<12x12xf32>
    %348 = arith.subf %344, %347 : vector<12x12xf32>
    %349 = math.exp %348 : vector<12x12xf32>
    %cst_157 = arith.constant dense<0.000000e+00> : vector<12xf32>
    %350 = vector.multi_reduction <add>, %349, %cst_157 [1] : vector<12x12xf32> to vector<12xf32>
    %351 = vector.shape_cast %350 : vector<12xf32> to vector<12x1xf32>
    %352 = vector.broadcast %351 : vector<12x1xf32> to vector<12x12xf32>
    %353 = arith.divf %349, %352 : vector<12x12xf32>
    %cst_158 = arith.constant dense<0.000000e+00> : vector<12x8xf32>
    %354 = tpu.matmul %353, %339, %cst_158 {dimension_numbers = #tpu.dot_dimension_numbers<[1], [0], [0], [1], [0, 0, 1, 1], [], []>} : vector<12x12xf32>, vector<12x8xf32>, vector<12x8xf32> -> vector<12x8xf32>
    %355 = vector.extract_strided_slice %262 {offsets = [24, 0], sizes = [8, 32], strides = [1, 1]} : vector<32x32xf32> to vector<8x32xf32>
    %cst_159 = arith.constant dense<0.000000e+00> : vector<12x32xf32>
    %356 = tpu.matmul %354, %355, %cst_159 {dimension_numbers = #tpu.dot_dimension_numbers<[1], [0], [0], [1], [0, 0, 1, 1], [], []>} : vector<12x8xf32>, vector<8x32xf32>, vector<12x32xf32> -> vector<12x32xf32>
    %357 = arith.addf %336, %356 : vector<12x32xf32>
    %358 = vector.broadcast %263 : vector<1x32xf32> to vector<12x32xf32>
    %359 = arith.addf %357, %358 : vector<12x32xf32>
    %360 = arith.addf %221, %359 : vector<12x32xf32>
    %361 = vector.extract_strided_slice %223 {offsets = [1, 0], sizes = [1, 32], strides = [1, 1]} : vector<2x32xf32> to vector<1x32xf32>
    %362 = vector.extract_strided_slice %225 {offsets = [1, 0], sizes = [1, 32], strides = [1, 1]} : vector<2x32xf32> to vector<1x32xf32>
    %cst_160 = arith.constant dense<0.000000e+00> : vector<12xf32>
    %363 = vector.multi_reduction <add>, %360, %cst_160 [1] : vector<12x32xf32> to vector<12xf32>
    %364 = vector.shape_cast %363 : vector<12xf32> to vector<12x1xf32>
    %cst_161 = arith.constant 3.200000e+01 : f32
    %365 = vector.broadcast %cst_161 : f32 to vector<12x1xf32>
    %366 = arith.divf %364, %365 : vector<12x1xf32>
    %367 = vector.broadcast %366 : vector<12x1xf32> to vector<12x32xf32>
    %368 = arith.subf %360, %367 : vector<12x32xf32>
    %369 = arith.mulf %368, %368 : vector<12x32xf32>
    %cst_162 = arith.constant dense<0.000000e+00> : vector<12xf32>
    %370 = vector.multi_reduction <add>, %369, %cst_162 [1] : vector<12x32xf32> to vector<12xf32>
    %371 = vector.shape_cast %370 : vector<12xf32> to vector<12x1xf32>
    %cst_163 = arith.constant 3.200000e+01 : f32
    %372 = vector.broadcast %cst_163 : f32 to vector<12x1xf32>
    %373 = arith.divf %371, %372 : vector<12x1xf32>
    %374 = vector.broadcast %366 : vector<12x1xf32> to vector<12x32xf32>
    %375 = arith.subf %360, %374 : vector<12x32xf32>
    %cst_164 = arith.constant 9.99999996E-13 : f32
    %376 = vector.broadcast %cst_164 : f32 to vector<12x1xf32>
    %377 = arith.addf %373, %376 : vector<12x1xf32>
    %378 = math.rsqrt %377 : vector<12x1xf32>
    %379 = vector.broadcast %378 : vector<12x1xf32> to vector<12x32xf32>
    %380 = arith.mulf %375, %379 : vector<12x32xf32>
    %381 = vector.broadcast %361 : vector<1x32xf32> to vector<12x32xf32>
    %382 = arith.mulf %380, %381 : vector<12x32xf32>
    %383 = vector.broadcast %362 : vector<1x32xf32> to vector<12x32xf32>
    %384 = arith.addf %382, %383 : vector<12x32xf32>
    %c1_165 = arith.constant 1 : index
    %c0_166 = arith.constant 0 : index
    %c0_167 = arith.constant 0 : index
    %385 = vector.load %arg12[%c1_165, %c0_166, %c0_167] : memref<2x32x64xf32, #tpu.memory_space<vmem>>, vector<1x32x64xf32>
    %386 = vector.shape_cast %385 : vector<1x32x64xf32> to vector<32x64xf32>
    %c1_168 = arith.constant 1 : index
    %c0_169 = arith.constant 0 : index
    %c0_170 = arith.constant 0 : index
    %387 = vector.load %arg13[%c1_168, %c0_169, %c0_170] : memref<2x1x64xf32, #tpu.memory_space<vmem>>, vector<1x1x64xf32>
    %388 = vector.shape_cast %387 : vector<1x1x64xf32> to vector<1x64xf32>
    %c1_171 = arith.constant 1 : index
    %c0_172 = arith.constant 0 : index
    %c0_173 = arith.constant 0 : index
    %389 = vector.load %arg14[%c1_171, %c0_172, %c0_173] : memref<2x64x32xf32, #tpu.memory_space<vmem>>, vector<1x64x32xf32>
    %390 = vector.shape_cast %389 : vector<1x64x32xf32> to vector<64x32xf32>
    %c1_174 = arith.constant 1 : index
    %c0_175 = arith.constant 0 : index
    %c0_176 = arith.constant 0 : index
    %391 = vector.load %arg15[%c1_174, %c0_175, %c0_176] : memref<2x1x32xf32, #tpu.memory_space<vmem>>, vector<1x1x32xf32>
    %392 = vector.shape_cast %391 : vector<1x1x32xf32> to vector<1x32xf32>
    %cst_177 = arith.constant dense<0.000000e+00> : vector<12x64xf32>
    %393 = tpu.matmul %384, %386, %cst_177 {dimension_numbers = #tpu.dot_dimension_numbers<[1], [0], [0], [1], [0, 0, 1, 1], [], []>} : vector<12x32xf32>, vector<32x64xf32>, vector<12x64xf32> -> vector<12x64xf32>
    %394 = vector.broadcast %388 : vector<1x64xf32> to vector<12x64xf32>
    %395 = arith.addf %393, %394 : vector<12x64xf32>
    %cst_178 = arith.constant 0.000000e+00 : f32
    %396 = vector.broadcast %cst_178 : f32 to vector<12x64xf32>
    %397 = arith.maximumf %395, %396 : vector<12x64xf32>
    %cst_179 = arith.constant dense<0.000000e+00> : vector<12x32xf32>
    %398 = tpu.matmul %397, %390, %cst_179 {dimension_numbers = #tpu.dot_dimension_numbers<[1], [0], [0], [1], [0, 0, 1, 1], [], []>} : vector<12x64xf32>, vector<64x32xf32>, vector<12x32xf32> -> vector<12x32xf32>
    %399 = vector.broadcast %392 : vector<1x32xf32> to vector<12x32xf32>
    %400 = arith.addf %398, %399 : vector<12x32xf32>
    %401 = arith.addf %360, %400 : vector<12x32xf32>
    %c0_180 = arith.constant 0 : index
    %c0_181 = arith.constant 0 : index
    %402 = vector.load %arg16[%c0_180, %c0_181] : memref<1x32xf32, #tpu.memory_space<vmem>>, vector<1x32xf32>
    %c0_182 = arith.constant 0 : index
    %c0_183 = arith.constant 0 : index
    %403 = vector.load %arg17[%c0_182, %c0_183] : memref<1x32xf32, #tpu.memory_space<vmem>>, vector<1x32xf32>
    %cst_184 = arith.constant dense<0.000000e+00> : vector<12xf32>
    %404 = vector.multi_reduction <add>, %401, %cst_184 [1] : vector<12x32xf32> to vector<12xf32>
    %405 = vector.shape_cast %404 : vector<12xf32> to vector<12x1xf32>
    %cst_185 = arith.constant 3.200000e+01 : f32
    %406 = vector.broadcast %cst_185 : f32 to vector<12x1xf32>
    %407 = arith.divf %405, %406 : vector<12x1xf32>
    %408 = vector.broadcast %407 : vector<12x1xf32> to vector<12x32xf32>
    %409 = arith.subf %401, %408 : vector<12x32xf32>
    %410 = arith.mulf %409, %409 : vector<12x32xf32>
    %cst_186 = arith.constant dense<0.000000e+00> : vector<12xf32>
    %411 = vector.multi_reduction <add>, %410, %cst_186 [1] : vector<12x32xf32> to vector<12xf32>
    %412 = vector.shape_cast %411 : vector<12xf32> to vector<12x1xf32>
    %cst_187 = arith.constant 3.200000e+01 : f32
    %413 = vector.broadcast %cst_187 : f32 to vector<12x1xf32>
    %414 = arith.divf %412, %413 : vector<12x1xf32>
    %415 = vector.broadcast %407 : vector<12x1xf32> to vector<12x32xf32>
    %416 = arith.subf %401, %415 : vector<12x32xf32>
    %cst_188 = arith.constant 9.99999996E-13 : f32
    %417 = vector.broadcast %cst_188 : f32 to vector<12x1xf32>
    %418 = arith.addf %414, %417 : vector<12x1xf32>
    %419 = math.rsqrt %418 : vector<12x1xf32>
    %420 = vector.broadcast %419 : vector<12x1xf32> to vector<12x32xf32>
    %421 = arith.mulf %416, %420 : vector<12x32xf32>
    %422 = vector.broadcast %402 : vector<1x32xf32> to vector<12x32xf32>
    %423 = arith.mulf %421, %422 : vector<12x32xf32>
    %424 = vector.broadcast %403 : vector<1x32xf32> to vector<12x32xf32>
    %425 = arith.addf %423, %424 : vector<12x32xf32>
    %c0_189 = arith.constant 0 : index
    %c0_190 = arith.constant 0 : index
    %c0_191 = arith.constant 0 : index
    %426 = vector.load %arg20[%c0_189, %c0_190, %c0_191] : memref<1x12x32xf32, #tpu.memory_space<vmem>>, vector<1x12x32xf32>
    %427 = vector.shape_cast %426 : vector<1x12x32xf32> to vector<12x32xf32>
    %428 = vector.shape_cast %425 : vector<12x32xf32> to vector<1x12x32xf32>
    tpu.vector_store %arg20[%c0_189, %c0_190, %c0_191], %428 {strides = array<i32>} : memref<1x12x32xf32, #tpu.memory_space<vmem>>, vector<1x12x32xf32>,
    %c0_192 = arith.constant 0 : index
    %c0_193 = arith.constant 0 : index
    %429 = vector.load %arg18[%c0_192, %c0_193] : memref<32x128xf32, #tpu.memory_space<vmem>>, vector<32x128xf32>
    %c0_194 = arith.constant 0 : index
    %c0_195 = arith.constant 0 : index
    %430 = vector.load %arg19[%c0_194, %c0_195] : memref<1x128xf32, #tpu.memory_space<vmem>>, vector<1x128xf32>
    %cst_196 = arith.constant dense<0.000000e+00> : vector<12x128xf32>
    %431 = tpu.matmul %425, %429, %cst_196 {dimension_numbers = #tpu.dot_dimension_numbers<[1], [0], [0], [1], [0, 0, 1, 1], [], []>} : vector<12x32xf32>, vector<32x128xf32>, vector<12x128xf32> -> vector<12x128xf32>
    %432 = vector.broadcast %430 : vector<1x128xf32> to vector<12x128xf32>
    %433 = arith.addf %431, %432 : vector<12x128xf32>
    %cst_197 = arith.constant dense<0xFF800000> : vector<12xf32>
    %434 = vector.multi_reduction <maximumf>, %433, %cst_197 [1] : vector<12x128xf32> to vector<12xf32>
    %435 = vector.shape_cast %434 : vector<12xf32> to vector<12x1xf32>
    %436 = vector.broadcast %435 : vector<12x1xf32> to vector<12x128xf32>
    %437 = arith.subf %433, %436 : vector<12x128xf32>
    %438 = math.exp %437 : vector<12x128xf32>
    %cst_198 = arith.constant dense<0.000000e+00> : vector<12xf32>
    %439 = vector.multi_reduction <add>, %438, %cst_198 [1] : vector<12x128xf32> to vector<12xf32>
    %440 = vector.shape_cast %439 : vector<12xf32> to vector<12x1xf32>
    %441 = math.log %440 : vector<12x1xf32>
    %442 = vector.broadcast %441 : vector<12x1xf32> to vector<12x128xf32>
    %443 = arith.subf %437, %442 : vector<12x128xf32>
    %c0_199 = arith.constant 0 : index
    %c0_200 = arith.constant 0 : index
    %c0_201 = arith.constant 0 : index
    %444 = vector.load %arg21[%c0_199, %c0_200, %c0_201] : memref<1x12x128xf32, #tpu.memory_space<vmem>>, vector<1x12x128xf32>
    %445 = vector.shape_cast %444 : vector<1x12x128xf32> to vector<12x128xf32>
    %446 = vector.shape_cast %443 : vector<12x128xf32> to vector<1x12x128xf32>
    tpu.vector_store %arg21[%c0_199, %c0_200, %c0_201], %446 {strides = array<i32>} : memref<1x12x128xf32, #tpu.memory_space<vmem>>, vector<1x12x128xf32>,
    return
  }
  func.func @transform_0(%arg0: i32, %arg1: memref<2xi32, #tpu.memory_space<smem>>) -> (i32, i32, i32) {
    %c0_i32 = arith.constant 0 : i32
    %c0_i32_0 = arith.constant 0 : i32
    %c0_i32_1 = arith.constant 0 : i32
    return %arg0, %c0_i32, %c0_i32_0 : i32, i32, i32
  }
  func.func @transform_1(%arg0: i32, %arg1: memref<2xi32, #tpu.memory_space<smem>>) -> (i32, i32) {
    %c0_i32 = arith.constant 0 : i32
    %c0_i32_0 = arith.constant 0 : i32
    %c0_i32_1 = arith.constant 0 : i32
    return %c0_i32, %c0_i32_0 : i32, i32
  }
  func.func @transform_2(%arg0: i32, %arg1: memref<2xi32, #tpu.memory_space<smem>>) -> (i32, i32) {
    %c0_i32 = arith.constant 0 : i32
    %c0_i32_0 = arith.constant 0 : i32
    %c0_i32_1 = arith.constant 0 : i32
    return %c0_i32, %c0_i32_0 : i32, i32
  }
  func.func @transform_3(%arg0: i32, %arg1: memref<2xi32, #tpu.memory_space<smem>>) -> (i32, i32) {
    %c0_i32 = arith.constant 0 : i32
    %c0_i32_0 = arith.constant 0 : i32
    %c0_i32_1 = arith.constant 0 : i32
    return %c0_i32, %c0_i32_0 : i32, i32
  }
  func.func @transform_4(%arg0: i32, %arg1: memref<2xi32, #tpu.memory_space<smem>>) -> (i32, i32) {
    %c0_i32 = arith.constant 0 : i32
    %c0_i32_0 = arith.constant 0 : i32
    %c0_i32_1 = arith.constant 0 : i32
    return %c0_i32, %c0_i32_0 : i32, i32
  }
  func.func @transform_5(%arg0: i32, %arg1: memref<2xi32, #tpu.memory_space<smem>>) -> (i32, i32) {
    %c0_i32 = arith.constant 0 : i32
    %c0_i32_0 = arith.constant 0 : i32
    %c0_i32_1 = arith.constant 0 : i32
    return %c0_i32, %c0_i32_0 : i32, i32
  }
  func.func @transform_6(%arg0: i32, %arg1: memref<2xi32, #tpu.memory_space<smem>>) -> (i32, i32, i32, i32) {
    %c0_i32 = arith.constant 0 : i32
    %c0_i32_0 = arith.constant 0 : i32
    %c0_i32_1 = arith.constant 0 : i32
    %c0_i32_2 = arith.constant 0 : i32
    %c0_i32_3 = arith.constant 0 : i32
    return %c0_i32, %c0_i32_0, %c0_i32_1, %c0_i32_2 : i32, i32, i32, i32
  }
  func.func @transform_7(%arg0: i32, %arg1: memref<2xi32, #tpu.memory_space<smem>>) -> (i32, i32, i32) {
    %c0_i32 = arith.constant 0 : i32
    %c0_i32_0 = arith.constant 0 : i32
    %c0_i32_1 = arith.constant 0 : i32
    %c0_i32_2 = arith.constant 0 : i32
    return %c0_i32, %c0_i32_0, %c0_i32_1 : i32, i32, i32
  }
  func.func @transform_8(%arg0: i32, %arg1: memref<2xi32, #tpu.memory_space<smem>>) -> (i32, i32, i32) {
    %c0_i32 = arith.constant 0 : i32
    %c0_i32_0 = arith.constant 0 : i32
    %c0_i32_1 = arith.constant 0 : i32
    %c0_i32_2 = arith.constant 0 : i32
    return %c0_i32, %c0_i32_0, %c0_i32_1 : i32, i32, i32
  }
  func.func @transform_9(%arg0: i32, %arg1: memref<2xi32, #tpu.memory_space<smem>>) -> (i32, i32, i32) {
    %c0_i32 = arith.constant 0 : i32
    %c0_i32_0 = arith.constant 0 : i32
    %c0_i32_1 = arith.constant 0 : i32
    %c0_i32_2 = arith.constant 0 : i32
    return %c0_i32, %c0_i32_0, %c0_i32_1 : i32, i32, i32
  }
  func.func @transform_10(%arg0: i32, %arg1: memref<2xi32, #tpu.memory_space<smem>>) -> (i32, i32, i32) {
    %c0_i32 = arith.constant 0 : i32
    %c0_i32_0 = arith.constant 0 : i32
    %c0_i32_1 = arith.constant 0 : i32
    %c0_i32_2 = arith.constant 0 : i32
    return %c0_i32, %c0_i32_0, %c0_i32_1 : i32, i32, i32
  }
  func.func @transform_11(%arg0: i32, %arg1: memref<2xi32, #tpu.memory_space<smem>>) -> (i32, i32, i32) {
    %c0_i32 = arith.constant 0 : i32
    %c0_i32_0 = arith.constant 0 : i32
    %c0_i32_1 = arith.constant 0 : i32
    %c0_i32_2 = arith.constant 0 : i32
    return %c0_i32, %c0_i32_0, %c0_i32_1 : i32, i32, i32
  }
  func.func @transform_12(%arg0: i32, %arg1: memref<2xi32, #tpu.memory_space<smem>>) -> (i32, i32, i32) {
    %c0_i32 = arith.constant 0 : i32
    %c0_i32_0 = arith.constant 0 : i32
    %c0_i32_1 = arith.constant 0 : i32
    %c0_i32_2 = arith.constant 0 : i32
    return %c0_i32, %c0_i32_0, %c0_i32_1 : i32, i32, i32
  }
  func.func @transform_13(%arg0: i32, %arg1: memref<2xi32, #tpu.memory_space<smem>>) -> (i32, i32, i32) {
    %c0_i32 = arith.constant 0 : i32
    %c0_i32_0 = arith.constant 0 : i32
    %c0_i32_1 = arith.constant 0 : i32
    %c0_i32_2 = arith.constant 0 : i32
    return %c0_i32, %c0_i32_0, %c0_i32_1 : i32, i32, i32
  }
  func.func @transform_14(%arg0: i32, %arg1: memref<2xi32, #tpu.memory_space<smem>>) -> (i32, i32) {
    %c0_i32 = arith.constant 0 : i32
    %c0_i32_0 = arith.constant 0 : i32
    %c0_i32_1 = arith.constant 0 : i32
    return %c0_i32, %c0_i32_0 : i32, i32
  }
  func.func @transform_15(%arg0: i32, %arg1: memref<2xi32, #tpu.memory_space<smem>>) -> (i32, i32) {
    %c0_i32 = arith.constant 0 : i32
    %c0_i32_0 = arith.constant 0 : i32
    %c0_i32_1 = arith.constant 0 : i32
    return %c0_i32, %c0_i32_0 : i32, i32
  }
  func.func @transform_16(%arg0: i32, %arg1: memref<2xi32, #tpu.memory_space<smem>>) -> (i32, i32) {
    %c0_i32 = arith.constant 0 : i32
    %c0_i32_0 = arith.constant 0 : i32
    %c0_i32_1 = arith.constant 0 : i32
    return %c0_i32, %c0_i32_0 : i32, i32
  }
  func.func @transform_17(%arg0: i32, %arg1: memref<2xi32, #tpu.memory_space<smem>>) -> (i32, i32) {
    %c0_i32 = arith.constant 0 : i32
    %c0_i32_0 = arith.constant 0 : i32
    %c0_i32_1 = arith.constant 0 : i32
    return %c0_i32, %c0_i32_0 : i32, i32
  }
  func.func @transform_18(%arg0: i32, %arg1: memref<2xi32, #tpu.memory_space<smem>>) -> (i32, i32, i32) {
    %c0_i32 = arith.constant 0 : i32
    %c0_i32_0 = arith.constant 0 : i32
    %c0_i32_1 = arith.constant 0 : i32
    return %arg0, %c0_i32, %c0_i32_0 : i32, i32, i32
  }
  func.func @transform_19(%arg0: i32, %arg1: memref<2xi32, #tpu.memory_space<smem>>) -> (i32, i32, i32) {
    %c0_i32 = arith.constant 0 : i32
    %c0_i32_0 = arith.constant 0 : i32
    %c0_i32_1 = arith.constant 0 : i32
    return %arg0, %c0_i32, %c0_i32_0 : i32, i32, i32
  }
}

module attributes {stable_mosaic.version = 11 : i64} {
  func.func @_decoder_kernel(%arg0: i32, %arg1: memref<2xi32, #tpu.memory_space<smem>>, %arg2: memref<2xi32, #tpu.memory_space<smem>>, %arg3: memref<1x7x32xf32, #tpu.memory_space<vmem>>, %arg4: memref<1x12x32xf32, #tpu.memory_space<vmem>>, %arg5: memref<7x32xf32, #tpu.memory_space<vmem>>, %arg6: memref<2x4x32x32xf32, #tpu.memory_space<vmem>>, %arg7: memref<2x4x32xf32, #tpu.memory_space<vmem>>, %arg8: memref<2x4x32x32xf32, #tpu.memory_space<vmem>>, %arg9: memref<2x4x32xf32, #tpu.memory_space<vmem>>, %arg10: memref<2x3x32xf32, #tpu.memory_space<vmem>>, %arg11: memref<2x3x32xf32, #tpu.memory_space<vmem>>, %arg12: memref<2x32x64xf32, #tpu.memory_space<vmem>>, %arg13: memref<2x1x64xf32, #tpu.memory_space<vmem>>, %arg14: memref<2x64x32xf32, #tpu.memory_space<vmem>>, %arg15: memref<2x1x32xf32, #tpu.memory_space<vmem>>, %arg16: memref<1x32xf32, #tpu.memory_space<vmem>>, %arg17: memref<1x32xf32, #tpu.memory_space<vmem>>, %arg18: memref<32x128xf32, #tpu.memory_space<vmem>>, %arg19: memref<1x128xf32, #tpu.memory_space<vmem>>, %arg20: memref<1x7x128xf32, #tpu.memory_space<vmem>>) attributes {dimension_semantics = [#tpu.dimension_semantics<parallel>], iteration_bounds = array<i64: 2>, scalar_prefetch = 2 : i64, scratch_operands = 0 : i64, tpu.core_type = #tpu.core_type<tc>, window_params = [{transform_indices = @transform_0, window_bounds = array<i64: 1, 7, 32>}, {transform_indices = @transform_1, window_bounds = array<i64: 1, 12, 32>}, {pipeline_mode = #tpu.pipeline_mode<synchronous>, transform_indices = @transform_2, window_bounds = array<i64: 7, 32>}, {pipeline_mode = #tpu.pipeline_mode<synchronous>, transform_indices = @transform_3, window_bounds = array<i64: 2, 4, 32, 32>}, {pipeline_mode = #tpu.pipeline_mode<synchronous>, transform_indices = @transform_4, window_bounds = array<i64: 2, 4, 32>}, {pipeline_mode = #tpu.pipeline_mode<synchronous>, transform_indices = @transform_5, window_bounds = array<i64: 2, 4, 32, 32>}, {pipeline_mode = #tpu.pipeline_mode<synchronous>, transform_indices = @transform_6, window_bounds = array<i64: 2, 4, 32>}, {pipeline_mode = #tpu.pipeline_mode<synchronous>, transform_indices = @transform_7, window_bounds = array<i64: 2, 3, 32>}, {pipeline_mode = #tpu.pipeline_mode<synchronous>, transform_indices = @transform_8, window_bounds = array<i64: 2, 3, 32>}, {pipeline_mode = #tpu.pipeline_mode<synchronous>, transform_indices = @transform_9, window_bounds = array<i64: 2, 32, 64>}, {pipeline_mode = #tpu.pipeline_mode<synchronous>, transform_indices = @transform_10, window_bounds = array<i64: 2, 1, 64>}, {pipeline_mode = #tpu.pipeline_mode<synchronous>, transform_indices = @transform_11, window_bounds = array<i64: 2, 64, 32>}, {pipeline_mode = #tpu.pipeline_mode<synchronous>, transform_indices = @transform_12, window_bounds = array<i64: 2, 1, 32>}, {pipeline_mode = #tpu.pipeline_mode<synchronous>, transform_indices = @transform_13, window_bounds = array<i64: 1, 32>}, {pipeline_mode = #tpu.pipeline_mode<synchronous>, transform_indices = @transform_14, window_bounds = array<i64: 1, 32>}, {pipeline_mode = #tpu.pipeline_mode<synchronous>, transform_indices = @transform_15, window_bounds = array<i64: 32, 128>}, {pipeline_mode = #tpu.pipeline_mode<synchronous>, transform_indices = @transform_16, window_bounds = array<i64: 1, 128>}, {transform_indices = @transform_17, window_bounds = array<i64: 1, 7, 128>}]} {
    %0 = arith.index_cast %arg0 : i32 to index
    %1 = memref.load %arg1[%0] : memref<2xi32, #tpu.memory_space<smem>>
    %2 = arith.index_cast %arg0 : i32 to index
    %3 = memref.load %arg2[%2] : memref<2xi32, #tpu.memory_space<smem>>
    %c0 = arith.constant 0 : index
    %c0_0 = arith.constant 0 : index
    %c0_1 = arith.constant 0 : index
    %4 = vector.load %arg3[%c0, %c0_0, %c0_1] : memref<1x7x32xf32, #tpu.memory_space<vmem>>, vector<1x7x32xf32>
    %5 = vector.shape_cast %4 : vector<1x7x32xf32> to vector<7x32xf32>
    %cst = arith.constant 5.65685415 : f32
    %6 = vector.broadcast %cst : f32 to vector<7x32xf32>
    %7 = arith.mulf %5, %6 : vector<7x32xf32>
    %c0_2 = arith.constant 0 : index
    %c0_3 = arith.constant 0 : index
    %8 = vector.load %arg5[%c0_2, %c0_3] : memref<7x32xf32, #tpu.memory_space<vmem>>, vector<7x32xf32>
    %9 = arith.addf %7, %8 : vector<7x32xf32>
    %c0_4 = arith.constant 0 : index
    %c0_5 = arith.constant 0 : index
    %c0_6 = arith.constant 0 : index
    %10 = vector.load %arg4[%c0_4, %c0_5, %c0_6] : memref<1x12x32xf32, #tpu.memory_space<vmem>>, vector<1x12x32xf32>
    %11 = vector.shape_cast %10 : vector<1x12x32xf32> to vector<12x32xf32>
    %12 = tpu.iota {dimensions = array<i32: 0>} : vector<7x7xi32>
    %13 = tpu.iota {dimensions = array<i32: 1>} : vector<7x7xi32>
    %14 = arith.cmpi sle, %13, %12 : vector<7x7xi32>
    %15 = vector.broadcast %3 : i32 to vector<7x7xi32>
    %16 = arith.cmpi slt, %13, %15 : vector<7x7xi32>
    %17 = arith.andi %14, %16 : vector<7x7xi1>
    %18 = tpu.iota {dimensions = array<i32: 1>} : vector<7x12xi32>
    %19 = vector.broadcast %1 : i32 to vector<7x12xi32>
    %20 = arith.cmpi slt, %18, %19 : vector<7x12xi32>
    %c0_7 = arith.constant 0 : index
    %c0_8 = arith.constant 0 : index
    %c0_9 = arith.constant 0 : index
    %21 = vector.load %arg10[%c0_7, %c0_8, %c0_9] : memref<2x3x32xf32, #tpu.memory_space<vmem>>, vector<1x3x32xf32>
    %22 = vector.shape_cast %21 : vector<1x3x32xf32> to vector<3x32xf32>
    %c0_10 = arith.constant 0 : index
    %c0_11 = arith.constant 0 : index
    %c0_12 = arith.constant 0 : index
    %23 = vector.load %arg11[%c0_10, %c0_11, %c0_12] : memref<2x3x32xf32, #tpu.memory_space<vmem>>, vector<1x3x32xf32>
    %24 = vector.shape_cast %23 : vector<1x3x32xf32> to vector<3x32xf32>
    %c0_13 = arith.constant 0 : index
    %c0_14 = arith.constant 0 : index
    %c0_15 = arith.constant 0 : index
    %25 = vector.load %arg7[%c0_13, %c0_14, %c0_15] : memref<2x4x32xf32, #tpu.memory_space<vmem>>, vector<1x4x32xf32>
    %26 = vector.shape_cast %25 : vector<1x4x32xf32> to vector<4x32xf32>
    %c0_16 = arith.constant 0 : index
    %c0_17 = arith.constant 0 : index
    %c0_18 = arith.constant 0 : index
    %27 = vector.load %arg9[%c0_16, %c0_17, %c0_18] : memref<2x4x32xf32, #tpu.memory_space<vmem>>, vector<1x4x32xf32>
    %28 = vector.shape_cast %27 : vector<1x4x32xf32> to vector<4x32xf32>
    %29 = vector.extract_strided_slice %22 {offsets = [0, 0], sizes = [1, 32], strides = [1, 1]} : vector<3x32xf32> to vector<1x32xf32>
    %30 = vector.extract_strided_slice %24 {offsets = [0, 0], sizes = [1, 32], strides = [1, 1]} : vector<3x32xf32> to vector<1x32xf32>
    %cst_19 = arith.constant dense<0.000000e+00> : vector<7xf32>
    %31 = vector.multi_reduction <add>, %9, %cst_19 [1] : vector<7x32xf32> to vector<7xf32>
    %32 = vector.shape_cast %31 : vector<7xf32> to vector<7x1xf32>
    %cst_20 = arith.constant 3.200000e+01 : f32
    %33 = vector.broadcast %cst_20 : f32 to vector<7x1xf32>
    %34 = arith.divf %32, %33 : vector<7x1xf32>
    %35 = vector.broadcast %34 : vector<7x1xf32> to vector<7x32xf32>
    %36 = arith.subf %9, %35 : vector<7x32xf32>
    %37 = arith.mulf %36, %36 : vector<7x32xf32>
    %cst_21 = arith.constant dense<0.000000e+00> : vector<7xf32>
    %38 = vector.multi_reduction <add>, %37, %cst_21 [1] : vector<7x32xf32> to vector<7xf32>
    %39 = vector.shape_cast %38 : vector<7xf32> to vector<7x1xf32>
    %cst_22 = arith.constant 3.200000e+01 : f32
    %40 = vector.broadcast %cst_22 : f32 to vector<7x1xf32>
    %41 = arith.divf %39, %40 : vector<7x1xf32>
    %42 = vector.broadcast %34 : vector<7x1xf32> to vector<7x32xf32>
    %43 = arith.subf %9, %42 : vector<7x32xf32>
    %cst_23 = arith.constant 9.99999996E-13 : f32
    %44 = vector.broadcast %cst_23 : f32 to vector<7x1xf32>
    %45 = arith.addf %41, %44 : vector<7x1xf32>
    %46 = math.rsqrt %45 : vector<7x1xf32>
    %47 = vector.broadcast %46 : vector<7x1xf32> to vector<7x32xf32>
    %48 = arith.mulf %43, %47 : vector<7x32xf32>
    %49 = vector.broadcast %29 : vector<1x32xf32> to vector<7x32xf32>
    %50 = arith.mulf %48, %49 : vector<7x32xf32>
    %51 = vector.broadcast %30 : vector<1x32xf32> to vector<7x32xf32>
    %52 = arith.addf %50, %51 : vector<7x32xf32>
    %c0_24 = arith.constant 0 : index
    %c0_25 = arith.constant 0 : index
    %c0_26 = arith.constant 0 : index
    %c0_27 = arith.constant 0 : index
    %53 = vector.load %arg6[%c0_24, %c0_25, %c0_26, %c0_27] : memref<2x4x32x32xf32, #tpu.memory_space<vmem>>, vector<1x1x32x32xf32>
    %54 = vector.shape_cast %53 : vector<1x1x32x32xf32> to vector<32x32xf32>
    %55 = vector.extract_strided_slice %26 {offsets = [0, 0], sizes = [1, 32], strides = [1, 1]} : vector<4x32xf32> to vector<1x32xf32>
    %c0_28 = arith.constant 0 : index
    %c1 = arith.constant 1 : index
    %c0_29 = arith.constant 0 : index
    %c0_30 = arith.constant 0 : index
    %56 = vector.load %arg6[%c0_28, %c1, %c0_29, %c0_30] : memref<2x4x32x32xf32, #tpu.memory_space<vmem>>, vector<1x1x32x32xf32>
    %57 = vector.shape_cast %56 : vector<1x1x32x32xf32> to vector<32x32xf32>
    %58 = vector.extract_strided_slice %26 {offsets = [1, 0], sizes = [1, 32], strides = [1, 1]} : vector<4x32xf32> to vector<1x32xf32>
    %c0_31 = arith.constant 0 : index
    %c2 = arith.constant 2 : index
    %c0_32 = arith.constant 0 : index
    %c0_33 = arith.constant 0 : index
    %59 = vector.load %arg6[%c0_31, %c2, %c0_32, %c0_33] : memref<2x4x32x32xf32, #tpu.memory_space<vmem>>, vector<1x1x32x32xf32>
    %60 = vector.shape_cast %59 : vector<1x1x32x32xf32> to vector<32x32xf32>
    %61 = vector.extract_strided_slice %26 {offsets = [2, 0], sizes = [1, 32], strides = [1, 1]} : vector<4x32xf32> to vector<1x32xf32>
    %c0_34 = arith.constant 0 : index
    %c3 = arith.constant 3 : index
    %c0_35 = arith.constant 0 : index
    %c0_36 = arith.constant 0 : index
    %62 = vector.load %arg6[%c0_34, %c3, %c0_35, %c0_36] : memref<2x4x32x32xf32, #tpu.memory_space<vmem>>, vector<1x1x32x32xf32>
    %63 = vector.shape_cast %62 : vector<1x1x32x32xf32> to vector<32x32xf32>
    %64 = vector.extract_strided_slice %26 {offsets = [3, 0], sizes = [1, 32], strides = [1, 1]} : vector<4x32xf32> to vector<1x32xf32>
    %cst_37 = arith.constant dense<0.000000e+00> : vector<7x32xf32>
    %65 = tpu.matmul %52, %54, %cst_37 {dimension_numbers = #tpu.dot_dimension_numbers<[1], [0], [0], [1], [0, 0, 1, 1], [], []>} : vector<7x32xf32>, vector<32x32xf32>, vector<7x32xf32> -> vector<7x32xf32>
    %66 = vector.broadcast %55 : vector<1x32xf32> to vector<7x32xf32>
    %67 = arith.addf %65, %66 : vector<7x32xf32>
    %cst_38 = arith.constant dense<0.000000e+00> : vector<7x32xf32>
    %68 = tpu.matmul %52, %57, %cst_38 {dimension_numbers = #tpu.dot_dimension_numbers<[1], [0], [0], [1], [0, 0, 1, 1], [], []>} : vector<7x32xf32>, vector<32x32xf32>, vector<7x32xf32> -> vector<7x32xf32>
    %69 = vector.broadcast %58 : vector<1x32xf32> to vector<7x32xf32>
    %70 = arith.addf %68, %69 : vector<7x32xf32>
    %cst_39 = arith.constant dense<0.000000e+00> : vector<7x32xf32>
    %71 = tpu.matmul %52, %60, %cst_39 {dimension_numbers = #tpu.dot_dimension_numbers<[1], [0], [0], [1], [0, 0, 1, 1], [], []>} : vector<7x32xf32>, vector<32x32xf32>, vector<7x32xf32> -> vector<7x32xf32>
    %72 = vector.broadcast %61 : vector<1x32xf32> to vector<7x32xf32>
    %73 = arith.addf %71, %72 : vector<7x32xf32>
    %cst_40 = arith.constant 0.000000e+00 : f32
    %74 = vector.broadcast %cst_40 : f32 to vector<7x32xf32>
    %75 = vector.extract_strided_slice %67 {offsets = [0, 0], sizes = [7, 8], strides = [1, 1]} : vector<7x32xf32> to vector<7x8xf32>
    %76 = vector.extract_strided_slice %70 {offsets = [0, 0], sizes = [7, 8], strides = [1, 1]} : vector<7x32xf32> to vector<7x8xf32>
    %77 = vector.extract_strided_slice %73 {offsets = [0, 0], sizes = [7, 8], strides = [1, 1]} : vector<7x32xf32> to vector<7x8xf32>
    %cst_41 = arith.constant dense<0.000000e+00> : vector<7x7xf32>
    %78 = tpu.matmul %75, %76, %cst_41 {dimension_numbers = #tpu.dot_dimension_numbers<[1], [1], [0], [0], [0, 0, 1, 0], [], []>} : vector<7x8xf32>, vector<7x8xf32>, vector<7x7xf32> -> vector<7x7xf32>
    %cst_42 = arith.constant 0.353553385 : f32
    %79 = vector.broadcast %cst_42 : f32 to vector<7x7xf32>
    %80 = arith.mulf %78, %79 : vector<7x7xf32>
    %cst_43 = arith.constant -1.000000e+30 : f32
    %81 = vector.broadcast %cst_43 : f32 to vector<7x7xf32>
    %82 = arith.select %17, %80, %81 : vector<7x7xi1>, vector<7x7xf32>
    %cst_44 = arith.constant dense<0xFF800000> : vector<7xf32>
    %83 = vector.multi_reduction <maximumf>, %82, %cst_44 [1] : vector<7x7xf32> to vector<7xf32>
    %84 = vector.shape_cast %83 : vector<7xf32> to vector<7x1xf32>
    %85 = vector.broadcast %84 : vector<7x1xf32> to vector<7x7xf32>
    %86 = arith.subf %82, %85 : vector<7x7xf32>
    %87 = math.exp %86 : vector<7x7xf32>
    %cst_45 = arith.constant dense<0.000000e+00> : vector<7xf32>
    %88 = vector.multi_reduction <add>, %87, %cst_45 [1] : vector<7x7xf32> to vector<7xf32>
    %89 = vector.shape_cast %88 : vector<7xf32> to vector<7x1xf32>
    %90 = vector.broadcast %89 : vector<7x1xf32> to vector<7x7xf32>
    %91 = arith.divf %87, %90 : vector<7x7xf32>
    %cst_46 = arith.constant dense<0.000000e+00> : vector<7x8xf32>
    %92 = tpu.matmul %91, %77, %cst_46 {dimension_numbers = #tpu.dot_dimension_numbers<[1], [0], [0], [1], [0, 0, 1, 1], [], []>} : vector<7x7xf32>, vector<7x8xf32>, vector<7x8xf32> -> vector<7x8xf32>
    %93 = vector.extract_strided_slice %63 {offsets = [0, 0], sizes = [8, 32], strides = [1, 1]} : vector<32x32xf32> to vector<8x32xf32>
    %cst_47 = arith.constant dense<0.000000e+00> : vector<7x32xf32>
    %94 = tpu.matmul %92, %93, %cst_47 {dimension_numbers = #tpu.dot_dimension_numbers<[1], [0], [0], [1], [0, 0, 1, 1], [], []>} : vector<7x8xf32>, vector<8x32xf32>, vector<7x32xf32> -> vector<7x32xf32>
    %95 = arith.addf %74, %94 : vector<7x32xf32>
    %96 = vector.extract_strided_slice %67 {offsets = [0, 8], sizes = [7, 8], strides = [1, 1]} : vector<7x32xf32> to vector<7x8xf32>
    %97 = vector.extract_strided_slice %70 {offsets = [0, 8], sizes = [7, 8], strides = [1, 1]} : vector<7x32xf32> to vector<7x8xf32>
    %98 = vector.extract_strided_slice %73 {offsets = [0, 8], sizes = [7, 8], strides = [1, 1]} : vector<7x32xf32> to vector<7x8xf32>
    %cst_48 = arith.constant dense<0.000000e+00> : vector<7x7xf32>
    %99 = tpu.matmul %96, %97, %cst_48 {dimension_numbers = #tpu.dot_dimension_numbers<[1], [1], [0], [0], [0, 0, 1, 0], [], []>} : vector<7x8xf32>, vector<7x8xf32>, vector<7x7xf32> -> vector<7x7xf32>
    %cst_49 = arith.constant 0.353553385 : f32
    %100 = vector.broadcast %cst_49 : f32 to vector<7x7xf32>
    %101 = arith.mulf %99, %100 : vector<7x7xf32>
    %cst_50 = arith.constant -1.000000e+30 : f32
    %102 = vector.broadcast %cst_50 : f32 to vector<7x7xf32>
    %103 = arith.select %17, %101, %102 : vector<7x7xi1>, vector<7x7xf32>
    %cst_51 = arith.constant dense<0xFF800000> : vector<7xf32>
    %104 = vector.multi_reduction <maximumf>, %103, %cst_51 [1] : vector<7x7xf32> to vector<7xf32>
    %105 = vector.shape_cast %104 : vector<7xf32> to vector<7x1xf32>
    %106 = vector.broadcast %105 : vector<7x1xf32> to vector<7x7xf32>
    %107 = arith.subf %103, %106 : vector<7x7xf32>
    %108 = math.exp %107 : vector<7x7xf32>
    %cst_52 = arith.constant dense<0.000000e+00> : vector<7xf32>
    %109 = vector.multi_reduction <add>, %108, %cst_52 [1] : vector<7x7xf32> to vector<7xf32>
    %110 = vector.shape_cast %109 : vector<7xf32> to vector<7x1xf32>
    %111 = vector.broadcast %110 : vector<7x1xf32> to vector<7x7xf32>
    %112 = arith.divf %108, %111 : vector<7x7xf32>
    %cst_53 = arith.constant dense<0.000000e+00> : vector<7x8xf32>
    %113 = tpu.matmul %112, %98, %cst_53 {dimension_numbers = #tpu.dot_dimension_numbers<[1], [0], [0], [1], [0, 0, 1, 1], [], []>} : vector<7x7xf32>, vector<7x8xf32>, vector<7x8xf32> -> vector<7x8xf32>
    %114 = vector.extract_strided_slice %63 {offsets = [8, 0], sizes = [8, 32], strides = [1, 1]} : vector<32x32xf32> to vector<8x32xf32>
    %cst_54 = arith.constant dense<0.000000e+00> : vector<7x32xf32>
    %115 = tpu.matmul %113, %114, %cst_54 {dimension_numbers = #tpu.dot_dimension_numbers<[1], [0], [0], [1], [0, 0, 1, 1], [], []>} : vector<7x8xf32>, vector<8x32xf32>, vector<7x32xf32> -> vector<7x32xf32>
    %116 = arith.addf %95, %115 : vector<7x32xf32>
    %117 = vector.extract_strided_slice %67 {offsets = [0, 16], sizes = [7, 8], strides = [1, 1]} : vector<7x32xf32> to vector<7x8xf32>
    %118 = vector.extract_strided_slice %70 {offsets = [0, 16], sizes = [7, 8], strides = [1, 1]} : vector<7x32xf32> to vector<7x8xf32>
    %119 = vector.extract_strided_slice %73 {offsets = [0, 16], sizes = [7, 8], strides = [1, 1]} : vector<7x32xf32> to vector<7x8xf32>
    %cst_55 = arith.constant dense<0.000000e+00> : vector<7x7xf32>
    %120 = tpu.matmul %117, %118, %cst_55 {dimension_numbers = #tpu.dot_dimension_numbers<[1], [1], [0], [0], [0, 0, 1, 0], [], []>} : vector<7x8xf32>, vector<7x8xf32>, vector<7x7xf32> -> vector<7x7xf32>
    %cst_56 = arith.constant 0.353553385 : f32
    %121 = vector.broadcast %cst_56 : f32 to vector<7x7xf32>
    %122 = arith.mulf %120, %121 : vector<7x7xf32>
    %cst_57 = arith.constant -1.000000e+30 : f32
    %123 = vector.broadcast %cst_57 : f32 to vector<7x7xf32>
    %124 = arith.select %17, %122, %123 : vector<7x7xi1>, vector<7x7xf32>
    %cst_58 = arith.constant dense<0xFF800000> : vector<7xf32>
    %125 = vector.multi_reduction <maximumf>, %124, %cst_58 [1] : vector<7x7xf32> to vector<7xf32>
    %126 = vector.shape_cast %125 : vector<7xf32> to vector<7x1xf32>
    %127 = vector.broadcast %126 : vector<7x1xf32> to vector<7x7xf32>
    %128 = arith.subf %124, %127 : vector<7x7xf32>
    %129 = math.exp %128 : vector<7x7xf32>
    %cst_59 = arith.constant dense<0.000000e+00> : vector<7xf32>
    %130 = vector.multi_reduction <add>, %129, %cst_59 [1] : vector<7x7xf32> to vector<7xf32>
    %131 = vector.shape_cast %130 : vector<7xf32> to vector<7x1xf32>
    %132 = vector.broadcast %131 : vector<7x1xf32> to vector<7x7xf32>
    %133 = arith.divf %129, %132 : vector<7x7xf32>
    %cst_60 = arith.constant dense<0.000000e+00> : vector<7x8xf32>
    %134 = tpu.matmul %133, %119, %cst_60 {dimension_numbers = #tpu.dot_dimension_numbers<[1], [0], [0], [1], [0, 0, 1, 1], [], []>} : vector<7x7xf32>, vector<7x8xf32>, vector<7x8xf32> -> vector<7x8xf32>
    %135 = vector.extract_strided_slice %63 {offsets = [16, 0], sizes = [8, 32], strides = [1, 1]} : vector<32x32xf32> to vector<8x32xf32>
    %cst_61 = arith.constant dense<0.000000e+00> : vector<7x32xf32>
    %136 = tpu.matmul %134, %135, %cst_61 {dimension_numbers = #tpu.dot_dimension_numbers<[1], [0], [0], [1], [0, 0, 1, 1], [], []>} : vector<7x8xf32>, vector<8x32xf32>, vector<7x32xf32> -> vector<7x32xf32>
    %137 = arith.addf %116, %136 : vector<7x32xf32>
    %138 = vector.extract_strided_slice %67 {offsets = [0, 24], sizes = [7, 8], strides = [1, 1]} : vector<7x32xf32> to vector<7x8xf32>
    %139 = vector.extract_strided_slice %70 {offsets = [0, 24], sizes = [7, 8], strides = [1, 1]} : vector<7x32xf32> to vector<7x8xf32>
    %140 = vector.extract_strided_slice %73 {offsets = [0, 24], sizes = [7, 8], strides = [1, 1]} : vector<7x32xf32> to vector<7x8xf32>
    %cst_62 = arith.constant dense<0.000000e+00> : vector<7x7xf32>
    %141 = tpu.matmul %138, %139, %cst_62 {dimension_numbers = #tpu.dot_dimension_numbers<[1], [1], [0], [0], [0, 0, 1, 0], [], []>} : vector<7x8xf32>, vector<7x8xf32>, vector<7x7xf32> -> vector<7x7xf32>
    %cst_63 = arith.constant 0.353553385 : f32
    %142 = vector.broadcast %cst_63 : f32 to vector<7x7xf32>
    %143 = arith.mulf %141, %142 : vector<7x7xf32>
    %cst_64 = arith.constant -1.000000e+30 : f32
    %144 = vector.broadcast %cst_64 : f32 to vector<7x7xf32>
    %145 = arith.select %17, %143, %144 : vector<7x7xi1>, vector<7x7xf32>
    %cst_65 = arith.constant dense<0xFF800000> : vector<7xf32>
    %146 = vector.multi_reduction <maximumf>, %145, %cst_65 [1] : vector<7x7xf32> to vector<7xf32>
    %147 = vector.shape_cast %146 : vector<7xf32> to vector<7x1xf32>
    %148 = vector.broadcast %147 : vector<7x1xf32> to vector<7x7xf32>
    %149 = arith.subf %145, %148 : vector<7x7xf32>
    %150 = math.exp %149 : vector<7x7xf32>
    %cst_66 = arith.constant dense<0.000000e+00> : vector<7xf32>
    %151 = vector.multi_reduction <add>, %150, %cst_66 [1] : vector<7x7xf32> to vector<7xf32>
    %152 = vector.shape_cast %151 : vector<7xf32> to vector<7x1xf32>
    %153 = vector.broadcast %152 : vector<7x1xf32> to vector<7x7xf32>
    %154 = arith.divf %150, %153 : vector<7x7xf32>
    %cst_67 = arith.constant dense<0.000000e+00> : vector<7x8xf32>
    %155 = tpu.matmul %154, %140, %cst_67 {dimension_numbers = #tpu.dot_dimension_numbers<[1], [0], [0], [1], [0, 0, 1, 1], [], []>} : vector<7x7xf32>, vector<7x8xf32>, vector<7x8xf32> -> vector<7x8xf32>
    %156 = vector.extract_strided_slice %63 {offsets = [24, 0], sizes = [8, 32], strides = [1, 1]} : vector<32x32xf32> to vector<8x32xf32>
    %cst_68 = arith.constant dense<0.000000e+00> : vector<7x32xf32>
    %157 = tpu.matmul %155, %156, %cst_68 {dimension_numbers = #tpu.dot_dimension_numbers<[1], [0], [0], [1], [0, 0, 1, 1], [], []>} : vector<7x8xf32>, vector<8x32xf32>, vector<7x32xf32> -> vector<7x32xf32>
    %158 = arith.addf %137, %157 : vector<7x32xf32>
    %159 = vector.broadcast %64 : vector<1x32xf32> to vector<7x32xf32>
    %160 = arith.addf %158, %159 : vector<7x32xf32>
    %161 = arith.addf %9, %160 : vector<7x32xf32>
    %162 = vector.extract_strided_slice %22 {offsets = [1, 0], sizes = [1, 32], strides = [1, 1]} : vector<3x32xf32> to vector<1x32xf32>
    %163 = vector.extract_strided_slice %24 {offsets = [1, 0], sizes = [1, 32], strides = [1, 1]} : vector<3x32xf32> to vector<1x32xf32>
    %cst_69 = arith.constant dense<0.000000e+00> : vector<7xf32>
    %164 = vector.multi_reduction <add>, %161, %cst_69 [1] : vector<7x32xf32> to vector<7xf32>
    %165 = vector.shape_cast %164 : vector<7xf32> to vector<7x1xf32>
    %cst_70 = arith.constant 3.200000e+01 : f32
    %166 = vector.broadcast %cst_70 : f32 to vector<7x1xf32>
    %167 = arith.divf %165, %166 : vector<7x1xf32>
    %168 = vector.broadcast %167 : vector<7x1xf32> to vector<7x32xf32>
    %169 = arith.subf %161, %168 : vector<7x32xf32>
    %170 = arith.mulf %169, %169 : vector<7x32xf32>
    %cst_71 = arith.constant dense<0.000000e+00> : vector<7xf32>
    %171 = vector.multi_reduction <add>, %170, %cst_71 [1] : vector<7x32xf32> to vector<7xf32>
    %172 = vector.shape_cast %171 : vector<7xf32> to vector<7x1xf32>
    %cst_72 = arith.constant 3.200000e+01 : f32
    %173 = vector.broadcast %cst_72 : f32 to vector<7x1xf32>
    %174 = arith.divf %172, %173 : vector<7x1xf32>
    %175 = vector.broadcast %167 : vector<7x1xf32> to vector<7x32xf32>
    %176 = arith.subf %161, %175 : vector<7x32xf32>
    %cst_73 = arith.constant 9.99999996E-13 : f32
    %177 = vector.broadcast %cst_73 : f32 to vector<7x1xf32>
    %178 = arith.addf %174, %177 : vector<7x1xf32>
    %179 = math.rsqrt %178 : vector<7x1xf32>
    %180 = vector.broadcast %179 : vector<7x1xf32> to vector<7x32xf32>
    %181 = arith.mulf %176, %180 : vector<7x32xf32>
    %182 = vector.broadcast %162 : vector<1x32xf32> to vector<7x32xf32>
    %183 = arith.mulf %181, %182 : vector<7x32xf32>
    %184 = vector.broadcast %163 : vector<1x32xf32> to vector<7x32xf32>
    %185 = arith.addf %183, %184 : vector<7x32xf32>
    %c0_74 = arith.constant 0 : index
    %c0_75 = arith.constant 0 : index
    %c0_76 = arith.constant 0 : index
    %c0_77 = arith.constant 0 : index
    %186 = vector.load %arg8[%c0_74, %c0_75, %c0_76, %c0_77] : memref<2x4x32x32xf32, #tpu.memory_space<vmem>>, vector<1x1x32x32xf32>
    %187 = vector.shape_cast %186 : vector<1x1x32x32xf32> to vector<32x32xf32>
    %188 = vector.extract_strided_slice %28 {offsets = [0, 0], sizes = [1, 32], strides = [1, 1]} : vector<4x32xf32> to vector<1x32xf32>
    %c0_78 = arith.constant 0 : index
    %c1_79 = arith.constant 1 : index
    %c0_80 = arith.constant 0 : index
    %c0_81 = arith.constant 0 : index
    %189 = vector.load %arg8[%c0_78, %c1_79, %c0_80, %c0_81] : memref<2x4x32x32xf32, #tpu.memory_space<vmem>>, vector<1x1x32x32xf32>
    %190 = vector.shape_cast %189 : vector<1x1x32x32xf32> to vector<32x32xf32>
    %191 = vector.extract_strided_slice %28 {offsets = [1, 0], sizes = [1, 32], strides = [1, 1]} : vector<4x32xf32> to vector<1x32xf32>
    %c0_82 = arith.constant 0 : index
    %c2_83 = arith.constant 2 : index
    %c0_84 = arith.constant 0 : index
    %c0_85 = arith.constant 0 : index
    %192 = vector.load %arg8[%c0_82, %c2_83, %c0_84, %c0_85] : memref<2x4x32x32xf32, #tpu.memory_space<vmem>>, vector<1x1x32x32xf32>
    %193 = vector.shape_cast %192 : vector<1x1x32x32xf32> to vector<32x32xf32>
    %194 = vector.extract_strided_slice %28 {offsets = [2, 0], sizes = [1, 32], strides = [1, 1]} : vector<4x32xf32> to vector<1x32xf32>
    %c0_86 = arith.constant 0 : index
    %c3_87 = arith.constant 3 : index
    %c0_88 = arith.constant 0 : index
    %c0_89 = arith.constant 0 : index
    %195 = vector.load %arg8[%c0_86, %c3_87, %c0_88, %c0_89] : memref<2x4x32x32xf32, #tpu.memory_space<vmem>>, vector<1x1x32x32xf32>
    %196 = vector.shape_cast %195 : vector<1x1x32x32xf32> to vector<32x32xf32>
    %197 = vector.extract_strided_slice %28 {offsets = [3, 0], sizes = [1, 32], strides = [1, 1]} : vector<4x32xf32> to vector<1x32xf32>
    %cst_90 = arith.constant dense<0.000000e+00> : vector<7x32xf32>
    %198 = tpu.matmul %185, %187, %cst_90 {dimension_numbers = #tpu.dot_dimension_numbers<[1], [0], [0], [1], [0, 0, 1, 1], [], []>} : vector<7x32xf32>, vector<32x32xf32>, vector<7x32xf32> -> vector<7x32xf32>
    %199 = vector.broadcast %188 : vector<1x32xf32> to vector<7x32xf32>
    %200 = arith.addf %198, %199 : vector<7x32xf32>
    %cst_91 = arith.constant dense<0.000000e+00> : vector<12x32xf32>
    %201 = tpu.matmul %11, %190, %cst_91 {dimension_numbers = #tpu.dot_dimension_numbers<[1], [0], [0], [1], [0, 0, 1, 1], [], []>} : vector<12x32xf32>, vector<32x32xf32>, vector<12x32xf32> -> vector<12x32xf32>
    %202 = vector.broadcast %191 : vector<1x32xf32> to vector<12x32xf32>
    %203 = arith.addf %201, %202 : vector<12x32xf32>
    %cst_92 = arith.constant dense<0.000000e+00> : vector<12x32xf32>
    %204 = tpu.matmul %11, %193, %cst_92 {dimension_numbers = #tpu.dot_dimension_numbers<[1], [0], [0], [1], [0, 0, 1, 1], [], []>} : vector<12x32xf32>, vector<32x32xf32>, vector<12x32xf32> -> vector<12x32xf32>
    %205 = vector.broadcast %194 : vector<1x32xf32> to vector<12x32xf32>
    %206 = arith.addf %204, %205 : vector<12x32xf32>
    %cst_93 = arith.constant 0.000000e+00 : f32
    %207 = vector.broadcast %cst_93 : f32 to vector<7x32xf32>
    %208 = vector.extract_strided_slice %200 {offsets = [0, 0], sizes = [7, 8], strides = [1, 1]} : vector<7x32xf32> to vector<7x8xf32>
    %209 = vector.extract_strided_slice %203 {offsets = [0, 0], sizes = [12, 8], strides = [1, 1]} : vector<12x32xf32> to vector<12x8xf32>
    %210 = vector.extract_strided_slice %206 {offsets = [0, 0], sizes = [12, 8], strides = [1, 1]} : vector<12x32xf32> to vector<12x8xf32>
    %cst_94 = arith.constant dense<0.000000e+00> : vector<7x12xf32>
    %211 = tpu.matmul %208, %209, %cst_94 {dimension_numbers = #tpu.dot_dimension_numbers<[1], [1], [0], [0], [0, 0, 1, 0], [], []>} : vector<7x8xf32>, vector<12x8xf32>, vector<7x12xf32> -> vector<7x12xf32>
    %cst_95 = arith.constant 0.353553385 : f32
    %212 = vector.broadcast %cst_95 : f32 to vector<7x12xf32>
    %213 = arith.mulf %211, %212 : vector<7x12xf32>
    %cst_96 = arith.constant -1.000000e+30 : f32
    %214 = vector.broadcast %cst_96 : f32 to vector<7x12xf32>
    %215 = arith.select %20, %213, %214 : vector<7x12xi1>, vector<7x12xf32>
    %cst_97 = arith.constant dense<0xFF800000> : vector<7xf32>
    %216 = vector.multi_reduction <maximumf>, %215, %cst_97 [1] : vector<7x12xf32> to vector<7xf32>
    %217 = vector.shape_cast %216 : vector<7xf32> to vector<7x1xf32>
    %218 = vector.broadcast %217 : vector<7x1xf32> to vector<7x12xf32>
    %219 = arith.subf %215, %218 : vector<7x12xf32>
    %220 = math.exp %219 : vector<7x12xf32>
    %cst_98 = arith.constant dense<0.000000e+00> : vector<7xf32>
    %221 = vector.multi_reduction <add>, %220, %cst_98 [1] : vector<7x12xf32> to vector<7xf32>
    %222 = vector.shape_cast %221 : vector<7xf32> to vector<7x1xf32>
    %223 = vector.broadcast %222 : vector<7x1xf32> to vector<7x12xf32>
    %224 = arith.divf %220, %223 : vector<7x12xf32>
    %cst_99 = arith.constant dense<0.000000e+00> : vector<7x8xf32>
    %225 = tpu.matmul %224, %210, %cst_99 {dimension_numbers = #tpu.dot_dimension_numbers<[1], [0], [0], [1], [0, 0, 1, 1], [], []>} : vector<7x12xf32>, vector<12x8xf32>, vector<7x8xf32> -> vector<7x8xf32>
    %226 = vector.extract_strided_slice %196 {offsets = [0, 0], sizes = [8, 32], strides = [1, 1]} : vector<32x32xf32> to vector<8x32xf32>
    %cst_100 = arith.constant dense<0.000000e+00> : vector<7x32xf32>
    %227 = tpu.matmul %225, %226, %cst_100 {dimension_numbers = #tpu.dot_dimension_numbers<[1], [0], [0], [1], [0, 0, 1, 1], [], []>} : vector<7x8xf32>, vector<8x32xf32>, vector<7x32xf32> -> vector<7x32xf32>
    %228 = arith.addf %207, %227 : vector<7x32xf32>
    %229 = vector.extract_strided_slice %200 {offsets = [0, 8], sizes = [7, 8], strides = [1, 1]} : vector<7x32xf32> to vector<7x8xf32>
    %230 = vector.extract_strided_slice %203 {offsets = [0, 8], sizes = [12, 8], strides = [1, 1]} : vector<12x32xf32> to vector<12x8xf32>
    %231 = vector.extract_strided_slice %206 {offsets = [0, 8], sizes = [12, 8], strides = [1, 1]} : vector<12x32xf32> to vector<12x8xf32>
    %cst_101 = arith.constant dense<0.000000e+00> : vector<7x12xf32>
    %232 = tpu.matmul %229, %230, %cst_101 {dimension_numbers = #tpu.dot_dimension_numbers<[1], [1], [0], [0], [0, 0, 1, 0], [], []>} : vector<7x8xf32>, vector<12x8xf32>, vector<7x12xf32> -> vector<7x12xf32>
    %cst_102 = arith.constant 0.353553385 : f32
    %233 = vector.broadcast %cst_102 : f32 to vector<7x12xf32>
    %234 = arith.mulf %232, %233 : vector<7x12xf32>
    %cst_103 = arith.constant -1.000000e+30 : f32
    %235 = vector.broadcast %cst_103 : f32 to vector<7x12xf32>
    %236 = arith.select %20, %234, %235 : vector<7x12xi1>, vector<7x12xf32>
    %cst_104 = arith.constant dense<0xFF800000> : vector<7xf32>
    %237 = vector.multi_reduction <maximumf>, %236, %cst_104 [1] : vector<7x12xf32> to vector<7xf32>
    %238 = vector.shape_cast %237 : vector<7xf32> to vector<7x1xf32>
    %239 = vector.broadcast %238 : vector<7x1xf32> to vector<7x12xf32>
    %240 = arith.subf %236, %239 : vector<7x12xf32>
    %241 = math.exp %240 : vector<7x12xf32>
    %cst_105 = arith.constant dense<0.000000e+00> : vector<7xf32>
    %242 = vector.multi_reduction <add>, %241, %cst_105 [1] : vector<7x12xf32> to vector<7xf32>
    %243 = vector.shape_cast %242 : vector<7xf32> to vector<7x1xf32>
    %244 = vector.broadcast %243 : vector<7x1xf32> to vector<7x12xf32>
    %245 = arith.divf %241, %244 : vector<7x12xf32>
    %cst_106 = arith.constant dense<0.000000e+00> : vector<7x8xf32>
    %246 = tpu.matmul %245, %231, %cst_106 {dimension_numbers = #tpu.dot_dimension_numbers<[1], [0], [0], [1], [0, 0, 1, 1], [], []>} : vector<7x12xf32>, vector<12x8xf32>, vector<7x8xf32> -> vector<7x8xf32>
    %247 = vector.extract_strided_slice %196 {offsets = [8, 0], sizes = [8, 32], strides = [1, 1]} : vector<32x32xf32> to vector<8x32xf32>
    %cst_107 = arith.constant dense<0.000000e+00> : vector<7x32xf32>
    %248 = tpu.matmul %246, %247, %cst_107 {dimension_numbers = #tpu.dot_dimension_numbers<[1], [0], [0], [1], [0, 0, 1, 1], [], []>} : vector<7x8xf32>, vector<8x32xf32>, vector<7x32xf32> -> vector<7x32xf32>
    %249 = arith.addf %228, %248 : vector<7x32xf32>
    %250 = vector.extract_strided_slice %200 {offsets = [0, 16], sizes = [7, 8], strides = [1, 1]} : vector<7x32xf32> to vector<7x8xf32>
    %251 = vector.extract_strided_slice %203 {offsets = [0, 16], sizes = [12, 8], strides = [1, 1]} : vector<12x32xf32> to vector<12x8xf32>
    %252 = vector.extract_strided_slice %206 {offsets = [0, 16], sizes = [12, 8], strides = [1, 1]} : vector<12x32xf32> to vector<12x8xf32>
    %cst_108 = arith.constant dense<0.000000e+00> : vector<7x12xf32>
    %253 = tpu.matmul %250, %251, %cst_108 {dimension_numbers = #tpu.dot_dimension_numbers<[1], [1], [0], [0], [0, 0, 1, 0], [], []>} : vector<7x8xf32>, vector<12x8xf32>, vector<7x12xf32> -> vector<7x12xf32>
    %cst_109 = arith.constant 0.353553385 : f32
    %254 = vector.broadcast %cst_109 : f32 to vector<7x12xf32>
    %255 = arith.mulf %253, %254 : vector<7x12xf32>
    %cst_110 = arith.constant -1.000000e+30 : f32
    %256 = vector.broadcast %cst_110 : f32 to vector<7x12xf32>
    %257 = arith.select %20, %255, %256 : vector<7x12xi1>, vector<7x12xf32>
    %cst_111 = arith.constant dense<0xFF800000> : vector<7xf32>
    %258 = vector.multi_reduction <maximumf>, %257, %cst_111 [1] : vector<7x12xf32> to vector<7xf32>
    %259 = vector.shape_cast %258 : vector<7xf32> to vector<7x1xf32>
    %260 = vector.broadcast %259 : vector<7x1xf32> to vector<7x12xf32>
    %261 = arith.subf %257, %260 : vector<7x12xf32>
    %262 = math.exp %261 : vector<7x12xf32>
    %cst_112 = arith.constant dense<0.000000e+00> : vector<7xf32>
    %263 = vector.multi_reduction <add>, %262, %cst_112 [1] : vector<7x12xf32> to vector<7xf32>
    %264 = vector.shape_cast %263 : vector<7xf32> to vector<7x1xf32>
    %265 = vector.broadcast %264 : vector<7x1xf32> to vector<7x12xf32>
    %266 = arith.divf %262, %265 : vector<7x12xf32>
    %cst_113 = arith.constant dense<0.000000e+00> : vector<7x8xf32>
    %267 = tpu.matmul %266, %252, %cst_113 {dimension_numbers = #tpu.dot_dimension_numbers<[1], [0], [0], [1], [0, 0, 1, 1], [], []>} : vector<7x12xf32>, vector<12x8xf32>, vector<7x8xf32> -> vector<7x8xf32>
    %268 = vector.extract_strided_slice %196 {offsets = [16, 0], sizes = [8, 32], strides = [1, 1]} : vector<32x32xf32> to vector<8x32xf32>
    %cst_114 = arith.constant dense<0.000000e+00> : vector<7x32xf32>
    %269 = tpu.matmul %267, %268, %cst_114 {dimension_numbers = #tpu.dot_dimension_numbers<[1], [0], [0], [1], [0, 0, 1, 1], [], []>} : vector<7x8xf32>, vector<8x32xf32>, vector<7x32xf32> -> vector<7x32xf32>
    %270 = arith.addf %249, %269 : vector<7x32xf32>
    %271 = vector.extract_strided_slice %200 {offsets = [0, 24], sizes = [7, 8], strides = [1, 1]} : vector<7x32xf32> to vector<7x8xf32>
    %272 = vector.extract_strided_slice %203 {offsets = [0, 24], sizes = [12, 8], strides = [1, 1]} : vector<12x32xf32> to vector<12x8xf32>
    %273 = vector.extract_strided_slice %206 {offsets = [0, 24], sizes = [12, 8], strides = [1, 1]} : vector<12x32xf32> to vector<12x8xf32>
    %cst_115 = arith.constant dense<0.000000e+00> : vector<7x12xf32>
    %274 = tpu.matmul %271, %272, %cst_115 {dimension_numbers = #tpu.dot_dimension_numbers<[1], [1], [0], [0], [0, 0, 1, 0], [], []>} : vector<7x8xf32>, vector<12x8xf32>, vector<7x12xf32> -> vector<7x12xf32>
    %cst_116 = arith.constant 0.353553385 : f32
    %275 = vector.broadcast %cst_116 : f32 to vector<7x12xf32>
    %276 = arith.mulf %274, %275 : vector<7x12xf32>
    %cst_117 = arith.constant -1.000000e+30 : f32
    %277 = vector.broadcast %cst_117 : f32 to vector<7x12xf32>
    %278 = arith.select %20, %276, %277 : vector<7x12xi1>, vector<7x12xf32>
    %cst_118 = arith.constant dense<0xFF800000> : vector<7xf32>
    %279 = vector.multi_reduction <maximumf>, %278, %cst_118 [1] : vector<7x12xf32> to vector<7xf32>
    %280 = vector.shape_cast %279 : vector<7xf32> to vector<7x1xf32>
    %281 = vector.broadcast %280 : vector<7x1xf32> to vector<7x12xf32>
    %282 = arith.subf %278, %281 : vector<7x12xf32>
    %283 = math.exp %282 : vector<7x12xf32>
    %cst_119 = arith.constant dense<0.000000e+00> : vector<7xf32>
    %284 = vector.multi_reduction <add>, %283, %cst_119 [1] : vector<7x12xf32> to vector<7xf32>
    %285 = vector.shape_cast %284 : vector<7xf32> to vector<7x1xf32>
    %286 = vector.broadcast %285 : vector<7x1xf32> to vector<7x12xf32>
    %287 = arith.divf %283, %286 : vector<7x12xf32>
    %cst_120 = arith.constant dense<0.000000e+00> : vector<7x8xf32>
    %288 = tpu.matmul %287, %273, %cst_120 {dimension_numbers = #tpu.dot_dimension_numbers<[1], [0], [0], [1], [0, 0, 1, 1], [], []>} : vector<7x12xf32>, vector<12x8xf32>, vector<7x8xf32> -> vector<7x8xf32>
    %289 = vector.extract_strided_slice %196 {offsets = [24, 0], sizes = [8, 32], strides = [1, 1]} : vector<32x32xf32> to vector<8x32xf32>
    %cst_121 = arith.constant dense<0.000000e+00> : vector<7x32xf32>
    %290 = tpu.matmul %288, %289, %cst_121 {dimension_numbers = #tpu.dot_dimension_numbers<[1], [0], [0], [1], [0, 0, 1, 1], [], []>} : vector<7x8xf32>, vector<8x32xf32>, vector<7x32xf32> -> vector<7x32xf32>
    %291 = arith.addf %270, %290 : vector<7x32xf32>
    %292 = vector.broadcast %197 : vector<1x32xf32> to vector<7x32xf32>
    %293 = arith.addf %291, %292 : vector<7x32xf32>
    %294 = arith.addf %161, %293 : vector<7x32xf32>
    %295 = vector.extract_strided_slice %22 {offsets = [2, 0], sizes = [1, 32], strides = [1, 1]} : vector<3x32xf32> to vector<1x32xf32>
    %296 = vector.extract_strided_slice %24 {offsets = [2, 0], sizes = [1, 32], strides = [1, 1]} : vector<3x32xf32> to vector<1x32xf32>
    %cst_122 = arith.constant dense<0.000000e+00> : vector<7xf32>
    %297 = vector.multi_reduction <add>, %294, %cst_122 [1] : vector<7x32xf32> to vector<7xf32>
    %298 = vector.shape_cast %297 : vector<7xf32> to vector<7x1xf32>
    %cst_123 = arith.constant 3.200000e+01 : f32
    %299 = vector.broadcast %cst_123 : f32 to vector<7x1xf32>
    %300 = arith.divf %298, %299 : vector<7x1xf32>
    %301 = vector.broadcast %300 : vector<7x1xf32> to vector<7x32xf32>
    %302 = arith.subf %294, %301 : vector<7x32xf32>
    %303 = arith.mulf %302, %302 : vector<7x32xf32>
    %cst_124 = arith.constant dense<0.000000e+00> : vector<7xf32>
    %304 = vector.multi_reduction <add>, %303, %cst_124 [1] : vector<7x32xf32> to vector<7xf32>
    %305 = vector.shape_cast %304 : vector<7xf32> to vector<7x1xf32>
    %cst_125 = arith.constant 3.200000e+01 : f32
    %306 = vector.broadcast %cst_125 : f32 to vector<7x1xf32>
    %307 = arith.divf %305, %306 : vector<7x1xf32>
    %308 = vector.broadcast %300 : vector<7x1xf32> to vector<7x32xf32>
    %309 = arith.subf %294, %308 : vector<7x32xf32>
    %cst_126 = arith.constant 9.99999996E-13 : f32
    %310 = vector.broadcast %cst_126 : f32 to vector<7x1xf32>
    %311 = arith.addf %307, %310 : vector<7x1xf32>
    %312 = math.rsqrt %311 : vector<7x1xf32>
    %313 = vector.broadcast %312 : vector<7x1xf32> to vector<7x32xf32>
    %314 = arith.mulf %309, %313 : vector<7x32xf32>
    %315 = vector.broadcast %295 : vector<1x32xf32> to vector<7x32xf32>
    %316 = arith.mulf %314, %315 : vector<7x32xf32>
    %317 = vector.broadcast %296 : vector<1x32xf32> to vector<7x32xf32>
    %318 = arith.addf %316, %317 : vector<7x32xf32>
    %c0_127 = arith.constant 0 : index
    %c0_128 = arith.constant 0 : index
    %c0_129 = arith.constant 0 : index
    %319 = vector.load %arg12[%c0_127, %c0_128, %c0_129] : memref<2x32x64xf32, #tpu.memory_space<vmem>>, vector<1x32x64xf32>
    %320 = vector.shape_cast %319 : vector<1x32x64xf32> to vector<32x64xf32>
    %c0_130 = arith.constant 0 : index
    %c0_131 = arith.constant 0 : index
    %c0_132 = arith.constant 0 : index
    %321 = vector.load %arg13[%c0_130, %c0_131, %c0_132] : memref<2x1x64xf32, #tpu.memory_space<vmem>>, vector<1x1x64xf32>
    %322 = vector.shape_cast %321 : vector<1x1x64xf32> to vector<1x64xf32>
    %c0_133 = arith.constant 0 : index
    %c0_134 = arith.constant 0 : index
    %c0_135 = arith.constant 0 : index
    %323 = vector.load %arg14[%c0_133, %c0_134, %c0_135] : memref<2x64x32xf32, #tpu.memory_space<vmem>>, vector<1x64x32xf32>
    %324 = vector.shape_cast %323 : vector<1x64x32xf32> to vector<64x32xf32>
    %c0_136 = arith.constant 0 : index
    %c0_137 = arith.constant 0 : index
    %c0_138 = arith.constant 0 : index
    %325 = vector.load %arg15[%c0_136, %c0_137, %c0_138] : memref<2x1x32xf32, #tpu.memory_space<vmem>>, vector<1x1x32xf32>
    %326 = vector.shape_cast %325 : vector<1x1x32xf32> to vector<1x32xf32>
    %cst_139 = arith.constant dense<0.000000e+00> : vector<7x64xf32>
    %327 = tpu.matmul %318, %320, %cst_139 {dimension_numbers = #tpu.dot_dimension_numbers<[1], [0], [0], [1], [0, 0, 1, 1], [], []>} : vector<7x32xf32>, vector<32x64xf32>, vector<7x64xf32> -> vector<7x64xf32>
    %328 = vector.broadcast %322 : vector<1x64xf32> to vector<7x64xf32>
    %329 = arith.addf %327, %328 : vector<7x64xf32>
    %cst_140 = arith.constant 0.000000e+00 : f32
    %330 = vector.broadcast %cst_140 : f32 to vector<7x64xf32>
    %331 = arith.maximumf %329, %330 : vector<7x64xf32>
    %cst_141 = arith.constant dense<0.000000e+00> : vector<7x32xf32>
    %332 = tpu.matmul %331, %324, %cst_141 {dimension_numbers = #tpu.dot_dimension_numbers<[1], [0], [0], [1], [0, 0, 1, 1], [], []>} : vector<7x64xf32>, vector<64x32xf32>, vector<7x32xf32> -> vector<7x32xf32>
    %333 = vector.broadcast %326 : vector<1x32xf32> to vector<7x32xf32>
    %334 = arith.addf %332, %333 : vector<7x32xf32>
    %335 = arith.addf %294, %334 : vector<7x32xf32>
    %c1_142 = arith.constant 1 : index
    %c0_143 = arith.constant 0 : index
    %c0_144 = arith.constant 0 : index
    %336 = vector.load %arg10[%c1_142, %c0_143, %c0_144] : memref<2x3x32xf32, #tpu.memory_space<vmem>>, vector<1x3x32xf32>
    %337 = vector.shape_cast %336 : vector<1x3x32xf32> to vector<3x32xf32>
    %c1_145 = arith.constant 1 : index
    %c0_146 = arith.constant 0 : index
    %c0_147 = arith.constant 0 : index
    %338 = vector.load %arg11[%c1_145, %c0_146, %c0_147] : memref<2x3x32xf32, #tpu.memory_space<vmem>>, vector<1x3x32xf32>
    %339 = vector.shape_cast %338 : vector<1x3x32xf32> to vector<3x32xf32>
    %c1_148 = arith.constant 1 : index
    %c0_149 = arith.constant 0 : index
    %c0_150 = arith.constant 0 : index
    %340 = vector.load %arg7[%c1_148, %c0_149, %c0_150] : memref<2x4x32xf32, #tpu.memory_space<vmem>>, vector<1x4x32xf32>
    %341 = vector.shape_cast %340 : vector<1x4x32xf32> to vector<4x32xf32>
    %c1_151 = arith.constant 1 : index
    %c0_152 = arith.constant 0 : index
    %c0_153 = arith.constant 0 : index
    %342 = vector.load %arg9[%c1_151, %c0_152, %c0_153] : memref<2x4x32xf32, #tpu.memory_space<vmem>>, vector<1x4x32xf32>
    %343 = vector.shape_cast %342 : vector<1x4x32xf32> to vector<4x32xf32>
    %344 = vector.extract_strided_slice %337 {offsets = [0, 0], sizes = [1, 32], strides = [1, 1]} : vector<3x32xf32> to vector<1x32xf32>
    %345 = vector.extract_strided_slice %339 {offsets = [0, 0], sizes = [1, 32], strides = [1, 1]} : vector<3x32xf32> to vector<1x32xf32>
    %cst_154 = arith.constant dense<0.000000e+00> : vector<7xf32>
    %346 = vector.multi_reduction <add>, %335, %cst_154 [1] : vector<7x32xf32> to vector<7xf32>
    %347 = vector.shape_cast %346 : vector<7xf32> to vector<7x1xf32>
    %cst_155 = arith.constant 3.200000e+01 : f32
    %348 = vector.broadcast %cst_155 : f32 to vector<7x1xf32>
    %349 = arith.divf %347, %348 : vector<7x1xf32>
    %350 = vector.broadcast %349 : vector<7x1xf32> to vector<7x32xf32>
    %351 = arith.subf %335, %350 : vector<7x32xf32>
    %352 = arith.mulf %351, %351 : vector<7x32xf32>
    %cst_156 = arith.constant dense<0.000000e+00> : vector<7xf32>
    %353 = vector.multi_reduction <add>, %352, %cst_156 [1] : vector<7x32xf32> to vector<7xf32>
    %354 = vector.shape_cast %353 : vector<7xf32> to vector<7x1xf32>
    %cst_157 = arith.constant 3.200000e+01 : f32
    %355 = vector.broadcast %cst_157 : f32 to vector<7x1xf32>
    %356 = arith.divf %354, %355 : vector<7x1xf32>
    %357 = vector.broadcast %349 : vector<7x1xf32> to vector<7x32xf32>
    %358 = arith.subf %335, %357 : vector<7x32xf32>
    %cst_158 = arith.constant 9.99999996E-13 : f32
    %359 = vector.broadcast %cst_158 : f32 to vector<7x1xf32>
    %360 = arith.addf %356, %359 : vector<7x1xf32>
    %361 = math.rsqrt %360 : vector<7x1xf32>
    %362 = vector.broadcast %361 : vector<7x1xf32> to vector<7x32xf32>
    %363 = arith.mulf %358, %362 : vector<7x32xf32>
    %364 = vector.broadcast %344 : vector<1x32xf32> to vector<7x32xf32>
    %365 = arith.mulf %363, %364 : vector<7x32xf32>
    %366 = vector.broadcast %345 : vector<1x32xf32> to vector<7x32xf32>
    %367 = arith.addf %365, %366 : vector<7x32xf32>
    %c1_159 = arith.constant 1 : index
    %c0_160 = arith.constant 0 : index
    %c0_161 = arith.constant 0 : index
    %c0_162 = arith.constant 0 : index
    %368 = vector.load %arg6[%c1_159, %c0_160, %c0_161, %c0_162] : memref<2x4x32x32xf32, #tpu.memory_space<vmem>>, vector<1x1x32x32xf32>
    %369 = vector.shape_cast %368 : vector<1x1x32x32xf32> to vector<32x32xf32>
    %370 = vector.extract_strided_slice %341 {offsets = [0, 0], sizes = [1, 32], strides = [1, 1]} : vector<4x32xf32> to vector<1x32xf32>
    %c1_163 = arith.constant 1 : index
    %c1_164 = arith.constant 1 : index
    %c0_165 = arith.constant 0 : index
    %c0_166 = arith.constant 0 : index
    %371 = vector.load %arg6[%c1_163, %c1_164, %c0_165, %c0_166] : memref<2x4x32x32xf32, #tpu.memory_space<vmem>>, vector<1x1x32x32xf32>
    %372 = vector.shape_cast %371 : vector<1x1x32x32xf32> to vector<32x32xf32>
    %373 = vector.extract_strided_slice %341 {offsets = [1, 0], sizes = [1, 32], strides = [1, 1]} : vector<4x32xf32> to vector<1x32xf32>
    %c1_167 = arith.constant 1 : index
    %c2_168 = arith.constant 2 : index
    %c0_169 = arith.constant 0 : index
    %c0_170 = arith.constant 0 : index
    %374 = vector.load %arg6[%c1_167, %c2_168, %c0_169, %c0_170] : memref<2x4x32x32xf32, #tpu.memory_space<vmem>>, vector<1x1x32x32xf32>
    %375 = vector.shape_cast %374 : vector<1x1x32x32xf32> to vector<32x32xf32>
    %376 = vector.extract_strided_slice %341 {offsets = [2, 0], sizes = [1, 32], strides = [1, 1]} : vector<4x32xf32> to vector<1x32xf32>
    %c1_171 = arith.constant 1 : index
    %c3_172 = arith.constant 3 : index
    %c0_173 = arith.constant 0 : index
    %c0_174 = arith.constant 0 : index
    %377 = vector.load %arg6[%c1_171, %c3_172, %c0_173, %c0_174] : memref<2x4x32x32xf32, #tpu.memory_space<vmem>>, vector<1x1x32x32xf32>
    %378 = vector.shape_cast %377 : vector<1x1x32x32xf32> to vector<32x32xf32>
    %379 = vector.extract_strided_slice %341 {offsets = [3, 0], sizes = [1, 32], strides = [1, 1]} : vector<4x32xf32> to vector<1x32xf32>
    %cst_175 = arith.constant dense<0.000000e+00> : vector<7x32xf32>
    %380 = tpu.matmul %367, %369, %cst_175 {dimension_numbers = #tpu.dot_dimension_numbers<[1], [0], [0], [1], [0, 0, 1, 1], [], []>} : vector<7x32xf32>, vector<32x32xf32>, vector<7x32xf32> -> vector<7x32xf32>
    %381 = vector.broadcast %370 : vector<1x32xf32> to vector<7x32xf32>
    %382 = arith.addf %380, %381 : vector<7x32xf32>
    %cst_176 = arith.constant dense<0.000000e+00> : vector<7x32xf32>
    %383 = tpu.matmul %367, %372, %cst_176 {dimension_numbers = #tpu.dot_dimension_numbers<[1], [0], [0], [1], [0, 0, 1, 1], [], []>} : vector<7x32xf32>, vector<32x32xf32>, vector<7x32xf32> -> vector<7x32xf32>
    %384 = vector.broadcast %373 : vector<1x32xf32> to vector<7x32xf32>
    %385 = arith.addf %383, %384 : vector<7x32xf32>
    %cst_177 = arith.constant dense<0.000000e+00> : vector<7x32xf32>
    %386 = tpu.matmul %367, %375, %cst_177 {dimension_numbers = #tpu.dot_dimension_numbers<[1], [0], [0], [1], [0, 0, 1, 1], [], []>} : vector<7x32xf32>, vector<32x32xf32>, vector<7x32xf32> -> vector<7x32xf32>
    %387 = vector.broadcast %376 : vector<1x32xf32> to vector<7x32xf32>
    %388 = arith.addf %386, %387 : vector<7x32xf32>
    %cst_178 = arith.constant 0.000000e+00 : f32
    %389 = vector.broadcast %cst_178 : f32 to vector<7x32xf32>
    %390 = vector.extract_strided_slice %382 {offsets = [0, 0], sizes = [7, 8], strides = [1, 1]} : vector<7x32xf32> to vector<7x8xf32>
    %391 = vector.extract_strided_slice %385 {offsets = [0, 0], sizes = [7, 8], strides = [1, 1]} : vector<7x32xf32> to vector<7x8xf32>
    %392 = vector.extract_strided_slice %388 {offsets = [0, 0], sizes = [7, 8], strides = [1, 1]} : vector<7x32xf32> to vector<7x8xf32>
    %cst_179 = arith.constant dense<0.000000e+00> : vector<7x7xf32>
    %393 = tpu.matmul %390, %391, %cst_179 {dimension_numbers = #tpu.dot_dimension_numbers<[1], [1], [0], [0], [0, 0, 1, 0], [], []>} : vector<7x8xf32>, vector<7x8xf32>, vector<7x7xf32> -> vector<7x7xf32>
    %cst_180 = arith.constant 0.353553385 : f32
    %394 = vector.broadcast %cst_180 : f32 to vector<7x7xf32>
    %395 = arith.mulf %393, %394 : vector<7x7xf32>
    %cst_181 = arith.constant -1.000000e+30 : f32
    %396 = vector.broadcast %cst_181 : f32 to vector<7x7xf32>
    %397 = arith.select %17, %395, %396 : vector<7x7xi1>, vector<7x7xf32>
    %cst_182 = arith.constant dense<0xFF800000> : vector<7xf32>
    %398 = vector.multi_reduction <maximumf>, %397, %cst_182 [1] : vector<7x7xf32> to vector<7xf32>
    %399 = vector.shape_cast %398 : vector<7xf32> to vector<7x1xf32>
    %400 = vector.broadcast %399 : vector<7x1xf32> to vector<7x7xf32>
    %401 = arith.subf %397, %400 : vector<7x7xf32>
    %402 = math.exp %401 : vector<7x7xf32>
    %cst_183 = arith.constant dense<0.000000e+00> : vector<7xf32>
    %403 = vector.multi_reduction <add>, %402, %cst_183 [1] : vector<7x7xf32> to vector<7xf32>
    %404 = vector.shape_cast %403 : vector<7xf32> to vector<7x1xf32>
    %405 = vector.broadcast %404 : vector<7x1xf32> to vector<7x7xf32>
    %406 = arith.divf %402, %405 : vector<7x7xf32>
    %cst_184 = arith.constant dense<0.000000e+00> : vector<7x8xf32>
    %407 = tpu.matmul %406, %392, %cst_184 {dimension_numbers = #tpu.dot_dimension_numbers<[1], [0], [0], [1], [0, 0, 1, 1], [], []>} : vector<7x7xf32>, vector<7x8xf32>, vector<7x8xf32> -> vector<7x8xf32>
    %408 = vector.extract_strided_slice %378 {offsets = [0, 0], sizes = [8, 32], strides = [1, 1]} : vector<32x32xf32> to vector<8x32xf32>
    %cst_185 = arith.constant dense<0.000000e+00> : vector<7x32xf32>
    %409 = tpu.matmul %407, %408, %cst_185 {dimension_numbers = #tpu.dot_dimension_numbers<[1], [0], [0], [1], [0, 0, 1, 1], [], []>} : vector<7x8xf32>, vector<8x32xf32>, vector<7x32xf32> -> vector<7x32xf32>
    %410 = arith.addf %389, %409 : vector<7x32xf32>
    %411 = vector.extract_strided_slice %382 {offsets = [0, 8], sizes = [7, 8], strides = [1, 1]} : vector<7x32xf32> to vector<7x8xf32>
    %412 = vector.extract_strided_slice %385 {offsets = [0, 8], sizes = [7, 8], strides = [1, 1]} : vector<7x32xf32> to vector<7x8xf32>
    %413 = vector.extract_strided_slice %388 {offsets = [0, 8], sizes = [7, 8], strides = [1, 1]} : vector<7x32xf32> to vector<7x8xf32>
    %cst_186 = arith.constant dense<0.000000e+00> : vector<7x7xf32>
    %414 = tpu.matmul %411, %412, %cst_186 {dimension_numbers = #tpu.dot_dimension_numbers<[1], [1], [0], [0], [0, 0, 1, 0], [], []>} : vector<7x8xf32>, vector<7x8xf32>, vector<7x7xf32> -> vector<7x7xf32>
    %cst_187 = arith.constant 0.353553385 : f32
    %415 = vector.broadcast %cst_187 : f32 to vector<7x7xf32>
    %416 = arith.mulf %414, %415 : vector<7x7xf32>
    %cst_188 = arith.constant -1.000000e+30 : f32
    %417 = vector.broadcast %cst_188 : f32 to vector<7x7xf32>
    %418 = arith.select %17, %416, %417 : vector<7x7xi1>, vector<7x7xf32>
    %cst_189 = arith.constant dense<0xFF800000> : vector<7xf32>
    %419 = vector.multi_reduction <maximumf>, %418, %cst_189 [1] : vector<7x7xf32> to vector<7xf32>
    %420 = vector.shape_cast %419 : vector<7xf32> to vector<7x1xf32>
    %421 = vector.broadcast %420 : vector<7x1xf32> to vector<7x7xf32>
    %422 = arith.subf %418, %421 : vector<7x7xf32>
    %423 = math.exp %422 : vector<7x7xf32>
    %cst_190 = arith.constant dense<0.000000e+00> : vector<7xf32>
    %424 = vector.multi_reduction <add>, %423, %cst_190 [1] : vector<7x7xf32> to vector<7xf32>
    %425 = vector.shape_cast %424 : vector<7xf32> to vector<7x1xf32>
    %426 = vector.broadcast %425 : vector<7x1xf32> to vector<7x7xf32>
    %427 = arith.divf %423, %426 : vector<7x7xf32>
    %cst_191 = arith.constant dense<0.000000e+00> : vector<7x8xf32>
    %428 = tpu.matmul %427, %413, %cst_191 {dimension_numbers = #tpu.dot_dimension_numbers<[1], [0], [0], [1], [0, 0, 1, 1], [], []>} : vector<7x7xf32>, vector<7x8xf32>, vector<7x8xf32> -> vector<7x8xf32>
    %429 = vector.extract_strided_slice %378 {offsets = [8, 0], sizes = [8, 32], strides = [1, 1]} : vector<32x32xf32> to vector<8x32xf32>
    %cst_192 = arith.constant dense<0.000000e+00> : vector<7x32xf32>
    %430 = tpu.matmul %428, %429, %cst_192 {dimension_numbers = #tpu.dot_dimension_numbers<[1], [0], [0], [1], [0, 0, 1, 1], [], []>} : vector<7x8xf32>, vector<8x32xf32>, vector<7x32xf32> -> vector<7x32xf32>
    %431 = arith.addf %410, %430 : vector<7x32xf32>
    %432 = vector.extract_strided_slice %382 {offsets = [0, 16], sizes = [7, 8], strides = [1, 1]} : vector<7x32xf32> to vector<7x8xf32>
    %433 = vector.extract_strided_slice %385 {offsets = [0, 16], sizes = [7, 8], strides = [1, 1]} : vector<7x32xf32> to vector<7x8xf32>
    %434 = vector.extract_strided_slice %388 {offsets = [0, 16], sizes = [7, 8], strides = [1, 1]} : vector<7x32xf32> to vector<7x8xf32>
    %cst_193 = arith.constant dense<0.000000e+00> : vector<7x7xf32>
    %435 = tpu.matmul %432, %433, %cst_193 {dimension_numbers = #tpu.dot_dimension_numbers<[1], [1], [0], [0], [0, 0, 1, 0], [], []>} : vector<7x8xf32>, vector<7x8xf32>, vector<7x7xf32> -> vector<7x7xf32>
    %cst_194 = arith.constant 0.353553385 : f32
    %436 = vector.broadcast %cst_194 : f32 to vector<7x7xf32>
    %437 = arith.mulf %435, %436 : vector<7x7xf32>
    %cst_195 = arith.constant -1.000000e+30 : f32
    %438 = vector.broadcast %cst_195 : f32 to vector<7x7xf32>
    %439 = arith.select %17, %437, %438 : vector<7x7xi1>, vector<7x7xf32>
    %cst_196 = arith.constant dense<0xFF800000> : vector<7xf32>
    %440 = vector.multi_reduction <maximumf>, %439, %cst_196 [1] : vector<7x7xf32> to vector<7xf32>
    %441 = vector.shape_cast %440 : vector<7xf32> to vector<7x1xf32>
    %442 = vector.broadcast %441 : vector<7x1xf32> to vector<7x7xf32>
    %443 = arith.subf %439, %442 : vector<7x7xf32>
    %444 = math.exp %443 : vector<7x7xf32>
    %cst_197 = arith.constant dense<0.000000e+00> : vector<7xf32>
    %445 = vector.multi_reduction <add>, %444, %cst_197 [1] : vector<7x7xf32> to vector<7xf32>
    %446 = vector.shape_cast %445 : vector<7xf32> to vector<7x1xf32>
    %447 = vector.broadcast %446 : vector<7x1xf32> to vector<7x7xf32>
    %448 = arith.divf %444, %447 : vector<7x7xf32>
    %cst_198 = arith.constant dense<0.000000e+00> : vector<7x8xf32>
    %449 = tpu.matmul %448, %434, %cst_198 {dimension_numbers = #tpu.dot_dimension_numbers<[1], [0], [0], [1], [0, 0, 1, 1], [], []>} : vector<7x7xf32>, vector<7x8xf32>, vector<7x8xf32> -> vector<7x8xf32>
    %450 = vector.extract_strided_slice %378 {offsets = [16, 0], sizes = [8, 32], strides = [1, 1]} : vector<32x32xf32> to vector<8x32xf32>
    %cst_199 = arith.constant dense<0.000000e+00> : vector<7x32xf32>
    %451 = tpu.matmul %449, %450, %cst_199 {dimension_numbers = #tpu.dot_dimension_numbers<[1], [0], [0], [1], [0, 0, 1, 1], [], []>} : vector<7x8xf32>, vector<8x32xf32>, vector<7x32xf32> -> vector<7x32xf32>
    %452 = arith.addf %431, %451 : vector<7x32xf32>
    %453 = vector.extract_strided_slice %382 {offsets = [0, 24], sizes = [7, 8], strides = [1, 1]} : vector<7x32xf32> to vector<7x8xf32>
    %454 = vector.extract_strided_slice %385 {offsets = [0, 24], sizes = [7, 8], strides = [1, 1]} : vector<7x32xf32> to vector<7x8xf32>
    %455 = vector.extract_strided_slice %388 {offsets = [0, 24], sizes = [7, 8], strides = [1, 1]} : vector<7x32xf32> to vector<7x8xf32>
    %cst_200 = arith.constant dense<0.000000e+00> : vector<7x7xf32>
    %456 = tpu.matmul %453, %454, %cst_200 {dimension_numbers = #tpu.dot_dimension_numbers<[1], [1], [0], [0], [0, 0, 1, 0], [], []>} : vector<7x8xf32>, vector<7x8xf32>, vector<7x7xf32> -> vector<7x7xf32>
    %cst_201 = arith.constant 0.353553385 : f32
    %457 = vector.broadcast %cst_201 : f32 to vector<7x7xf32>
    %458 = arith.mulf %456, %457 : vector<7x7xf32>
    %cst_202 = arith.constant -1.000000e+30 : f32
    %459 = vector.broadcast %cst_202 : f32 to vector<7x7xf32>
    %460 = arith.select %17, %458, %459 : vector<7x7xi1>, vector<7x7xf32>
    %cst_203 = arith.constant dense<0xFF800000> : vector<7xf32>
    %461 = vector.multi_reduction <maximumf>, %460, %cst_203 [1] : vector<7x7xf32> to vector<7xf32>
    %462 = vector.shape_cast %461 : vector<7xf32> to vector<7x1xf32>
    %463 = vector.broadcast %462 : vector<7x1xf32> to vector<7x7xf32>
    %464 = arith.subf %460, %463 : vector<7x7xf32>
    %465 = math.exp %464 : vector<7x7xf32>
    %cst_204 = arith.constant dense<0.000000e+00> : vector<7xf32>
    %466 = vector.multi_reduction <add>, %465, %cst_204 [1] : vector<7x7xf32> to vector<7xf32>
    %467 = vector.shape_cast %466 : vector<7xf32> to vector<7x1xf32>
    %468 = vector.broadcast %467 : vector<7x1xf32> to vector<7x7xf32>
    %469 = arith.divf %465, %468 : vector<7x7xf32>
    %cst_205 = arith.constant dense<0.000000e+00> : vector<7x8xf32>
    %470 = tpu.matmul %469, %455, %cst_205 {dimension_numbers = #tpu.dot_dimension_numbers<[1], [0], [0], [1], [0, 0, 1, 1], [], []>} : vector<7x7xf32>, vector<7x8xf32>, vector<7x8xf32> -> vector<7x8xf32>
    %471 = vector.extract_strided_slice %378 {offsets = [24, 0], sizes = [8, 32], strides = [1, 1]} : vector<32x32xf32> to vector<8x32xf32>
    %cst_206 = arith.constant dense<0.000000e+00> : vector<7x32xf32>
    %472 = tpu.matmul %470, %471, %cst_206 {dimension_numbers = #tpu.dot_dimension_numbers<[1], [0], [0], [1], [0, 0, 1, 1], [], []>} : vector<7x8xf32>, vector<8x32xf32>, vector<7x32xf32> -> vector<7x32xf32>
    %473 = arith.addf %452, %472 : vector<7x32xf32>
    %474 = vector.broadcast %379 : vector<1x32xf32> to vector<7x32xf32>
    %475 = arith.addf %473, %474 : vector<7x32xf32>
    %476 = arith.addf %335, %475 : vector<7x32xf32>
    %477 = vector.extract_strided_slice %337 {offsets = [1, 0], sizes = [1, 32], strides = [1, 1]} : vector<3x32xf32> to vector<1x32xf32>
    %478 = vector.extract_strided_slice %339 {offsets = [1, 0], sizes = [1, 32], strides = [1, 1]} : vector<3x32xf32> to vector<1x32xf32>
    %cst_207 = arith.constant dense<0.000000e+00> : vector<7xf32>
    %479 = vector.multi_reduction <add>, %476, %cst_207 [1] : vector<7x32xf32> to vector<7xf32>
    %480 = vector.shape_cast %479 : vector<7xf32> to vector<7x1xf32>
    %cst_208 = arith.constant 3.200000e+01 : f32
    %481 = vector.broadcast %cst_208 : f32 to vector<7x1xf32>
    %482 = arith.divf %480, %481 : vector<7x1xf32>
    %483 = vector.broadcast %482 : vector<7x1xf32> to vector<7x32xf32>
    %484 = arith.subf %476, %483 : vector<7x32xf32>
    %485 = arith.mulf %484, %484 : vector<7x32xf32>
    %cst_209 = arith.constant dense<0.000000e+00> : vector<7xf32>
    %486 = vector.multi_reduction <add>, %485, %cst_209 [1] : vector<7x32xf32> to vector<7xf32>
    %487 = vector.shape_cast %486 : vector<7xf32> to vector<7x1xf32>
    %cst_210 = arith.constant 3.200000e+01 : f32
    %488 = vector.broadcast %cst_210 : f32 to vector<7x1xf32>
    %489 = arith.divf %487, %488 : vector<7x1xf32>
    %490 = vector.broadcast %482 : vector<7x1xf32> to vector<7x32xf32>
    %491 = arith.subf %476, %490 : vector<7x32xf32>
    %cst_211 = arith.constant 9.99999996E-13 : f32
    %492 = vector.broadcast %cst_211 : f32 to vector<7x1xf32>
    %493 = arith.addf %489, %492 : vector<7x1xf32>
    %494 = math.rsqrt %493 : vector<7x1xf32>
    %495 = vector.broadcast %494 : vector<7x1xf32> to vector<7x32xf32>
    %496 = arith.mulf %491, %495 : vector<7x32xf32>
    %497 = vector.broadcast %477 : vector<1x32xf32> to vector<7x32xf32>
    %498 = arith.mulf %496, %497 : vector<7x32xf32>
    %499 = vector.broadcast %478 : vector<1x32xf32> to vector<7x32xf32>
    %500 = arith.addf %498, %499 : vector<7x32xf32>
    %c1_212 = arith.constant 1 : index
    %c0_213 = arith.constant 0 : index
    %c0_214 = arith.constant 0 : index
    %c0_215 = arith.constant 0 : index
    %501 = vector.load %arg8[%c1_212, %c0_213, %c0_214, %c0_215] : memref<2x4x32x32xf32, #tpu.memory_space<vmem>>, vector<1x1x32x32xf32>
    %502 = vector.shape_cast %501 : vector<1x1x32x32xf32> to vector<32x32xf32>
    %503 = vector.extract_strided_slice %343 {offsets = [0, 0], sizes = [1, 32], strides = [1, 1]} : vector<4x32xf32> to vector<1x32xf32>
    %c1_216 = arith.constant 1 : index
    %c1_217 = arith.constant 1 : index
    %c0_218 = arith.constant 0 : index
    %c0_219 = arith.constant 0 : index
    %504 = vector.load %arg8[%c1_216, %c1_217, %c0_218, %c0_219] : memref<2x4x32x32xf32, #tpu.memory_space<vmem>>, vector<1x1x32x32xf32>
    %505 = vector.shape_cast %504 : vector<1x1x32x32xf32> to vector<32x32xf32>
    %506 = vector.extract_strided_slice %343 {offsets = [1, 0], sizes = [1, 32], strides = [1, 1]} : vector<4x32xf32> to vector<1x32xf32>
    %c1_220 = arith.constant 1 : index
    %c2_221 = arith.constant 2 : index
    %c0_222 = arith.constant 0 : index
    %c0_223 = arith.constant 0 : index
    %507 = vector.load %arg8[%c1_220, %c2_221, %c0_222, %c0_223] : memref<2x4x32x32xf32, #tpu.memory_space<vmem>>, vector<1x1x32x32xf32>
    %508 = vector.shape_cast %507 : vector<1x1x32x32xf32> to vector<32x32xf32>
    %509 = vector.extract_strided_slice %343 {offsets = [2, 0], sizes = [1, 32], strides = [1, 1]} : vector<4x32xf32> to vector<1x32xf32>
    %c1_224 = arith.constant 1 : index
    %c3_225 = arith.constant 3 : index
    %c0_226 = arith.constant 0 : index
    %c0_227 = arith.constant 0 : index
    %510 = vector.load %arg8[%c1_224, %c3_225, %c0_226, %c0_227] : memref<2x4x32x32xf32, #tpu.memory_space<vmem>>, vector<1x1x32x32xf32>
    %511 = vector.shape_cast %510 : vector<1x1x32x32xf32> to vector<32x32xf32>
    %512 = vector.extract_strided_slice %343 {offsets = [3, 0], sizes = [1, 32], strides = [1, 1]} : vector<4x32xf32> to vector<1x32xf32>
    %cst_228 = arith.constant dense<0.000000e+00> : vector<7x32xf32>
    %513 = tpu.matmul %500, %502, %cst_228 {dimension_numbers = #tpu.dot_dimension_numbers<[1], [0], [0], [1], [0, 0, 1, 1], [], []>} : vector<7x32xf32>, vector<32x32xf32>, vector<7x32xf32> -> vector<7x32xf32>
    %514 = vector.broadcast %503 : vector<1x32xf32> to vector<7x32xf32>
    %515 = arith.addf %513, %514 : vector<7x32xf32>
    %cst_229 = arith.constant dense<0.000000e+00> : vector<12x32xf32>
    %516 = tpu.matmul %11, %505, %cst_229 {dimension_numbers = #tpu.dot_dimension_numbers<[1], [0], [0], [1], [0, 0, 1, 1], [], []>} : vector<12x32xf32>, vector<32x32xf32>, vector<12x32xf32> -> vector<12x32xf32>
    %517 = vector.broadcast %506 : vector<1x32xf32> to vector<12x32xf32>
    %518 = arith.addf %516, %517 : vector<12x32xf32>
    %cst_230 = arith.constant dense<0.000000e+00> : vector<12x32xf32>
    %519 = tpu.matmul %11, %508, %cst_230 {dimension_numbers = #tpu.dot_dimension_numbers<[1], [0], [0], [1], [0, 0, 1, 1], [], []>} : vector<12x32xf32>, vector<32x32xf32>, vector<12x32xf32> -> vector<12x32xf32>
    %520 = vector.broadcast %509 : vector<1x32xf32> to vector<12x32xf32>
    %521 = arith.addf %519, %520 : vector<12x32xf32>
    %cst_231 = arith.constant 0.000000e+00 : f32
    %522 = vector.broadcast %cst_231 : f32 to vector<7x32xf32>
    %523 = vector.extract_strided_slice %515 {offsets = [0, 0], sizes = [7, 8], strides = [1, 1]} : vector<7x32xf32> to vector<7x8xf32>
    %524 = vector.extract_strided_slice %518 {offsets = [0, 0], sizes = [12, 8], strides = [1, 1]} : vector<12x32xf32> to vector<12x8xf32>
    %525 = vector.extract_strided_slice %521 {offsets = [0, 0], sizes = [12, 8], strides = [1, 1]} : vector<12x32xf32> to vector<12x8xf32>
    %cst_232 = arith.constant dense<0.000000e+00> : vector<7x12xf32>
    %526 = tpu.matmul %523, %524, %cst_232 {dimension_numbers = #tpu.dot_dimension_numbers<[1], [1], [0], [0], [0, 0, 1, 0], [], []>} : vector<7x8xf32>, vector<12x8xf32>, vector<7x12xf32> -> vector<7x12xf32>
    %cst_233 = arith.constant 0.353553385 : f32
    %527 = vector.broadcast %cst_233 : f32 to vector<7x12xf32>
    %528 = arith.mulf %526, %527 : vector<7x12xf32>
    %cst_234 = arith.constant -1.000000e+30 : f32
    %529 = vector.broadcast %cst_234 : f32 to vector<7x12xf32>
    %530 = arith.select %20, %528, %529 : vector<7x12xi1>, vector<7x12xf32>
    %cst_235 = arith.constant dense<0xFF800000> : vector<7xf32>
    %531 = vector.multi_reduction <maximumf>, %530, %cst_235 [1] : vector<7x12xf32> to vector<7xf32>
    %532 = vector.shape_cast %531 : vector<7xf32> to vector<7x1xf32>
    %533 = vector.broadcast %532 : vector<7x1xf32> to vector<7x12xf32>
    %534 = arith.subf %530, %533 : vector<7x12xf32>
    %535 = math.exp %534 : vector<7x12xf32>
    %cst_236 = arith.constant dense<0.000000e+00> : vector<7xf32>
    %536 = vector.multi_reduction <add>, %535, %cst_236 [1] : vector<7x12xf32> to vector<7xf32>
    %537 = vector.shape_cast %536 : vector<7xf32> to vector<7x1xf32>
    %538 = vector.broadcast %537 : vector<7x1xf32> to vector<7x12xf32>
    %539 = arith.divf %535, %538 : vector<7x12xf32>
    %cst_237 = arith.constant dense<0.000000e+00> : vector<7x8xf32>
    %540 = tpu.matmul %539, %525, %cst_237 {dimension_numbers = #tpu.dot_dimension_numbers<[1], [0], [0], [1], [0, 0, 1, 1], [], []>} : vector<7x12xf32>, vector<12x8xf32>, vector<7x8xf32> -> vector<7x8xf32>
    %541 = vector.extract_strided_slice %511 {offsets = [0, 0], sizes = [8, 32], strides = [1, 1]} : vector<32x32xf32> to vector<8x32xf32>
    %cst_238 = arith.constant dense<0.000000e+00> : vector<7x32xf32>
    %542 = tpu.matmul %540, %541, %cst_238 {dimension_numbers = #tpu.dot_dimension_numbers<[1], [0], [0], [1], [0, 0, 1, 1], [], []>} : vector<7x8xf32>, vector<8x32xf32>, vector<7x32xf32> -> vector<7x32xf32>
    %543 = arith.addf %522, %542 : vector<7x32xf32>
    %544 = vector.extract_strided_slice %515 {offsets = [0, 8], sizes = [7, 8], strides = [1, 1]} : vector<7x32xf32> to vector<7x8xf32>
    %545 = vector.extract_strided_slice %518 {offsets = [0, 8], sizes = [12, 8], strides = [1, 1]} : vector<12x32xf32> to vector<12x8xf32>
    %546 = vector.extract_strided_slice %521 {offsets = [0, 8], sizes = [12, 8], strides = [1, 1]} : vector<12x32xf32> to vector<12x8xf32>
    %cst_239 = arith.constant dense<0.000000e+00> : vector<7x12xf32>
    %547 = tpu.matmul %544, %545, %cst_239 {dimension_numbers = #tpu.dot_dimension_numbers<[1], [1], [0], [0], [0, 0, 1, 0], [], []>} : vector<7x8xf32>, vector<12x8xf32>, vector<7x12xf32> -> vector<7x12xf32>
    %cst_240 = arith.constant 0.353553385 : f32
    %548 = vector.broadcast %cst_240 : f32 to vector<7x12xf32>
    %549 = arith.mulf %547, %548 : vector<7x12xf32>
    %cst_241 = arith.constant -1.000000e+30 : f32
    %550 = vector.broadcast %cst_241 : f32 to vector<7x12xf32>
    %551 = arith.select %20, %549, %550 : vector<7x12xi1>, vector<7x12xf32>
    %cst_242 = arith.constant dense<0xFF800000> : vector<7xf32>
    %552 = vector.multi_reduction <maximumf>, %551, %cst_242 [1] : vector<7x12xf32> to vector<7xf32>
    %553 = vector.shape_cast %552 : vector<7xf32> to vector<7x1xf32>
    %554 = vector.broadcast %553 : vector<7x1xf32> to vector<7x12xf32>
    %555 = arith.subf %551, %554 : vector<7x12xf32>
    %556 = math.exp %555 : vector<7x12xf32>
    %cst_243 = arith.constant dense<0.000000e+00> : vector<7xf32>
    %557 = vector.multi_reduction <add>, %556, %cst_243 [1] : vector<7x12xf32> to vector<7xf32>
    %558 = vector.shape_cast %557 : vector<7xf32> to vector<7x1xf32>
    %559 = vector.broadcast %558 : vector<7x1xf32> to vector<7x12xf32>
    %560 = arith.divf %556, %559 : vector<7x12xf32>
    %cst_244 = arith.constant dense<0.000000e+00> : vector<7x8xf32>
    %561 = tpu.matmul %560, %546, %cst_244 {dimension_numbers = #tpu.dot_dimension_numbers<[1], [0], [0], [1], [0, 0, 1, 1], [], []>} : vector<7x12xf32>, vector<12x8xf32>, vector<7x8xf32> -> vector<7x8xf32>
    %562 = vector.extract_strided_slice %511 {offsets = [8, 0], sizes = [8, 32], strides = [1, 1]} : vector<32x32xf32> to vector<8x32xf32>
    %cst_245 = arith.constant dense<0.000000e+00> : vector<7x32xf32>
    %563 = tpu.matmul %561, %562, %cst_245 {dimension_numbers = #tpu.dot_dimension_numbers<[1], [0], [0], [1], [0, 0, 1, 1], [], []>} : vector<7x8xf32>, vector<8x32xf32>, vector<7x32xf32> -> vector<7x32xf32>
    %564 = arith.addf %543, %563 : vector<7x32xf32>
    %565 = vector.extract_strided_slice %515 {offsets = [0, 16], sizes = [7, 8], strides = [1, 1]} : vector<7x32xf32> to vector<7x8xf32>
    %566 = vector.extract_strided_slice %518 {offsets = [0, 16], sizes = [12, 8], strides = [1, 1]} : vector<12x32xf32> to vector<12x8xf32>
    %567 = vector.extract_strided_slice %521 {offsets = [0, 16], sizes = [12, 8], strides = [1, 1]} : vector<12x32xf32> to vector<12x8xf32>
    %cst_246 = arith.constant dense<0.000000e+00> : vector<7x12xf32>
    %568 = tpu.matmul %565, %566, %cst_246 {dimension_numbers = #tpu.dot_dimension_numbers<[1], [1], [0], [0], [0, 0, 1, 0], [], []>} : vector<7x8xf32>, vector<12x8xf32>, vector<7x12xf32> -> vector<7x12xf32>
    %cst_247 = arith.constant 0.353553385 : f32
    %569 = vector.broadcast %cst_247 : f32 to vector<7x12xf32>
    %570 = arith.mulf %568, %569 : vector<7x12xf32>
    %cst_248 = arith.constant -1.000000e+30 : f32
    %571 = vector.broadcast %cst_248 : f32 to vector<7x12xf32>
    %572 = arith.select %20, %570, %571 : vector<7x12xi1>, vector<7x12xf32>
    %cst_249 = arith.constant dense<0xFF800000> : vector<7xf32>
    %573 = vector.multi_reduction <maximumf>, %572, %cst_249 [1] : vector<7x12xf32> to vector<7xf32>
    %574 = vector.shape_cast %573 : vector<7xf32> to vector<7x1xf32>
    %575 = vector.broadcast %574 : vector<7x1xf32> to vector<7x12xf32>
    %576 = arith.subf %572, %575 : vector<7x12xf32>
    %577 = math.exp %576 : vector<7x12xf32>
    %cst_250 = arith.constant dense<0.000000e+00> : vector<7xf32>
    %578 = vector.multi_reduction <add>, %577, %cst_250 [1] : vector<7x12xf32> to vector<7xf32>
    %579 = vector.shape_cast %578 : vector<7xf32> to vector<7x1xf32>
    %580 = vector.broadcast %579 : vector<7x1xf32> to vector<7x12xf32>
    %581 = arith.divf %577, %580 : vector<7x12xf32>
    %cst_251 = arith.constant dense<0.000000e+00> : vector<7x8xf32>
    %582 = tpu.matmul %581, %567, %cst_251 {dimension_numbers = #tpu.dot_dimension_numbers<[1], [0], [0], [1], [0, 0, 1, 1], [], []>} : vector<7x12xf32>, vector<12x8xf32>, vector<7x8xf32> -> vector<7x8xf32>
    %583 = vector.extract_strided_slice %511 {offsets = [16, 0], sizes = [8, 32], strides = [1, 1]} : vector<32x32xf32> to vector<8x32xf32>
    %cst_252 = arith.constant dense<0.000000e+00> : vector<7x32xf32>
    %584 = tpu.matmul %582, %583, %cst_252 {dimension_numbers = #tpu.dot_dimension_numbers<[1], [0], [0], [1], [0, 0, 1, 1], [], []>} : vector<7x8xf32>, vector<8x32xf32>, vector<7x32xf32> -> vector<7x32xf32>
    %585 = arith.addf %564, %584 : vector<7x32xf32>
    %586 = vector.extract_strided_slice %515 {offsets = [0, 24], sizes = [7, 8], strides = [1, 1]} : vector<7x32xf32> to vector<7x8xf32>
    %587 = vector.extract_strided_slice %518 {offsets = [0, 24], sizes = [12, 8], strides = [1, 1]} : vector<12x32xf32> to vector<12x8xf32>
    %588 = vector.extract_strided_slice %521 {offsets = [0, 24], sizes = [12, 8], strides = [1, 1]} : vector<12x32xf32> to vector<12x8xf32>
    %cst_253 = arith.constant dense<0.000000e+00> : vector<7x12xf32>
    %589 = tpu.matmul %586, %587, %cst_253 {dimension_numbers = #tpu.dot_dimension_numbers<[1], [1], [0], [0], [0, 0, 1, 0], [], []>} : vector<7x8xf32>, vector<12x8xf32>, vector<7x12xf32> -> vector<7x12xf32>
    %cst_254 = arith.constant 0.353553385 : f32
    %590 = vector.broadcast %cst_254 : f32 to vector<7x12xf32>
    %591 = arith.mulf %589, %590 : vector<7x12xf32>
    %cst_255 = arith.constant -1.000000e+30 : f32
    %592 = vector.broadcast %cst_255 : f32 to vector<7x12xf32>
    %593 = arith.select %20, %591, %592 : vector<7x12xi1>, vector<7x12xf32>
    %cst_256 = arith.constant dense<0xFF800000> : vector<7xf32>
    %594 = vector.multi_reduction <maximumf>, %593, %cst_256 [1] : vector<7x12xf32> to vector<7xf32>
    %595 = vector.shape_cast %594 : vector<7xf32> to vector<7x1xf32>
    %596 = vector.broadcast %595 : vector<7x1xf32> to vector<7x12xf32>
    %597 = arith.subf %593, %596 : vector<7x12xf32>
    %598 = math.exp %597 : vector<7x12xf32>
    %cst_257 = arith.constant dense<0.000000e+00> : vector<7xf32>
    %599 = vector.multi_reduction <add>, %598, %cst_257 [1] : vector<7x12xf32> to vector<7xf32>
    %600 = vector.shape_cast %599 : vector<7xf32> to vector<7x1xf32>
    %601 = vector.broadcast %600 : vector<7x1xf32> to vector<7x12xf32>
    %602 = arith.divf %598, %601 : vector<7x12xf32>
    %cst_258 = arith.constant dense<0.000000e+00> : vector<7x8xf32>
    %603 = tpu.matmul %602, %588, %cst_258 {dimension_numbers = #tpu.dot_dimension_numbers<[1], [0], [0], [1], [0, 0, 1, 1], [], []>} : vector<7x12xf32>, vector<12x8xf32>, vector<7x8xf32> -> vector<7x8xf32>
    %604 = vector.extract_strided_slice %511 {offsets = [24, 0], sizes = [8, 32], strides = [1, 1]} : vector<32x32xf32> to vector<8x32xf32>
    %cst_259 = arith.constant dense<0.000000e+00> : vector<7x32xf32>
    %605 = tpu.matmul %603, %604, %cst_259 {dimension_numbers = #tpu.dot_dimension_numbers<[1], [0], [0], [1], [0, 0, 1, 1], [], []>} : vector<7x8xf32>, vector<8x32xf32>, vector<7x32xf32> -> vector<7x32xf32>
    %606 = arith.addf %585, %605 : vector<7x32xf32>
    %607 = vector.broadcast %512 : vector<1x32xf32> to vector<7x32xf32>
    %608 = arith.addf %606, %607 : vector<7x32xf32>
    %609 = arith.addf %476, %608 : vector<7x32xf32>
    %610 = vector.extract_strided_slice %337 {offsets = [2, 0], sizes = [1, 32], strides = [1, 1]} : vector<3x32xf32> to vector<1x32xf32>
    %611 = vector.extract_strided_slice %339 {offsets = [2, 0], sizes = [1, 32], strides = [1, 1]} : vector<3x32xf32> to vector<1x32xf32>
    %cst_260 = arith.constant dense<0.000000e+00> : vector<7xf32>
    %612 = vector.multi_reduction <add>, %609, %cst_260 [1] : vector<7x32xf32> to vector<7xf32>
    %613 = vector.shape_cast %612 : vector<7xf32> to vector<7x1xf32>
    %cst_261 = arith.constant 3.200000e+01 : f32
    %614 = vector.broadcast %cst_261 : f32 to vector<7x1xf32>
    %615 = arith.divf %613, %614 : vector<7x1xf32>
    %616 = vector.broadcast %615 : vector<7x1xf32> to vector<7x32xf32>
    %617 = arith.subf %609, %616 : vector<7x32xf32>
    %618 = arith.mulf %617, %617 : vector<7x32xf32>
    %cst_262 = arith.constant dense<0.000000e+00> : vector<7xf32>
    %619 = vector.multi_reduction <add>, %618, %cst_262 [1] : vector<7x32xf32> to vector<7xf32>
    %620 = vector.shape_cast %619 : vector<7xf32> to vector<7x1xf32>
    %cst_263 = arith.constant 3.200000e+01 : f32
    %621 = vector.broadcast %cst_263 : f32 to vector<7x1xf32>
    %622 = arith.divf %620, %621 : vector<7x1xf32>
    %623 = vector.broadcast %615 : vector<7x1xf32> to vector<7x32xf32>
    %624 = arith.subf %609, %623 : vector<7x32xf32>
    %cst_264 = arith.constant 9.99999996E-13 : f32
    %625 = vector.broadcast %cst_264 : f32 to vector<7x1xf32>
    %626 = arith.addf %622, %625 : vector<7x1xf32>
    %627 = math.rsqrt %626 : vector<7x1xf32>
    %628 = vector.broadcast %627 : vector<7x1xf32> to vector<7x32xf32>
    %629 = arith.mulf %624, %628 : vector<7x32xf32>
    %630 = vector.broadcast %610 : vector<1x32xf32> to vector<7x32xf32>
    %631 = arith.mulf %629, %630 : vector<7x32xf32>
    %632 = vector.broadcast %611 : vector<1x32xf32> to vector<7x32xf32>
    %633 = arith.addf %631, %632 : vector<7x32xf32>
    %c1_265 = arith.constant 1 : index
    %c0_266 = arith.constant 0 : index
    %c0_267 = arith.constant 0 : index
    %634 = vector.load %arg12[%c1_265, %c0_266, %c0_267] : memref<2x32x64xf32, #tpu.memory_space<vmem>>, vector<1x32x64xf32>
    %635 = vector.shape_cast %634 : vector<1x32x64xf32> to vector<32x64xf32>
    %c1_268 = arith.constant 1 : index
    %c0_269 = arith.constant 0 : index
    %c0_270 = arith.constant 0 : index
    %636 = vector.load %arg13[%c1_268, %c0_269, %c0_270] : memref<2x1x64xf32, #tpu.memory_space<vmem>>, vector<1x1x64xf32>
    %637 = vector.shape_cast %636 : vector<1x1x64xf32> to vector<1x64xf32>
    %c1_271 = arith.constant 1 : index
    %c0_272 = arith.constant 0 : index
    %c0_273 = arith.constant 0 : index
    %638 = vector.load %arg14[%c1_271, %c0_272, %c0_273] : memref<2x64x32xf32, #tpu.memory_space<vmem>>, vector<1x64x32xf32>
    %639 = vector.shape_cast %638 : vector<1x64x32xf32> to vector<64x32xf32>
    %c1_274 = arith.constant 1 : index
    %c0_275 = arith.constant 0 : index
    %c0_276 = arith.constant 0 : index
    %640 = vector.load %arg15[%c1_274, %c0_275, %c0_276] : memref<2x1x32xf32, #tpu.memory_space<vmem>>, vector<1x1x32xf32>
    %641 = vector.shape_cast %640 : vector<1x1x32xf32> to vector<1x32xf32>
    %cst_277 = arith.constant dense<0.000000e+00> : vector<7x64xf32>
    %642 = tpu.matmul %633, %635, %cst_277 {dimension_numbers = #tpu.dot_dimension_numbers<[1], [0], [0], [1], [0, 0, 1, 1], [], []>} : vector<7x32xf32>, vector<32x64xf32>, vector<7x64xf32> -> vector<7x64xf32>
    %643 = vector.broadcast %637 : vector<1x64xf32> to vector<7x64xf32>
    %644 = arith.addf %642, %643 : vector<7x64xf32>
    %cst_278 = arith.constant 0.000000e+00 : f32
    %645 = vector.broadcast %cst_278 : f32 to vector<7x64xf32>
    %646 = arith.maximumf %644, %645 : vector<7x64xf32>
    %cst_279 = arith.constant dense<0.000000e+00> : vector<7x32xf32>
    %647 = tpu.matmul %646, %639, %cst_279 {dimension_numbers = #tpu.dot_dimension_numbers<[1], [0], [0], [1], [0, 0, 1, 1], [], []>} : vector<7x64xf32>, vector<64x32xf32>, vector<7x32xf32> -> vector<7x32xf32>
    %648 = vector.broadcast %641 : vector<1x32xf32> to vector<7x32xf32>
    %649 = arith.addf %647, %648 : vector<7x32xf32>
    %650 = arith.addf %609, %649 : vector<7x32xf32>
    %c0_280 = arith.constant 0 : index
    %c0_281 = arith.constant 0 : index
    %651 = vector.load %arg16[%c0_280, %c0_281] : memref<1x32xf32, #tpu.memory_space<vmem>>, vector<1x32xf32>
    %c0_282 = arith.constant 0 : index
    %c0_283 = arith.constant 0 : index
    %652 = vector.load %arg17[%c0_282, %c0_283] : memref<1x32xf32, #tpu.memory_space<vmem>>, vector<1x32xf32>
    %cst_284 = arith.constant dense<0.000000e+00> : vector<7xf32>
    %653 = vector.multi_reduction <add>, %650, %cst_284 [1] : vector<7x32xf32> to vector<7xf32>
    %654 = vector.shape_cast %653 : vector<7xf32> to vector<7x1xf32>
    %cst_285 = arith.constant 3.200000e+01 : f32
    %655 = vector.broadcast %cst_285 : f32 to vector<7x1xf32>
    %656 = arith.divf %654, %655 : vector<7x1xf32>
    %657 = vector.broadcast %656 : vector<7x1xf32> to vector<7x32xf32>
    %658 = arith.subf %650, %657 : vector<7x32xf32>
    %659 = arith.mulf %658, %658 : vector<7x32xf32>
    %cst_286 = arith.constant dense<0.000000e+00> : vector<7xf32>
    %660 = vector.multi_reduction <add>, %659, %cst_286 [1] : vector<7x32xf32> to vector<7xf32>
    %661 = vector.shape_cast %660 : vector<7xf32> to vector<7x1xf32>
    %cst_287 = arith.constant 3.200000e+01 : f32
    %662 = vector.broadcast %cst_287 : f32 to vector<7x1xf32>
    %663 = arith.divf %661, %662 : vector<7x1xf32>
    %664 = vector.broadcast %656 : vector<7x1xf32> to vector<7x32xf32>
    %665 = arith.subf %650, %664 : vector<7x32xf32>
    %cst_288 = arith.constant 9.99999996E-13 : f32
    %666 = vector.broadcast %cst_288 : f32 to vector<7x1xf32>
    %667 = arith.addf %663, %666 : vector<7x1xf32>
    %668 = math.rsqrt %667 : vector<7x1xf32>
    %669 = vector.broadcast %668 : vector<7x1xf32> to vector<7x32xf32>
    %670 = arith.mulf %665, %669 : vector<7x32xf32>
    %671 = vector.broadcast %651 : vector<1x32xf32> to vector<7x32xf32>
    %672 = arith.mulf %670, %671 : vector<7x32xf32>
    %673 = vector.broadcast %652 : vector<1x32xf32> to vector<7x32xf32>
    %674 = arith.addf %672, %673 : vector<7x32xf32>
    %c0_289 = arith.constant 0 : index
    %c0_290 = arith.constant 0 : index
    %675 = vector.load %arg18[%c0_289, %c0_290] : memref<32x128xf32, #tpu.memory_space<vmem>>, vector<32x128xf32>
    %c0_291 = arith.constant 0 : index
    %c0_292 = arith.constant 0 : index
    %676 = vector.load %arg19[%c0_291, %c0_292] : memref<1x128xf32, #tpu.memory_space<vmem>>, vector<1x128xf32>
    %cst_293 = arith.constant dense<0.000000e+00> : vector<7x128xf32>
    %677 = tpu.matmul %674, %675, %cst_293 {dimension_numbers = #tpu.dot_dimension_numbers<[1], [0], [0], [1], [0, 0, 1, 1], [], []>} : vector<7x32xf32>, vector<32x128xf32>, vector<7x128xf32> -> vector<7x128xf32>
    %678 = vector.broadcast %676 : vector<1x128xf32> to vector<7x128xf32>
    %679 = arith.addf %677, %678 : vector<7x128xf32>
    %cst_294 = arith.constant dense<0xFF800000> : vector<7xf32>
    %680 = vector.multi_reduction <maximumf>, %679, %cst_294 [1] : vector<7x128xf32> to vector<7xf32>
    %681 = vector.shape_cast %680 : vector<7xf32> to vector<7x1xf32>
    %682 = vector.broadcast %681 : vector<7x1xf32> to vector<7x128xf32>
    %683 = arith.subf %679, %682 : vector<7x128xf32>
    %684 = math.exp %683 : vector<7x128xf32>
    %cst_295 = arith.constant dense<0.000000e+00> : vector<7xf32>
    %685 = vector.multi_reduction <add>, %684, %cst_295 [1] : vector<7x128xf32> to vector<7xf32>
    %686 = vector.shape_cast %685 : vector<7xf32> to vector<7x1xf32>
    %687 = math.log %686 : vector<7x1xf32>
    %688 = vector.broadcast %687 : vector<7x1xf32> to vector<7x128xf32>
    %689 = arith.subf %683, %688 : vector<7x128xf32>
    %c0_296 = arith.constant 0 : index
    %c0_297 = arith.constant 0 : index
    %c0_298 = arith.constant 0 : index
    %690 = vector.load %arg20[%c0_296, %c0_297, %c0_298] : memref<1x7x128xf32, #tpu.memory_space<vmem>>, vector<1x7x128xf32>
    %691 = vector.shape_cast %690 : vector<1x7x128xf32> to vector<7x128xf32>
    %692 = vector.shape_cast %689 : vector<7x128xf32> to vector<1x7x128xf32>
    tpu.vector_store %arg20[%c0_296, %c0_297, %c0_298], %692 {strides = array<i32>} : memref<1x7x128xf32, #tpu.memory_space<vmem>>, vector<1x7x128xf32>,
    return
  }
  func.func @transform_0(%arg0: i32, %arg1: memref<2xi32, #tpu.memory_space<smem>>, %arg2: memref<2xi32, #tpu.memory_space<smem>>) -> (i32, i32, i32) {
    %c0_i32 = arith.constant 0 : i32
    %c0_i32_0 = arith.constant 0 : i32
    %c0_i32_1 = arith.constant 0 : i32
    return %arg0, %c0_i32, %c0_i32_0 : i32, i32, i32
  }
  func.func @transform_1(%arg0: i32, %arg1: memref<2xi32, #tpu.memory_space<smem>>, %arg2: memref<2xi32, #tpu.memory_space<smem>>) -> (i32, i32, i32) {
    %c0_i32 = arith.constant 0 : i32
    %c0_i32_0 = arith.constant 0 : i32
    %c0_i32_1 = arith.constant 0 : i32
    return %arg0, %c0_i32, %c0_i32_0 : i32, i32, i32
  }
  func.func @transform_2(%arg0: i32, %arg1: memref<2xi32, #tpu.memory_space<smem>>, %arg2: memref<2xi32, #tpu.memory_space<smem>>) -> (i32, i32) {
    %c0_i32 = arith.constant 0 : i32
    %c0_i32_0 = arith.constant 0 : i32
    %c0_i32_1 = arith.constant 0 : i32
    return %c0_i32, %c0_i32_0 : i32, i32
  }
  func.func @transform_3(%arg0: i32, %arg1: memref<2xi32, #tpu.memory_space<smem>>, %arg2: memref<2xi32, #tpu.memory_space<smem>>) -> (i32, i32, i32, i32) {
    %c0_i32 = arith.constant 0 : i32
    %c0_i32_0 = arith.constant 0 : i32
    %c0_i32_1 = arith.constant 0 : i32
    %c0_i32_2 = arith.constant 0 : i32
    %c0_i32_3 = arith.constant 0 : i32
    return %c0_i32, %c0_i32_0, %c0_i32_1, %c0_i32_2 : i32, i32, i32, i32
  }
  func.func @transform_4(%arg0: i32, %arg1: memref<2xi32, #tpu.memory_space<smem>>, %arg2: memref<2xi32, #tpu.memory_space<smem>>) -> (i32, i32, i32) {
    %c0_i32 = arith.constant 0 : i32
    %c0_i32_0 = arith.constant 0 : i32
    %c0_i32_1 = arith.constant 0 : i32
    %c0_i32_2 = arith.constant 0 : i32
    return %c0_i32, %c0_i32_0, %c0_i32_1 : i32, i32, i32
  }
  func.func @transform_5(%arg0: i32, %arg1: memref<2xi32, #tpu.memory_space<smem>>, %arg2: memref<2xi32, #tpu.memory_space<smem>>) -> (i32, i32, i32, i32) {
    %c0_i32 = arith.constant 0 : i32
    %c0_i32_0 = arith.constant 0 : i32
    %c0_i32_1 = arith.constant 0 : i32
    %c0_i32_2 = arith.constant 0 : i32
    %c0_i32_3 = arith.constant 0 : i32
    return %c0_i32, %c0_i32_0, %c0_i32_1, %c0_i32_2 : i32, i32, i32, i32
  }
  func.func @transform_6(%arg0: i32, %arg1: memref<2xi32, #tpu.memory_space<smem>>, %arg2: memref<2xi32, #tpu.memory_space<smem>>) -> (i32, i32, i32) {
    %c0_i32 = arith.constant 0 : i32
    %c0_i32_0 = arith.constant 0 : i32
    %c0_i32_1 = arith.constant 0 : i32
    %c0_i32_2 = arith.constant 0 : i32
    return %c0_i32, %c0_i32_0, %c0_i32_1 : i32, i32, i32
  }
  func.func @transform_7(%arg0: i32, %arg1: memref<2xi32, #tpu.memory_space<smem>>, %arg2: memref<2xi32, #tpu.memory_space<smem>>) -> (i32, i32, i32) {
    %c0_i32 = arith.constant 0 : i32
    %c0_i32_0 = arith.constant 0 : i32
    %c0_i32_1 = arith.constant 0 : i32
    %c0_i32_2 = arith.constant 0 : i32
    return %c0_i32, %c0_i32_0, %c0_i32_1 : i32, i32, i32
  }
  func.func @transform_8(%arg0: i32, %arg1: memref<2xi32, #tpu.memory_space<smem>>, %arg2: memref<2xi32, #tpu.memory_space<smem>>) -> (i32, i32, i32) {
    %c0_i32 = arith.constant 0 : i32
    %c0_i32_0 = arith.constant 0 : i32
    %c0_i32_1 = arith.constant 0 : i32
    %c0_i32_2 = arith.constant 0 : i32
    return %c0_i32, %c0_i32_0, %c0_i32_1 : i32, i32, i32
  }
  func.func @transform_9(%arg0: i32, %arg1: memref<2xi32, #tpu.memory_space<smem>>, %arg2: memref<2xi32, #tpu.memory_space<smem>>) -> (i32, i32, i32) {
    %c0_i32 = arith.constant 0 : i32
    %c0_i32_0 = arith.constant 0 : i32
    %c0_i32_1 = arith.constant 0 : i32
    %c0_i32_2 = arith.constant 0 : i32
    return %c0_i32, %c0_i32_0, %c0_i32_1 : i32, i32, i32
  }
  func.func @transform_10(%arg0: i32, %arg1: memref<2xi32, #tpu.memory_space<smem>>, %arg2: memref<2xi32, #tpu.memory_space<smem>>) -> (i32, i32, i32) {
    %c0_i32 = arith.constant 0 : i32
    %c0_i32_0 = arith.constant 0 : i32
    %c0_i32_1 = arith.constant 0 : i32
    %c0_i32_2 = arith.constant 0 : i32
    return %c0_i32, %c0_i32_0, %c0_i32_1 : i32, i32, i32
  }
  func.func @transform_11(%arg0: i32, %arg1: memref<2xi32, #tpu.memory_space<smem>>, %arg2: memref<2xi32, #tpu.memory_space<smem>>) -> (i32, i32, i32) {
    %c0_i32 = arith.constant 0 : i32
    %c0_i32_0 = arith.constant 0 : i32
    %c0_i32_1 = arith.constant 0 : i32
    %c0_i32_2 = arith.constant 0 : i32
    return %c0_i32, %c0_i32_0, %c0_i32_1 : i32, i32, i32
  }
  func.func @transform_12(%arg0: i32, %arg1: memref<2xi32, #tpu.memory_space<smem>>, %arg2: memref<2xi32, #tpu.memory_space<smem>>) -> (i32, i32, i32) {
    %c0_i32 = arith.constant 0 : i32
    %c0_i32_0 = arith.constant 0 : i32
    %c0_i32_1 = arith.constant 0 : i32
    %c0_i32_2 = arith.constant 0 : i32
    return %c0_i32, %c0_i32_0, %c0_i32_1 : i32, i32, i32
  }
  func.func @transform_13(%arg0: i32, %arg1: memref<2xi32, #tpu.memory_space<smem>>, %arg2: memref<2xi32, #tpu.memory_space<smem>>) -> (i32, i32) {
    %c0_i32 = arith.constant 0 : i32
    %c0_i32_0 = arith.constant 0 : i32
    %c0_i32_1 = arith.constant 0 : i32
    return %c0_i32, %c0_i32_0 : i32, i32
  }
  func.func @transform_14(%arg0: i32, %arg1: memref<2xi32, #tpu.memory_space<smem>>, %arg2: memref<2xi32, #tpu.memory_space<smem>>) -> (i32, i32) {
    %c0_i32 = arith.constant 0 : i32
    %c0_i32_0 = arith.constant 0 : i32
    %c0_i32_1 = arith.constant 0 : i32
    return %c0_i32, %c0_i32_0 : i32, i32
  }
  func.func @transform_15(%arg0: i32, %arg1: memref<2xi32, #tpu.memory_space<smem>>, %arg2: memref<2xi32, #tpu.memory_space<smem>>) -> (i32, i32) {
    %c0_i32 = arith.constant 0 : i32
    %c0_i32_0 = arith.constant 0 : i32
    %c0_i32_1 = arith.constant 0 : i32
    return %c0_i32, %c0_i32_0 : i32, i32
  }
  func.func @transform_16(%arg0: i32, %arg1: memref<2xi32, #tpu.memory_space<smem>>, %arg2: memref<2xi32, #tpu.memory_space<smem>>) -> (i32, i32) {
    %c0_i32 = arith.constant 0 : i32
    %c0_i32_0 = arith.constant 0 : i32
    %c0_i32_1 = arith.constant 0 : i32
    return %c0_i32, %c0_i32_0 : i32, i32
  }
  func.func @transform_17(%arg0: i32, %arg1: memref<2xi32, #tpu.memory_space<smem>>, %arg2: memref<2xi32, #tpu.memory_space<smem>>) -> (i32, i32, i32) {
    %c0_i32 = arith.constant 0 : i32
    %c0_i32_0 = arith.constant 0 : i32
    %c0_i32_1 = arith.constant 0 : i32
    return %arg0, %c0_i32, %c0_i32_0 : i32, i32, i32
  }
}

</mosaic_0001>

<bundles_post_ra>
// kernel: forward.2
= control target key start
LH: loop header
LB: loop body
LE: loop exit
PB: predicated region body
PF: predicated region fallthrough
CT: control target
= control target key end

     0   :  { %s3127_s24 = smov [#allocation3]   ;;  %s3856_s0 = inlined_call_operand.vmem [shape: s32[2], index: 0, kind: input, shape index: {}]   ;;  %s3857_s1 = inlined_call_operand.vmem [shape: f32[2,12,16], index: 1, kind: input, shape index: {}]   ;;  %s3858_s2 = inlined_call_operand.vmem [shape: f32[12,32], index: 2, kind: input, shape index: {}]   ;;  %s3859_s3 = inlined_call_operand.vmem [shape: f32[16,32], index: 3, kind: input, shape index: {}]   ;;  %s3860_s4 = inlined_call_operand.vmem [shape: f32[1,32], index: 4, kind: input, shape index: {}]   ;;  %s3861_s5 = inlined_call_operand.vmem [shape: f32[1,32], index: 5, kind: input, shape index: {}]   ;;  %s3862_s6 = inlined_call_operand.vmem [shape: f32[1,32], index: 6, kind: input, shape index: {}]   ;;  %s3863_s7 = inlined_call_operand.hbm [shape: f32[2,4,32,32], index: 7, kind: input, shape index: {}]   ;;  %s3864_s8 = inlined_call_operand.vmem [shape: f32[2,4,32], index: 8, kind: input, shape index: {}]   ;;  %s3865_s9 = inlined_call_operand.vmem [shape: f32[2,2,32], index: 9, kind: input, shape index: {}]   ;;  %s3866_s10 = inlined_call_operand.vmem [shape: f32[2,2,32], index: 10, kind: input, shape index: {}]   ;;  %s3867_s11 = inlined_call_operand.vmem [shape: f32[2,32,64], index: 11, kind: input, shape index: {}]   ;;  %s3868_s12 = inlined_call_operand.vmem [shape: f32[2,1,64], index: 12, kind: input, shape index: {}]   ;;  %s3869_s13 = inlined_call_operand.vmem [shape: f32[2,64,32], index: 13, kind: input, shape index: {}]   ;;  %s3870_s14 = inlined_call_operand.vmem [shape: f32[2,1,32], index: 14, kind: input, shape index: {}]   ;;  %s3871_s15 = inlined_call_operand.vmem [shape: f32[1,32], index: 15, kind: input, shape index: {}]   ;;  %s3872_s16 = inlined_call_operand.vmem [shape: f32[1,32], index: 16, kind: input, shape index: {}]   ;;  %s3873_s17 = inlined_call_operand.vmem [shape: f32[32,128], index: 17, kind: input, shape index: {}]   ;;  %s3874_s18 = inlined_call_operand.vmem [shape: f32[1,128], index: 18, kind: input, shape index: {}]   ;;  %s3875_s19 = inlined_call_operand.vmem [shape: f32[2,12,32], index: 19, kind: output, shape index: {0}]   ;;  %s3876_s20 = inlined_call_operand.vmem [shape: f32[2,12,128], index: 20, kind: output, shape index: {1}]  }
   0x1   :  { %3880 = sst [smem:[#allocation8_spill]] %s3856_s0 }
   0x2   :  { %3881 = sst [smem:[#allocation9_spill]] %s3857_s1 }
   0x3   :  { %3882 = sst [smem:[#allocation10_spill]] %s3858_s2 }
   0x4   :  { %3883 = sst [smem:[#allocation11_spill]] %s3859_s3 }
   0x5   :  { %3884 = sst [smem:[#allocation12_spill]] %s3860_s4 }
   0x6   :  { %3885 = sst [smem:[#allocation13_spill]] %s3870_s14 }
   0x7   :  { %s3886_s23 = sld [smem:[#allocation8_spill]] }
   0xd   :  { %s27_s14 = sshll.u32 %s3886_s23, 4  ;;  %s28_s14 = int_to_ptr.vmem [resolvable:$true] %s27_s14 }
   0xe   :  { %30 = dma.vmem_to_smem %s28_s14, 16, %s3127_s24, [#allocation2] }
   0xf   :  { %3117 = dma.done.wait [#allocation2], 16 }
  0x10   :  { %3118 = vsyncadd [#allocation2], 4294967280 }
  0x11   :  { %33 = sfence }
  0x12   :  { %34 = vsyncpa [#allocation5], 0  ;;  %s3243_s2 = smov 0  }
  0x13 LB: > { %s506_s26 = sshll.u32 %s3863_s7, 4  ;;  %s3252_s27 = sadd.s32 4294967295, %s3125_s2   ;;  %s3125_s2 = sphi %s3243_s2, %s40_s2   ;;  %s507_s26 = int_to_ptr.hbm [resolvable:$true] %s506_s26 }
  0x14   : > { %p2808_p0 = scmp.ge.s32.totalorder %s3125_s2, 1  ;;  %p480_p1 = scmp.lt.s32.totalorder %s3125_s2, 3 }
  0x15   : > { %p2945_p2 = scmp.eq.s32.totalorder %s3252_s27, 0  ;;  %s3128_s14 = smov [#allocation4]  }
  0x16   : > { %p481_p3 = pnand %p2808_p0, %p480_p1  ;;  %s508_s28 = sshll.u32 %s3128_s14, 4  ;;  %s509_s28 = int_to_ptr.vmem [resolvable:$true] %s508_s28 }
  0x17   : > { %s3129_s4 = smov 128   ;;  %s3130_s29 = smov 8  }
  0x18   : > { %p2941_p4 = pneg %p481_p3  ;;  %565 = sbr.rel (%p481_p3) target bundleno = 5433 (0x1539), region = 92 }
  0x1a   : > { %p2942_p5 = pnand %p2945_p2, %p2941_p4 }
  0x1c   : > { %2944 = dma.hbm_to_vmem [thread:$0]  (!%p2942_p5), %s507_s26, 4096, %s509_s28, [#allocation5], %s3129_s4, %s3129_s4, %s3130_s29  }
  0x1d   : > { %3120 = dma.done.wait (%p2945_p2), [#allocation5], 4096  }
  0x1e   : > { %3122 = vsyncadd (%p2945_p2), [#allocation5], 4294963200  ;;  %p627_p6 = scmp.lt.s32.totalorder %s3252_s27, 1  ;;  %s3887_s22 = sld [smem:[#allocation9_spill]]  ;;  %vm651_vm0 = vcmask 130048   ;;  %vm683_vm1 = vcmask 261120  }
  0x1f   : > { %s3888_s3 = sld [smem:[#allocation11_spill]]  ;;  %vm687_vm2 = vcmask 257024   ;;  %v3131_v11 = vmov 32.0   ;;  %v2964_v42 = vld [vmem:[%s3861_s5] ss:$0 sm:$0xff]  ;;  %s3134_s24 = smov 104  }
  0x20   : > { %s628_s30 = scalar_select %p627_p6, %s3252_s27, 1  ;;  %2973 = vrcp.f32 %v3131_v11  ;;  %v2965_v46 = vld [vmem:[%s3862_s6] ss:$0 sm:$0xff] }
  0x21   : > { %s3889_s29 = sld [smem:[#allocation12_spill]] }
  0x22   : > { %s3259_s0 = sshll.u32 %s628_s30, 4  ;;  %s3890_s25 = sld [smem:[#allocation10_spill]] }
  0x23   : > { %s3893_s26 = sld [smem:[#allocation13_spill]]  ;;  %s636_s21 = scalar_lea.vmem %s3875_s19, %s3259_s0 }
  0x24   : > { %s631_s23 = scalar_lea.vmem %s3887_s22, %s3259_s0  ;;  %s642_s22 = sld [smem:[#allocation3 + %s3252_s27]] }
  0x25   : > { %v646_v0 = vld [vmem:[%s3888_s3 + $0x8] sm:$0xff]  ;;  %v645_v1 = vld [vmem:[%s3888_s3] sm:$0xff]  ;;  %s3132_s27 = smov 120  }
  0x26   : > { %672 = vmatpush.msra.mxu0 %v646_v0  ;;  %v643_v2 = vld [vmem:[%s631_s23] sm:$0xff]  ;;  %v644_v3 = vld [vmem:[%s631_s23 + $0x8] sm:$0xf]  ;;  %v2974_v12 = vpop.eup %2973  ;;  %s3133_s23 = smov 112  }
  0x27   : > { %v2963_v4 = vld [vmem:[%s3889_s29] ss:$0 sm:$0xff]  ;;  %v692_v13 = vmul.f32 32.0, %v2974_v12  ;;  %vm696_vm3 = vweird.f32 %v2974_v12 }
  0x28   : > { %673 = vmatpush.msra.mxu0 %v645_v1  ;;  %v750_v54 = vld [vmem:[%s3890_s25] sm:$0xff]  ;;  %v751_v62 = vld [vmem:[%s3890_s25 + $0x8] sm:$0xf] }
  0x29   : > { %2819 = vmatmul.msk.f32.vlgmr.msra.gmra.mxu0 %vm651_vm0, %v643_v2  ;;  %v693_v14 = vsub.f32 1.0, %v692_v13  ;;  %v819_v13 = vld [vmem:[#allocation4 + $0x38] sm:$0xff] }
  0x2a   : > { %873 = vmatpush.msra.mxu2 %v819_v13 }
  0x2b   : > { %v694_v15 = vmul.f32 %v2974_v12, %v693_v14  ;;  %v824_v14 = vld [vmem:[#allocation4 + $0x58] sm:$0xff] }
  0x2c   : > { %897 = vmatpush.msra.mxu3 %v824_v14 }
  0x2d   : > { %v695_v16 = vadd.f32 %v2974_v12, %v694_v15  ;;  %v813_v15 = vld [vmem:[#allocation4 + $0x10] sm:$0xff] }
  0x2f   : > { %v3276_v17 = vsel %vm696_vm3, %v2974_v12, %v695_v16  ;;  %v814_v12 = vld [vmem:[#allocation4 + $0x18] sm:$0xff]  ;;  %v818_v16 = vld [vmem:[#allocation4 + $0x30] sm:$0xff]  ;;  %vm1004_vm3 = vcmask 1043456  }
  0x30   : > { %849 = vmatpush.msra.mxu1 %v814_v12  ;;  %874 = vmatpush.msra.mxu2 %v818_v16 }
  0x31   : > { %2820 = vmatmul.msk.f32.gmra.mxu0 %vm651_vm0, %v644_v3  ;;  %vm908_vm0 = vcmask 64512  }
  0x32   : > { %850 = vmatpush.msra.mxu1 %v813_v15 }
  0xa6   : > { %v675_v5 = vpop.f32.mrf.mxu0 }
  0xa7   : > { %v676_v6 = vadd.f32 %v2963_v4, %v675_v5 }
  0xa9   : > { %v684_v7 = vsel %vm683_vm1, %v676_v6, 0.0 }
  0xaa   : > { %685 = vadd.xlane.f32.xlu0 %v684_v7 }
  0xae   : > { %v678_v8 = vpop.f32.mrf.mxu0 }
  0xaf   : > { %v679_v9 = vadd.f32 %v2963_v4, %v678_v8 }
  0xb1   : > { %v688_v10 = vsel %vm687_vm2, %v679_v9, 0.0 }
  0xb2   : > { %689 = vadd.xlane.f32.xlu0 %v688_v10 }
 0x11d   : > { %v686_v18 = vpop.xlane.xlu0 %685 }
 0x11e   : > { %v698_v19 = vmul.f32 %v3276_v17, %v686_v18  ;;  %v823_v18 = vld [vmem:[#allocation4 + $0x50] sm:$0xff] }
 0x11f   : > { %898 = vmatpush.msra.mxu3 %v823_v18 }
 0x120   : > { %v700_v20 = vsub.f32 %v676_v6, %v698_v19  ;;  %v812_v19 = vld [vmem:[#allocation4 + $0x8] sm:$0xff] }
 0x121   : > { %851 = vmatpush.msra.mxu1 %v812_v19 }
 0x122   : > { %v702_v21 = vmul.f32 %v700_v20, %v700_v20 }
 0x124   : > { %v704_v22 = vsel %vm683_vm1, %v702_v21, 0.0  ;;  %v822_v21 = vld [vmem:[#allocation4 + $0x48] sm:$0xff] }
 0x125   : > { %705 = vadd.xlane.f32.xlu1 %v704_v22  ;;  %v690_v23 = vpop.xlane.xlu0 %689  ;;  %899 = vmatpush.msra.mxu3 %v822_v21  ;;  %v811_v22 = vld [vmem:[#allocation4] sm:$0xff] }
 0x126   : > { %v699_v24 = vmul.f32 %v3276_v17, %v690_v23  ;;  %v816_v23 = vld [vmem:[#allocation4 + $0x20] sm:$0xff]  ;;  %852 = vmatpush.msra.mxu1 %v811_v22 }
 0x128   : > { %v701_v25 = vsub.f32 %v679_v9, %v699_v24  ;;  %v821_v24 = vld [vmem:[#allocation4 + $0x40] sm:$0xff] }
 0x129   : > { %900 = vmatpush.msra.mxu3 %v821_v24 }
 0x12a   : > { %v703_v26 = vmul.f32 %v701_v25, %v701_v25 }
 0x12c   : > { %v707_v27 = vsel %vm687_vm2, %v703_v26, 0.0 }
 0x12d   : > { %708 = vadd.xlane.f32.xlu1 %v707_v27 }
 0x198   : > { %v706_v28 = vpop.xlane.xlu1 %705 }
 0x199   : > { %v710_v29 = vmul.f32 %v706_v28, %v3276_v17 }
 0x19b   : > { %v712_v30 = vadd.f32 1e-12, %v710_v29 }
 0x19d   : > { %2975 = vrsqrt.f32 %v712_v30  ;;  %vm720_vm5 = vweird.f32 %v712_v30 }
 0x1a0   : > { %v709_v31 = vpop.xlane.xlu1 %708 }
 0x1a1   : > { %v711_v32 = vmul.f32 %v709_v31, %v3276_v17 }
 0x1a3   : > { %v2976_v33 = vpop.eup %2975  ;;  %v713_v34 = vadd.f32 1e-12, %v711_v32 }
 0x1a4   : > { %v715_v35 = vmul.f32 %v2976_v33, %v712_v30  ;;  %vm721_vm4 = vweird.f32 %v2976_v33 }
 0x1a5   : > { %2977 = vrsqrt.f32 %v713_v34  ;;  %vm722_vm6 = vmor %vm720_vm5, %vm721_vm4  ;;  %vm730_vm8 = vweird.f32 %v713_v34  ;;  %vm948_vm5 = vcmask 97280  }
 0x1a6   : > { %v716_v36 = vmul.f32 %v2976_v33, %v715_v35 }
 0x1a8   : > { %v717_v37 = vmul.f32 0.5, %v716_v36  ;;  %v3319_v36 = vld [vmem:[%s3865_s9] sm:$0x3] }
 0x1aa   : > { %v718_v38 = vsub.f32 1.5, %v717_v37 }
 0x1ab   : > { %v2978_v39 = vpop.eup %2977 }
 0x1ac   : > { %v719_v40 = vmul.f32 %v2976_v33, %v718_v38  ;;  %v725_v41 = vmul.f32 %v2978_v39, %v713_v34  ;;  %vm731_vm7 = vweird.f32 %v2978_v39 }
 0x1ad   : > { %vm732_vm9 = vmor %vm730_vm8, %vm731_vm7 }
 0x1ae   : > { %v723_v43 = vsel %vm722_vm6, %v2976_v33, %v719_v40  ;;  %v726_v44 = vmul.f32 %v2978_v39, %v725_v41  ;;  %v3324_v40 = vld [vmem:[%s3866_s10] sm:$0x3]  ;;  %v805_v41 = vperm.slane %v3319_v36, 0  ;;  %vm952_vm6 = vcmask 93184  }
 0x1af   : > { %v734_v45 = vmul.f32 %v723_v43, %v700_v20  ;;  %v817_v20 = vld [vmem:[#allocation4 + $0x28] sm:$0xff] }
 0x1b0   : > { %v727_v47 = vmul.f32 0.5, %v726_v44  ;;  %875 = vmatpush.msra.mxu2 %v817_v20 }
 0x1b1   : > { %v739_v48 = vmul.f32 %v2964_v42, %v734_v45  ;;  %v808_v45 = vperm.slane %v3324_v40, 0 }
 0x1b2   : > { %v728_v49 = vsub.f32 1.5, %v727_v47  ;;  %876 = vmatpush.msra.mxu2 %v816_v23 }
 0x1b3   : > { %v744_v50 = vadd.f32 %v2965_v46, %v739_v48 }
 0x1b4   : > { %v729_v51 = vmul.f32 %v2978_v39, %v728_v49 }
 0x1b5   : > { %v746_v52 = vmax.f32 %v744_v50, 0.0 }
 0x1b6   : > { %v733_v53 = vsel %vm732_vm9, %v2978_v39, %v729_v51 }
 0x1b7   : > { %v735_v55 = vmul.f32 %v733_v53, %v701_v25  ;;  %v748_v56 = vmul.f32 5.656854, %v746_v52 }
 0x1b9   : > { %v3293_v57 = vadd.f32 %v750_v54, %v748_v56  ;;  %v740_v58 = vmul.f32 %v2964_v42, %v735_v55 }
 0x1bb   : > { %v761_v59 = vsel %vm683_vm1, %v3293_v57, 0.0  ;;  %v745_v60 = vadd.f32 %v2965_v46, %v740_v58  ;;  %v3338_v58 = vld [vmem:[%s3864_s8] sm:$0xf] }
 0x1bc   : > { %762 = vadd.xlane.f32.xlu2 %v761_v59  ;;  %v860_v59 = vperm.slane %v3338_v58, 1 }
 0x1bd   : > { %v747_v61 = vmax.f32 %v745_v60, 0.0  ;;  %v884_v60 = vperm.slane %v3338_v58, 2 }
 0x1bf   : > { %v749_v63 = vmul.f32 5.656854, %v747_v61 }
 0x1c1   : > { %v3300_v0 = vadd.f32 %v751_v62, %v749_v63 }
 0x1c3   : > { %v764_v1 = vsel %vm687_vm2, %v3300_v0, 0.0 }
 0x1c4   : > { %765 = vadd.xlane.f32.xlu2 %v764_v1 }
 0x22f   : > { %v763_v2 = vpop.xlane.xlu2 %762 }
 0x230   : > { %v767_v3 = vmul.f32 %v763_v2, %v3276_v17 }
 0x232   : > { %v769_v4 = vsub.f32 %v3293_v57, %v767_v3  ;;  %v830_v3 = vperm.slane %v3338_v58, 0 }
 0x234   : > { %v771_v5 = vmul.f32 %v769_v4, %v769_v4 }
 0x236   : > { %v773_v6 = vsel %vm683_vm1, %v771_v5, 0.0 }
 0x237   : > { %774 = vadd.xlane.f32.xlu0 %v773_v6  ;;  %v766_v7 = vpop.xlane.xlu2 %765 }
 0x238   : > { %v768_v8 = vmul.f32 %v766_v7, %v3276_v17 }
 0x23a   : > { %v3309_v9 = vsub.f32 %v3300_v0, %v768_v8 }
 0x23c   : > { %v772_v10 = vmul.f32 %v3309_v9, %v3309_v9 }
 0x23e   : > { %v776_v11 = vsel %vm687_vm2, %v772_v10, 0.0 }
 0x23f   : > { %777 = vadd.xlane.f32.xlu1 %v776_v11  ;;  %v756_v11 = vstv %s642_s22  ;;  %s641_s22 = scalar_lea.vmem %s3876_s20, %s3259_s0 }
 0x2aa   : > { %v775_v25 = vpop.xlane.xlu0 %774 }
 0x2ab   : > { %v779_v26 = vmul.f32 %v775_v25, %v3276_v17 }
 0x2ad   : > { %v781_v27 = vadd.f32 1e-12, %v779_v26 }
 0x2af   : > { %2979 = vrsqrt.f32 %v781_v27  ;;  %vm789_vm11 = vweird.f32 %v781_v27 }
 0x2b2   : > { %v778_v28 = vpop.xlane.xlu1 %777 }
 0x2b3   : > { %v780_v29 = vmul.f32 %v778_v28, %v3276_v17 }
 0x2b5   : > { %v2980_v30 = vpop.eup %2979  ;;  %v782_v31 = vadd.f32 1e-12, %v780_v29 }
 0x2b6   : > { %v784_v32 = vmul.f32 %v2980_v30, %v781_v27  ;;  %vm790_vm10 = vweird.f32 %v2980_v30 }
 0x2b7   : > { %2981 = vrsqrt.f32 %v782_v31  ;;  %vm791_vm12 = vmor %vm789_vm11, %vm790_vm10  ;;  %vm799_vm14 = vweird.f32 %v782_v31 }
 0x2b8   : > { %v785_v33 = vmul.f32 %v2980_v30, %v784_v32 }
 0x2ba   : > { %v786_v34 = vmul.f32 0.5, %v785_v33  ;;  %v826_v33 = vld [vmem:[#allocation4 + $0x60] sm:$0xff] }
 0x2bc   : > { %v787_v35 = vsub.f32 1.5, %v786_v34 }
 0x2bd   : > { %v2982_v37 = vpop.eup %2981 }
 0x2be   : > { %v788_v38 = vmul.f32 %v2980_v30, %v787_v35  ;;  %v794_v39 = vmul.f32 %v2982_v37, %v782_v31  ;;  %vm800_vm13 = vweird.f32 %v2982_v37 }
 0x2bf   : > { %vm801_vm15 = vmor %vm799_vm14, %vm800_vm13 }
 0x2c0   : > { %v792_v42 = vsel %vm791_vm12, %v2980_v30, %v788_v38  ;;  %v795_v43 = vmul.f32 %v2982_v37, %v794_v39 }
 0x2c1   : > { %v803_v44 = vmul.f32 %v792_v42, %v769_v4 }
 0x2c2   : > { %v796_v46 = vmul.f32 0.5, %v795_v43 }
 0x2c3   : > { %v806_v47 = vmul.f32 %v805_v41, %v803_v44 }
 0x2c4   : > { %v797_v48 = vsub.f32 1.5, %v796_v46 }
 0x2c5   : > { %v809_v49 = vadd.f32 %v808_v45, %v806_v47 }
 0x2c6   : > { %v798_v50 = vmul.f32 %v2982_v37, %v797_v48 }
 0x2c7   : > { %2821 = vmatmul.msk.f32.vlgmr.msra.gmra.mxu1 %vm683_vm1, %v809_v49  ;;  %2823 = vmatmul.msk.f32.vlgmr.msra.gmra.mxu2 %vm683_vm1, %v809_v49 }
 0x2c8   : > { %v802_v51 = vsel %vm801_vm15, %v2982_v37, %v798_v50  ;;  %2825 = vmatmul.msk.f32.vlgmr.msra.gmra.mxu3 %vm683_vm1, %v809_v49 }
 0x2c9   : > { %v804_v52 = vmul.f32 %v802_v51, %v3309_v9  ;;  %v754_v9 = vlaneseq }
 0x2cb   : > { %v807_v53 = vmul.f32 %v805_v41, %v804_v52  ;;  %v755_v10 = vand.u32 127, %v754_v9 }
 0x2cd   : > { %v810_v54 = vadd.f32 %v808_v45, %v807_v53  ;;  %vm3355_vm4 = vcmp.lt.s32.totalorder %v755_v10, %v756_v11 }
 0x2cf   : > { %2822 = vmatmul.msk.f32.gmra.mxu1 %vm683_vm1, %v810_v54  ;;  %2824 = vmatmul.msk.f32.gmra.mxu2 %vm683_vm1, %v810_v54 }
 0x2d0   : > { %2826 = vmatmul.msk.f32.gmra.mxu3 %vm683_vm1, %v810_v54 }
 0x344   : > { %v854_v2 = vpop.f32.mrf.mxu1 }
 0x345   : > { %v855_v6 = vadd.f32 %v854_v2, %v830_v3 }
 0x34a   : > { %v878_v55 = vpop.f32.mrf.mxu2 }
 0x34b   : > { %v902_v56 = vpop.f32.mrf.mxu3  ;;  %v879_v5 = vadd.f32 %v878_v55, %v860_v59 }
 0x34c   : > { %v3346_v4 = vadd.f32 %v902_v56, %v884_v60  ;;  %v857_v7 = vpop.f32.mrf.mxu1 }
 0x34d   : > { %v858_v8 = vadd.f32 %v857_v7, %v830_v3 }
 0x352   : > { %v881_v61 = vpop.f32.mrf.mxu2 }
 0x353   : > { %v882_v62 = vadd.f32 %v881_v61, %v860_v59  ;;  %v905_v63 = vpop.f32.mrf.mxu3 }
 0x354   : > { %v3342_v1 = vadd.f32 %v905_v63, %v884_v60 }
 0x355   : > { %2827 = vmatpush.xpose.msk.msrb.mxu0 %vm908_vm0, %v882_v62 }
 0x356   : > { %2831 = vmatpush.msk.msrb.mxu1 %vm1004_vm3, %v3342_v1 }
 0x358   : > { %1023 = vmatpush.msrb.mxu1 %v3346_v4 }
 0x359   : > { %2828 = vmatpush.xpose.msk.msrb.mxu0 %vm908_vm0, %v879_v5 }
 0x35a   : > { %1209 = vmatpush.msra.mxu1 %v826_v33 }
 0x35c   : > { %2829 = vmatmul.msk.f32.vlgmr.msrb.gmra.mxu0 %vm908_vm0, %v855_v6 }
 0x364   : > { %2830 = vmatmul.msk.f32.gmra.mxu0 %vm908_vm0, %v858_v8 }
 0x3d9   : > { %v938_v12 = vpop.f32.mrf.mxu0 }
 0x3da   : > { %v944_v14 = vmul.f32 0.35355338, %v938_v12 }
 0x3dc   : > { %v946_v15 = vsel %vm3355_vm4, %v944_v14, -1e+30 }
 0x3dd   : > { %v949_v16 = vsel %vm948_vm5, %v946_v15, -inf }
 0x3de   : > { %950 = vmax.xlane.f32.xlu2 %v949_v16 }
 0x3e1   : > { %v941_v18 = vpop.f32.mrf.mxu0 }
 0x3e2   : > { %v945_v19 = vmul.f32 0.35355338, %v941_v18 }
 0x3e4   : > { %v947_v20 = vsel %vm3355_vm4, %v945_v19, -1e+30 }
 0x3e5   : > { %v953_v21 = vsel %vm952_vm6, %v947_v20, -inf }
 0x3e6   : > { %954 = vmax.xlane.f32.xlu0 %v953_v21 }
 0x3fa   : > { %1037 = vrot.lane.b32.xlu0 %v882_v62, %s3132_s27 }
 0x402   : > { %1033 = vrot.lane.b32.xlu0 %v858_v8, %s3132_s27 }
 0x40a   : > { %1221 = vrot.lane.b32.xlu0 %v879_v5, %s3133_s23 }
 0x412   : > { %1375 = vrot.lane.b32.xlu0 %v855_v6, %s3134_s24 }
 0x451   : > { %v951_v22 = vpop.xlane.xlu2 %950 }
 0x452   : > { %v956_v23 = vsub.f32 %v946_v15, %v951_v22 }
 0x454   : > { %v958_v24 = vmul.f32 1.442695, %v956_v23 }
 0x456   : > { %2983 = vpow2.f32 %v958_v24 }
 0x459   : > { %v955_v25 = vpop.xlane.xlu0 %954 }
 0x45a   : > { %v957_v26 = vsub.f32 %v947_v20, %v955_v25 }
 0x45c   : > { %v2984_v27 = vpop.eup %2983  ;;  %v960_v28 = vmul.f32 1.442695, %v957_v26 }
 0x45d   : > { %v962_v29 = vsel %vm948_vm5, %v2984_v27, 0.0 }
 0x45e   : > { %2985 = vpow2.f32 %v960_v28  ;;  %963 = vadd.xlane.f32.xlu1 %v962_v29 }
 0x464   : > { %v2986_v30 = vpop.eup %2985 }
 0x465   : > { %v965_v31 = vsel %vm952_vm6, %v2986_v30, 0.0 }
 0x466   : > { %966 = vadd.xlane.f32.xlu2 %v965_v31 }
 0x46c   : > { %v1038_v32 = vpop.permute.xlu0 %1037 }
 0x46d   : > { %2834 = vmatpush.xpose.msk.msrb.mxu2 %vm908_vm0, %v1038_v32 }
 0x474   : > { %v1034_v53 = vpop.permute.xlu0 %1033 }
 0x477   : > { %1035 = vrot.lane.b32.xlu1 %v879_v5, %s3132_s27 }
 0x47e   : > { %1031 = vrot.lane.b32.xlu2 %v855_v6, %s3132_s27 }
 0x47f   : > { %1381 = vrot.lane.b32.xlu1 %v882_v62, %s3134_s24 }
 0x486   : > { %1223 = vrot.lane.b32.xlu2 %v882_v62, %s3133_s23 }
 0x487   : > { %1217 = vrot.lane.b32.xlu1 %v855_v6, %s3133_s23 }
 0x48e   : > { %1379 = vrot.lane.b32.xlu2 %v879_v5, %s3134_s24  ;;  %v1222_v5 = vpop.permute.xlu0 %1221 }
 0x48f   : > { %1377 = vrot.lane.b32.xlu1 %v858_v8, %s3134_s24 }
 0x496   : > { %1219 = vrot.lane.b32.xlu2 %v858_v8, %s3133_s23  ;;  %v1376_v15 = vpop.permute.xlu0 %1375 }
 0x4d1   : > { %v964_v34 = vpop.xlane.xlu1 %963 }
 0x4d2   : > { %2987 = vrcp.f32 %v964_v34  ;;  %v979_v41 = vand.u32 2147483648, %v964_v34  ;;  %v977_v43 = vand.u32 2147483647, %v964_v34  ;;  %vm973_vm8 = vweird.f32 %v964_v34 }
 0x4d4   : > { %v980_v46 = vor.u32 1.1754944e-38, %v979_v41  ;;  %vm978_vm10 = vcmp.eq.f32.partialorder %v977_v43, 8.507059e+37 }
 0x4d8   : > { %v2988_v35 = vpop.eup %2987 }
 0x4d9   : > { %v969_v37 = vmul.f32 %v2988_v35, %v964_v34  ;;  %v967_v38 = vpop.xlane.xlu2 %966  ;;  %vm974_vm7 = vweird.f32 %v2988_v35 }
 0x4da   : > { %2989 = vrcp.f32 %v967_v38  ;;  %vm975_vm9 = vmor %vm973_vm8, %vm974_vm7  ;;  %v994_v54 = vand.u32 2147483648, %v967_v38  ;;  %v992_v56 = vand.u32 2147483647, %v967_v38  ;;  %vm988_vm12 = vweird.f32 %v967_v38 }
 0x4db   : > { %v970_v39 = vsub.f32 1.0, %v969_v37 }
 0x4dc   : > { %v995_v60 = vor.u32 1.1754944e-38, %v994_v54  ;;  %vm993_vm14 = vcmp.eq.f32.partialorder %v992_v56, 8.507059e+37 }
 0x4dd   : > { %v971_v42 = vmul.f32 %v2988_v35, %v970_v39 }
 0x4df   : > { %v972_v44 = vadd.f32 %v2988_v35, %v971_v42 }
 0x4e0   : > { %v2990_v45 = vpop.eup %2989 }
 0x4e1   : > { %v984_v47 = vmul.f32 %v2990_v45, %v967_v38  ;;  %v1032_v48 = vpop.permute.xlu2 %1031  ;;  %v976_v49 = vsel %vm975_vm9, %v2988_v35, %v972_v44  ;;  %vm989_vm11 = vweird.f32 %v2990_v45 }
 0x4e2   : > { %v981_v50 = vsel %vm978_vm10, %v980_v46, %v976_v49  ;;  %vm990_vm13 = vmor %vm988_vm12, %vm989_vm11 }
 0x4e3   : > { %v985_v51 = vsub.f32 1.0, %v984_v47  ;;  %v982_v52 = vmul.f32 %v2984_v27, %v981_v50 }
 0x4e5   : > { %v986_v55 = vmul.f32 %v2990_v45, %v985_v51  ;;  %2832 = vmatmul.msk.f32.vlgmr.msrb.gmra.mxu1 %vm948_vm5, %v982_v52 }
 0x4e7   : > { %v987_v59 = vadd.f32 %v2990_v45, %v986_v55 }
 0x4e9   : > { %v1036_v61 = vpop.permute.xlu1 %1035  ;;  %v1224_v62 = vpop.permute.xlu2 %1223  ;;  %v991_v63 = vsel %vm990_vm13, %v2990_v45, %v987_v59 }
 0x4ea   : > { %2835 = vmatpush.xpose.msk.msrb.mxu2 %vm908_vm0, %v1036_v61  ;;  %v996_v2 = vsel %vm993_vm14, %v995_v60, %v991_v63 }
 0x4eb   : > { %v997_v3 = vmul.f32 %v2986_v30, %v996_v2 }
 0x4ed   : > { %2833 = vmatmul.msk.f32.gmra.mxu1 %vm948_vm5, %v997_v3  ;;  %2836 = vmatmul.msk.f32.vlgmr.msrb.gmra.mxu2 %vm908_vm0, %v1032_v48 }
 0x4ee   : > { %2845 = vmatpush.xpose.msk.msra.mxu2 %vm908_vm0, %v1224_v62 }
 0x4f1   : > { %v1382_v6 = vpop.permute.xlu1 %1381  ;;  %v1380_v7 = vpop.permute.xlu2 %1379 }
 0x4f2   : > { %2846 = vmatpush.xpose.msk.msra.mxu2 %vm908_vm0, %v1222_v5  ;;  %2854 = vmatpush.xpose.msk.msrb.mxu1 %vm908_vm0, %v1382_v6 }
 0x4f5   : > { %2837 = vmatmul.msk.f32.gmra.mxu2 %vm908_vm0, %v1034_v53 }
 0x4f6   : > { %2855 = vmatpush.xpose.msk.msrb.mxu1 %vm908_vm0, %v1380_v7 }
 0x4f9   : > { %v1218_v8 = vpop.permute.xlu1 %1217  ;;  %v1220_v9 = vpop.permute.xlu2 %1219 }
 0x4fd   : > { %2847 = vmatmul.msk.f32.vlgmr.msra.gmra.mxu2 %vm908_vm0, %v1218_v8 }
 0x501   : > { %v1378_v21 = vpop.permute.xlu1 %1377 }
 0x505   : > { %2848 = vmatmul.msk.f32.gmra.mxu2 %vm908_vm0, %v1220_v9 }
 0x562   : > { %v1025_v10 = vpop.f32.mrf.mxu1 }
 0x563   : > { %2843 = vmatmul.msk.f32.vlgmr.msra.gmra.mxu1 %vm908_vm0, %v1025_v10 }
 0x56a   : > { %v1028_v11 = vpop.f32.mrf.mxu1 }
 0x56b   : > { %2844 = vmatmul.msk.f32.gmra.mxu1 %vm908_vm0, %v1028_v11 }
 0x570   : > { %v1064_v12 = vpop.f32.mrf.mxu2 }
 0x571   : > { %v1070_v14 = vmul.f32 0.35355338, %v1064_v12 }
 0x573   : > { %2856 = vmatmul.msk.f32.vlgmr.msrb.gmra.mxu1 %vm908_vm0, %v1376_v15  ;;  %v1072_v16 = vsel %vm3355_vm4, %v1070_v14, -1e+30 }
 0x574   : > { %v1074_v18 = vsel %vm948_vm5, %v1072_v16, -inf }
 0x575   : > { %1075 = vmax.xlane.f32.xlu0 %v1074_v18 }
 0x578   : > { %v1067_v19 = vpop.f32.mrf.mxu2 }
 0x579   : > { %v1071_v20 = vmul.f32 0.35355338, %v1067_v19 }
 0x57b   : > { %2857 = vmatmul.msk.f32.gmra.mxu1 %vm908_vm0, %v1378_v21  ;;  %v1073_v22 = vsel %vm3355_vm4, %v1071_v20, -1e+30 }
 0x57c   : > { %v1077_v23 = vsel %vm952_vm6, %v1073_v22, -inf }
 0x57d   : > { %1078 = vmax.xlane.f32.xlu2 %v1077_v23 }
 0x580   : > { %v1250_v24 = vpop.f32.mrf.mxu2 }
 0x581   : > { %v1256_v25 = vmul.f32 0.35355338, %v1250_v24 }
 0x583   : > { %v1258_v26 = vsel %vm3355_vm4, %v1256_v25, -1e+30 }
 0x584   : > { %v1260_v27 = vsel %vm948_vm5, %v1258_v26, -inf }
 0x585   : > { %1261 = vmax.xlane.f32.xlu0 %v1260_v27 }
 0x588   : > { %v1253_v28 = vpop.f32.mrf.mxu2 }
 0x589   : > { %v1257_v29 = vmul.f32 0.35355338, %v1253_v28 }
 0x58b   : > { %v1259_v30 = vsel %vm3355_vm4, %v1257_v29, -1e+30 }
 0x58c   : > { %v1263_v31 = vsel %vm952_vm6, %v1259_v30, -inf }
 0x58d   : > { %1264 = vmax.xlane.f32.xlu1 %v1263_v31 }
 0x5e0   : > { %v3407_v32 = vpop.f32.mrf.mxu1 }
 0x5e8   : > { %v3409_v33 = vpop.f32.mrf.mxu1  ;;  %v1076_v34 = vpop.xlane.xlu0 %1075 }
 0x5e9   : > { %v1080_v35 = vsub.f32 %v1072_v16, %v1076_v34 }
 0x5eb   : > { %v1082_v37 = vmul.f32 1.442695, %v1080_v35 }
 0x5ed   : > { %2991 = vpow2.f32 %v1082_v37 }
 0x5f0   : > { %v1408_v38 = vpop.f32.mrf.mxu1  ;;  %v1079_v39 = vpop.xlane.xlu2 %1078 }
 0x5f1   : > { %v1414_v41 = vmul.f32 0.35355338, %v1408_v38  ;;  %v1081_v43 = vsub.f32 %v1073_v22, %v1079_v39 }
 0x5f3   : > { %v3411_v42 = vpop.eup %2991  ;;  %v1416_v44 = vsel %vm3355_vm4, %v1414_v41, -1e+30  ;;  %v1084_v47 = vmul.f32 1.442695, %v1081_v43 }
 0x5f4   : > { %v1086_v45 = vsel %vm948_vm5, %v3411_v42, 0.0  ;;  %v1418_v46 = vsel %vm948_vm5, %v1416_v44, -inf }
 0x5f5   : > { %1087 = vadd.xlane.f32.xlu0 %v1086_v45  ;;  %1419 = vmax.xlane.f32.xlu1 %v1418_v46  ;;  %2993 = vpow2.f32 %v1084_v47 }
 0x5f8   : > { %v1262_v48 = vpop.xlane.xlu0 %1261  ;;  %v1411_v49 = vpop.f32.mrf.mxu1 }
 0x5f9   : > { %v1266_v50 = vsub.f32 %v1258_v26, %v1262_v48  ;;  %v1415_v51 = vmul.f32 0.35355338, %v1411_v49  ;;  %v827_v48 = vld [vmem:[#allocation4 + $0x68] sm:$0xff] }
 0x5fa   : > { %1180 = vmatpush.msra.mxu0 %v827_v48  ;;  %v828_v48 = vld [vmem:[#allocation4 + $0x70] sm:$0xff] }
 0x5fb   : > { %v1268_v52 = vmul.f32 1.442695, %v1266_v50  ;;  %v1417_v53 = vsel %vm3355_vm4, %v1415_v51, -1e+30  ;;  %v3421_v56 = vpop.eup %2993 }
 0x5fc   : > { %v1421_v54 = vsel %vm952_vm6, %v1417_v53, -inf  ;;  %v1089_v63 = vsel %vm952_vm6, %v3421_v56, 0.0  ;;  %1365 = vmatpush.msrb.mxu0 %v828_v48 }
 0x5fd   : > { %2995 = vpow2.f32 %v1268_v52  ;;  %1422 = vmax.xlane.f32.xlu2 %v1421_v54 }
 0x600   : > { %v1265_v55 = vpop.xlane.xlu1 %1264 }
 0x601   : > { %v1267_v59 = vsub.f32 %v1259_v30, %v1265_v55 }
 0x603   : > { %v3423_v60 = vpop.eup %2995  ;;  %v1270_v61 = vmul.f32 1.442695, %v1267_v59 }
 0x604   : > { %v1272_v62 = vsel %vm948_vm5, %v3423_v60, 0.0 }
 0x605   : > { %2997 = vpow2.f32 %v1270_v61  ;;  %1273 = vadd.xlane.f32.xlu0 %v1272_v62  ;;  %1090 = vadd.xlane.f32.xlu2 %v1089_v63 }
 0x60b   : > { %v3429_v2 = vpop.eup %2997 }
 0x60c   : > { %v1275_v3 = vsel %vm952_vm6, %v3429_v2, 0.0 }
 0x60d   : > { %1276 = vadd.xlane.f32.xlu0 %v1275_v3 }
 0x60e   : > { %1123 = vrot.lane.b32.xlu1 %v3346_v4, %s3132_s27 }
 0x61d   : > { %1125 = vrot.lane.b32.xlu2 %v3342_v1, %s3132_s27 }
 0x625   : > { %1466 = vrot.lane.b32.xlu2 %v3346_v4, %s3134_s24 }
 0x62d   : > { %1308 = vrot.lane.b32.xlu2 %v3346_v4, %s3133_s23 }
 0x668   : > { %v1088_v5 = vpop.xlane.xlu0 %1087  ;;  %v1420_v6 = vpop.xlane.xlu1 %1419 }
 0x669   : > { %2999 = vrcp.f32 %v1088_v5  ;;  %v1424_v7 = vsub.f32 %v1416_v44, %v1420_v6  ;;  %v1103_v21 = vand.u32 2147483648, %v1088_v5  ;;  %vm1097_vm7 = vweird.f32 %v1088_v5 }
 0x66a   : > { %v1101_v23 = vand.u32 2147483647, %v1088_v5 }
 0x66b   : > { %v1426_v8 = vmul.f32 1.442695, %v1424_v7  ;;  %v1104_v26 = vor.u32 1.1754944e-38, %v1103_v21 }
 0x66c   : > { %vm1102_vm9 = vcmp.eq.f32.partialorder %v1101_v23, 8.507059e+37 }
 0x66d   : > { %3001 = vpow2.f32 %v1426_v8 }
 0x66f   : > { %v3000_v9 = vpop.eup %2999 }
 0x670   : > { %v1093_v10 = vmul.f32 %v3000_v9, %v1088_v5  ;;  %v1423_v11 = vpop.xlane.xlu2 %1422  ;;  %vm1098_vm15 = vweird.f32 %v3000_v9 }
 0x671   : > { %v1425_v12 = vsub.f32 %v1417_v53, %v1423_v11  ;;  %vm1099_vm8 = vmor %vm1097_vm7, %vm1098_vm15 }
 0x672   : > { %v1094_v14 = vsub.f32 1.0, %v1093_v10 }
 0x673   : > { %v1428_v15 = vmul.f32 1.442695, %v1425_v12  ;;  %v3441_v16 = vpop.eup %3001 }
 0x674   : > { %v1095_v18 = vmul.f32 %v3000_v9, %v1094_v14  ;;  %v1430_v19 = vsel %vm948_vm5, %v3441_v16, 0.0 }
 0x675   : > { %3003 = vpow2.f32 %v1428_v15  ;;  %1431 = vadd.xlane.f32.xlu1 %v1430_v19 }
 0x676   : > { %v1096_v20 = vadd.f32 %v3000_v9, %v1095_v18 }
 0x678   : > { %v1091_v4 = vpop.xlane.xlu2 %1090  ;;  %v1100_v25 = vsel %vm1099_vm8, %v3000_v9, %v1096_v20 }
 0x679   : > { %3005 = vrcp.f32 %v1091_v4  ;;  %v1105_v28 = vsel %vm1102_vm9, %v1104_v26, %v1100_v25  ;;  %v1118_v37 = vand.u32 2147483648, %v1091_v4  ;;  %v1116_v39 = vand.u32 2147483647, %v1091_v4 }
 0x67a   : > { %v1106_v35 = vmul.f32 %v3411_v42, %v1105_v28  ;;  %vm1112_vm11 = vweird.f32 %v1091_v4  ;;  %v1274_v42 = vpop.xlane.xlu0 %1273 }
 0x67b   : > { %v3445_v22 = vpop.eup %3003  ;;  %v1119_v43 = vor.u32 1.1754944e-38, %v1118_v37  ;;  %vm1117_vm13 = vcmp.eq.f32.partialorder %v1116_v39, 8.507059e+37  ;;  %3007 = vrcp.f32 %v1274_v42  ;;  %vm1283_vm15 = vweird.f32 %v1274_v42 }
 0x67c   : > { %v1433_v24 = vsel %vm952_vm6, %v3445_v22, 0.0  ;;  %v1289_v8 = vand.u32 2147483648, %v1274_v42  ;;  %v1287_v9 = vand.u32 2147483647, %v1274_v42 }
 0x67d   : > { %1434 = vadd.xlane.f32.xlu0 %v1433_v24 }
 0x67e   : > { %v1290_v19 = vor.u32 1.1754944e-38, %v1289_v8 }
 0x67f   : > { %v3006_v27 = vpop.eup %3005 }
 0x680   : > { %v1108_v29 = vmul.f32 %v3006_v27, %v1091_v4  ;;  %v1126_v30 = vpop.permute.xlu2 %1125  ;;  %v1124_v34 = vpop.permute.xlu1 %1123  ;;  %vm1113_vm10 = vweird.f32 %v3006_v27 }
 0x681   : > { %2838 = vmatpush.msk.msrb.mxu3 %vm1004_vm3, %v1126_v30  ;;  %vm1114_vm12 = vmor %vm1112_vm11, %vm1113_vm10  ;;  %v3008_v50 = vpop.eup %3007  ;;  %vm1288_vm11 = vcmp.eq.f32.partialorder %v1287_v9, 8.507059e+37 }
 0x682   : > { %v1109_v31 = vsub.f32 1.0, %v1108_v29  ;;  %v3458_v47 = vpop.xlane.xlu0 %1276  ;;  %v1279_v51 = vmul.f32 %v3008_v50, %v1274_v42  ;;  %vm1284_vm14 = vweird.f32 %v3008_v50 }
 0x683   : > { %1151 = vmatpush.msrb.mxu3 %v1124_v34  ;;  %vm1285_vm8 = vmor %vm1283_vm15, %vm1284_vm14  ;;  %vm1298_vm14 = vweird.f32 %v3458_v47  ;;  %v1304_v26 = vand.u32 2147483648, %v3458_v47 }
 0x684   : > { %v1110_v38 = vmul.f32 %v3006_v27, %v1109_v31  ;;  %2839 = vmatmul.msk.f32.vlgmr.msrb.gmra.mxu3 %vm948_vm5, %v1106_v35  ;;  %v1280_v54 = vsub.f32 1.0, %v1279_v51  ;;  %v1302_v31 = vand.u32 2147483647, %v3458_v47 }
 0x685   : > { %v1305_v39 = vor.u32 1.1754944e-38, %v1304_v26 }
 0x686   : > { %v1111_v41 = vadd.f32 %v3006_v27, %v1110_v38  ;;  %v1281_v59 = vmul.f32 %v3008_v50, %v1280_v54 }
 0x688   : > { %v1115_v44 = vsel %vm1114_vm12, %v3006_v27, %v1111_v41  ;;  %v1282_v5 = vadd.f32 %v3008_v50, %v1281_v59  ;;  %v1467_v7 = vpop.permute.xlu2 %1466 }
 0x689   : > { %v1120_v45 = vsel %vm1117_vm13, %v1119_v43, %v1115_v44 }
 0x68a   : > { %v1121_v46 = vmul.f32 %v3421_v56, %v1120_v45  ;;  %v1286_v14 = vsel %vm1285_vm8, %v3008_v50, %v1282_v5 }
 0x68b   : > { %v1291_v21 = vsel %vm1288_vm11, %v1290_v19, %v1286_v14 }
 0x68c   : > { %2840 = vmatmul.msk.f32.gmra.mxu3 %vm948_vm5, %v1121_v46  ;;  %v1292_v30 = vmul.f32 %v3423_v60, %v1291_v21  ;;  %v1590_v21 = vld [vmem:[%s3867_s11 + $0x10] sm:$0xff] }
 0x68e   : > { %1310 = vrot.lane.b32.xlu1 %v3342_v1, %s3133_s23 }
 0x690   : > { %v1309_v28 = vpop.permute.xlu2 %1308 }
 0x691   : > { %1468 = vrot.lane.b32.xlu0 %v3342_v1, %s3134_s24 }
 0x6e8   : > { %v1432_v49 = vpop.xlane.xlu1 %1431 }
 0x6e9   : > { %3009 = vrcp.f32 %v1432_v49  ;;  %v1447_v12 = vand.u32 2147483648, %v1432_v49  ;;  %vm1441_vm9 = vweird.f32 %v1432_v49  ;;  %v1445_v18 = vand.u32 2147483647, %v1432_v49 }
 0x6ea   : > { %3011 = vrcp.f32 %v3458_v47 }
 0x6eb   : > { %v1448_v23 = vor.u32 1.1754944e-38, %v1447_v12  ;;  %vm1446_vm12 = vcmp.eq.f32.partialorder %v1445_v18, 8.507059e+37 }
 0x6ef   : > { %v3010_v52 = vpop.eup %3009 }
 0x6f0   : > { %v3461_v53 = vpop.xlane.xlu0 %1434  ;;  %v1437_v55 = vmul.f32 %v3010_v52, %v1432_v49  ;;  %v3464_v1 = vpop.eup %3011  ;;  %vm1442_vm7 = vweird.f32 %v3010_v52  ;;  %v829_v49 = vld [vmem:[#allocation4 + $0x78] sm:$0xff] }
 0x6f1   : > { %3013 = vrcp.f32 %v3461_v53  ;;  %v1294_v61 = vmul.f32 %v3464_v1, %v3458_v47  ;;  %vm1443_vm10 = vmor %vm1441_vm9, %vm1442_vm7  ;;  %vm1299_vm13 = vweird.f32 %v3464_v1  ;;  %v1462_v35 = vand.u32 2147483648, %v3461_v53 }
 0x6f2   : > { %v1438_v56 = vsub.f32 1.0, %v1437_v55  ;;  %vm1300_vm7 = vmor %vm1298_vm14, %vm1299_vm13  ;;  %vm1456_vm8 = vweird.f32 %v3461_v53  ;;  %v1460_v60 = vand.u32 2147483647, %v3461_v53 }
 0x6f3   : > { %v1295_v6 = vsub.f32 1.0, %v1294_v61  ;;  %v1463_v43 = vor.u32 1.1754944e-38, %v1462_v35  ;;  %v1597_v35 = vld [vmem:[%s3869_s13 + $0x20] sm:$0xff] }
 0x6f4   : > { %v1439_v63 = vmul.f32 %v3010_v52, %v1438_v56  ;;  %vm1461_vm11 = vcmp.eq.f32.partialorder %v1460_v60, 8.507059e+37  ;;  %v1533_v56 = vperm.slane %v3338_v58, 3  ;;  %v1596_v60 = vld [vmem:[%s3869_s13 + $0x18] sm:$0xff] }
 0x6f5   : > { %v1296_v15 = vmul.f32 %v3464_v1, %v1295_v6 }
 0x6f6   : > { %v1440_v10 = vadd.f32 %v3010_v52, %v1439_v63 }
 0x6f7   : > { %v3014_v62 = vpop.eup %3013  ;;  %v1297_v25 = vadd.f32 %v3464_v1, %v1296_v15 }
 0x6f8   : > { %v1452_v3 = vmul.f32 %v3014_v62, %v3461_v53  ;;  %v1444_v4 = vsel %vm1443_vm10, %v3010_v52, %v1440_v10  ;;  %vm1457_vm15 = vweird.f32 %v3014_v62  ;;  %vm1303_vm10 = vcmp.eq.f32.partialorder %v1302_v31, 8.507059e+37 }
 0x6f9   : > { %v1449_v27 = vsel %vm1446_vm12, %v1448_v23, %v1444_v4  ;;  %v1301_v38 = vsel %vm1300_vm7, %v3464_v1, %v1297_v25  ;;  %vm1458_vm9 = vmor %vm1456_vm8, %vm1457_vm15  ;;  %v1589_v23 = vld [vmem:[%s3867_s11 + $0x8] sm:$0xff] }
 0x6fa   : > { %v1453_v11 = vsub.f32 1.0, %v1452_v3  ;;  %v1450_v37 = vmul.f32 %v3441_v16, %v1449_v27  ;;  %v1306_v45 = vsel %vm1303_vm10, %v1305_v39, %v1301_v38 }
 0x6fb   : > { %v1307_v16 = vmul.f32 %v3429_v2, %v1306_v45 }
 0x6fc   : > { %v1454_v20 = vmul.f32 %v3014_v62, %v1453_v11 }
 0x6fe   : > { %v1455_v34 = vadd.f32 %v3014_v62, %v1454_v20  ;;  %v1591_v20 = vld [vmem:[%s3867_s11 + $0x18] sm:$0xff] }
 0x700   : > { %v1311_v24 = vpop.permute.xlu1 %1310  ;;  %v1459_v41 = vsel %vm1458_vm9, %v3014_v62, %v1455_v34  ;;  %vm1639_vm9 = vcmask 523264  }
 0x701   : > { %2849 = vmatpush.msk.msra.mxu3 %vm1004_vm3, %v1311_v24  ;;  %v1464_v46 = vsel %vm1461_vm11, %v1463_v43, %v1459_v41  ;;  %v1588_v24 = vld [vmem:[%s3867_s11] sm:$0xff] }
 0x702   : > { %v1465_v42 = vmul.f32 %v3445_v22, %v1464_v46 }
 0x703   : > { %v1469_v29 = vpop.permute.xlu0 %1468  ;;  %1336 = vmatpush.msra.mxu3 %v1309_v28  ;;  %v1600_v28 = vld [vmem:[%s3869_s13 + $0x38] sm:$0xff] }
 0x704   : > { %2858 = vmatpush.msk.msrb.mxu2 %vm1004_vm3, %v1469_v29  ;;  %2850 = vmatmul.msk.f32.vlgmr.msra.gmra.mxu3 %vm948_vm5, %v1292_v30  ;;  %v1599_v29 = vld [vmem:[%s3869_s13 + $0x30] sm:$0xff]  ;;  %v1598_v30 = vld [vmem:[%s3869_s13 + $0x28] sm:$0xff] }
 0x705   : > { %1523 = vmatpush.msrb.mxu3 %v829_v49  ;;  %1654 = vmatpush.msra.mxu1 %v1600_v28  ;;  %v1585_v49 = vperm.slane %v3324_v40, 1  ;;  %v1595_v40 = vld [vmem:[%s3869_s13 + $0x10] sm:$0xff] }
 0x706   : > { %1494 = vmatpush.msrb.mxu2 %v1467_v7  ;;  %v1730_v28 = vld [vmem:[#allocation4 + $0x90] sm:$0xff] }
 0x707   : > { %2859 = vmatmul.msk.f32.vlgmr.msrb.gmra.mxu2 %vm948_vm5, %v1450_v37  ;;  %v1153_v44 = vpop.f32.mrf.mxu3  ;;  %1655 = vmatpush.msra.mxu1 %v1599_v29  ;;  %v1735_v29 = vld [vmem:[#allocation4 + $0xb0] sm:$0xff] }
 0x708   : > { %2841 = vmatmul.msk.f32.vlgmr.msra.gmra.mxu0 %vm908_vm0, %v1153_v44 }
 0x709   : > { %1623 = vmatpush.msra.mxu0 %v1591_v20  ;;  %1656 = vmatpush.msra.mxu1 %v1598_v30  ;;  %v1740_v30 = vld [vmem:[#allocation4 + $0xd0] sm:$0xff] }
 0x70b   : > { %1624 = vmatpush.msra.mxu0 %v1590_v21  ;;  %1657 = vmatpush.msra.mxu1 %v1597_v35  ;;  %v1739_v35 = vld [vmem:[#allocation4 + $0xc8] sm:$0xff] }
 0x70c   : > { %2851 = vmatmul.msk.f32.gmra.mxu3 %vm948_vm5, %v1307_v16 }
 0x70d   : > { %1625 = vmatpush.msra.mxu0 %v1589_v23  ;;  %1658 = vmatpush.msra.mxu1 %v1596_v60  ;;  %v1738_v60 = vld [vmem:[#allocation4 + $0xc0] sm:$0xff] }
 0x70f   : > { %2860 = vmatmul.msk.f32.gmra.mxu2 %vm948_vm5, %v1465_v42  ;;  %v1156_v47 = vpop.f32.mrf.mxu3  ;;  %1626 = vmatpush.msra.mxu0 %v1588_v24  ;;  %v1582_v42 = vperm.slane %v3319_v36, 1 }
 0x710   : > { %2842 = vmatmul.msk.f32.gmra.mxu0 %vm908_vm0, %v1156_v47  ;;  %1659 = vmatpush.msra.mxu1 %v1595_v40 }
 0x785   : > { %v1182_v22 = vpop.f32.mrf.mxu0 }
 0x786   : > { %v1212_v55 = vadd.f32 %v3407_v32, %v1182_v22 }
 0x787   : > { %v1338_v50 = vpop.f32.mrf.mxu3 }
 0x788   : > { %2852 = vmatmul.msk.f32.vlgmr.msrb.gmra.mxu0 %vm908_vm0, %v1338_v50 }
 0x78a   : > { %v1496_v51 = vpop.f32.mrf.mxu2 }
 0x78b   : > { %2861 = vmatmul.msk.f32.vlgmr.msrb.gmra.mxu3 %vm908_vm0, %v1496_v51 }
 0x78d   : > { %v1185_v53 = vpop.f32.mrf.mxu0 }
 0x78e   : > { %v1215_v3 = vadd.f32 %v3409_v33, %v1185_v53 }
 0x78f   : > { %v1341_v2 = vpop.f32.mrf.mxu3 }
 0x790   : > { %2853 = vmatmul.msk.f32.gmra.mxu0 %vm908_vm0, %v1341_v2 }
 0x792   : > { %v1499_v52 = vpop.f32.mrf.mxu2 }
 0x793   : > { %2862 = vmatmul.msk.f32.gmra.mxu3 %vm908_vm0, %v1499_v52 }
 0x805   : > { %v1367_v54 = vpop.f32.mrf.mxu0 }
 0x806   : > { %v1373_v1 = vadd.f32 %v1367_v54, %v1212_v55 }
 0x80d   : > { %v1370_v63 = vpop.f32.mrf.mxu0 }
 0x80e   : > { %v1525_v59 = vpop.f32.mrf.mxu3  ;;  %v1374_v6 = vadd.f32 %v1370_v63, %v1215_v3 }
 0x80f   : > { %v1531_v61 = vadd.f32 %v1525_v59, %v1373_v1  ;;  %v1593_v59 = vld [vmem:[%s3869_s13] sm:$0xff] }
 0x811   : > { %v1534_v62 = vadd.f32 %v1533_v56, %v1531_v61  ;;  %v2966_v61 = vld [vmem:[%s3868_s12] ss:$0 sm:$0xff] }
 0x813   : > { %v3499_v5 = vadd.f32 %v1534_v62, %v3293_v57 }
 0x815   : > { %v1538_v7 = vsel %vm683_vm1, %v3499_v5, 0.0 }
 0x816   : > { %1539 = vadd.xlane.f32.xlu1 %v1538_v7  ;;  %v1528_v8 = vpop.f32.mrf.mxu3 }
 0x817   : > { %v1532_v9 = vadd.f32 %v1528_v8, %v1374_v6 }
 0x819   : > { %v1535_v32 = vadd.f32 %v1533_v56, %v1532_v9  ;;  %v1594_v56 = vld [vmem:[%s3869_s13 + $0x8] sm:$0xff]  ;;  %v2967_v9 = vld [vmem:[%s3893_s26] ss:$0 sm:$0xff] }
 0x81a   : > { %1660 = vmatpush.msra.mxu1 %v1594_v56 }
 0x81b   : > { %v3504_v10 = vadd.f32 %v1535_v32, %v3300_v0 }
 0x81c   : > { %1661 = vmatpush.msra.mxu1 %v1593_v59 }
 0x81d   : > { %v1541_v58 = vsel %vm687_vm2, %v3504_v10, 0.0 }
 0x81e   : > { %1542 = vadd.xlane.f32.xlu2 %v1541_v58 }
 0x889   : > { %v1540_v11 = vpop.xlane.xlu1 %1539 }
 0x88a   : > { %v1544_v33 = vmul.f32 %v1540_v11, %v3276_v17 }
 0x88c   : > { %v1546_v57 = vsub.f32 %v3499_v5, %v1544_v33 }
 0x88e   : > { %v1548_v12 = vmul.f32 %v1546_v57, %v1546_v57 }
 0x890   : > { %v1550_v14 = vsel %vm683_vm1, %v1548_v12, 0.0 }
 0x891   : > { %1551 = vadd.xlane.f32.xlu0 %v1550_v14  ;;  %v1543_v15 = vpop.xlane.xlu2 %1542 }
 0x892   : > { %v1545_v18 = vmul.f32 %v1543_v15, %v3276_v17 }
 0x894   : > { %v1547_v19 = vsub.f32 %v3504_v10, %v1545_v18 }
 0x896   : > { %v1549_v0 = vmul.f32 %v1547_v19, %v1547_v19 }
 0x898   : > { %v1553_v4 = vsel %vm687_vm2, %v1549_v0, 0.0 }
 0x899   : > { %1554 = vadd.xlane.f32.xlu1 %v1553_v4 }
 0x904   : > { %v1552_v25 = vpop.xlane.xlu0 %1551 }
 0x905   : > { %v1556_v26 = vmul.f32 %v1552_v25, %v3276_v17  ;;  %v1731_v25 = vld [vmem:[#allocation4 + $0x98] sm:$0xff] }
 0x906   : > { %1766 = vmatpush.msra.mxu2 %v1731_v25 }
 0x907   : > { %v1558_v27 = vadd.f32 1e-12, %v1556_v26  ;;  %v1736_v26 = vld [vmem:[#allocation4 + $0xb8] sm:$0xff] }
 0x908   : > { %1790 = vmatpush.msra.mxu3 %v1736_v26  ;;  %1767 = vmatpush.msra.mxu2 %v1730_v28 }
 0x909   : > { %3015 = vrsqrt.f32 %v1558_v27  ;;  %vm1566_vm13 = vweird.f32 %v1558_v27 }
 0x90a   : > { %1791 = vmatpush.msra.mxu3 %v1735_v29 }
 0x90c   : > { %v1555_v31 = vpop.xlane.xlu1 %1554 }
 0x90d   : > { %v1557_v34 = vmul.f32 %v1555_v31, %v3276_v17  ;;  %v1729_v31 = vld [vmem:[#allocation4 + $0x88] sm:$0xff] }
 0x90e   : > { %1768 = vmatpush.msra.mxu2 %v1729_v31 }
 0x90f   : > { %v3016_v37 = vpop.eup %3015  ;;  %v1559_v38 = vadd.f32 1e-12, %v1557_v34  ;;  %v1734_v34 = vld [vmem:[#allocation4 + $0xa8] sm:$0xff] }
 0x910   : > { %v1561_v39 = vmul.f32 %v3016_v37, %v1558_v27  ;;  %vm1567_vm12 = vweird.f32 %v3016_v37  ;;  %v1741_v27 = vld [vmem:[#allocation4 + $0xd8] sm:$0xff]  ;;  %1792 = vmatpush.msra.mxu3 %v1734_v34 }
 0x911   : > { %3017 = vrsqrt.f32 %v1559_v38  ;;  %vm1568_vm14 = vmor %vm1566_vm13, %vm1567_vm12  ;;  %vm1576_vm7 = vweird.f32 %v1559_v38  ;;  %1814 = vmatpush.msrb.mxu0 %v1741_v27 }
 0x912   : > { %v1562_v41 = vmul.f32 %v3016_v37, %v1561_v39 }
 0x913   : > { %1815 = vmatpush.msrb.mxu0 %v1740_v30 }
 0x914   : > { %v1563_v43 = vmul.f32 0.5, %v1562_v41 }
 0x915   : > { %1816 = vmatpush.msrb.mxu0 %v1739_v35 }
 0x916   : > { %v1564_v44 = vsub.f32 1.5, %v1563_v43 }
 0x917   : > { %v3018_v45 = vpop.eup %3017  ;;  %1817 = vmatpush.msrb.mxu0 %v1738_v60 }
 0x918   : > { %v1565_v46 = vmul.f32 %v3016_v37, %v1564_v44  ;;  %v1571_v16 = vmul.f32 %v3018_v45, %v1559_v38  ;;  %vm1577_vm15 = vweird.f32 %v3018_v45  ;;  %v1733_v38 = vld [vmem:[#allocation4 + $0xa0] sm:$0xff] }
 0x919   : > { %vm1578_vm8 = vmor %vm1576_vm7, %vm1577_vm15  ;;  %1793 = vmatpush.msra.mxu3 %v1733_v38 }
 0x91a   : > { %v1569_v47 = vsel %vm1568_vm14, %v3016_v37, %v1565_v46  ;;  %v1572_v48 = vmul.f32 %v3018_v45, %v1571_v16  ;;  %v1728_v37 = vld [vmem:[#allocation4 + $0x80] sm:$0xff] }
 0x91b   : > { %v1580_v50 = vmul.f32 %v1569_v47, %v1546_v57  ;;  %1769 = vmatpush.msra.mxu2 %v1728_v37 }
 0x91c   : > { %v1573_v51 = vmul.f32 0.5, %v1572_v48 }
 0x91d   : > { %v1583_v2 = vmul.f32 %v1582_v42, %v1580_v50 }
 0x91e   : > { %v1574_v52 = vsub.f32 1.5, %v1573_v51 }
 0x91f   : > { %v1586_v22 = vadd.f32 %v1585_v49, %v1583_v2 }
 0x920   : > { %v1575_v53 = vmul.f32 %v3018_v45, %v1574_v52 }
 0x921   : > { %2863 = vmatmul.msk.f32.vlgmr.msra.gmra.mxu0 %vm683_vm1, %v1586_v22  ;;  %v3594_v22 = vld [vmem:[%s3866_s10 + $0x2] sm:$0x3] }
 0x922   : > { %v1579_v54 = vsel %vm1578_vm8, %v3018_v45, %v1575_v53 }
 0x923   : > { %v1581_v55 = vmul.f32 %v1579_v54, %v1547_v19 }
 0x925   : > { %v1584_v1 = vmul.f32 %v1582_v42, %v1581_v55 }
 0x927   : > { %v1587_v36 = vadd.f32 %v1585_v49, %v1584_v1  ;;  %v3589_v49 = vld [vmem:[%s3865_s9 + $0x2] sm:$0x3] }
 0x928   : > { %v1721_v53 = vperm.slane %v3589_v49, 0 }
 0x929   : > { %2864 = vmatmul.msk.f32.gmra.mxu0 %vm683_vm1, %v1587_v36  ;;  %v1724_v36 = vperm.slane %v3594_v22, 0 }
 0x99e   : > { %v1628_v62 = vpop.f32.mrf.mxu0 }
 0x99f   : > { %v1629_v63 = vadd.f32 %v2966_v61, %v1628_v62 }
 0x9a1   : > { %v1634_v3 = vmax.f32 %v1629_v63, 0.0 }
 0x9a3   : > { %2865 = vmatmul.msk.f32.vlgmr.msra.gmra.mxu1 %vm1639_vm9, %v1634_v3 }
 0x9a6   : > { %v1631_v6 = vpop.f32.mrf.mxu0 }
 0x9a7   : > { %v1632_v7 = vadd.f32 %v2966_v61, %v1631_v6 }
 0x9a9   : > { %v1635_v8 = vmax.f32 %v1632_v7, 0.0 }
 0x9ab   : > { %2866 = vmatmul.msk.f32.gmra.mxu1 %vm1639_vm9, %v1635_v8 }
 0xa20   : > { %v1663_v32 = vpop.f32.mrf.mxu1 }
 0xa21   : > { %v1664_v58 = vadd.f32 %v2967_v9, %v1663_v32 }
 0xa23   : > { %v3565_v11 = vadd.f32 %v1664_v58, %v3499_v5 }
 0xa25   : > { %v1677_v33 = vsel %vm683_vm1, %v3565_v11, 0.0 }
 0xa26   : > { %1678 = vadd.xlane.f32.xlu2 %v1677_v33 }
 0xa28   : > { %v1666_v57 = vpop.f32.mrf.mxu1 }
 0xa29   : > { %v1667_v12 = vadd.f32 %v2967_v9, %v1666_v57  ;;  %v3608_v9 = vld [vmem:[%s3864_s8 + $0x4] sm:$0xf] }
 0xa2a   : > { %v1801_v58 = vperm.slane %v3608_v9, 2 }
 0xa2b   : > { %v3570_v14 = vadd.f32 %v1667_v12, %v3504_v10 }
 0xa2d   : > { %v1680_v15 = vsel %vm687_vm2, %v3570_v14, 0.0 }
 0xa2e   : > { %1681 = vadd.xlane.f32.xlu0 %v1680_v15  ;;  %v1777_v15 = vperm.slane %v3608_v9, 1 }
 0xa99   : > { %v1679_v18 = vpop.xlane.xlu2 %1678 }
 0xa9a   : > { %v1683_v19 = vmul.f32 %v1679_v18, %v3276_v17 }
 0xa9c   : > { %v1685_v0 = vsub.f32 %v3565_v11, %v1683_v19 }
 0xa9e   : > { %v1687_v5 = vmul.f32 %v1685_v0, %v1685_v0 }
 0xaa0   : > { %v1689_v4 = vsel %vm683_vm1, %v1687_v5, 0.0  ;;  %v1747_v5 = vperm.slane %v3608_v9, 0 }
 0xaa1   : > { %v1682_v20 = vpop.xlane.xlu0 %1681  ;;  %1690 = vadd.xlane.f32.xlu1 %v1689_v4 }
 0xaa2   : > { %v1684_v21 = vmul.f32 %v1682_v20, %v3276_v17 }
 0xaa4   : > { %v3579_v23 = vsub.f32 %v3570_v14, %v1684_v21 }
 0xaa6   : > { %v1688_v10 = vmul.f32 %v3579_v23, %v3579_v23 }
 0xaa8   : > { %v1692_v24 = vsel %vm687_vm2, %v1688_v10, 0.0 }
 0xaa9   : > { %1693 = vadd.xlane.f32.xlu2 %v1692_v24 }
 0xb14   : > { %v1691_v39 = vpop.xlane.xlu1 %1690 }
 0xb15   : > { %v1695_v41 = vmul.f32 %v1691_v39, %v3276_v17 }
 0xb17   : > { %v1697_v43 = vadd.f32 1e-12, %v1695_v41 }
 0xb19   : > { %3019 = vrsqrt.f32 %v1697_v43  ;;  %vm1705_vm11 = vweird.f32 %v1697_v43 }
 0xb1c   : > { %v1694_v44 = vpop.xlane.xlu2 %1693 }
 0xb1d   : > { %v1696_v45 = vmul.f32 %v1694_v44, %v3276_v17 }
 0xb1f   : > { %v3020_v46 = vpop.eup %3019  ;;  %v1698_v16 = vadd.f32 1e-12, %v1696_v45 }
 0xb20   : > { %v1700_v42 = vmul.f32 %v3020_v46, %v1697_v43  ;;  %vm1706_vm10 = vweird.f32 %v3020_v46 }
 0xb21   : > { %3021 = vrsqrt.f32 %v1698_v16  ;;  %vm1707_vm12 = vmor %vm1705_vm11, %vm1706_vm10  ;;  %vm1715_vm14 = vweird.f32 %v1698_v16 }
 0xb22   : > { %v1701_v47 = vmul.f32 %v3020_v46, %v1700_v42 }
 0xb24   : > { %v1702_v48 = vmul.f32 0.5, %v1701_v47 }
 0xb26   : > { %v1703_v50 = vsub.f32 1.5, %v1702_v48 }
 0xb27   : > { %v3022_v51 = vpop.eup %3021 }
 0xb28   : > { %v1704_v2 = vmul.f32 %v3020_v46, %v1703_v50  ;;  %v1710_v52 = vmul.f32 %v3022_v51, %v1698_v16  ;;  %vm1716_vm13 = vweird.f32 %v3022_v51 }
 0xb29   : > { %vm1717_vm15 = vmor %vm1715_vm14, %vm1716_vm13 }
 0xb2a   : > { %v1708_v54 = vsel %vm1707_vm12, %v3020_v46, %v1704_v2  ;;  %v1711_v55 = vmul.f32 %v3022_v51, %v1710_v52  ;;  %v1743_v46 = vld [vmem:[#allocation4 + $0xe0] sm:$0xff] }
 0xb2b   : > { %v1719_v1 = vmul.f32 %v1708_v54, %v1685_v0 }
 0xb2c   : > { %v1712_v40 = vmul.f32 0.5, %v1711_v55 }
 0xb2d   : > { %v1722_v56 = vmul.f32 %v1721_v53, %v1719_v1 }
 0xb2e   : > { %v1713_v59 = vsub.f32 1.5, %v1712_v40 }
 0xb2f   : > { %v1725_v61 = vadd.f32 %v1724_v36, %v1722_v56 }
 0xb30   : > { %v1714_v62 = vmul.f32 %v3022_v51, %v1713_v59 }
 0xb31   : > { %2870 = vmatmul.msk.f32.vlgmr.msra.gmra.mxu2 %vm683_vm1, %v1725_v61  ;;  %2872 = vmatmul.msk.f32.vlgmr.msra.gmra.mxu3 %vm683_vm1, %v1725_v61 }
 0xb32   : > { %v1718_v63 = vsel %vm1717_vm15, %v3022_v51, %v1714_v62  ;;  %2874 = vmatmul.msk.f32.vlgmr.msrb.gmra.mxu0 %vm683_vm1, %v1725_v61 }
 0xb33   : > { %v1720_v3 = vmul.f32 %v1718_v63, %v3579_v23 }
 0xb35   : > { %v1723_v6 = vmul.f32 %v1721_v53, %v1720_v3 }
 0xb37   : > { %v1726_v7 = vadd.f32 %v1724_v36, %v1723_v6 }
 0xb39   : > { %2871 = vmatmul.msk.f32.gmra.mxu2 %vm683_vm1, %v1726_v7  ;;  %2873 = vmatmul.msk.f32.gmra.mxu3 %vm683_vm1, %v1726_v7 }
 0xb3a   : > { %2875 = vmatmul.msk.f32.gmra.mxu0 %vm683_vm1, %v1726_v7 }
 0xbaf   : > { %v1819_v8 = vpop.f32.mrf.mxu0 }
 0xbb0   : > { %v3613_v12 = vadd.f32 %v1819_v8, %v1801_v58 }
 0xbb4   : > { %v1795_v32 = vpop.f32.mrf.mxu3  ;;  %v1771_v0 = vpop.f32.mrf.mxu2 }
 0xbb5   : > { %v1796_v4 = vadd.f32 %v1795_v32, %v1777_v15  ;;  %v1772_v20 = vadd.f32 %v1771_v0, %v1747_v5 }
 0xbb7   : > { %v1822_v33 = vpop.f32.mrf.mxu0 }
 0xbb8   : > { %v3611_v57 = vadd.f32 %v1822_v33, %v1801_v58 }
 0xbba   : > { %2880 = vmatpush.msk.msrb.mxu2 %vm1004_vm3, %v3611_v57 }
 0xbbc   : > { %1936 = vmatpush.msrb.mxu2 %v3613_v12  ;;  %v1798_v18 = vpop.f32.mrf.mxu3  ;;  %v1774_v21 = vpop.f32.mrf.mxu2 }
 0xbbd   : > { %v1799_v19 = vadd.f32 %v1798_v18, %v1777_v15  ;;  %v1775_v23 = vadd.f32 %v1774_v21, %v1747_v5 }
 0xbbe   : > { %2122 = vmatpush.msra.mxu2 %v1743_v46 }
 0xbbf   : > { %2876 = vmatpush.xpose.msk.msrb.mxu1 %vm908_vm0, %v1799_v19 }
 0xbc3   : > { %2877 = vmatpush.xpose.msk.msrb.mxu1 %vm908_vm0, %v1796_v4 }
 0xbc6   : > { %2878 = vmatmul.msk.f32.vlgmr.msrb.gmra.mxu1 %vm908_vm0, %v1772_v20 }
 0xbce   : > { %2879 = vmatmul.msk.f32.gmra.mxu1 %vm908_vm0, %v1775_v23 }
 0xc43   : > { %v1854_v10 = vpop.f32.mrf.mxu1 }
 0xc44   : > { %v1860_v24 = vmul.f32 0.35355338, %v1854_v10 }
 0xc46   : > { %v1862_v25 = vsel %vm3355_vm4, %v1860_v24, -1e+30 }
 0xc47   : > { %v1864_v26 = vsel %vm948_vm5, %v1862_v25, -inf }
 0xc48   : > { %1865 = vmax.xlane.f32.xlu0 %v1864_v26 }
 0xc4b   : > { %v1857_v27 = vpop.f32.mrf.mxu1 }
 0xc4c   : > { %v1861_v28 = vmul.f32 0.35355338, %v1857_v27 }
 0xc4e   : > { %v1863_v29 = vsel %vm3355_vm4, %v1861_v28, -1e+30 }
 0xc4f   : > { %v1867_v30 = vsel %vm952_vm6, %v1863_v29, -inf }
 0xc50   : > { %1868 = vmax.xlane.f32.xlu1 %v1867_v30 }
 0xc69   : > { %1950 = vrot.lane.b32.xlu1 %v1799_v19, %s3132_s27 }
 0xc71   : > { %2294 = vrot.lane.b32.xlu1 %v1799_v19, %s3134_s24 }
 0xc79   : > { %2292 = vrot.lane.b32.xlu1 %v1796_v4, %s3134_s24 }
 0xc81   : > { %2130 = vrot.lane.b32.xlu1 %v1772_v20, %s3133_s23 }
 0xcbb   : > { %v1866_v31 = vpop.xlane.xlu0 %1865 }
 0xcbc   : > { %v1870_v34 = vsub.f32 %v1862_v25, %v1866_v31 }
 0xcbe   : > { %v1872_v35 = vmul.f32 1.442695, %v1870_v34 }
 0xcc0   : > { %3023 = vpow2.f32 %v1872_v35 }
 0xcc3   : > { %v1869_v37 = vpop.xlane.xlu1 %1868 }
 0xcc4   : > { %v1871_v38 = vsub.f32 %v1863_v29, %v1869_v37 }
 0xcc6   : > { %v3024_v60 = vpop.eup %3023  ;;  %v1874_v39 = vmul.f32 1.442695, %v1871_v38 }
 0xcc7   : > { %v1876_v41 = vsel %vm948_vm5, %v3024_v60, 0.0 }
 0xcc8   : > { %3025 = vpow2.f32 %v1874_v39  ;;  %1877 = vadd.xlane.f32.xlu2 %v1876_v41 }
 0xcce   : > { %v3026_v43 = vpop.eup %3025 }
 0xccf   : > { %v1879_v44 = vsel %vm952_vm6, %v3026_v43, 0.0 }
 0xcd0   : > { %1880 = vadd.xlane.f32.xlu0 %v1879_v44 }
 0xcdb   : > { %v1951_v45 = vpop.permute.xlu1 %1950 }
 0xcdc   : > { %2883 = vmatpush.xpose.msk.msrb.mxu3 %vm908_vm0, %v1951_v45 }
 0xce0   : > { %1948 = vrot.lane.b32.xlu2 %v1796_v4, %s3132_s27 }
 0xce3   : > { %v2295_v54 = vpop.permute.xlu1 %2294 }
 0xce4   : > { %1944 = vrot.lane.b32.xlu0 %v1772_v20, %s3132_s27 }
 0xce8   : > { %2136 = vrot.lane.b32.xlu2 %v1799_v19, %s3133_s23 }
 0xceb   : > { %v2293_v58 = vpop.permute.xlu1 %2292 }
 0xcec   : > { %1946 = vrot.lane.b32.xlu0 %v1775_v23, %s3132_s27 }
 0xcf0   : > { %2134 = vrot.lane.b32.xlu2 %v1796_v4, %s3133_s23 }
 0xcf3   : > { %v2131_v4 = vpop.permute.xlu1 %2130 }
 0xcf4   : > { %2288 = vrot.lane.b32.xlu0 %v1772_v20, %s3134_s24 }
 0xcf8   : > { %2132 = vrot.lane.b32.xlu2 %v1775_v23, %s3133_s23 }
 0xcfc   : > { %2290 = vrot.lane.b32.xlu0 %v1775_v23, %s3134_s24 }
 0xd3b   : > { %v1878_v16 = vpop.xlane.xlu2 %1877 }
 0xd3c   : > { %3027 = vrcp.f32 %v1878_v16  ;;  %v1893_v2 = vand.u32 2147483648, %v1878_v16  ;;  %v1891_v53 = vand.u32 2147483647, %v1878_v16  ;;  %vm1887_vm8 = vweird.f32 %v1878_v16 }
 0xd3e   : > { %v1894_v36 = vor.u32 1.1754944e-38, %v1893_v2  ;;  %vm1892_vm11 = vcmp.eq.f32.partialorder %v1891_v53, 8.507059e+37 }
 0xd42   : > { %v3028_v42 = vpop.eup %3027 }
 0xd43   : > { %v1883_v47 = vmul.f32 %v3028_v42, %v1878_v16  ;;  %v1949_v48 = vpop.permute.xlu2 %1948  ;;  %v1881_v50 = vpop.xlane.xlu0 %1880  ;;  %vm1888_vm7 = vweird.f32 %v3028_v42 }
 0xd44   : > { %3029 = vrcp.f32 %v1881_v50  ;;  %2884 = vmatpush.xpose.msk.msrb.mxu3 %vm908_vm0, %v1949_v48  ;;  %vm1889_vm10 = vmor %vm1887_vm8, %vm1888_vm7  ;;  %v1908_v3 = vand.u32 2147483648, %v1881_v50  ;;  %v1906_v7 = vand.u32 2147483647, %v1881_v50  ;;  %vm1902_vm13 = vweird.f32 %v1881_v50 }
 0xd45   : > { %v1884_v51 = vsub.f32 1.0, %v1883_v47 }
 0xd46   : > { %v1909_v32 = vor.u32 1.1754944e-38, %v1908_v3  ;;  %vm1907_vm15 = vcmp.eq.f32.partialorder %v1906_v7, 8.507059e+37 }
 0xd47   : > { %v1885_v52 = vmul.f32 %v3028_v42, %v1884_v51 }
 0xd49   : > { %v1886_v55 = vadd.f32 %v3028_v42, %v1885_v52 }
 0xd4a   : > { %v3030_v1 = vpop.eup %3029 }
 0xd4b   : > { %v1890_v40 = vsel %vm1889_vm10, %v3028_v42, %v1886_v55  ;;  %v1898_v56 = vmul.f32 %v3030_v1, %v1881_v50  ;;  %v2137_v59 = vpop.permute.xlu2 %2136  ;;  %vm1903_vm12 = vweird.f32 %v3030_v1 }
 0xd4c   : > { %v1895_v61 = vsel %vm1892_vm11, %v1894_v36, %v1890_v40  ;;  %2894 = vmatpush.xpose.msk.msra.mxu3 %vm908_vm0, %v2137_v59  ;;  %vm1904_vm14 = vmor %vm1902_vm13, %vm1903_vm12 }
 0xd4d   : > { %v1899_v62 = vsub.f32 1.0, %v1898_v56  ;;  %v1896_v63 = vmul.f32 %v3024_v60, %v1895_v61 }
 0xd4f   : > { %v1900_v6 = vmul.f32 %v3030_v1, %v1899_v62  ;;  %2881 = vmatmul.msk.f32.vlgmr.msrb.gmra.mxu2 %vm948_vm5, %v1896_v63 }
 0xd50   : > { %2903 = vmatpush.xpose.msk.msrb.mxu2 %vm908_vm0, %v2295_v54 }
 0xd51   : > { %v1901_v8 = vadd.f32 %v3030_v1, %v1900_v6 }
 0xd53   : > { %v2135_v33 = vpop.permute.xlu2 %2134  ;;  %v1905_v15 = vsel %vm1904_vm14, %v3030_v1, %v1901_v8 }
 0xd54   : > { %2904 = vmatpush.xpose.msk.msrb.mxu2 %vm908_vm0, %v2293_v58  ;;  %2895 = vmatpush.xpose.msk.msra.mxu3 %vm908_vm0, %v2135_v33  ;;  %v1910_v18 = vsel %vm1907_vm15, %v1909_v32, %v1905_v15 }
 0xd55   : > { %v1911_v19 = vmul.f32 %v3026_v43, %v1910_v18 }
 0xd56   : > { %v1945_v0 = vpop.permute.xlu0 %1944 }
 0xd57   : > { %2882 = vmatmul.msk.f32.gmra.mxu2 %vm948_vm5, %v1911_v19  ;;  %2885 = vmatmul.msk.f32.vlgmr.msrb.gmra.mxu3 %vm908_vm0, %v1945_v0 }
 0xd5b   : > { %v2133_v20 = vpop.permute.xlu2 %2132 }
 0xd5e   : > { %v1947_v5 = vpop.permute.xlu0 %1946 }
 0xd5f   : > { %2886 = vmatmul.msk.f32.gmra.mxu3 %vm908_vm0, %v1947_v5 }
 0xd66   : > { %v2289_v27 = vpop.permute.xlu0 %2288 }
 0xd67   : > { %2896 = vmatmul.msk.f32.vlgmr.msra.gmra.mxu3 %vm908_vm0, %v2131_v4 }
 0xd6e   : > { %v2291_v34 = vpop.permute.xlu0 %2290 }
 0xd6f   : > { %2897 = vmatmul.msk.f32.gmra.mxu3 %vm908_vm0, %v2133_v20 }
 0xdd2   : > { %v1938_v21 = vpop.f32.mrf.mxu2 }
 0xdd3   : > { %2892 = vmatmul.msk.f32.vlgmr.msra.gmra.mxu2 %vm908_vm0, %v1938_v21 }
 0xdda   : > { %v1941_v23 = vpop.f32.mrf.mxu2  ;;  %v1977_v10 = vpop.f32.mrf.mxu3 }
 0xddb   : > { %v1983_v24 = vmul.f32 0.35355338, %v1977_v10  ;;  %2893 = vmatmul.msk.f32.gmra.mxu2 %vm908_vm0, %v1941_v23 }
 0xddd   : > { %v1985_v25 = vsel %vm3355_vm4, %v1983_v24, -1e+30 }
 0xdde   : > { %v1987_v26 = vsel %vm948_vm5, %v1985_v25, -inf }
 0xddf   : > { %1988 = vmax.xlane.f32.xlu1 %v1987_v26 }
 0xde2   : > { %v1980_v28 = vpop.f32.mrf.mxu3 }
 0xde3   : > { %v1984_v29 = vmul.f32 0.35355338, %v1980_v28  ;;  %2905 = vmatmul.msk.f32.vlgmr.msrb.gmra.mxu2 %vm908_vm0, %v2289_v27 }
 0xde5   : > { %v1986_v30 = vsel %vm3355_vm4, %v1984_v29, -1e+30 }
 0xde6   : > { %v1990_v31 = vsel %vm952_vm6, %v1986_v30, -inf }
 0xde7   : > { %1991 = vmax.xlane.f32.xlu0 %v1990_v31 }
 0xdea   : > { %v2163_v35 = vpop.f32.mrf.mxu3 }
 0xdeb   : > { %v2169_v37 = vmul.f32 0.35355338, %v2163_v35  ;;  %2906 = vmatmul.msk.f32.gmra.mxu2 %vm908_vm0, %v2291_v34 }
 0xded   : > { %v2171_v38 = vsel %vm3355_vm4, %v2169_v37, -1e+30 }
 0xdee   : > { %v2173_v60 = vsel %vm948_vm5, %v2171_v38, -inf }
 0xdef   : > { %2174 = vmax.xlane.f32.xlu1 %v2173_v60 }
 0xdf2   : > { %v2166_v39 = vpop.f32.mrf.mxu3 }
 0xdf3   : > { %v2170_v41 = vmul.f32 0.35355338, %v2166_v39 }
 0xdf5   : > { %v2172_v43 = vsel %vm3355_vm4, %v2170_v41, -1e+30 }
 0xdf6   : > { %v2176_v44 = vsel %vm952_vm6, %v2172_v43, -inf }
 0xdf7   : > { %2177 = vmax.xlane.f32.xlu2 %v2176_v44 }
 0xe52   : > { %v1989_v45 = vpop.xlane.xlu1 %1988 }
 0xe53   : > { %v1993_v46 = vsub.f32 %v1985_v25, %v1989_v45 }
 0xe55   : > { %v1995_v16 = vmul.f32 1.442695, %v1993_v46 }
 0xe56   : > { %v3672_v42 = vpop.f32.mrf.mxu2 }
 0xe57   : > { %3031 = vpow2.f32 %v1995_v16 }
 0xe5a   : > { %v1992_v53 = vpop.xlane.xlu0 %1991 }
 0xe5b   : > { %v1994_v1 = vsub.f32 %v1986_v30, %v1992_v53 }
 0xe5d   : > { %v3674_v47 = vpop.eup %3031  ;;  %v1997_v62 = vmul.f32 1.442695, %v1994_v1 }
 0xe5e   : > { %v3676_v48 = vpop.f32.mrf.mxu2  ;;  %v1999_v50 = vsel %vm948_vm5, %v3674_v47, 0.0 }
 0xe5f   : > { %2000 = vadd.xlane.f32.xlu1 %v1999_v50 }
 0xe62   : > { %v2175_v51 = vpop.xlane.xlu1 %2174 }
 0xe63   : > { %v2179_v2 = vsub.f32 %v2171_v38, %v2175_v51 }
 0xe65   : > { %v2181_v52 = vmul.f32 1.442695, %v2179_v2 }
 0xe66   : > { %v2321_v54 = vpop.f32.mrf.mxu2 }
 0xe67   : > { %3033 = vpow2.f32 %v2181_v52  ;;  %v2327_v55 = vmul.f32 0.35355338, %v2321_v54 }
 0xe69   : > { %v2329_v36 = vsel %vm3355_vm4, %v2327_v55, -1e+30 }
 0xe6a   : > { %v2178_v40 = vpop.xlane.xlu2 %2177  ;;  %v2331_v56 = vsel %vm948_vm5, %v2329_v36, -inf }
 0xe6b   : > { %v2180_v59 = vsub.f32 %v2172_v43, %v2178_v40  ;;  %2332 = vmax.xlane.f32.xlu2 %v2331_v56 }
 0xe6d   : > { %v3683_v61 = vpop.eup %3033  ;;  %v2183_v63 = vmul.f32 1.442695, %v2180_v59 }
 0xe6e   : > { %v2324_v3 = vpop.f32.mrf.mxu2  ;;  %v2185_v6 = vsel %vm948_vm5, %v3683_v61, 0.0 }
 0xe6f   : > { %3035 = vpow2.f32 %v2183_v63  ;;  %v2328_v7 = vmul.f32 0.35355338, %v2324_v3  ;;  %2186 = vadd.xlane.f32.xlu1 %v2185_v6 }
 0xe70   : > { %3037 = vpow2.f32 %v1997_v62 }
 0xe71   : > { %v2330_v8 = vsel %vm3355_vm4, %v2328_v7, -1e+30 }
 0xe72   : > { %v2334_v32 = vsel %vm952_vm6, %v2330_v8, -inf }
 0xe73   : > { %2335 = vmax.xlane.f32.xlu0 %v2334_v32 }
 0xe75   : > { %v3690_v58 = vpop.eup %3035 }
 0xe76   : > { %v2188_v33 = vsel %vm952_vm6, %v3690_v58, 0.0  ;;  %v3694_v15 = vpop.eup %3037 }
 0xe77   : > { %2189 = vadd.xlane.f32.xlu1 %v2188_v33  ;;  %v2002_v18 = vsel %vm952_vm6, %v3694_v15, 0.0 }
 0xe7b   : > { %2003 = vadd.xlane.f32.xlu0 %v2002_v18 }
 0xe83   : > { %2036 = vrot.lane.b32.xlu2 %v3613_v12, %s3132_s27 }
 0xe8f   : > { %2038 = vrot.lane.b32.xlu0 %v3611_v57, %s3132_s27 }
 0xe97   : > { %2381 = vrot.lane.b32.xlu0 %v3611_v57, %s3134_s24 }
 0xe9f   : > { %2221 = vrot.lane.b32.xlu0 %v3613_v12, %s3133_s23 }
 0xed2   : > { %v2001_v0 = vpop.xlane.xlu1 %2000 }
 0xed3   : > { %v2016_v38 = vand.u32 2147483648, %v2001_v0  ;;  %vm2010_vm7 = vweird.f32 %v2001_v0  ;;  %v2014_v60 = vand.u32 2147483647, %v2001_v0 }
 0xed5   : > { %v2017_v43 = vor.u32 1.1754944e-38, %v2016_v38  ;;  %vm2015_vm10 = vcmp.eq.f32.partialorder %v2014_v60, 8.507059e+37 }
 0xede   : > { %v2333_v13 = vpop.xlane.xlu2 %2332 }
 0xedf   : > { %v2337_v19 = vsub.f32 %v2329_v36, %v2333_v13 }
 0xee1   : > { %v2339_v5 = vmul.f32 1.442695, %v2337_v19 }
 0xee3   : > { %3039 = vpow2.f32 %v2339_v5 }
 0xee4   : > { %3041 = vrcp.f32 %v2001_v0 }
 0xee6   : > { %v2336_v4 = vpop.xlane.xlu0 %2335  ;;  %v2037_v50 = vpop.permute.xlu2 %2036 }
 0xee7   : > { %v2338_v20 = vsub.f32 %v2330_v8, %v2336_v4 }
 0xee9   : > { %v3706_v21 = vpop.eup %3039  ;;  %v2341_v23 = vmul.f32 1.442695, %v2338_v20 }
 0xeea   : > { %v3042_v10 = vpop.eup %3041  ;;  %v2343_v24 = vsel %vm948_vm5, %v3706_v21, 0.0 }
 0xeeb   : > { %3043 = vpow2.f32 %v2341_v23  ;;  %2344 = vadd.xlane.f32.xlu2 %v2343_v24  ;;  %v2006_v25 = vmul.f32 %v3042_v10, %v2001_v0  ;;  %vm2011_vm4 = vweird.f32 %v3042_v10 }
 0xeec   : > { %vm2012_vm8 = vmor %vm2010_vm7, %vm2011_vm4 }
 0xeed   : > { %v2007_v28 = vsub.f32 1.0, %v2006_v25 }
 0xeee   : > { %v2004_v26 = vpop.xlane.xlu0 %2003 }
 0xeef   : > { %3045 = vrcp.f32 %v2004_v26  ;;  %v2008_v31 = vmul.f32 %v3042_v10, %v2007_v28  ;;  %v2031_v16 = vand.u32 2147483648, %v2004_v26  ;;  %v2029_v2 = vand.u32 2147483647, %v2004_v26 }
 0xef1   : > { %v3710_v27 = vpop.eup %3043  ;;  %v2009_v35 = vadd.f32 %v3042_v10, %v2008_v31  ;;  %v2032_v53 = vor.u32 1.1754944e-38, %v2031_v16  ;;  %vm2030_vm13 = vcmp.eq.f32.partialorder %v2029_v2, 8.507059e+37 }
 0xef2   : > { %v2346_v29 = vsel %vm952_vm6, %v3710_v27, 0.0  ;;  %vm2025_vm6 = vweird.f32 %v2004_v26 }
 0xef3   : > { %2347 = vadd.xlane.f32.xlu1 %v2346_v29  ;;  %v2013_v39 = vsel %vm2012_vm8, %v3042_v10, %v2009_v35 }
 0xef4   : > { %v2018_v44 = vsel %vm2015_vm10, %v2017_v43, %v2013_v39 }
 0xef5   : > { %v3046_v30 = vpop.eup %3045  ;;  %v2019_v51 = vmul.f32 %v3674_v47, %v2018_v44 }
 0xef6   : > { %v2021_v34 = vmul.f32 %v3046_v30, %v2004_v26  ;;  %vm2026_vm11 = vweird.f32 %v3046_v30 }
 0xef7   : > { %vm2027_vm12 = vmor %vm2025_vm6, %vm2026_vm11 }
 0xef8   : > { %v2022_v37 = vsub.f32 1.0, %v2021_v34 }
 0xefa   : > { %v2023_v41 = vmul.f32 %v3046_v30, %v2022_v37 }
 0xefc   : > { %v2024_v46 = vadd.f32 %v3046_v30, %v2023_v41 }
 0xefe   : > { %v2028_v52 = vsel %vm2027_vm12, %v3046_v30, %v2024_v46 }
 0xeff   : > { %v2033_v54 = vsel %vm2030_vm13, %v2032_v53, %v2028_v52 }
 0xf00   : > { %v2034_v1 = vmul.f32 %v3694_v15, %v2033_v54  ;;  %v1744_v15 = vld [vmem:[#allocation4 + $0xe8] sm:$0xff] }
 0xf01   : > { %v2039_v45 = vpop.permute.xlu0 %2038  ;;  %2093 = vmatpush.msra.mxu1 %v1744_v15 }
 0xf02   : > { %2887 = vmatpush.msk.msra.mxu0 %vm1004_vm3, %v2039_v45 }
 0xf03   : > { %2223 = vrot.lane.b32.xlu2 %v3611_v57, %s3133_s23  ;;  %v2187_v57 = vpop.xlane.xlu1 %2186 }
 0xf04   : > { %2064 = vmatpush.msra.mxu0 %v2037_v50  ;;  %3047 = vrcp.f32 %v2187_v57  ;;  %v2202_v8 = vand.u32 2147483648, %v2187_v57  ;;  %vm2196_vm15 = vweird.f32 %v2187_v57 }
 0xf05   : > { %2888 = vmatmul.msk.f32.vlgmr.msra.gmra.mxu0 %vm948_vm5, %v2019_v51 }
 0xf06   : > { %v2203_v18 = vor.u32 1.1754944e-38, %v2202_v8 }
 0xf09   : > { %v2382_v55 = vpop.permute.xlu0 %2381 }
 0xf0a   : > { %2907 = vmatpush.msk.msrb.mxu3 %vm1004_vm3, %v2382_v55  ;;  %v3048_v36 = vpop.eup %3047 }
 0xf0b   : > { %v2190_v47 = vpop.xlane.xlu1 %2189  ;;  %v2192_v40 = vmul.f32 %v3048_v36, %v2187_v57  ;;  %vm2197_vm14 = vweird.f32 %v3048_v36 }
 0xf0c   : > { %2379 = vrot.lane.b32.xlu1 %v3613_v12, %s3134_s24  ;;  %3049 = vrcp.f32 %v2190_v47  ;;  %v2200_v12 = vand.u32 2147483647, %v2187_v57  ;;  %vm2198_vm4 = vmor %vm2196_vm15, %vm2197_vm14  ;;  %v2217_v20 = vand.u32 2147483648, %v2190_v47  ;;  %vm2211_vm10 = vweird.f32 %v2190_v47  ;;  %v1746_v57 = vld [vmem:[#allocation4 + $0xf8] sm:$0xff] }
 0xf0d   : > { %2889 = vmatmul.msk.f32.gmra.mxu0 %vm948_vm5, %v2034_v1  ;;  %v2193_v56 = vsub.f32 1.0, %v2192_v40  ;;  %v2215_v25 = vand.u32 2147483647, %v2190_v47 }
 0xf0e   : > { %vm2201_vm7 = vcmp.eq.f32.partialorder %v2200_v12, 8.507059e+37  ;;  %v2218_v28 = vor.u32 1.1754944e-38, %v2217_v20 }
 0xf0f   : > { %v2194_v62 = vmul.f32 %v3048_v36, %v2193_v56  ;;  %vm2216_vm6 = vcmp.eq.f32.partialorder %v2215_v25, 8.507059e+37 }
 0xf11   : > { %v2195_v3 = vadd.f32 %v3048_v36, %v2194_v62  ;;  %v2222_v23 = vpop.permute.xlu0 %2221 }
 0xf12   : > { %v3050_v59 = vpop.eup %3049 }
 0xf13   : > { %v2207_v63 = vmul.f32 %v3050_v59, %v2190_v47  ;;  %v2199_v32 = vsel %vm2198_vm4, %v3048_v36, %v2195_v3  ;;  %vm2212_vm8 = vweird.f32 %v3050_v59 }
 0xf14   : > { %v2204_v19 = vsel %vm2201_vm7, %v2203_v18, %v2199_v32  ;;  %vm2213_vm11 = vmor %vm2211_vm10, %vm2212_vm8 }
 0xf15   : > { %v2208_v6 = vsub.f32 1.0, %v2207_v63  ;;  %v2205_v24 = vmul.f32 %v3683_v61, %v2204_v19 }
 0xf17   : > { %v2209_v33 = vmul.f32 %v3050_v59, %v2208_v6  ;;  %v2446_v6 = vperm.slane %v3608_v9, 3 }
 0xf19   : > { %v2210_v4 = vadd.f32 %v3050_v59, %v2209_v33 }
 0xf1b   : > { %v2214_v26 = vsel %vm2213_vm11, %v3050_v59, %v2210_v4 }
 0xf1c   : > { %v2219_v31 = vsel %vm2216_vm6, %v2218_v28, %v2214_v26  ;;  %v2915_v28 = vld [vmem:[%s3867_s11 + $0x38] sm:$0xff] }
 0xf1d   : > { %v2220_v37 = vmul.f32 %v3690_v58, %v2219_v31  ;;  %v2912_v31 = vld [vmem:[%s3867_s11 + $0x20] sm:$0xff] }
 0xf5e   : > { %v2345_v7 = vpop.xlane.xlu2 %2344 }
 0xf5f   : > { %3051 = vrcp.f32 %v2345_v7  ;;  %v2360_v60 = vand.u32 2147483648, %v2345_v7  ;;  %vm2354_vm13 = vweird.f32 %v2345_v7  ;;  %v2358_v39 = vand.u32 2147483647, %v2345_v7 }
 0xf61   : > { %v2361_v44 = vor.u32 1.1754944e-38, %v2360_v60  ;;  %vm2359_vm15 = vcmp.eq.f32.partialorder %v2358_v39, 8.507059e+37  ;;  %v2922_v60 = vld [vmem:[%s3869_s13 + $0x68] sm:$0xff] }
 0xf65   : > { %v3052_v13 = vpop.eup %3051 }
 0xf66   : > { %v2224_v0 = vpop.permute.xlu2 %2223  ;;  %v2348_v5 = vpop.xlane.xlu1 %2347  ;;  %v2350_v10 = vmul.f32 %v3052_v13, %v2345_v7  ;;  %vm2355_vm12 = vweird.f32 %v3052_v13 }
 0xf67   : > { %3053 = vrcp.f32 %v2348_v5  ;;  %2898 = vmatpush.msk.msrb.mxu0 %vm1004_vm3, %v2224_v0  ;;  %vm2356_vm14 = vmor %vm2354_vm13, %vm2355_vm12  ;;  %v2375_v16 = vand.u32 2147483648, %v2348_v5  ;;  %vm2369_vm7 = vweird.f32 %v2348_v5  ;;  %v2373_v51 = vand.u32 2147483647, %v2348_v5 }
 0xf68   : > { %v2351_v29 = vsub.f32 1.0, %v2350_v10 }
 0xf69   : > { %2249 = vmatpush.msrb.mxu0 %v2222_v23  ;;  %v2376_v52 = vor.u32 1.1754944e-38, %v2375_v16  ;;  %vm2374_vm10 = vcmp.eq.f32.partialorder %v2373_v51, 8.507059e+37 }
 0xf6a   : > { %2899 = vmatmul.msk.f32.vlgmr.msrb.gmra.mxu0 %vm948_vm5, %v2205_v24  ;;  %v2352_v34 = vmul.f32 %v3052_v13, %v2351_v29  ;;  %v2914_v29 = vld [vmem:[%s3867_s11 + $0x30] sm:$0xff] }
 0xf6b   : > { %2436 = vmatpush.msra.mxu0 %v1746_v57  ;;  %v2498_v57 = vperm.slane %v3594_v22, 1  ;;  %v2919_v22 = vld [vmem:[%s3869_s13 + $0x50] sm:$0xff] }
 0xf6c   : > { %v2353_v38 = vadd.f32 %v3052_v13, %v2352_v34 }
 0xf6d   : > { %v3054_v30 = vpop.eup %3053 }
 0xf6e   : > { %v2365_v35 = vmul.f32 %v3054_v30, %v2348_v5  ;;  %v2357_v41 = vsel %vm2356_vm14, %v3052_v13, %v2353_v38  ;;  %vm2370_vm4 = vweird.f32 %v3054_v30  ;;  %v2924_v38 = vld [vmem:[%s3869_s13 + $0x78] sm:$0xff] }
 0xf6f   : > { %v2362_v45 = vsel %vm2359_vm15, %v2361_v44, %v2357_v41  ;;  %vm2371_vm8 = vmor %vm2369_vm7, %vm2370_vm4  ;;  %2570 = vmatpush.msra.mxu2 %v2924_v38 }
 0xf70   : > { %v2366_v61 = vsub.f32 1.0, %v2365_v35  ;;  %v2363_v58 = vmul.f32 %v3706_v21, %v2362_v45  ;;  %v1745_v21 = vld [vmem:[#allocation4 + $0xf0] sm:$0xff] }
 0xf71   : > { %2278 = vmatpush.msrb.mxu1 %v1745_v21 }
 0xf72   : > { %2900 = vmatmul.msk.f32.gmra.mxu0 %vm948_vm5, %v2220_v37  ;;  %v2367_v43 = vmul.f32 %v3054_v30, %v2366_v61  ;;  %v2923_v61 = vld [vmem:[%s3869_s13 + $0x70] sm:$0xff] }
 0xf73   : > { %2571 = vmatpush.msra.mxu2 %v2923_v61 }
 0xf74   : > { %v2368_v46 = vadd.f32 %v3054_v30, %v2367_v43  ;;  %v2921_v43 = vld [vmem:[%s3869_s13 + $0x60] sm:$0xff] }
 0xf75   : > { %2572 = vmatpush.msra.mxu2 %v2922_v60 }
 0xf76   : > { %v2372_v2 = vsel %vm2371_vm8, %v3054_v30, %v2368_v46  ;;  %v2913_v30 = vld [vmem:[%s3867_s11 + $0x28] sm:$0xff]  ;;  %v2920_v46 = vld [vmem:[%s3869_s13 + $0x58] sm:$0xff] }
 0xf77   : > { %v2377_v54 = vsel %vm2374_vm10, %v2376_v52, %v2372_v2  ;;  %2573 = vmatpush.msra.mxu2 %v2921_v43 }
 0xf78   : > { %v2378_v55 = vmul.f32 %v3710_v27, %v2377_v54  ;;  %v2495_v54 = vperm.slane %v3589_v49, 1 }
 0xf79   : > { %2574 = vmatpush.msra.mxu2 %v2920_v46 }
 0xf7b   : > { %2575 = vmatpush.msra.mxu2 %v2919_v22 }
 0xf7e   : > { %v2380_v50 = vpop.permute.xlu1 %2379 }
 0xf7f   : > { %2407 = vmatpush.msrb.mxu3 %v2380_v50 }
 0xf80   : > { %2908 = vmatmul.msk.f32.vlgmr.msrb.gmra.mxu3 %vm948_vm5, %v2363_v58 }
 0xf82   : > { %v2066_v53 = vpop.f32.mrf.mxu0 }
 0xf83   : > { %2890 = vmatmul.msk.f32.vlgmr.msra.gmra.mxu1 %vm908_vm0, %v2066_v53 }
 0xf84   : > { %2540 = vmatpush.msra.mxu1 %v2915_v28 }
 0xf86   : > { %2541 = vmatpush.msra.mxu1 %v2914_v29 }
 0xf88   : > { %2909 = vmatmul.msk.f32.gmra.mxu3 %vm948_vm5, %v2378_v55  ;;  %2542 = vmatpush.msra.mxu1 %v2913_v30 }
 0xf8a   : > { %v2069_v1 = vpop.f32.mrf.mxu0  ;;  %2543 = vmatpush.msra.mxu1 %v2912_v31 }
 0xf8b   : > { %2891 = vmatmul.msk.f32.gmra.mxu1 %vm908_vm0, %v2069_v1 }
 0xfe7   : > { %v2251_v47 = vpop.f32.mrf.mxu0 }
 0xfe8   : > { %2901 = vmatmul.msk.f32.vlgmr.msrb.gmra.mxu1 %vm908_vm0, %v2251_v47 }
 0xfef   : > { %v2254_v36 = vpop.f32.mrf.mxu0 }
 0xff0   : > { %2902 = vmatmul.msk.f32.gmra.mxu1 %vm908_vm0, %v2254_v36 }
0x1000   : > { %v2095_v27 = vpop.f32.mrf.mxu1 }
0x1001   : > { %v2125_v63 = vadd.f32 %v3672_v42, %v2095_v27 }
0x1003   : > { %v2409_v40 = vpop.f32.mrf.mxu3 }
0x1004   : > { %2910 = vmatmul.msk.f32.vlgmr.msra.gmra.mxu0 %vm908_vm0, %v2409_v40 }
0x1008   : > { %v2098_v59 = vpop.f32.mrf.mxu1 }
0x1009   : > { %v2128_v33 = vadd.f32 %v3676_v48, %v2098_v59 }
0x100b   : > { %v2412_v56 = vpop.f32.mrf.mxu3 }
0x100c   : > { %2911 = vmatmul.msk.f32.gmra.mxu0 %vm908_vm0, %v2412_v56 }
0x1065   : > { %v2280_v62 = vpop.f32.mrf.mxu1 }
0x1066   : > { %v2286_v3 = vadd.f32 %v2280_v62, %v2125_v63 }
0x106d   : > { %v2283_v32 = vpop.f32.mrf.mxu1 }
0x106e   : > { %v2287_v18 = vadd.f32 %v2283_v32, %v2128_v33 }
0x1081   : > { %v2438_v7 = vpop.f32.mrf.mxu0 }
0x1082   : > { %v2444_v8 = vadd.f32 %v2438_v7, %v2286_v3  ;;  %v2918_v3 = vld [vmem:[%s3869_s13 + $0x48] sm:$0xff]  ;;  %v2968_v7 = vld [vmem:[%s3868_s12 + $0x1] ss:$0 sm:$0xff] }
0x1083   : > { %2576 = vmatpush.msra.mxu2 %v2918_v3 }
0x1084   : > { %v2447_v12 = vadd.f32 %v2446_v6, %v2444_v8 }
0x1086   : > { %v3743_v15 = vadd.f32 %v2447_v12, %v3565_v11 }
0x1088   : > { %v2451_v13 = vsel %vm683_vm1, %v3743_v15, 0.0 }
0x1089   : > { %2452 = vadd.xlane.f32.xlu2 %v2451_v13  ;;  %v2441_v19 = vpop.f32.mrf.mxu0 }
0x108a   : > { %v2445_v0 = vadd.f32 %v2441_v19, %v2287_v18  ;;  %v2969_v19 = vld [vmem:[%s3893_s26 + $0x1] ss:$0 sm:$0xff] }
0x108c   : > { %v2448_v42 = vadd.f32 %v2446_v6, %v2445_v0  ;;  %v2917_v6 = vld [vmem:[%s3869_s13 + $0x40] sm:$0xff] }
0x108d   : > { %2577 = vmatpush.msra.mxu2 %v2917_v6 }
0x108e   : > { %v3748_v5 = vadd.f32 %v2448_v42, %v3570_v14 }
0x1090   : > { %v2454_v9 = vsel %vm687_vm2, %v3748_v5, 0.0 }
0x1091   : > { %2455 = vadd.xlane.f32.xlu0 %v2454_v9 }
0x10fc   : > { %v2453_v4 = vpop.xlane.xlu2 %2452 }
0x10fd   : > { %v2457_v48 = vmul.f32 %v2453_v4, %v3276_v17 }
0x10ff   : > { %v2459_v11 = vsub.f32 %v3743_v15, %v2457_v48 }
0x1101   : > { %v2461_v20 = vmul.f32 %v2459_v11, %v2459_v11 }
0x1103   : > { %v2463_v23 = vsel %vm683_vm1, %v2461_v20, 0.0 }
0x1104   : > { %2464 = vadd.xlane.f32.xlu1 %v2463_v23  ;;  %v2456_v10 = vpop.xlane.xlu0 %2455 }
0x1105   : > { %v2458_v24 = vmul.f32 %v2456_v10, %v3276_v17 }
0x1107   : > { %v2460_v25 = vsub.f32 %v3748_v5, %v2458_v24 }
0x1109   : > { %v2462_v14 = vmul.f32 %v2460_v25, %v2460_v25 }
0x110b   : > { %v2466_v26 = vsel %vm687_vm2, %v2462_v14, 0.0 }
0x110c   : > { %2467 = vadd.xlane.f32.xlu2 %v2466_v26 }
0x1177   : > { %v2465_v34 = vpop.xlane.xlu1 %2464 }
0x1178   : > { %v2469_v35 = vmul.f32 %v2465_v34, %v3276_v17  ;;  %v2647_v34 = vld [vmem:[%s3873_s17 + $0x10] sm:$0xff] }
0x117a   : > { %v2471_v37 = vadd.f32 1e-12, %v2469_v35  ;;  %v2646_v35 = vld [vmem:[%s3873_s17 + $0x8] sm:$0xff] }
0x117c   : > { %3055 = vrsqrt.f32 %v2471_v37  ;;  %vm2479_vm5 = vweird.f32 %v2471_v37 }
0x117f   : > { %v2468_v39 = vpop.xlane.xlu2 %2467 }
0x1180   : > { %v2470_v41 = vmul.f32 %v2468_v39, %v3276_v17 }
0x1182   : > { %v3056_v44 = vpop.eup %3055  ;;  %v2472_v45 = vadd.f32 1e-12, %v2470_v41 }
0x1183   : > { %v2474_v16 = vmul.f32 %v3056_v44, %v2471_v37  ;;  %vm2480_vm0 = vweird.f32 %v3056_v44  ;;  %v2645_v37 = vld [vmem:[%s3873_s17] sm:$0xff] }
0x1184   : > { %3057 = vrsqrt.f32 %v2472_v45  ;;  %vm2481_vm11 = vmor %vm2479_vm5, %vm2480_vm0  ;;  %vm2489_vm12 = vweird.f32 %v2472_v45 }
0x1185   : > { %v2475_v50 = vmul.f32 %v3056_v44, %v2474_v16 }
0x1187   : > { %v2476_v58 = vmul.f32 0.5, %v2475_v50 }
0x1189   : > { %v2477_v51 = vsub.f32 1.5, %v2476_v58 }
0x118a   : > { %v3058_v2 = vpop.eup %3057 }
0x118b   : > { %v2478_v52 = vmul.f32 %v3056_v44, %v2477_v51  ;;  %v2484_v53 = vmul.f32 %v3058_v2, %v2472_v45  ;;  %vm2490_vm6 = vweird.f32 %v3058_v2 }
0x118c   : > { %vm2491_vm13 = vmor %vm2489_vm12, %vm2490_vm6 }
0x118d   : > { %v2482_v55 = vsel %vm2481_vm11, %v3056_v44, %v2478_v52  ;;  %v2485_v1 = vmul.f32 %v3058_v2, %v2484_v53  ;;  %v2970_v52 = vld [vmem:[%s3871_s15] ss:$0 sm:$0xff] }
0x118e   : > { %v2493_v21 = vmul.f32 %v2482_v55, %v2459_v11  ;;  %v2971_v55 = vld [vmem:[%s3872_s16] ss:$0 sm:$0xff] }
0x118f   : > { %v2486_v47 = vmul.f32 0.5, %v2485_v1 }
0x1190   : > { %v2496_v36 = vmul.f32 %v2495_v54, %v2493_v21 }
0x1191   : > { %v2487_v40 = vsub.f32 1.5, %v2486_v47 }
0x1192   : > { %v2499_v56 = vadd.f32 %v2498_v57, %v2496_v36 }
0x1193   : > { %v2488_v27 = vmul.f32 %v3058_v2, %v2487_v40 }
0x1194   : > { %2926 = vmatmul.msk.f32.vlgmr.msra.gmra.mxu1 %vm683_vm1, %v2499_v56 }
0x1195   : > { %v2492_v59 = vsel %vm2491_vm13, %v3058_v2, %v2488_v27 }
0x1196   : > { %v2494_v62 = vmul.f32 %v2492_v59, %v2460_v25 }
0x1198   : > { %v2497_v63 = vmul.f32 %v2495_v54, %v2494_v62  ;;  %v2972_v62 = vld [vmem:[%s3874_s18] ss:$0 sm:$0xff] }
0x119a   : > { %v2500_v49 = vadd.f32 %v2498_v57, %v2497_v63 }
0x119c   : > { %2927 = vmatmul.msk.f32.gmra.mxu1 %vm683_vm1, %v2500_v49 }
0x1211   : > { %v2545_v8 = vpop.f32.mrf.mxu1 }
0x1212   : > { %v2546_v12 = vadd.f32 %v2968_v7, %v2545_v8 }
0x1214   : > { %v2551_v32 = vmax.f32 %v2546_v12, 0.0 }
0x1216   : > { %2928 = vmatmul.msk.f32.vlgmr.msra.gmra.mxu2 %vm1639_vm9, %v2551_v32 }
0x1219   : > { %v2548_v33 = vpop.f32.mrf.mxu1 }
0x121a   : > { %v2549_v18 = vadd.f32 %v2968_v7, %v2548_v33 }
0x121c   : > { %v2552_v13 = vmax.f32 %v2549_v18, 0.0 }
0x121e   : > { %2929 = vmatmul.msk.f32.gmra.mxu2 %vm1639_vm9, %v2552_v13 }
0x1299   : > { %v2579_v0 = vpop.f32.mrf.mxu2 }
0x129a   : > { %v2580_v42 = vadd.f32 %v2969_v19, %v2579_v0 }
0x129c   : > { %v2585_v9 = vadd.f32 %v2580_v42, %v3743_v15 }
0x129e   : > { %v2589_v4 = vsel %vm683_vm1, %v2585_v9, 0.0 }
0x129f   : > { %2590 = vadd.xlane.f32.xlu0 %v2589_v4 }
0x12a1   : > { %v2582_v48 = vpop.f32.mrf.mxu2 }
0x12a2   : > { %v2583_v11 = vadd.f32 %v2969_v19, %v2582_v48 }
0x12a4   : > { %v2586_v20 = vadd.f32 %v2583_v11, %v3748_v5  ;;  %v2648_v5 = vld [vmem:[%s3873_s17 + $0x18] sm:$0xff] }
0x12a5   : > { %2671 = vmatpush.msra.mxu3 %v2648_v5 }
0x12a6   : > { %v2592_v23 = vsel %vm687_vm2, %v2586_v20, 0.0 }
0x12a7   : > { %2593 = vadd.xlane.f32.xlu2 %v2592_v23  ;;  %2672 = vmatpush.msra.mxu3 %v2647_v34 }
0x12a9   : > { %2673 = vmatpush.msra.mxu3 %v2646_v35 }
0x12ab   : > { %2674 = vmatpush.msra.mxu3 %v2645_v37 }
0x1312   : > { %v2591_v10 = vpop.xlane.xlu0 %2590 }
0x1313   : > { %v2595_v24 = vmul.f32 %v2591_v10, %v3276_v17 }
0x1315   : > { %v2597_v25 = vsub.f32 %v2585_v9, %v2595_v24 }
0x1317   : > { %v2599_v14 = vmul.f32 %v2597_v25, %v2597_v25 }
0x1319   : > { %v2601_v26 = vsel %vm683_vm1, %v2599_v14, 0.0 }
0x131a   : > { %v2594_v28 = vpop.xlane.xlu2 %2593  ;;  %2602 = vadd.xlane.f32.xlu0 %v2601_v26 }
0x131b   : > { %v2596_v15 = vmul.f32 %v2594_v28, %v3276_v17 }
0x131d   : > { %v2598_v29 = vsub.f32 %v2586_v20, %v2596_v15 }
0x131f   : > { %v2600_v30 = vmul.f32 %v2598_v29, %v2598_v29 }
0x1321   : > { %v2604_v31 = vsel %vm687_vm2, %v2600_v30, 0.0 }
0x1322   : > { %2605 = vadd.xlane.f32.xlu1 %v2604_v31 }
0x138d   : > { %v2603_v38 = vpop.xlane.xlu0 %2602 }
0x138e   : > { %v2607_v61 = vmul.f32 %v2603_v38, %v3276_v17 }
0x1390   : > { %v2609_v60 = vadd.f32 1e-12, %v2607_v61 }
0x1392   : > { %3059 = vrsqrt.f32 %v2609_v60  ;;  %vm2617_vm14 = vweird.f32 %v2609_v60 }
0x1395   : > { %v2606_v39 = vpop.xlane.xlu1 %2605 }
0x1396   : > { %v2608_v41 = vmul.f32 %v2606_v39, %v3276_v17 }
0x1398   : > { %v3060_v43 = vpop.eup %3059  ;;  %v2610_v44 = vadd.f32 1e-12, %v2608_v41 }
0x1399   : > { %v2612_v45 = vmul.f32 %v3060_v43, %v2609_v60  ;;  %vm2618_vm9 = vweird.f32 %v3060_v43 }
0x139a   : > { %3061 = vrsqrt.f32 %v2610_v44  ;;  %vm2619_vm15 = vmor %vm2617_vm14, %vm2618_vm9  ;;  %vm2627_vm7 = vweird.f32 %v2610_v44 }
0x139b   : > { %v2613_v46 = vmul.f32 %v3060_v43, %v2612_v45 }
0x139d   : > { %v2614_v16 = vmul.f32 0.5, %v2613_v46 }
0x139f   : > { %v2615_v50 = vsub.f32 1.5, %v2614_v16 }
0x13a0   : > { %v3062_v58 = vpop.eup %3061 }
0x13a1   : > { %v2616_v51 = vmul.f32 %v3060_v43, %v2615_v50  ;;  %v2622_v2 = vmul.f32 %v3062_v58, %v2610_v44  ;;  %vm2628_vm4 = vweird.f32 %v3062_v58 }
0x13a2   : > { %vm2629_vm8 = vmor %vm2627_vm7, %vm2628_vm4 }
0x13a3   : > { %v2620_v53 = vsel %vm2619_vm15, %v3060_v43, %v2616_v51  ;;  %v2623_v17 = vmul.f32 %v3062_v58, %v2622_v2 }
0x13a4   : > { %v2631_v54 = vmul.f32 %v2620_v53, %v2597_v25 }
0x13a5   : > { %v2624_v1 = vmul.f32 0.5, %v2623_v17 }
0x13a6   : > { %v2636_v21 = vmul.f32 %v2970_v52, %v2631_v54 }
0x13a7   : > { %v2625_v57 = vsub.f32 1.5, %v2624_v1 }
0x13a8   : > { %v2641_v47 = vadd.f32 %v2971_v55, %v2636_v21 }
0x13a9   : > { %v2626_v36 = vmul.f32 %v3062_v58, %v2625_v57 }
0x13aa   : > { %2643 = vst.msk [vmem:[%s636_s21] sm:$0xff] %vm683_vm1, %v2641_v47  ;;  %2930 = vmatmul.msk.f32.vlgmr.msra.gmra.mxu3 %vm683_vm1, %v2641_v47 }
0x13ab   : > { %v2630_v40 = vsel %vm2629_vm8, %v3062_v58, %v2626_v36 }
0x13ac   : > { %v2632_v56 = vmul.f32 %v2630_v40, %v2598_v29 }
0x13ae   : > { %v2637_v27 = vmul.f32 %v2970_v52, %v2632_v56 }
0x13b0   : > { %v2642_v59 = vadd.f32 %v2971_v55, %v2637_v27 }
0x13b2   : > { %2644 = vst.msk [vmem:[%s636_s21 + $0x8] sm:$0xf] %vm687_vm2, %v2642_v59  ;;  %2931 = vmatmul.msk.f32.gmra.mxu3 %vm683_vm1, %v2642_v59 }
0x142d   : > { %v2676_v63 = vpop.f32.mrf.mxu3 }
0x142e   : > { %v2677_v49 = vadd.f32 %v2972_v62, %v2676_v63 }
0x1430   : > { %2682 = vmax.xlane.f32.xlu0 %v2677_v49 }
0x1435   : > { %v2679_v22 = vpop.f32.mrf.mxu3 }
0x1436   : > { %v2680_v3 = vadd.f32 %v2972_v62, %v2679_v22 }
0x1438   : > { %v2684_v6 = vsel %vm1004_vm3, %v2680_v3, -inf }
0x1439   : > { %2685 = vmax.xlane.f32.xlu2 %v2684_v6 }
0x14a3   : > { %v2683_v7 = vpop.xlane.xlu0 %2682 }
0x14a4   : > { %v2687_v8 = vsub.f32 %v2677_v49, %v2683_v7 }
0x14a6   : > { %v2689_v12 = vmul.f32 1.442695, %v2687_v8 }
0x14a8   : > { %3063 = vpow2.f32 %v2689_v12 }
0x14ac   : > { %v2686_v32 = vpop.xlane.xlu2 %2685 }
0x14ad   : > { %v2688_v33 = vsub.f32 %v2680_v3, %v2686_v32 }
0x14ae   : > { %v3064_v18 = vpop.eup %3063 }
0x14af   : > { %v2691_v13 = vmul.f32 1.442695, %v2688_v33  ;;  %2693 = vadd.xlane.f32.xlu1 %v3064_v18 }
0x14b1   : > { %3065 = vpow2.f32 %v2691_v13 }
0x14b7   : > { %v3066_v19 = vpop.eup %3065 }
0x14b8   : > { %v2695_v0 = vsel %vm1004_vm3, %v3066_v19, 0.0 }
0x14b9   : > { %2696 = vadd.xlane.f32.xlu2 %v2695_v0 }
0x1522   : > { %v2694_v42 = vpop.xlane.xlu1 %2693 }
0x1523   : > { %3067 = vlog2.f32 %v2694_v42 }
0x1529   : > { %v3068_v9 = vpop.eup %3067 }
0x152a   : > { %v2699_v4 = vmul.f32 0.6931472, %v3068_v9 }
0x152c   : > { %v2702_v48 = vsub.f32 %v2687_v8, %v2699_v4  ;;  %v2697_v11 = vpop.xlane.xlu2 %2696 }
0x152d   : > { %3069 = vlog2.f32 %v2697_v11 }
0x152e   : > { %2704 = vst [vmem:[%s641_s22] sm:$0xff] %v2702_v48 }
0x1533   : > { %v3070_v20 = vpop.eup %3069 }
0x1534   : > { %v2701_v23 = vmul.f32 0.6931472, %v3070_v20 }
0x1536   : > { %v2703_v10 = vsub.f32 %v2688_v33, %v2701_v23 }
0x1538   : > { %2705 = vst [vmem:[%s641_s22 + $0x8] sm:$0xf] %v2703_v10 }
0x1539 PF: > { %s40_s2 = sadd.s32 1, %s3125_s2  }
0x153a   : > { %p37_p7 = scmp.ge.s32.totalorder %s40_s2, 4  }
0x153c   :  { %39 = sbr.rel (!%p37_p7) target bundleno = 19 (0x13), region = 153 }
0x1541   :  { %2743 = vsyncpa [#allocation5], 1 }
0x1542   :  { %2745 = vsyncpa [#allocation5 + $0x1], 1 }

// kernel: forward.3
= control target key start
LH: loop header
LB: loop body
LE: loop exit
PB: predicated region body
PF: predicated region fallthrough
CT: control target
= control target key end

     0   :  { %s3484_s23 = smov [#allocation4]   ;;  %s4376_s0 = inlined_call_operand.vmem [shape: s32[2], index: 0, kind: input, shape index: {}]   ;;  %s4377_s2 = inlined_call_operand.vmem [shape: f32[2,7,32], index: 2, kind: input, shape index: {}]   ;;  %s4378_s3 = inlined_call_operand.vmem [shape: f32[2,12,32], index: 3, kind: input, shape index: {}]   ;;  %s4379_s4 = inlined_call_operand.vmem [shape: f32[7,32], index: 4, kind: input, shape index: {}]   ;;  %s4380_s5 = inlined_call_operand.vmem [shape: f32[2,4,32,32], index: 5, kind: input, shape index: {}]   ;;  %s4381_s6 = inlined_call_operand.vmem [shape: f32[2,4,32], index: 6, kind: input, shape index: {}]   ;;  %s4382_s7 = inlined_call_operand.vmem [shape: f32[2,4,32,32], index: 7, kind: input, shape index: {}]   ;;  %s4383_s8 = inlined_call_operand.vmem [shape: f32[2,4,32], index: 8, kind: input, shape index: {}]   ;;  %s4384_s9 = inlined_call_operand.vmem [shape: f32[2,3,32], index: 9, kind: input, shape index: {}]   ;;  %s4385_s10 = inlined_call_operand.vmem [shape: f32[2,3,32], index: 10, kind: input, shape index: {}]   ;;  %s4386_s11 = inlined_call_operand.vmem [shape: f32[2,32,64], index: 11, kind: input, shape index: {}]   ;;  %s4387_s12 = inlined_call_operand.vmem [shape: f32[2,1,64], index: 12, kind: input, shape index: {}]   ;;  %s4388_s13 = inlined_call_operand.vmem [shape: f32[2,64,32], index: 13, kind: input, shape index: {}]   ;;  %s4389_s14 = inlined_call_operand.vmem [shape: f32[2,1,32], index: 14, kind: input, shape index: {}]   ;;  %s4390_s15 = inlined_call_operand.vmem [shape: f32[1,32], index: 15, kind: input, shape index: {}]   ;;  %s4391_s16 = inlined_call_operand.vmem [shape: f32[1,32], index: 16, kind: input, shape index: {}]   ;;  %s4392_s17 = inlined_call_operand.vmem [shape: f32[32,128], index: 17, kind: input, shape index: {}]   ;;  %s4393_s18 = inlined_call_operand.vmem [shape: f32[1,128], index: 18, kind: input, shape index: {}]   ;;  %s4394_s19 = inlined_call_operand.vmem [shape: f32[2,7,128], index: 19, kind: output, shape index: {}]   ;;  %s4395_s1 = inlined_call_operand.vmem [shape: s32[2], index: 1, kind: input, shape index: {}]  }
   0x1   :  { %4400 = sst [smem:[#allocation6_spill]] %s4376_s0  ;;  %s30_s22 = sshll.u32 %s4395_s1, 4  ;;  %s31_s22 = int_to_ptr.vmem [resolvable:$true] %s30_s22 }
   0x2   :  { %4401 = sst [smem:[#allocation7_spill]] %s4377_s2 }
   0x3   :  { %4402 = sst [smem:[#allocation8_spill]] %s4378_s3  ;;  %s3483_s3 = smov [#allocation3]  }
   0x4   :  { %4403 = sst [smem:[#allocation9_spill]] %s4379_s4 }
   0x5   :  { %4404 = sst [smem:[#allocation10_spill]] %s4389_s14 }
   0x6   :  { %s4405_s20 = sld [smem:[#allocation6_spill]] }
   0xc   :  { %s25_s14 = sshll.u32 %s4405_s20, 4  ;;  %s26_s14 = int_to_ptr.vmem [resolvable:$true] %s25_s14 }
   0xd   :  { %28 = dma.vmem_to_smem %s26_s14, 16, %s3483_s3, [#allocation2] }
   0xe   :  { %33 = dma.vmem_to_smem %s31_s22, 16, %s3484_s23, [#allocation2] }
   0xf   :  { %3477 = dma.done.wait [#allocation2], 32 }
  0x10   :  { %3478 = vsyncadd [#allocation2], 4294967264 }
  0x11   :  { %36 = sfence }
  0x12   :  { %s3595_s24 = smov 0  }
  0x13 LB: > { %s3601_s1 = sadd.s32 4294967295, %s3481_s24   ;;  %p3149_p0 = scmp.ge.s32.totalorder %s3481_s24, 1  ;;  %s3481_s24 = sphi %s3595_s24, %s42_s24  }
  0x14   : > { %p511_p1 = scmp.lt.s32.totalorder %s3481_s24, 3 }
  0x16   : > { %p512_p2 = pnand %p3149_p0, %p511_p1 }
  0x17   : > { %p566_p3 = scmp.lt.s32.totalorder (!%p512_p2), %s3601_s1, 1  ;;  %s4406_s27 = sld [smem:[#allocation7_spill]] (!%p512_p2) }
  0x18   : > { %515 = sbr.rel (%p512_p2) target bundleno = 8137 (0x1fc9), region = 88  ;;  %s4407_s30 = sld [smem:[#allocation9_spill]] (!%p512_p2) }
  0x19   : > { %s3486_s3 = smov (!%p512_p2), 112   ;;  %s3487_s23 = smov (!%p512_p2), 120  }
  0x1a   : > { %s4398_s4 = smov (!%p512_p2), 104   ;;  %s580_s26 = sld [smem:[#allocation4 + %s3601_s1]] (!%p512_p2) }
  0x1b   : > { %s4410_s2 = sld [smem:[#allocation8_spill]] (!%p512_p2) }
  0x1c   : > { %s4414_s0 = sld [smem:[#allocation10_spill]] (!%p512_p2) }
  0x1d   : > { %s3607_s14 = scalar_select %p566_p3, %s3601_s1, 1  ;;  %vm601_vm0 = vcmask 260096   ;;  %v3485_v5 = vmov 32.0   ;;  %v638_v17 = vld [vmem:[%s4380_s5 + $0x18] sm:$0xff]  ;;  %v637_v20 = vld [vmem:[%s4380_s5 + $0x10] sm:$0xff]  ;;  %v636_v23 = vld [vmem:[%s4380_s5 + $0x8] sm:$0xff]  ;;  %v587_v60 = vlaneseq }
  0x1e   : > { %v583_v1 = vld [vmem:[%s4407_s30] sm:$0x7f]  ;;  %3361 = vrcp.f32 %v3485_v5  ;;  %v3157_v18 = vld [vmem:[%s4380_s5 + $0x38] sm:$0xff]  ;;  %671 = vmatpush.msra.mxu0 %v638_v17  ;;  %v3156_v21 = vld [vmem:[%s4380_s5 + $0x30] sm:$0xff]  ;;  %vm655_vm5 = vcmask 261120   ;;  %vm721_vm6 = vcmask 64512  }
  0x1f   : > { %s4397_s25 = sshll.u32 %s3607_s14, 3  ;;  %v3161_v19 = vld [vmem:[%s4380_s5 + $0x58] sm:$0xff]  ;;  %692 = vmatpush.msra.mxu1 %v3157_v18  ;;  %v3160_v22 = vld [vmem:[%s4380_s5 + $0x50] sm:$0xff]  ;;  %v3155_v24 = vld [vmem:[%s4380_s5 + $0x28] sm:$0xff]  ;;  %vm779_vm7 = vcmask 1046528   ;;  %v588_v61 = vshrl.u32 %v587_v60, 7 }
  0x20   : > { %s569_s28 = scalar_lea.vmem %s4406_s27, %s4397_s25  ;;  %713 = vmatpush.msra.mxu2 %v3161_v19  ;;  %672 = vmatpush.msra.mxu0 %v637_v20  ;;  %v3159_v25 = vld [vmem:[%s4380_s5 + $0x48] sm:$0xff]  ;;  %v635_v26 = vld [vmem:[%s4380_s5] sm:$0xff]  ;;  %v3703_v62 = vand.u32 127, %v587_v60  ;;  %v592_v63 = vstv %s580_s26  ;;  %vm750_vm11 = vcmask 55296   ;;  %s3339_s22 = sshll.u32 %s3607_s14, 4 }
  0x21   : > { %v581_v0 = vld [vmem:[%s569_s28] sm:$0x7f]  ;;  %693 = vmatpush.msra.mxu1 %v3156_v21  ;;  %s3789_s25 = scalar_lea.vmem %s4410_s2, %s3339_s22  ;;  %s4411_s26 = smov 104  }
  0x22   : > { %v582_v2 = vmul.f32 5.656854, %v581_v0  ;;  %714 = vmatpush.msra.mxu2 %v3160_v22  ;;  %v3154_v27 = vld [vmem:[%s4380_s5 + $0x20] sm:$0xff]  ;;  %673 = vmatpush.msra.mxu0 %v636_v23  ;;  %vm591_vm8 = vcmp.le.s32.totalorder %v3703_v62, %v588_v61  ;;  %vm593_vm9 = vcmp.lt.s32.totalorder %v3703_v62, %v592_v63  ;;  %s4415_s27 = sshll.u32 %s3607_s14, 3 }
  0x23   : > { %694 = vmatpush.msra.mxu1 %v3155_v24  ;;  %v3158_v28 = vld [vmem:[%s4380_s5 + $0x40] sm:$0xff]  ;;  %vm3707_vm10 = vmand %vm591_vm8, %vm593_vm9  ;;  %s578_s29 = scalar_lea.vmem %s4394_s19, %s4415_s27 }
  0x24   : > { %v3618_v3 = vadd.f32 %v583_v1, %v582_v2  ;;  %v3362_v6 = vpop.eup %3361  ;;  %715 = vmatpush.msra.mxu2 %v3159_v25  ;;  %674 = vmatpush.msra.mxu0 %v635_v26  ;;  %v3667_v37 = vld [vmem:[%s4384_s9] sm:$0x7]  ;;  %v3249_v1 = vld [vmem:[%s4380_s5 + $0xe8] sm:$0xff] }
  0x25   : > { %v606_v7 = vmul.f32 32.0, %v3362_v6  ;;  %vm610_vm1 = vweird.f32 %v3362_v6  ;;  %695 = vmatpush.msra.mxu1 %v3154_v27  ;;  %v3672_v39 = vld [vmem:[%s4385_s10] sm:$0x7]  ;;  %v631_v40 = vperm.slane %v3667_v37, 0 }
  0x26   : > { %v602_v4 = vsel %vm601_vm0, %v3618_v3, 0.0  ;;  %716 = vmatpush.msra.mxu2 %v3158_v28  ;;  %v633_v43 = vperm.slane %v3672_v39, 0  ;;  %v3682_v46 = vld [vmem:[%s4381_s6] sm:$0xf] }
  0x27   : > { %603 = vadd.xlane.f32.xlu0 %v602_v4  ;;  %v607_v8 = vsub.f32 1.0, %v606_v7  ;;  %v679_v47 = vperm.slane %v3682_v46, 1  ;;  %v654_v49 = vperm.slane %v3682_v46, 0  ;;  %v700_v52 = vperm.slane %v3682_v46, 2  ;;  %v3162_v28 = vld [vmem:[%s4380_s5 + $0x60] sm:$0xff] }
  0x29   : > { %v608_v9 = vmul.f32 %v3362_v6, %v607_v8 }
  0x2b   : > { %v609_v10 = vadd.f32 %v3362_v6, %v608_v9 }
  0x2d   : > { %v3622_v11 = vsel %vm610_vm1, %v3362_v6, %v609_v10  ;;  %vm775_vm1 = vcmask 56320  }
  0x9a   : > { %v604_v12 = vpop.xlane.xlu0 %603 }
  0x9b   : > { %v612_v13 = vmul.f32 %v3622_v11, %v604_v12 }
  0x9d   : > { %v613_v14 = vsub.f32 %v3618_v3, %v612_v13 }
  0x9f   : > { %v614_v15 = vmul.f32 %v613_v14, %v613_v14 }
  0xa1   : > { %v615_v16 = vsel %vm601_vm0, %v614_v15, 0.0 }
  0xa2   : > { %616 = vadd.xlane.f32.xlu0 %v615_v16 }
 0x115   : > { %v617_v29 = vpop.xlane.xlu0 %616 }
 0x116   : > { %v618_v30 = vmul.f32 %v617_v29, %v3622_v11 }
 0x118   : > { %v619_v31 = vadd.f32 1e-12, %v618_v30 }
 0x11a   : > { %3363 = vrsqrt.f32 %v619_v31  ;;  %vm626_vm3 = vweird.f32 %v619_v31 }
 0x120   : > { %v3364_v32 = vpop.eup %3363 }
 0x121   : > { %v621_v33 = vmul.f32 %v3364_v32, %v619_v31  ;;  %vm627_vm2 = vweird.f32 %v3364_v32 }
 0x122   : > { %vm628_vm4 = vmor %vm626_vm3, %vm627_vm2 }
 0x123   : > { %v622_v34 = vmul.f32 %v3364_v32, %v621_v33 }
 0x125   : > { %v623_v35 = vmul.f32 0.5, %v622_v34 }
 0x127   : > { %v624_v36 = vsub.f32 1.5, %v623_v35 }
 0x129   : > { %v625_v38 = vmul.f32 %v3364_v32, %v624_v36 }
 0x12b   : > { %v629_v41 = vsel %vm628_vm4, %v3364_v32, %v625_v38 }
 0x12c   : > { %v630_v42 = vmul.f32 %v629_v41, %v613_v14 }
 0x12e   : > { %v632_v44 = vmul.f32 %v631_v40, %v630_v42 }
 0x130   : > { %v634_v45 = vadd.f32 %v633_v43, %v632_v44 }
 0x132   : > { %3166 = vmatmul.msk.f32.vlgmr.msra.gmra.mxu0 %vm655_vm5, %v634_v45  ;;  %3167 = vmatmul.msk.f32.vlgmr.msra.gmra.mxu1 %vm655_vm5, %v634_v45 }
 0x133   : > { %3168 = vmatmul.msk.f32.vlgmr.msra.gmra.mxu2 %vm655_vm5, %v634_v45 }
 0x1af   : > { %v697_v48 = vpop.f32.mrf.mxu1  ;;  %v676_v51 = vpop.f32.mrf.mxu0 }
 0x1b0   : > { %v698_v50 = vadd.f32 %v697_v48, %v679_v47  ;;  %v677_v53 = vadd.f32 %v676_v51, %v654_v49 }
 0x1b2   : > { %932 = vrot.lane.b32.xlu0 %v698_v50, %s3486_s3  ;;  %805 = vrot.lane.b32.xlu2 %v698_v50, %s3487_s23 }
 0x1b3   : > { %3169 = vmatpush.xpose.msk.msrb.mxu1 %vm721_vm6, %v698_v50 }
 0x1b6   : > { %v718_v54 = vpop.f32.mrf.mxu2  ;;  %3170 = vmatmul.msk.f32.vlgmr.msrb.gmra.mxu1 %vm721_vm6, %v677_v53 }
 0x1b7   : > { %v3691_v55 = vadd.f32 %v718_v54, %v700_v52 }
 0x1b9   : > { %3171 = vmatpush.msk.msra.mxu3 %vm779_vm7, %v3691_v55 }
 0x1ba   : > { %803 = vrot.lane.b32.xlu2 %v677_v53, %s3487_s23 }
 0x1bb   : > { %925 = vmatpush.msrb.mxu3 %v3162_v28 }
 0x1c2   : > { %930 = vrot.lane.b32.xlu2 %v677_v53, %s3486_s3 }
 0x1ca   : > { %1035 = vrot.lane.b32.xlu2 %v677_v53, %s4398_s4 }
 0x20c   : > { %v806_v56 = vpop.permute.xlu2 %805 }
 0x20d   : > { %3173 = vmatpush.xpose.msk.msrb.mxu0 %vm721_vm6, %v806_v56 }
 0x214   : > { %v804_v57 = vpop.permute.xlu2 %803 }
 0x215   : > { %3174 = vmatmul.msk.f32.vlgmr.msrb.gmra.mxu0 %vm721_vm6, %v804_v57 }
 0x21c   : > { %v931_v59 = vpop.permute.xlu2 %930 }
 0x224   : > { %v933_v58 = vpop.permute.xlu0 %932  ;;  %v1036_v20 = vpop.permute.xlu2 %1035 }
 0x225   : > { %3179 = vmatpush.xpose.msk.msra.mxu0 %vm721_vm6, %v933_v58 }
 0x228   : > { %3180 = vmatmul.msk.f32.vlgmr.msra.gmra.mxu0 %vm721_vm6, %v931_v59 }
 0x233   : > { %v745_v0 = vpop.f32.mrf.mxu1 }
 0x234   : > { %v748_v2 = vmul.f32 0.35355338, %v745_v0 }
 0x236   : > { %v749_v4 = vsel %vm3707_vm10, %v748_v2, -1e+30 }
 0x237   : > { %v751_v5 = vsel %vm750_vm11, %v749_v4, -inf }
 0x238   : > { %752 = vmax.xlane.f32.xlu1 %v751_v5 }
 0x292   : > { %v828_v6 = vpop.f32.mrf.mxu0 }
 0x293   : > { %v831_v7 = vmul.f32 0.35355338, %v828_v6 }
 0x295   : > { %v832_v8 = vsel %vm3707_vm10, %v831_v7, -1e+30 }
 0x296   : > { %v833_v9 = vsel %vm750_vm11, %v832_v8, -inf }
 0x297   : > { %834 = vmax.xlane.f32.xlu2 %v833_v9 }
 0x2a5   : > { %v955_v10 = vpop.f32.mrf.mxu0 }
 0x2a6   : > { %v958_v12 = vmul.f32 0.35355338, %v955_v10 }
 0x2a8   : > { %v959_v13 = vsel %vm3707_vm10, %v958_v12, -1e+30 }
 0x2a9   : > { %v960_v14 = vsel %vm750_vm11, %v959_v13, -inf }
 0x2aa   : > { %961 = vmax.xlane.f32.xlu0 %v960_v14 }
 0x2ab   : > { %v753_v15 = vpop.xlane.xlu1 %752 }
 0x2ac   : > { %v754_v16 = vsub.f32 %v749_v4, %v753_v15 }
 0x2ae   : > { %v755_v17 = vmul.f32 1.442695, %v754_v16 }
 0x2b0   : > { %3365 = vpow2.f32 %v755_v17 }
 0x2b6   : > { %v3366_v18 = vpop.eup %3365 }
 0x2b7   : > { %v757_v19 = vsel %vm750_vm11, %v3366_v18, 0.0 }
 0x2b8   : > { %758 = vadd.xlane.f32.xlu1 %v757_v19 }
 0x2d1   : > { %1037 = vrot.lane.b32.xlu1 %v698_v50, %s4398_s4 }
 0x30a   : > { %v835_v21 = vpop.xlane.xlu2 %834 }
 0x30b   : > { %v836_v22 = vsub.f32 %v832_v8, %v835_v21 }
 0x30d   : > { %v837_v23 = vmul.f32 1.442695, %v836_v22 }
 0x30f   : > { %3367 = vpow2.f32 %v837_v23 }
 0x315   : > { %v3722_v24 = vpop.eup %3367 }
 0x316   : > { %v839_v25 = vsel %vm750_vm11, %v3722_v24, 0.0 }
 0x317   : > { %840 = vadd.xlane.f32.xlu2 %v839_v25 }
 0x31d   : > { %v962_v26 = vpop.xlane.xlu0 %961 }
 0x31e   : > { %v963_v27 = vsub.f32 %v959_v13, %v962_v26 }
 0x320   : > { %v964_v29 = vmul.f32 1.442695, %v963_v27  ;;  %v3164_v27 = vld [vmem:[%s4380_s5 + $0x70] sm:$0xff] }
 0x322   : > { %3369 = vpow2.f32 %v964_v29  ;;  %v3165_v29 = vld [vmem:[%s4380_s5 + $0x78] sm:$0xff] }
 0x328   : > { %v3729_v30 = vpop.eup %3369 }
 0x329   : > { %v966_v31 = vsel %vm750_vm11, %v3729_v30, 0.0 }
 0x32a   : > { %967 = vadd.xlane.f32.xlu0 %v966_v31 }
 0x32b   : > { %v759_v32 = vpop.xlane.xlu1 %758 }
 0x32c   : > { %3371 = vrcp.f32 %v759_v32  ;;  %v771_v36 = vand.u32 2147483648, %v759_v32  ;;  %v769_v40 = vand.u32 2147483647, %v759_v32  ;;  %vm765_vm13 = vweird.f32 %v759_v32 }
 0x32e   : > { %v772_v42 = vor.u32 1.1754944e-38, %v771_v36  ;;  %vm770_vm15 = vcmp.eq.f32.partialorder %v769_v40, 8.507059e+37 }
 0x332   : > { %v3372_v33 = vpop.eup %3371 }
 0x333   : > { %v761_v34 = vmul.f32 %v3372_v33, %v759_v32  ;;  %vm766_vm12 = vweird.f32 %v3372_v33 }
 0x334   : > { %vm767_vm14 = vmor %vm765_vm13, %vm766_vm12 }
 0x335   : > { %v762_v35 = vsub.f32 1.0, %v761_v34 }
 0x337   : > { %v763_v38 = vmul.f32 %v3372_v33, %v762_v35 }
 0x339   : > { %v764_v41 = vadd.f32 %v3372_v33, %v763_v38 }
 0x33b   : > { %v768_v43 = vsel %vm767_vm14, %v3372_v33, %v764_v41 }
 0x33c   : > { %v773_v44 = vsel %vm770_vm15, %v772_v42, %v768_v43 }
 0x33d   : > { %v774_v45 = vmul.f32 %v3366_v18, %v773_v44 }
 0x33e   : > { %984 = vrot.lane.b32.xlu0 %v3691_v55, %s3486_s3 }
 0x33f   : > { %3172 = vmatmul.msk.f32.vlgmr.msra.gmra.mxu3 %vm775_vm1, %v774_v45 }
 0x343   : > { %v1038_v47 = vpop.permute.xlu1 %1037 }
 0x344   : > { %3184 = vmatpush.xpose.msk.msra.mxu3 %vm721_vm6, %v1038_v47 }
 0x38a   : > { %v841_v54 = vpop.xlane.xlu2 %840 }
 0x38b   : > { %3373 = vrcp.f32 %v841_v54  ;;  %v853_v9 = vand.u32 2147483648, %v841_v54  ;;  %vm847_vm3 = vweird.f32 %v841_v54  ;;  %v851_v10 = vand.u32 2147483647, %v841_v54 }
 0x38d   : > { %v854_v14 = vor.u32 1.1754944e-38, %v853_v9  ;;  %vm852_vm8 = vcmp.eq.f32.partialorder %v851_v10, 8.507059e+37  ;;  %v1169_v9 = vld [vmem:[%s4382_s7] sm:$0xff] }
 0x391   : > { %v3374_v57 = vpop.eup %3373 }
 0x392   : > { %v843_v60 = vmul.f32 %v3374_v57, %v841_v54  ;;  %vm848_vm2 = vweird.f32 %v3374_v57 }
 0x393   : > { %vm849_vm4 = vmor %vm847_vm3, %vm848_vm2 }
 0x394   : > { %v844_v63 = vsub.f32 1.0, %v843_v60  ;;  %v3795_v60 = vld [vmem:[%s3789_s25] sm:$0xff] }
 0x396   : > { %v845_v2 = vmul.f32 %v3374_v57, %v844_v63 }
 0x398   : > { %v846_v7 = vadd.f32 %v3374_v57, %v845_v2 }
 0x39a   : > { %v850_v12 = vsel %vm849_vm4, %v3374_v57, %v846_v7  ;;  %v1171_v7 = vld [vmem:[%s4382_s7 + $0x10] sm:$0xff] }
 0x39b   : > { %v855_v15 = vsel %vm852_vm8, %v854_v14, %v850_v12 }
 0x39d   : > { %v968_v56 = vpop.xlane.xlu0 %967 }
 0x39e   : > { %3375 = vrcp.f32 %v968_v56  ;;  %v980_v17 = vand.u32 2147483648, %v968_v56  ;;  %vm974_vm12 = vweird.f32 %v968_v56  ;;  %v978_v18 = vand.u32 2147483647, %v968_v56 }
 0x3a0   : > { %v981_v23 = vor.u32 1.1754944e-38, %v980_v17  ;;  %vm979_vm14 = vcmp.eq.f32.partialorder %v978_v18, 8.507059e+37 }
 0x3a4   : > { %v3376_v0 = vpop.eup %3375 }
 0x3a5   : > { %v970_v4 = vmul.f32 %v3376_v0, %v968_v56  ;;  %vm975_vm9 = vweird.f32 %v3376_v0 }
 0x3a6   : > { %vm976_vm13 = vmor %vm974_vm12, %vm975_vm9 }
 0x3a7   : > { %v971_v8 = vsub.f32 1.0, %v970_v4 }
 0x3a9   : > { %v972_v13 = vmul.f32 %v3376_v0, %v971_v8  ;;  %v1170_v8 = vld [vmem:[%s4382_s7 + $0x8] sm:$0xff] }
 0x3ab   : > { %v973_v16 = vadd.f32 %v3376_v0, %v972_v13 }
 0x3ad   : > { %v977_v21 = vsel %vm976_vm13, %v3376_v0, %v973_v16 }
 0x3ae   : > { %v982_v25 = vsel %vm979_vm14, %v981_v23, %v977_v21  ;;  %vm1297_vm14 = vcmask 96256  }
 0x3af   : > { %v983_v26 = vmul.f32 %v3729_v30, %v982_v25 }
 0x3b0   : > { %v985_v22 = vpop.permute.xlu0 %984 }
 0x3c2   : > { %v800_v48 = vpop.f32.mrf.mxu3 }
 0x3c3   : > { %3178 = vmatmul.msk.f32.vlgmr.msrb.gmra.mxu3 %vm721_vm6, %v800_v48 }
 0x3cb   : > { %3185 = vmatmul.msk.f32.vlgmr.msra.gmra.mxu3 %vm721_vm6, %v1036_v20  ;;  %v856_v20 = vmul.f32 %v3722_v24, %v855_v15  ;;  %v3163_v24 = vld [vmem:[%s4380_s5 + $0x68] sm:$0xff] }
 0x3cc   : > { %902 = vmatpush.msrb.mxu2 %v3163_v24 }
 0x3ce   : > { %1029 = vmatpush.msra.mxu2 %v3164_v27  ;;  %v3823_v27 = vld [vmem:[%s4383_s8] sm:$0xf] }
 0x446   : > { %v3739_v49 = vpop.f32.mrf.mxu3 }
 0x44e   : > { %v1060_v50 = vpop.f32.mrf.mxu3 }
 0x44f   : > { %v1063_v51 = vmul.f32 0.35355338, %v1060_v50 }
 0x451   : > { %v1064_v52 = vsel %vm3707_vm10, %v1063_v51, -1e+30 }
 0x452   : > { %v1065_v53 = vsel %vm750_vm11, %v1064_v52, -inf }
 0x453   : > { %1066 = vmax.xlane.f32.xlu1 %v1065_v53 }
 0x46c   : > { %857 = vrot.lane.b32.xlu1 %v3691_v55, %s3487_s23 }
 0x4c6   : > { %v1067_v58 = vpop.xlane.xlu1 %1066 }
 0x4c7   : > { %v1068_v59 = vsub.f32 %v1064_v52, %v1067_v58  ;;  %v1140_v52 = vperm.slane %v3682_v46, 3  ;;  %v3190_v46 = vld [vmem:[%s4382_s7 + $0x28] sm:$0xff] }
 0x4c9   : > { %v1069_v61 = vmul.f32 1.442695, %v1068_v59  ;;  %v3192_v59 = vld [vmem:[%s4382_s7 + $0x38] sm:$0xff] }
 0x4ca   : > { %1231 = vmatpush.msrb.mxu3 %v3192_v59 }
 0x4cb   : > { %3377 = vpow2.f32 %v1069_v61 }
 0x4d1   : > { %v3378_v5 = vpop.eup %3377 }
 0x4d2   : > { %v1071_v6 = vsel %vm750_vm11, %v3378_v5, 0.0 }
 0x4d3   : > { %1072 = vadd.xlane.f32.xlu2 %v1071_v6  ;;  %v1172_v6 = vld [vmem:[%s4382_s7 + $0x18] sm:$0xff] }
 0x4de   : > { %v858_v19 = vpop.permute.xlu1 %857 }
 0x4df   : > { %3175 = vmatpush.msk.msra.mxu1 %vm779_vm7, %v858_v19 }
 0x4e0   : > { %3176 = vmatmul.msk.f32.vlgmr.msra.gmra.mxu1 %vm775_vm1, %v856_v20  ;;  %v1165_v20 = vperm.slane %v3667_v37, 1 }
 0x4e1   : > { %3181 = vmatpush.msk.msrb.mxu1 %vm779_vm7, %v985_v22  ;;  %v1167_v22 = vperm.slane %v3672_v39, 1  ;;  %v1188_v39 = vperm.slane %v3823_v27, 0 }
 0x4e3   : > { %1134 = vmatpush.msra.mxu1 %v3165_v29 }
 0x4e8   : > { %3182 = vmatmul.msk.f32.vlgmr.msrb.gmra.mxu1 %vm775_vm1, %v983_v26 }
 0x4eb   : > { %1089 = vrot.lane.b32.xlu2 %v3691_v55, %s4398_s4  ;;  %s579_s4 = sld [smem:[#allocation3 + %s3601_s1]] }
 0x546   : > { %v1073_v28 = vpop.xlane.xlu2 %1072 }
 0x547   : > { %3379 = vrcp.f32 %v1073_v28  ;;  %v1085_v33 = vand.u32 2147483648, %v1073_v28  ;;  %v1083_v35 = vand.u32 2147483647, %v1073_v28  ;;  %vm1079_vm2 = vweird.f32 %v1073_v28 }
 0x549   : > { %v1086_v38 = vor.u32 1.1754944e-38, %v1085_v33  ;;  %vm1084_vm4 = vcmp.eq.f32.partialorder %v1083_v35, 8.507059e+37  ;;  %v3195_v33 = vld [vmem:[%s4382_s7 + $0x50] sm:$0xff]  ;;  %v3193_v35 = vld [vmem:[%s4382_s7 + $0x40] sm:$0xff] }
 0x54d   : > { %v3380_v30 = vpop.eup %3379 }
 0x54e   : > { %v1075_v31 = vmul.f32 %v3380_v30, %v1073_v28  ;;  %v1090_v55 = vpop.permute.xlu2 %1089  ;;  %vm1080_vm15 = vweird.f32 %v3380_v30  ;;  %v1212_v28 = vperm.slane %v3823_v27, 1 }
 0x54f   : > { %3186 = vmatpush.msk.msrb.mxu0 %vm779_vm7, %v1090_v55  ;;  %vm1081_vm3 = vmor %vm1079_vm2, %vm1080_vm15  ;;  %vm1326_vm15 = vcmask 1043456  }
 0x550   : > { %v1076_v32 = vsub.f32 1.0, %v1075_v31 }
 0x552   : > { %v1077_v34 = vmul.f32 %v3380_v30, %v1076_v32  ;;  %v3196_v32 = vld [vmem:[%s4382_s7 + $0x58] sm:$0xff] }
 0x553   : > { %1255 = vmatpush.msra.mxu0 %v3196_v32 }
 0x554   : > { %v1078_v36 = vadd.f32 %v3380_v30, %v1077_v34  ;;  %v3194_v34 = vld [vmem:[%s4382_s7 + $0x48] sm:$0xff] }
 0x555   : > { %1256 = vmatpush.msra.mxu0 %v3195_v33 }
 0x556   : > { %v1082_v40 = vsel %vm1081_vm3, %v3380_v30, %v1078_v36  ;;  %v3197_v36 = vld [vmem:[%s4382_s7 + $0x60] sm:$0xff] }
 0x557   : > { %v1087_v41 = vsel %vm1084_vm4, %v1086_v38, %v1082_v40  ;;  %1257 = vmatpush.msra.mxu0 %v3194_v34 }
 0x558   : > { %v1088_v42 = vmul.f32 %v3378_v5, %v1087_v41  ;;  %v586_v5 = vld [vmem:[%s3789_s25 + $0x8] sm:$0xf] }
 0x559   : > { %1258 = vmatpush.msra.mxu0 %v3193_v35 }
 0x55a   : > { %3187 = vmatmul.msk.f32.vlgmr.msrb.gmra.mxu0 %vm775_vm1, %v1088_v42  ;;  %v595_v42 = vstv %s579_s4 }
 0x55b   : > { %1480 = vmatpush.msrb.mxu0 %v3197_v36  ;;  %vm3855_vm13 = vcmp.lt.s32.totalorder %v3703_v62, %v595_v42 }
 0x55d   : > { %v881_v43 = vpop.f32.mrf.mxu1 }
 0x55e   : > { %3177 = vmatmul.msk.f32.vlgmr.msrb.gmra.mxu2 %vm721_vm6, %v881_v43 }
 0x55f   : > { %1204 = vmatpush.msrb.mxu2 %v1172_v6 }
 0x561   : > { %1205 = vmatpush.msrb.mxu2 %v1171_v7 }
 0x562   : > { %3204 = vmatmul.msk.f32.vlgmr.msra.gmra.mxu0 %vm655_vm5, %v3795_v60 }
 0x563   : > { %1206 = vmatpush.msrb.mxu2 %v1170_v8 }
 0x565   : > { %v1008_v44 = vpop.f32.mrf.mxu1  ;;  %1207 = vmatpush.msrb.mxu2 %v1169_v9 }
 0x566   : > { %3183 = vmatmul.msk.f32.vlgmr.msra.gmra.mxu2 %vm721_vm6, %v1008_v44 }
 0x56a   : > { %3205 = vmatmul.msk.f32.gmra.mxu0 %vm655_vm5, %v586_v5 }
 0x5d7   : > { %v1113_v45 = vpop.f32.mrf.mxu0 }
 0x5d8   : > { %3188 = vmatmul.msk.f32.vlgmr.msra.gmra.mxu1 %vm721_vm6, %v1113_v45 }
 0x5e1   : > { %v904_v47 = vpop.f32.mrf.mxu2 }
 0x5e2   : > { %v928_v50 = vadd.f32 %v3739_v49, %v904_v47  ;;  %v3191_v49 = vld [vmem:[%s4382_s7 + $0x30] sm:$0xff] }
 0x5e3   : > { %1232 = vmatpush.msrb.mxu3 %v3191_v49 }
 0x5e5   : > { %1233 = vmatpush.msrb.mxu3 %v3190_v46 }
 0x5e9   : > { %v1031_v48 = vpop.f32.mrf.mxu2 }
 0x5ea   : > { %v1034_v51 = vadd.f32 %v1031_v48, %v928_v50 }
 0x655   : > { %v1136_v53 = vpop.f32.mrf.mxu1 }
 0x656   : > { %v1139_v54 = vadd.f32 %v1136_v53, %v1034_v51 }
 0x658   : > { %v1141_v56 = vadd.f32 %v1140_v52, %v1139_v54 }
 0x65a   : > { %v3772_v57 = vadd.f32 %v1141_v56, %v3618_v3  ;;  %v3189_v3 = vld [vmem:[%s4382_s7 + $0x20] sm:$0xff]  ;;  %v1260_v56 = vpop.f32.mrf.mxu0 }
 0x65b   : > { %1234 = vmatpush.msrb.mxu3 %v3189_v3 }
 0x65c   : > { %v1143_v58 = vsel %vm601_vm0, %v3772_v57, 0.0  ;;  %3202 = vmatmul.msk.f32.vlgmr.msrb.gmra.mxu3 %vm655_vm5, %v3795_v60 }
 0x65d   : > { %1144 = vadd.xlane.f32.xlu0 %v1143_v58  ;;  %v1242_v58 = vperm.slane %v3823_v27, 2 }
 0x65f   : > { %v3872_v49 = vadd.f32 %v1260_v56, %v1242_v58 }
 0x662   : > { %v1263_v59 = vpop.f32.mrf.mxu0 }
 0x663   : > { %v3874_v46 = vadd.f32 %v1263_v59, %v1242_v58 }
 0x664   : > { %3203 = vmatmul.msk.f32.gmra.mxu3 %vm655_vm5, %v586_v5 }
 0x665   : > { %3209 = vmatpush.msk.msra.mxu2 %vm1326_vm15, %v3874_v46 }
 0x667   : > { %1345 = vmatpush.msra.mxu2 %v3872_v49 }
 0x6d0   : > { %v1145_v61 = vpop.xlane.xlu0 %1144 }
 0x6d1   : > { %v1146_v63 = vmul.f32 %v1145_v61, %v3622_v11 }
 0x6d3   : > { %v1147_v0 = vsub.f32 %v3772_v57, %v1146_v63 }
 0x6d5   : > { %v1148_v2 = vmul.f32 %v1147_v0, %v1147_v0 }
 0x6d7   : > { %v1149_v4 = vsel %vm601_vm0, %v1148_v2, 0.0 }
 0x6d8   : > { %1150 = vadd.xlane.f32.xlu1 %v1149_v4 }
 0x6df   : > { %v1236_v24 = vpop.f32.mrf.mxu3 }
 0x6e0   : > { %v1237_v37 = vadd.f32 %v1236_v24, %v1212_v28 }
 0x6e7   : > { %v1239_v29 = vpop.f32.mrf.mxu3 }
 0x6e8   : > { %v1240_v30 = vadd.f32 %v1239_v29, %v1212_v28 }
 0x6ea   : > { %3206 = vmatpush.xpose.msk.msrb.mxu1 %vm721_vm6, %v1240_v30 }
 0x6ee   : > { %3207 = vmatpush.xpose.msk.msrb.mxu1 %vm721_vm6, %v1237_v37 }
 0x6f1   : > { %1354 = vrot.lane.b32.xlu1 %v1240_v30, %s3487_s23 }
 0x6f9   : > { %1489 = vrot.lane.b32.xlu1 %v1240_v30, %s3486_s3 }
 0x701   : > { %1601 = vrot.lane.b32.xlu1 %v1240_v30, %s4411_s26 }
 0x74b   : > { %v1151_v10 = vpop.xlane.xlu1 %1150 }
 0x74c   : > { %v1152_v12 = vmul.f32 %v1151_v10, %v3622_v11 }
 0x74e   : > { %v1153_v13 = vadd.f32 1e-12, %v1152_v12 }
 0x750   : > { %3381 = vrsqrt.f32 %v1153_v13  ;;  %vm1160_vm9 = vweird.f32 %v1153_v13 }
 0x756   : > { %v3382_v14 = vpop.eup %3381 }
 0x757   : > { %v1155_v15 = vmul.f32 %v3382_v14, %v1153_v13  ;;  %vm1161_vm8 = vweird.f32 %v3382_v14 }
 0x758   : > { %vm1162_vm12 = vmor %vm1160_vm9, %vm1161_vm8  ;;  %vm1322_vm9 = vcmask 97280  }
 0x759   : > { %v1156_v16 = vmul.f32 %v3382_v14, %v1155_v15 }
 0x75b   : > { %v1157_v17 = vmul.f32 0.5, %v1156_v16 }
 0x75d   : > { %v1158_v18 = vsub.f32 1.5, %v1157_v17 }
 0x75f   : > { %v1159_v19 = vmul.f32 %v3382_v14, %v1158_v18 }
 0x761   : > { %v1163_v21 = vsel %vm1162_vm12, %v3382_v14, %v1159_v19 }
 0x762   : > { %v1164_v23 = vmul.f32 %v1163_v21, %v1147_v0 }
 0x763   : > { %v1355_v38 = vpop.permute.xlu1 %1354 }
 0x764   : > { %v1166_v25 = vmul.f32 %v1165_v20, %v1164_v23  ;;  %3211 = vmatpush.xpose.msk.msra.mxu1 %vm721_vm6, %v1355_v38 }
 0x766   : > { %v1168_v26 = vadd.f32 %v1167_v22, %v1166_v25 }
 0x768   : > { %3201 = vmatmul.msk.f32.vlgmr.msrb.gmra.mxu2 %vm655_vm5, %v1168_v26 }
 0x76b   : > { %v1490_v40 = vpop.permute.xlu1 %1489 }
 0x773   : > { %v1602_v41 = vpop.permute.xlu1 %1601 }
 0x774   : > { %3224 = vmatpush.xpose.msk.msra.mxu0 %vm721_vm6, %v1602_v41 }
 0x7eb   : > { %v1209_v31 = vpop.f32.mrf.mxu2 }
 0x7ec   : > { %v1210_v55 = vadd.f32 %v1209_v31, %v1188_v39 }
 0x7ee   : > { %3208 = vmatmul.msk.f32.vlgmr.msrb.gmra.mxu1 %vm721_vm6, %v1210_v55 }
 0x86b   : > { %v1292_v43 = vpop.f32.mrf.mxu1 }
 0x86c   : > { %v1295_v45 = vmul.f32 0.35355338, %v1292_v43 }
 0x86e   : > { %v1296_v47 = vsel %vm3855_vm13, %v1295_v45, -1e+30 }
 0x86f   : > { %v1298_v48 = vsel %vm1297_vm14, %v1296_v47, -inf }
 0x870   : > { %1299 = vmax.xlane.f32.xlu2 %v1298_v48 }
 0x888   : > { %1352 = vrot.lane.b32.xlu2 %v1237_v37, %s3487_s23 }
 0x890   : > { %1485 = vrot.lane.b32.xlu2 %v1210_v55, %s3486_s3 }
 0x898   : > { %1597 = vrot.lane.b32.xlu2 %v1210_v55, %s4411_s26 }
 0x8e3   : > { %v1300_v50 = vpop.xlane.xlu2 %1299 }
 0x8e4   : > { %v1301_v51 = vsub.f32 %v1296_v47, %v1300_v50 }
 0x8e6   : > { %v1302_v62 = vmul.f32 1.442695, %v1301_v51 }
 0x8e8   : > { %3383 = vpow2.f32 %v1302_v62 }
 0x8eb   : > { %v1353_v52 = vpop.permute.xlu2 %1352 }
 0x8ec   : > { %3212 = vmatpush.xpose.msk.msra.mxu1 %vm721_vm6, %v1353_v52 }
 0x8ee   : > { %v3384_v53 = vpop.eup %3383 }
 0x8ef   : > { %v1304_v54 = vsel %vm1297_vm14, %v3384_v53, 0.0 }
 0x8f0   : > { %3218 = vmatpush.xpose.msk.msrb.mxu1 %vm721_vm6, %v1490_v40  ;;  %1305 = vadd.xlane.f32.xlu0 %v1304_v54 }
 0x8f3   : > { %v1486_v13 = vpop.permute.xlu2 %1485 }
 0x8fb   : > { %v1598_v22 = vpop.permute.xlu2 %1597 }
 0x904   : > { %1350 = vrot.lane.b32.xlu0 %v1210_v55, %s3487_s23 }
 0x90c   : > { %1487 = vrot.lane.b32.xlu0 %v1237_v37, %s3486_s3 }
 0x914   : > { %1599 = vrot.lane.b32.xlu0 %v1237_v37, %s4411_s26 }
 0x963   : > { %v1306_v3 = vpop.xlane.xlu0 %1305 }
 0x964   : > { %3385 = vrcp.f32 %v1306_v3  ;;  %v1318_v0 = vand.u32 2147483648, %v1306_v3  ;;  %v1316_v4 = vand.u32 2147483647, %v1306_v3  ;;  %vm1312_vm3 = vweird.f32 %v1306_v3 }
 0x966   : > { %v1319_v6 = vor.u32 1.1754944e-38, %v1318_v0  ;;  %vm1317_vm8 = vcmp.eq.f32.partialorder %v1316_v4, 8.507059e+37 }
 0x96a   : > { %v3386_v60 = vpop.eup %3385 }
 0x96b   : > { %v1308_v61 = vmul.f32 %v3386_v60, %v1306_v3  ;;  %vm1313_vm2 = vweird.f32 %v3386_v60 }
 0x96c   : > { %vm1314_vm4 = vmor %vm1312_vm3, %vm1313_vm2 }
 0x96d   : > { %v1309_v63 = vsub.f32 1.0, %v1308_v61 }
 0x96f   : > { %v1310_v2 = vmul.f32 %v3386_v60, %v1309_v63 }
 0x971   : > { %v1311_v5 = vadd.f32 %v3386_v60, %v1310_v2 }
 0x973   : > { %v1315_v7 = vsel %vm1314_vm4, %v3386_v60, %v1311_v5 }
 0x974   : > { %v1320_v8 = vsel %vm1317_vm8, %v1319_v6, %v1315_v7 }
 0x975   : > { %v1321_v9 = vmul.f32 %v3384_v53, %v1320_v8 }
 0x976   : > { %v1351_v10 = vpop.permute.xlu0 %1350 }
 0x977   : > { %3210 = vmatmul.msk.f32.vlgmr.msra.gmra.mxu2 %vm1322_vm9, %v1321_v9  ;;  %3213 = vmatmul.msk.f32.vlgmr.msra.gmra.mxu1 %vm721_vm6, %v1351_v10 }
 0x97e   : > { %v1488_v12 = vpop.permute.xlu0 %1487 }
 0x97f   : > { %3219 = vmatpush.xpose.msk.msrb.mxu1 %vm721_vm6, %v1488_v12 }
 0x982   : > { %3220 = vmatmul.msk.f32.vlgmr.msrb.gmra.mxu1 %vm721_vm6, %v1486_v13 }
 0x986   : > { %v1600_v14 = vpop.permute.xlu0 %1599 }
 0x987   : > { %3225 = vmatpush.xpose.msk.msra.mxu0 %vm721_vm6, %v1600_v14 }
 0x9f4   : > { %v1379_v15 = vpop.f32.mrf.mxu1 }
 0x9f5   : > { %v1382_v16 = vmul.f32 0.35355338, %v1379_v15 }
 0x9f7   : > { %v1383_v17 = vsel %vm3855_vm13, %v1382_v16, -1e+30  ;;  %v3198_v16 = vld [vmem:[%s4382_s7 + $0x68] sm:$0xff] }
 0x9f8   : > { %v1384_v18 = vsel %vm1297_vm14, %v1383_v17, -inf  ;;  %1457 = vmatpush.msra.mxu3 %v3198_v16  ;;  %v1744_v16 = vld [vmem:[%s4388_s13 + $0x8] sm:$0xff] }
 0x9f9   : > { %1385 = vmax.xlane.f32.xlu1 %v1384_v18 }
 0x9fa   : > { %v1347_v19 = vpop.f32.mrf.mxu2 }
 0x9fb   : > { %3217 = vmatmul.msk.f32.vlgmr.msrb.gmra.mxu0 %vm721_vm6, %v1347_v19 }
 0x9ff   : > { %v1514_v20 = vpop.f32.mrf.mxu1 }
 0xa00   : > { %v1517_v21 = vmul.f32 0.35355338, %v1514_v20 }
 0xa02   : > { %v1518_v23 = vsel %vm3855_vm13, %v1517_v21, -1e+30 }
 0xa03   : > { %3226 = vmatmul.msk.f32.vlgmr.msra.gmra.mxu0 %vm721_vm6, %v1598_v22  ;;  %v1519_v25 = vsel %vm1297_vm14, %v1518_v23, -inf }
 0xa04   : > { %1520 = vmax.xlane.f32.xlu0 %v1519_v25 }
 0xa12   : > { %1411 = vrot.lane.b32.xlu1 %v3874_v46, %s3487_s23 }
 0xa18   : > { %1409 = vrot.lane.b32.xlu0 %v3872_v49, %s3487_s23 }
 0xa6c   : > { %v1386_v26 = vpop.xlane.xlu1 %1385 }
 0xa6d   : > { %v1387_v24 = vsub.f32 %v1383_v17, %v1386_v26  ;;  %v3199_v17 = vld [vmem:[%s4382_s7 + $0x70] sm:$0xff] }
 0xa6e   : > { %1591 = vmatpush.msrb.mxu3 %v3199_v17  ;;  %v1743_v17 = vld [vmem:[%s4388_s13] sm:$0xff] }
 0xa6f   : > { %v1388_v28 = vmul.f32 1.442695, %v1387_v24 }
 0xa71   : > { %3387 = vpow2.f32 %v1388_v28 }
 0xa77   : > { %v3388_v29 = vpop.eup %3387  ;;  %v1521_v30 = vpop.xlane.xlu0 %1520 }
 0xa78   : > { %v1522_v37 = vsub.f32 %v1518_v23, %v1521_v30  ;;  %v3896_v39 = vpop.f32.mrf.mxu0  ;;  %v1390_v31 = vsel %vm1297_vm14, %v3388_v29, 0.0 }
 0xa79   : > { %1391 = vadd.xlane.f32.xlu1 %v1390_v31 }
 0xa7a   : > { %v1523_v55 = vmul.f32 1.442695, %v1522_v37 }
 0xa7c   : > { %3389 = vpow2.f32 %v1523_v55  ;;  %v3200_v55 = vld [vmem:[%s4382_s7 + $0x78] sm:$0xff] }
 0xa80   : > { %v1626_v32 = vpop.f32.mrf.mxu0 }
 0xa81   : > { %v1629_v33 = vmul.f32 0.35355338, %v1626_v32 }
 0xa82   : > { %v3390_v34 = vpop.eup %3389 }
 0xa83   : > { %v1525_v35 = vsel %vm1297_vm14, %v3390_v34, 0.0  ;;  %v1630_v36 = vsel %vm3855_vm13, %v1629_v33, -1e+30 }
 0xa84   : > { %1526 = vadd.xlane.f32.xlu0 %v1525_v35  ;;  %v1412_v38 = vpop.permute.xlu1 %1411  ;;  %v1631_v40 = vsel %vm1297_vm14, %v1630_v36, -inf }
 0xa85   : > { %1632 = vmax.xlane.f32.xlu2 %v1631_v40  ;;  %3214 = vmatpush.msk.msrb.mxu2 %vm1326_vm15, %v1412_v38  ;;  %v1709_v38 = vperm.slane %v3823_v27, 3  ;;  %v1741_v27 = vld [vmem:[%s4386_s11 + $0x18] sm:$0xff] }
 0xa8a   : > { %v1410_v41 = vpop.permute.xlu0 %1409 }
 0xa8b   : > { %1434 = vmatpush.msrb.mxu2 %v1410_v41 }
 0xa92   : > { %1657 = vrot.lane.b32.xlu1 %v3874_v46, %s4411_s26 }
 0xa98   : > { %1543 = vrot.lane.b32.xlu0 %v3872_v49, %s3486_s3 }
 0xa9d   : > { %1545 = vrot.lane.b32.xlu2 %v3874_v46, %s3486_s3 }
 0xaec   : > { %v1392_v42 = vpop.xlane.xlu1 %1391 }
 0xaed   : > { %3391 = vrcp.f32 %v1392_v42  ;;  %v1404_v48 = vand.u32 2147483648, %v1392_v42  ;;  %v1402_v62 = vand.u32 2147483647, %v1392_v42  ;;  %vm1398_vm2 = vweird.f32 %v1392_v42 }
 0xaef   : > { %v1405_v56 = vor.u32 1.1754944e-38, %v1404_v48  ;;  %vm1403_vm4 = vcmp.eq.f32.partialorder %v1402_v62, 8.507059e+37  ;;  %v1739_v62 = vld [vmem:[%s4386_s11 + $0x8] sm:$0xff] }
 0xaf3   : > { %v3392_v43 = vpop.eup %3391 }
 0xaf4   : > { %v1394_v45 = vmul.f32 %v3392_v43, %v1392_v42  ;;  %vm1399_vm12 = vweird.f32 %v3392_v43 }
 0xaf5   : > { %vm1400_vm3 = vmor %vm1398_vm2, %vm1399_vm12 }
 0xaf6   : > { %v1395_v47 = vsub.f32 1.0, %v1394_v45 }
 0xaf7   : > { %v1527_v50 = vpop.xlane.xlu0 %1526 }
 0xaf8   : > { %v1396_v51 = vmul.f32 %v3392_v43, %v1395_v47  ;;  %3393 = vrcp.f32 %v1527_v50  ;;  %v1633_v52 = vpop.xlane.xlu2 %1632  ;;  %v1539_v2 = vand.u32 2147483648, %v1527_v50  ;;  %v1537_v6 = vand.u32 2147483647, %v1527_v50 }
 0xaf9   : > { %v1634_v53 = vsub.f32 %v1630_v36, %v1633_v52  ;;  %vm1533_vm12 = vweird.f32 %v1527_v50  ;;  %v1738_v52 = vld [vmem:[%s4386_s11] sm:$0xff] }
 0xafa   : > { %v1397_v54 = vadd.f32 %v3392_v43, %v1396_v51  ;;  %v1540_v10 = vor.u32 1.1754944e-38, %v1539_v2 }
 0xafb   : > { %v1635_v58 = vmul.f32 1.442695, %v1634_v53  ;;  %v1750_v53 = vld [vmem:[%s4388_s13 + $0x38] sm:$0xff] }
 0xafc   : > { %v1401_v59 = vsel %vm1400_vm3, %v3392_v43, %v1397_v54  ;;  %vm1538_vm3 = vcmp.eq.f32.partialorder %v1537_v6, 8.507059e+37  ;;  %v1749_v54 = vld [vmem:[%s4388_s13 + $0x30] sm:$0xff]  ;;  %1794 = vmatpush.msrb.mxu0 %v1750_v53  ;;  %v3445_v6 = vld [vmem:[%s4384_s9] sm:$0x7]  ;;  %v4044_v53 = vld [vmem:[%s4385_s10 + $0x4] sm:$0x7] }
 0xafd   : > { %v1406_v46 = vsel %vm1403_vm4, %v1405_v56, %v1401_v59  ;;  %3395 = vpow2.f32 %v1635_v58  ;;  %v1748_v56 = vld [vmem:[%s4388_s13 + $0x28] sm:$0xff] }
 0xafe   : > { %v3394_v3 = vpop.eup %3393  ;;  %v1407_v60 = vmul.f32 %v3388_v29, %v1406_v46  ;;  %1795 = vmatpush.msrb.mxu0 %v1749_v54  ;;  %v1747_v46 = vld [vmem:[%s4388_s13 + $0x20] sm:$0xff] }
 0xaff   : > { %v1529_v61 = vmul.f32 %v3394_v3, %v1527_v50  ;;  %vm1534_vm8 = vweird.f32 %v3394_v3 }
 0xb00   : > { %v1546_v63 = vpop.permute.xlu2 %1545  ;;  %3215 = vmatmul.msk.f32.vlgmr.msrb.gmra.mxu2 %vm1322_vm9, %v1407_v60  ;;  %vm1535_vm2 = vmor %vm1533_vm12, %vm1534_vm8  ;;  %1796 = vmatpush.msrb.mxu0 %v1748_v56  ;;  %v1746_v60 = vld [vmem:[%s4388_s13 + $0x18] sm:$0xff] }
 0xb01   : > { %v1530_v0 = vsub.f32 1.0, %v1529_v61  ;;  %3221 = vmatpush.msk.msra.mxu2 %vm1326_vm15, %v1546_v63 }
 0xb02   : > { %1797 = vmatpush.msrb.mxu0 %v1747_v46 }
 0xb03   : > { %v3396_v4 = vpop.eup %3395  ;;  %v1531_v5 = vmul.f32 %v3394_v3, %v1530_v0 }
 0xb04   : > { %v1658_v7 = vpop.permute.xlu1 %1657  ;;  %v1637_v8 = vsel %vm1297_vm14, %v3396_v4, 0.0  ;;  %1798 = vmatpush.msrb.mxu0 %v1746_v60  ;;  %v4054_v60 = vld [vmem:[%s4381_s6 + $0x4] sm:$0xf] }
 0xb05   : > { %v1532_v9 = vadd.f32 %v3394_v3, %v1531_v5  ;;  %1638 = vadd.xlane.f32.xlu2 %v1637_v8  ;;  %3227 = vmatpush.msk.msra.mxu1 %vm1326_vm15, %v1658_v7  ;;  %v1734_v7 = vperm.slane %v3445_v6, 2 }
 0xb07   : > { %v1536_v12 = vsel %vm1535_vm2, %v3394_v3, %v1532_v9  ;;  %v3446_v9 = vld [vmem:[%s4385_s10] sm:$0x7] }
 0xb08   : > { %v1541_v13 = vsel %vm1538_vm3, %v1540_v10, %v1536_v12  ;;  %v1736_v10 = vperm.slane %v3446_v9, 2 }
 0xb09   : > { %v1542_v14 = vmul.f32 %v3390_v34, %v1541_v13 }
 0xb0a   : > { %v1544_v15 = vpop.permute.xlu0 %1543 }
 0xb0b   : > { %1568 = vmatpush.msra.mxu2 %v1544_v15  ;;  %v1745_v15 = vld [vmem:[%s4388_s13 + $0x10] sm:$0xff] }
 0xb0c   : > { %3222 = vmatmul.msk.f32.vlgmr.msra.gmra.mxu2 %vm1322_vm9, %v1542_v14  ;;  %1799 = vmatpush.msrb.mxu0 %v1745_v15 }
 0xb0d   : > { %1703 = vmatpush.msrb.mxu2 %v3200_v55  ;;  %v3243_v55 = vld [vmem:[%s4380_s5 + $0xb8] sm:$0xff] }
 0xb0e   : > { %1800 = vmatpush.msrb.mxu0 %v1744_v16 }
 0xb0f   : > { %1898 = vmatpush.msra.mxu2 %v3243_v55 }
 0xb10   : > { %1801 = vmatpush.msrb.mxu0 %v1743_v17 }
 0xb1d   : > { %1655 = vrot.lane.b32.xlu2 %v3872_v49, %s4411_s26 }
 0xb78   : > { %v1639_v18 = vpop.xlane.xlu2 %1638 }
 0xb79   : > { %3397 = vrcp.f32 %v1639_v18  ;;  %v1651_v23 = vand.u32 2147483648, %v1639_v18  ;;  %v1649_v26 = vand.u32 2147483647, %v1639_v18  ;;  %vm1645_vm8 = vweird.f32 %v1639_v18 }
 0xb7b   : > { %v1652_v28 = vor.u32 1.1754944e-38, %v1651_v23  ;;  %vm1650_vm2 = vcmp.eq.f32.partialorder %v1649_v26, 8.507059e+37 }
 0xb7f   : > { %v3398_v19 = vpop.eup %3397 }
 0xb80   : > { %v1641_v20 = vmul.f32 %v3398_v19, %v1639_v18  ;;  %v1656_v21 = vpop.permute.xlu2 %1655  ;;  %vm1646_vm4 = vweird.f32 %v3398_v19  ;;  %v3354_v18 = vld [vmem:[%s4387_s12] ss:$0 sm:$0xff] }
 0xb81   : > { %1680 = vmatpush.msra.mxu1 %v1656_v21  ;;  %vm1647_vm12 = vmor %vm1645_vm8, %vm1646_vm4 }
 0xb82   : > { %v1642_v22 = vsub.f32 1.0, %v1641_v20 }
 0xb83   : > { %v1436_v25 = vpop.f32.mrf.mxu2 }
 0xb84   : > { %v1643_v49 = vmul.f32 %v3398_v19, %v1642_v22  ;;  %3216 = vmatmul.msk.f32.vlgmr.msra.gmra.mxu3 %vm721_vm6, %v1436_v25  ;;  %v3355_v22 = vld [vmem:[%s4414_s0] ss:$0 sm:$0xff] }
 0xb85   : > { %1770 = vmatpush.msra.mxu3 %v1741_v27 }
 0xb86   : > { %v1644_v24 = vadd.f32 %v3398_v19, %v1643_v49 }
 0xb88   : > { %v1648_v29 = vsel %vm1647_vm12, %v3398_v19, %v1644_v24  ;;  %vm1782_vm12 = vcmask 523264  }
 0xb89   : > { %v1653_v30 = vsel %vm1650_vm2, %v1652_v28, %v1648_v29 }
 0xb8a   : > { %v1654_v37 = vmul.f32 %v3396_v4, %v1653_v30 }
 0xb8c   : > { %3228 = vmatmul.msk.f32.vlgmr.msra.gmra.mxu1 %vm1322_vm9, %v1654_v37 }
 0xb8f   : > { %v1570_v31 = vpop.f32.mrf.mxu2 }
 0xb90   : > { %3223 = vmatmul.msk.f32.vlgmr.msrb.gmra.mxu3 %vm721_vm6, %v1570_v31  ;;  %v3239_v31 = vld [vmem:[%s4380_s5 + $0x98] sm:$0xff] }
 0xb91   : > { %1877 = vmatpush.msrb.mxu1 %v3239_v31 }
 0xc07   : > { %v1459_v33 = vpop.f32.mrf.mxu3 }
 0xc08   : > { %v1483_v35 = vadd.f32 %v3896_v39, %v1459_v33  ;;  %v3238_v33 = vld [vmem:[%s4380_s5 + $0x90] sm:$0xff] }
 0xc09   : > { %v1682_v32 = vpop.f32.mrf.mxu1  ;;  %1878 = vmatpush.msrb.mxu1 %v3238_v33 }
 0xc0a   : > { %3229 = vmatmul.msk.f32.vlgmr.msrb.gmra.mxu2 %vm721_vm6, %v1682_v32  ;;  %v3247_v32 = vld [vmem:[%s4380_s5 + $0xd8] sm:$0xff] }
 0xc13   : > { %v1593_v34 = vpop.f32.mrf.mxu3 }
 0xc14   : > { %v1596_v36 = vadd.f32 %v1593_v34, %v1483_v35  ;;  %v3242_v34 = vld [vmem:[%s4380_s5 + $0xb0] sm:$0xff] }
 0xc15   : > { %v3246_v35 = vld [vmem:[%s4380_s5 + $0xd0] sm:$0xff]  ;;  %1899 = vmatpush.msra.mxu2 %v3242_v34 }
 0xc8d   : > { %v1705_v40 = vpop.f32.mrf.mxu2 }
 0xc8e   : > { %v1708_v41 = vadd.f32 %v1705_v40, %v1596_v36  ;;  %v3237_v36 = vld [vmem:[%s4380_s5 + $0x88] sm:$0xff] }
 0xc8f   : > { %v3245_v40 = vld [vmem:[%s4380_s5 + $0xc8] sm:$0xff]  ;;  %1879 = vmatpush.msrb.mxu1 %v3237_v36 }
 0xc90   : > { %v1710_v42 = vadd.f32 %v1709_v38, %v1708_v41  ;;  %v3241_v38 = vld [vmem:[%s4380_s5 + $0xa8] sm:$0xff]  ;;  %v3236_v41 = vld [vmem:[%s4380_s5 + $0x80] sm:$0xff] }
 0xc91   : > { %1900 = vmatpush.msra.mxu2 %v3241_v38  ;;  %1880 = vmatpush.msrb.mxu1 %v3236_v41 }
 0xc92   : > { %v3933_v43 = vadd.f32 %v1710_v42, %v3772_v57  ;;  %v1740_v57 = vld [vmem:[%s4386_s11 + $0x10] sm:$0xff]  ;;  %v3240_v42 = vld [vmem:[%s4380_s5 + $0xa0] sm:$0xff] }
 0xc93   : > { %1771 = vmatpush.msra.mxu3 %v1740_v57  ;;  %1901 = vmatpush.msra.mxu2 %v3240_v42  ;;  %v4039_v57 = vld [vmem:[%s4384_s9 + $0x4] sm:$0x7] }
 0xc94   : > { %v1712_v45 = vsel %vm601_vm0, %v3933_v43, 0.0  ;;  %v1837_v54 = vperm.slane %v4039_v57, 0 }
 0xc95   : > { %1713 = vadd.xlane.f32.xlu0 %v1712_v45  ;;  %1772 = vmatpush.msra.mxu3 %v1739_v62 }
 0xc97   : > { %1773 = vmatpush.msra.mxu3 %v1738_v52 }
 0xc99   : > { %1919 = vmatpush.msrb.mxu3 %v3247_v32 }
 0xc9b   : > { %1920 = vmatpush.msrb.mxu3 %v3246_v35 }
 0xc9d   : > { %1921 = vmatpush.msrb.mxu3 %v3245_v40 }
 0xd08   : > { %v1714_v47 = vpop.xlane.xlu0 %1713 }
 0xd09   : > { %v1715_v48 = vmul.f32 %v1714_v47, %v3622_v11 }
 0xd0b   : > { %v1716_v50 = vsub.f32 %v3933_v43, %v1715_v48 }
 0xd0d   : > { %v1717_v51 = vmul.f32 %v1716_v50, %v1716_v50 }
 0xd0f   : > { %v1718_v39 = vsel %vm601_vm0, %v1717_v51, 0.0 }
 0xd10   : > { %1719 = vadd.xlane.f32.xlu1 %v1718_v39 }
 0xd83   : > { %v1720_v58 = vpop.xlane.xlu1 %1719 }
 0xd84   : > { %v1721_v59 = vmul.f32 %v1720_v58, %v3622_v11 }
 0xd86   : > { %v1722_v3 = vadd.f32 1e-12, %v1721_v59  ;;  %v1839_v59 = vperm.slane %v4044_v53, 0 }
 0xd88   : > { %3399 = vrsqrt.f32 %v1722_v3  ;;  %vm1729_vm4 = vweird.f32 %v1722_v3 }
 0xd8e   : > { %v3400_v61 = vpop.eup %3399 }
 0xd8f   : > { %v1724_v63 = vmul.f32 %v3400_v61, %v1722_v3  ;;  %vm1730_vm3 = vweird.f32 %v3400_v61 }
 0xd90   : > { %vm1731_vm8 = vmor %vm1729_vm4, %vm1730_vm3 }
 0xd91   : > { %v1725_v0 = vmul.f32 %v3400_v61, %v1724_v63  ;;  %v1906_v63 = vperm.slane %v4054_v60, 2 }
 0xd93   : > { %v1726_v2 = vmul.f32 0.5, %v1725_v0  ;;  %v1861_v0 = vperm.slane %v4054_v60, 0 }
 0xd95   : > { %v1727_v4 = vsub.f32 1.5, %v1726_v2 }
 0xd97   : > { %v1728_v5 = vmul.f32 %v3400_v61, %v1727_v4 }
 0xd99   : > { %v1732_v8 = vsel %vm1731_vm8, %v3400_v61, %v1728_v5  ;;  %v1885_v61 = vperm.slane %v4054_v60, 1 }
 0xd9a   : > { %v1733_v12 = vmul.f32 %v1732_v8, %v1716_v50 }
 0xd9c   : > { %v1735_v13 = vmul.f32 %v1734_v7, %v1733_v12 }
 0xd9e   : > { %v1737_v14 = vadd.f32 %v1736_v10, %v1735_v13 }
 0xda0   : > { %3230 = vmatmul.msk.f32.vlgmr.msra.gmra.mxu3 %vm655_vm5, %v1737_v14 }
 0xe23   : > { %v1775_v19 = vpop.f32.mrf.mxu3 }
 0xe24   : > { %v1776_v20 = vadd.f32 %v3354_v18, %v1775_v19 }
 0xe26   : > { %v1778_v21 = vmax.f32 %v1776_v20, 0.0 }
 0xe28   : > { %3231 = vmatmul.msk.f32.vlgmr.msrb.gmra.mxu0 %vm1782_vm12, %v1778_v21 }
 0xea5   : > { %v1803_v23 = vpop.f32.mrf.mxu0 }
 0xea6   : > { %v1804_v25 = vadd.f32 %v3355_v22, %v1803_v23  ;;  %v3248_v23 = vld [vmem:[%s4380_s5 + $0xe0] sm:$0xff] }
 0xea8   : > { %v3992_v49 = vadd.f32 %v1804_v25, %v3933_v43  ;;  %v3244_v43 = vld [vmem:[%s4380_s5 + $0xc0] sm:$0xff] }
 0xea9   : > { %1922 = vmatpush.msrb.mxu3 %v3244_v43 }
 0xeaa   : > { %v1815_v26 = vsel %vm601_vm0, %v3992_v49, 0.0 }
 0xeab   : > { %1816 = vadd.xlane.f32.xlu2 %v1815_v26 }
 0xf1e   : > { %v1817_v24 = vpop.xlane.xlu2 %1816 }
 0xf1f   : > { %v1818_v28 = vmul.f32 %v1817_v24, %v3622_v11 }
 0xf21   : > { %v1819_v29 = vsub.f32 %v3992_v49, %v1818_v28 }
 0xf23   : > { %v1820_v30 = vmul.f32 %v1819_v29, %v1819_v29 }
 0xf25   : > { %v1821_v37 = vsel %vm601_vm0, %v1820_v30, 0.0 }
 0xf26   : > { %1822 = vadd.xlane.f32.xlu0 %v1821_v37 }
 0xf99   : > { %v1823_v45 = vpop.xlane.xlu0 %1822 }
 0xf9a   : > { %v1824_v47 = vmul.f32 %v1823_v45, %v3622_v11 }
 0xf9c   : > { %v1825_v48 = vadd.f32 1e-12, %v1824_v47 }
 0xf9e   : > { %3401 = vrsqrt.f32 %v1825_v48  ;;  %vm1832_vm3 = vweird.f32 %v1825_v48 }
 0xfa4   : > { %v3402_v50 = vpop.eup %3401 }
 0xfa5   : > { %v1827_v51 = vmul.f32 %v3402_v50, %v1825_v48  ;;  %vm1833_vm2 = vweird.f32 %v3402_v50 }
 0xfa6   : > { %vm1834_vm4 = vmor %vm1832_vm3, %vm1833_vm2 }
 0xfa7   : > { %v1828_v39 = vmul.f32 %v3402_v50, %v1827_v51 }
 0xfa9   : > { %v1829_v27 = vmul.f32 0.5, %v1828_v39 }
 0xfab   : > { %v1830_v62 = vsub.f32 1.5, %v1829_v27 }
 0xfad   : > { %v1831_v52 = vmul.f32 %v3402_v50, %v1830_v62 }
 0xfaf   : > { %v1835_v56 = vsel %vm1834_vm4, %v3402_v50, %v1831_v52 }
 0xfb0   : > { %v1836_v58 = vmul.f32 %v1835_v56, %v1819_v29 }
 0xfb2   : > { %v1838_v46 = vmul.f32 %v1837_v54, %v1836_v58 }
 0xfb4   : > { %v1840_v3 = vadd.f32 %v1839_v59, %v1838_v46 }
 0xfb6   : > { %3252 = vmatmul.msk.f32.vlgmr.msrb.gmra.mxu1 %vm655_vm5, %v1840_v3  ;;  %3253 = vmatmul.msk.f32.vlgmr.msra.gmra.mxu2 %vm655_vm5, %v1840_v3 }
 0xfb7   : > { %3254 = vmatmul.msk.f32.vlgmr.msrb.gmra.mxu3 %vm655_vm5, %v1840_v3 }
0x1033   : > { %v1882_v4 = vpop.f32.mrf.mxu1 }
0x1034   : > { %v1883_v8 = vadd.f32 %v1882_v4, %v1861_v0 }
0x1039   : > { %v1903_v2 = vpop.f32.mrf.mxu2 }
0x103a   : > { %v1904_v5 = vadd.f32 %v1903_v2, %v1885_v61  ;;  %v1924_v6 = vpop.f32.mrf.mxu3 }
0x103b   : > { %v4059_v7 = vadd.f32 %v1924_v6, %v1906_v63 }
0x103c   : > { %2007 = vrot.lane.b32.xlu0 %v1904_v5, %s3487_s23  ;;  %3255 = vmatpush.xpose.msk.msra.mxu1 %vm721_vm6, %v1904_v5 }
0x103d   : > { %3257 = vmatpush.msk.msrb.mxu2 %vm779_vm7, %v4059_v7 }
0x103f   : > { %3256 = vmatmul.msk.f32.vlgmr.msra.gmra.mxu1 %vm721_vm6, %v1883_v8  ;;  %2127 = vmatpush.msra.mxu2 %v3248_v23 }
0x1040   : > { %2104 = vmatpush.msrb.mxu1 %v3249_v1  ;;  %v3276_v1 = vld [vmem:[%s4382_s7 + $0x88] sm:$0xff] }
0x1044   : > { %2237 = vrot.lane.b32.xlu0 %v1883_v8, %s4411_s26 }
0x104c   : > { %2134 = vrot.lane.b32.xlu0 %v1904_v5, %s3486_s3 }
0x10ae   : > { %v2008_v9 = vpop.permute.xlu0 %2007 }
0x10af   : > { %3259 = vmatpush.xpose.msk.msra.mxu3 %vm721_vm6, %v2008_v9 }
0x10b6   : > { %v2238_v10 = vpop.permute.xlu0 %2237 }
0x10bc   : > { %v1950_v12 = vpop.f32.mrf.mxu1 }
0x10bd   : > { %v1953_v13 = vmul.f32 0.35355338, %v1950_v12 }
0x10be   : > { %v2135_v14 = vpop.permute.xlu0 %2134 }
0x10bf   : > { %3265 = vmatpush.xpose.msk.msrb.mxu3 %vm721_vm6, %v2135_v14  ;;  %v1954_v15 = vsel %vm3707_vm10, %v1953_v13, -1e+30 }
0x10c0   : > { %v1955_v16 = vsel %vm750_vm11, %v1954_v15, -inf }
0x10c1   : > { %1956 = vmax.xlane.f32.xlu1 %v1955_v16 }
0x10da   : > { %2005 = vrot.lane.b32.xlu1 %v1883_v8, %s3487_s23 }
0x1134   : > { %v1957_v17 = vpop.xlane.xlu1 %1956 }
0x1135   : > { %v1958_v18 = vsub.f32 %v1954_v15, %v1957_v17 }
0x1137   : > { %v1959_v19 = vmul.f32 1.442695, %v1958_v18 }
0x1139   : > { %3403 = vpow2.f32 %v1959_v19 }
0x113f   : > { %v3404_v20 = vpop.eup %3403 }
0x1140   : > { %v1961_v21 = vsel %vm750_vm11, %v3404_v20, 0.0 }
0x1141   : > { %1962 = vadd.xlane.f32.xlu2 %v1961_v21 }
0x114c   : > { %v2006_v22 = vpop.permute.xlu1 %2005 }
0x114d   : > { %3260 = vmatmul.msk.f32.vlgmr.msra.gmra.mxu3 %vm721_vm6, %v2006_v22 }
0x1159   : > { %2239 = vrot.lane.b32.xlu2 %v1904_v5, %s4411_s26 }
0x1161   : > { %2132 = vrot.lane.b32.xlu2 %v1883_v8, %s3486_s3 }
0x11b4   : > { %v1963_v25 = vpop.xlane.xlu2 %1962 }
0x11b5   : > { %3405 = vrcp.f32 %v1963_v25  ;;  %v1975_v30 = vand.u32 2147483648, %v1963_v25  ;;  %v1973_v31 = vand.u32 2147483647, %v1963_v25  ;;  %vm1969_vm2 = vweird.f32 %v1963_v25 }
0x11b7   : > { %v1976_v32 = vor.u32 1.1754944e-38, %v1975_v30  ;;  %vm1974_vm4 = vcmp.eq.f32.partialorder %v1973_v31, 8.507059e+37 }
0x11bb   : > { %v3406_v26 = vpop.eup %3405 }
0x11bc   : > { %v1965_v24 = vmul.f32 %v3406_v26, %v1963_v25  ;;  %v2240_v28 = vpop.permute.xlu2 %2239  ;;  %vm1970_vm8 = vweird.f32 %v3406_v26 }
0x11bd   : > { %vm1971_vm3 = vmor %vm1969_vm2, %vm1970_vm8 }
0x11be   : > { %v1966_v29 = vsub.f32 1.0, %v1965_v24 }
0x11c0   : > { %v1967_v37 = vmul.f32 %v3406_v26, %v1966_v29 }
0x11c2   : > { %v1968_v55 = vadd.f32 %v3406_v26, %v1967_v37 }
0x11c4   : > { %v1972_v33 = vsel %vm1971_vm3, %v3406_v26, %v1968_v55  ;;  %v2133_v34 = vpop.permute.xlu2 %2132 }
0x11c5   : > { %v1977_v35 = vsel %vm1974_vm4, %v1976_v32, %v1972_v33  ;;  %3266 = vmatmul.msk.f32.vlgmr.msrb.gmra.mxu3 %vm721_vm6, %v2133_v34 }
0x11c6   : > { %v1978_v36 = vmul.f32 %v3404_v20, %v1977_v35 }
0x11c8   : > { %3258 = vmatmul.msk.f32.vlgmr.msrb.gmra.mxu2 %vm775_vm1, %v1978_v36 }
0x11c9   : > { %3270 = vmatpush.xpose.msk.msrb.mxu2 %vm721_vm6, %v2240_v28 }
0x11d0   : > { %v2030_v38 = vpop.f32.mrf.mxu3 }
0x11d1   : > { %v2033_v40 = vmul.f32 0.35355338, %v2030_v38  ;;  %v3250_v38 = vld [vmem:[%s4380_s5 + $0xf0] sm:$0xff] }
0x11d2   : > { %2231 = vmatpush.msra.mxu1 %v3250_v38  ;;  %v2369_v38 = vperm.slane %v4044_v53, 1 }
0x11d3   : > { %v2034_v41 = vsel %vm3707_vm10, %v2033_v40, -1e+30  ;;  %v3251_v40 = vld [vmem:[%s4380_s5 + $0xf8] sm:$0xff] }
0x11d4   : > { %v2035_v42 = vsel %vm750_vm11, %v2034_v41, -inf }
0x11d5   : > { %2036 = vmax.xlane.f32.xlu1 %v2035_v42 }
0x1248   : > { %v2157_v43 = vpop.f32.mrf.mxu3  ;;  %v2037_v45 = vpop.xlane.xlu1 %2036 }
0x1249   : > { %v2160_v47 = vmul.f32 0.35355338, %v2157_v43  ;;  %v2038_v48 = vsub.f32 %v2034_v41, %v2037_v45 }
0x124b   : > { %v2039_v50 = vmul.f32 1.442695, %v2038_v48  ;;  %v2002_v51 = vpop.f32.mrf.mxu2  ;;  %v2161_v39 = vsel %vm3707_vm10, %v2160_v47, -1e+30 }
0x124c   : > { %3264 = vmatmul.msk.f32.vlgmr.msra.gmra.mxu2 %vm721_vm6, %v2002_v51  ;;  %v2162_v27 = vsel %vm750_vm11, %v2161_v39, -inf }
0x124d   : > { %3407 = vpow2.f32 %v2039_v50  ;;  %2163 = vmax.xlane.f32.xlu2 %v2162_v27 }
0x1253   : > { %v3408_v62 = vpop.eup %3407 }
0x1254   : > { %3271 = vmatmul.msk.f32.vlgmr.msrb.gmra.mxu2 %vm721_vm6, %v2238_v10  ;;  %v2041_v52 = vsel %vm750_vm11, %v3408_v62, 0.0 }
0x1255   : > { %2042 = vadd.xlane.f32.xlu1 %v2041_v52 }
0x126e   : > { %2059 = vrot.lane.b32.xlu1 %v4059_v7, %s3487_s23 }
0x12c0   : > { %v2164_v58 = vpop.xlane.xlu2 %2163 }
0x12c1   : > { %v2165_v3 = vsub.f32 %v2161_v39, %v2164_v58 }
0x12c3   : > { %v2166_v0 = vmul.f32 1.442695, %v2165_v3 }
0x12c8   : > { %v2043_v54 = vpop.xlane.xlu1 %2042 }
0x12c9   : > { %3409 = vrcp.f32 %v2043_v54  ;;  %v2055_v4 = vand.u32 2147483648, %v2043_v54  ;;  %vm2049_vm2 = vweird.f32 %v2043_v54  ;;  %v2053_v6 = vand.u32 2147483647, %v2043_v54 }
0x12ca   : > { %3411 = vpow2.f32 %v2166_v0 }
0x12cb   : > { %v2056_v12 = vor.u32 1.1754944e-38, %v2055_v4  ;;  %vm2054_vm4 = vcmp.eq.f32.partialorder %v2053_v6, 8.507059e+37 }
0x12cf   : > { %v3410_v56 = vpop.eup %3409  ;;  %v4095_v59 = vpop.f32.mrf.mxu2 }
0x12d0   : > { %v2045_v46 = vmul.f32 %v3410_v56, %v2043_v54  ;;  %vm2050_vm8 = vweird.f32 %v3410_v56  ;;  %v3412_v15 = vpop.eup %3411 }
0x12d1   : > { %vm2051_vm3 = vmor %vm2049_vm2, %vm2050_vm8  ;;  %v2168_v18 = vsel %vm750_vm11, %v3412_v15, 0.0 }
0x12d2   : > { %v2046_v61 = vsub.f32 1.0, %v2045_v46 }
0x12d4   : > { %v2047_v63 = vmul.f32 %v3410_v56, %v2046_v61 }
0x12d6   : > { %v2048_v2 = vadd.f32 %v3410_v56, %v2047_v63  ;;  %v2342_v63 = vperm.slane %v4054_v60, 3  ;;  %v3280_v60 = vld [vmem:[%s4382_s7 + $0xa8] sm:$0xff] }
0x12d7   : > { %v2262_v5 = vpop.f32.mrf.mxu2 }
0x12d8   : > { %v2265_v8 = vmul.f32 0.35355338, %v2262_v5  ;;  %v2052_v9 = vsel %vm2051_vm3, %v3410_v56, %v2048_v2 }
0x12d9   : > { %v2057_v14 = vsel %vm2054_vm4, %v2056_v12, %v2052_v9  ;;  %v4144_v9 = vld [vmem:[%s3789_s25] sm:$0xff] }
0x12da   : > { %v2266_v10 = vsel %vm3707_vm10, %v2265_v8, -1e+30  ;;  %v2058_v17 = vmul.f32 %v3408_v62, %v2057_v14  ;;  %v3282_v8 = vld [vmem:[%s4382_s7 + $0xb8] sm:$0xff] }
0x12db   : > { %v2267_v13 = vsel %vm750_vm11, %v2266_v10, -inf  ;;  %2428 = vmatpush.msra.mxu2 %v3282_v8 }
0x12dc   : > { %2268 = vmax.xlane.f32.xlu0 %v2267_v13 }
0x12e0   : > { %v2060_v16 = vpop.permute.xlu1 %2059 }
0x12e1   : > { %3261 = vmatpush.msk.msra.mxu0 %vm779_vm7, %v2060_v16 }
0x12e2   : > { %3262 = vmatmul.msk.f32.vlgmr.msra.gmra.mxu0 %vm775_vm1, %v2058_v17  ;;  %v3278_v17 = vld [vmem:[%s4382_s7 + $0x98] sm:$0xff] }
0x12e4   : > { %2169 = vadd.xlane.f32.xlu0 %v2168_v18  ;;  %v3277_v18 = vld [vmem:[%s4382_s7 + $0x90] sm:$0xff] }
0x12f8   : > { %2186 = vrot.lane.b32.xlu0 %v4059_v7, %s3486_s3 }
0x134f   : > { %v2269_v19 = vpop.xlane.xlu0 %2268 }
0x1350   : > { %v2270_v20 = vsub.f32 %v2266_v10, %v2269_v19  ;;  %v4149_v10 = vld [vmem:[%s3789_s25 + $0x8] sm:$0xf]  ;;  %v3275_v19 = vld [vmem:[%s4382_s7 + $0x80] sm:$0xff] }
0x1352   : > { %v2271_v21 = vmul.f32 1.442695, %v2270_v20 }
0x1354   : > { %3413 = vpow2.f32 %v2271_v21  ;;  %v4171_v21 = vld [vmem:[%s4383_s8 + $0x4] sm:$0xf] }
0x1355   : > { %v2439_v8 = vperm.slane %v4171_v21, 2 }
0x1357   : > { %v2170_v22 = vpop.xlane.xlu0 %2169 }
0x1358   : > { %3415 = vrcp.f32 %v2170_v22  ;;  %v2182_v30 = vand.u32 2147483648, %v2170_v22  ;;  %v2180_v31 = vand.u32 2147483647, %v2170_v22  ;;  %vm2176_vm8 = vweird.f32 %v2170_v22 }
0x135a   : > { %v3414_v23 = vpop.eup %3413  ;;  %v2183_v32 = vor.u32 1.1754944e-38, %v2182_v30  ;;  %vm2181_vm3 = vcmp.eq.f32.partialorder %v2180_v31, 8.507059e+37 }
0x135b   : > { %v2273_v25 = vsel %vm750_vm11, %v3414_v23, 0.0 }
0x135c   : > { %2274 = vadd.xlane.f32.xlu2 %v2273_v25  ;;  %v2415_v25 = vperm.slane %v4171_v21, 1 }
0x135e   : > { %v3416_v26 = vpop.eup %3415 }
0x135f   : > { %v2172_v24 = vmul.f32 %v3416_v26, %v2170_v22  ;;  %v2083_v28 = vpop.f32.mrf.mxu0  ;;  %vm2177_vm10 = vweird.f32 %v3416_v26 }
0x1360   : > { %3263 = vmatmul.msk.f32.vlgmr.msrb.gmra.mxu1 %vm721_vm6, %v2083_v28  ;;  %vm2178_vm2 = vmor %vm2176_vm8, %vm2177_vm10 }
0x1361   : > { %v2173_v29 = vsub.f32 1.0, %v2172_v24  ;;  %2407 = vmatpush.msrb.mxu1 %v3278_v17 }
0x1363   : > { %v2174_v37 = vmul.f32 %v3416_v26, %v2173_v29  ;;  %2408 = vmatpush.msrb.mxu1 %v3277_v18 }
0x1365   : > { %v2175_v55 = vadd.f32 %v3416_v26, %v2174_v37  ;;  %2409 = vmatpush.msrb.mxu1 %v3276_v1 }
0x1367   : > { %v2179_v33 = vsel %vm2178_vm2, %v3416_v26, %v2175_v55  ;;  %2410 = vmatpush.msrb.mxu1 %v3275_v19 }
0x1368   : > { %v2184_v34 = vsel %vm2181_vm3, %v2183_v32, %v2179_v33 }
0x1369   : > { %v2185_v35 = vmul.f32 %v3412_v15, %v2184_v34  ;;  %v2367_v34 = vperm.slane %v4039_v57, 1 }
0x136a   : > { %v2187_v36 = vpop.permute.xlu0 %2186 }
0x136b   : > { %3267 = vmatpush.msk.msrb.mxu0 %vm779_vm7, %v2187_v36 }
0x136c   : > { %3268 = vmatmul.msk.f32.vlgmr.msrb.gmra.mxu0 %vm775_vm1, %v2185_v35 }
0x136d   : > { %2336 = vmatpush.msra.mxu0 %v3251_v40 }
0x1374   : > { %2291 = vrot.lane.b32.xlu2 %v4059_v7, %s4411_s26 }
0x13cf   : > { %v2275_v41 = vpop.xlane.xlu2 %2274 }
0x13d0   : > { %3417 = vrcp.f32 %v2275_v41  ;;  %v2287_v48 = vand.u32 2147483648, %v2275_v41  ;;  %v2285_v50 = vand.u32 2147483647, %v2275_v41  ;;  %vm2281_vm4 = vweird.f32 %v2275_v41 }
0x13d2   : > { %v2288_v39 = vor.u32 1.1754944e-38, %v2287_v48  ;;  %vm2286_vm8 = vcmp.eq.f32.partialorder %v2285_v50, 8.507059e+37 }
0x13d6   : > { %v3418_v42 = vpop.eup %3417 }
0x13d7   : > { %v2277_v43 = vmul.f32 %v3418_v42, %v2275_v41  ;;  %v2292_v45 = vpop.permute.xlu2 %2291  ;;  %vm2282_vm11 = vweird.f32 %v3418_v42 }
0x13d8   : > { %3272 = vmatpush.msk.msra.mxu3 %vm779_vm7, %v2292_v45  ;;  %vm2283_vm10 = vmor %vm2281_vm4, %vm2282_vm11 }
0x13d9   : > { %v2278_v47 = vsub.f32 1.0, %v2277_v43  ;;  %v2391_v43 = vperm.slane %v4171_v21, 0 }
0x13db   : > { %v2279_v7 = vmul.f32 %v3418_v42, %v2278_v47 }
0x13dd   : > { %v2280_v51 = vadd.f32 %v3418_v42, %v2279_v7  ;;  %v2106_v58 = vpop.f32.mrf.mxu1 }
0x13de   : > { %v2130_v3 = vadd.f32 %v4095_v59, %v2106_v58  ;;  %v3281_v59 = vld [vmem:[%s4382_s7 + $0xb0] sm:$0xff] }
0x13df   : > { %v2284_v27 = vsel %vm2283_vm10, %v3418_v42, %v2280_v51  ;;  %2429 = vmatpush.msra.mxu2 %v3281_v59 }
0x13e0   : > { %v2289_v62 = vsel %vm2286_vm8, %v2288_v39, %v2284_v27  ;;  %v3286_v39 = vld [vmem:[%s4382_s7 + $0xd8] sm:$0xff]  ;;  %v3285_v27 = vld [vmem:[%s4382_s7 + $0xd0] sm:$0xff] }
0x13e1   : > { %v2290_v52 = vmul.f32 %v3414_v23, %v2289_v62  ;;  %2430 = vmatpush.msra.mxu2 %v3280_v60  ;;  %2452 = vmatpush.msrb.mxu3 %v3286_v39  ;;  %v3284_v62 = vld [vmem:[%s4382_s7 + $0xc8] sm:$0xff] }
0x13e3   : > { %3273 = vmatmul.msk.f32.vlgmr.msra.gmra.mxu3 %vm775_vm1, %v2290_v52  ;;  %v3283_v52 = vld [vmem:[%s4382_s7 + $0xc0] sm:$0xff] }
0x13e4   : > { %2453 = vmatpush.msrb.mxu3 %v3285_v27 }
0x13e6   : > { %2454 = vmatpush.msrb.mxu3 %v3284_v62 }
0x13e8   : > { %2455 = vmatpush.msrb.mxu3 %v3283_v52 }
0x13e9   : > { %v2210_v54 = vpop.f32.mrf.mxu0 }
0x13ea   : > { %3269 = vmatmul.msk.f32.vlgmr.msra.gmra.mxu1 %vm721_vm6, %v2210_v54  ;;  %v3287_v54 = vld [vmem:[%s4382_s7 + $0xe0] sm:$0xff] }
0x13eb   : > { %3294 = vmatmul.msk.f32.vlgmr.msrb.gmra.mxu3 %vm655_vm5, %v4144_v9 }
0x13ec   : > { %2674 = vmatpush.msra.mxu3 %v3287_v54 }
0x13f3   : > { %3295 = vmatmul.msk.f32.gmra.mxu3 %vm655_vm5, %v4149_v10 }
0x1466   : > { %v2315_v56 = vpop.f32.mrf.mxu3 }
0x1467   : > { %3274 = vmatmul.msk.f32.vlgmr.msra.gmra.mxu0 %vm721_vm6, %v2315_v56  ;;  %v2233_v46 = vpop.f32.mrf.mxu1 }
0x1468   : > { %v2236_v61 = vadd.f32 %v2233_v46, %v2130_v3 }
0x14e4   : > { %v2338_v0 = vpop.f32.mrf.mxu0 }
0x14e5   : > { %v2341_v2 = vadd.f32 %v2338_v0, %v2236_v61 }
0x14e7   : > { %v2343_v4 = vadd.f32 %v2342_v63, %v2341_v2 }
0x14e9   : > { %v4127_v5 = vadd.f32 %v2343_v4, %v3992_v49  ;;  %v3279_v49 = vld [vmem:[%s4382_s7 + $0xa0] sm:$0xff] }
0x14ea   : > { %2431 = vmatpush.msra.mxu2 %v3279_v49 }
0x14eb   : > { %v2345_v6 = vsel %vm601_vm0, %v4127_v5, 0.0  ;;  %3292 = vmatmul.msk.f32.vlgmr.msra.gmra.mxu2 %vm655_vm5, %v4144_v9 }
0x14ec   : > { %2346 = vadd.xlane.f32.xlu1 %v2345_v6  ;;  %v2457_v6 = vpop.f32.mrf.mxu3 }
0x14ed   : > { %v4226_v60 = vadd.f32 %v2457_v6, %v2439_v8 }
0x14f3   : > { %3293 = vmatmul.msk.f32.gmra.mxu2 %vm655_vm5, %v4149_v10 }
0x14f4   : > { %v2460_v59 = vpop.f32.mrf.mxu3 }
0x14f5   : > { %v4228_v49 = vadd.f32 %v2460_v59, %v2439_v8 }
0x14f7   : > { %3299 = vmatpush.msk.msra.mxu1 %vm1326_vm15, %v4228_v49 }
0x14f9   : > { %2539 = vmatpush.msra.mxu1 %v4226_v60 }
0x155f   : > { %v2347_v12 = vpop.xlane.xlu1 %2346 }
0x1560   : > { %v2348_v13 = vmul.f32 %v2347_v12, %v3622_v11 }
0x1562   : > { %v2349_v14 = vsub.f32 %v4127_v5, %v2348_v13 }
0x1564   : > { %v2350_v15 = vmul.f32 %v2349_v14, %v2349_v14 }
0x1566   : > { %v2351_v16 = vsel %vm601_vm0, %v2350_v15, 0.0 }
0x1567   : > { %2352 = vadd.xlane.f32.xlu0 %v2351_v16 }
0x156e   : > { %v2433_v20 = vpop.f32.mrf.mxu2 }
0x156f   : > { %v4175_v29 = vadd.f32 %v2433_v20, %v2415_v25 }
0x1576   : > { %v2436_v24 = vpop.f32.mrf.mxu2 }
0x1577   : > { %v2437_v28 = vadd.f32 %v2436_v24, %v2415_v25 }
0x1579   : > { %3296 = vmatpush.xpose.msk.msrb.mxu0 %vm721_vm6, %v2437_v28 }
0x157b   : > { %2548 = vrot.lane.b32.xlu0 %v2437_v28, %s3487_s23 }
0x157d   : > { %3297 = vmatpush.xpose.msk.msrb.mxu0 %vm721_vm6, %v4175_v29 }
0x1583   : > { %2683 = vrot.lane.b32.xlu0 %v2437_v28, %s3486_s3 }
0x158b   : > { %2681 = vrot.lane.b32.xlu0 %v4175_v29, %s3486_s3 }
0x15da   : > { %v2353_v22 = vpop.xlane.xlu0 %2352 }
0x15db   : > { %v2354_v23 = vmul.f32 %v2353_v22, %v3622_v11 }
0x15dd   : > { %v2355_v26 = vadd.f32 1e-12, %v2354_v23 }
0x15df   : > { %3419 = vrsqrt.f32 %v2355_v26  ;;  %vm2362_vm2 = vweird.f32 %v2355_v26 }
0x15e5   : > { %v3420_v30 = vpop.eup %3419 }
0x15e6   : > { %v2357_v37 = vmul.f32 %v3420_v30, %v2355_v26  ;;  %vm2363_vm1 = vweird.f32 %v3420_v30 }
0x15e7   : > { %vm2364_vm3 = vmor %vm2362_vm2, %vm2363_vm1 }
0x15e8   : > { %v2358_v31 = vmul.f32 %v3420_v30, %v2357_v37 }
0x15ea   : > { %v2359_v55 = vmul.f32 0.5, %v2358_v31 }
0x15ec   : > { %v2360_v32 = vsub.f32 1.5, %v2359_v55 }
0x15ed   : > { %v2549_v42 = vpop.permute.xlu0 %2548 }
0x15ee   : > { %v2361_v33 = vmul.f32 %v3420_v30, %v2360_v32  ;;  %3301 = vmatpush.xpose.msk.msra.mxu0 %vm721_vm6, %v2549_v42 }
0x15f0   : > { %v2365_v35 = vsel %vm2364_vm3, %v3420_v30, %v2361_v33 }
0x15f1   : > { %v2366_v36 = vmul.f32 %v2365_v35, %v2349_v14 }
0x15f3   : > { %v2368_v40 = vmul.f32 %v2367_v34, %v2366_v36 }
0x15f5   : > { %v2370_v41 = vadd.f32 %v2369_v38, %v2368_v40  ;;  %v2684_v46 = vpop.permute.xlu0 %2683 }
0x15f7   : > { %3291 = vmatmul.msk.f32.vlgmr.msrb.gmra.mxu1 %vm655_vm5, %v2370_v41 }
0x15fd   : > { %v2682_v2 = vpop.permute.xlu0 %2681 }
0x1674   : > { %v2412_v45 = vpop.f32.mrf.mxu1 }
0x1675   : > { %v2413_v47 = vadd.f32 %v2412_v45, %v2391_v43 }
0x1677   : > { %2791 = vrot.lane.b32.xlu0 %v2413_v47, %s4411_s26  ;;  %3298 = vmatmul.msk.f32.vlgmr.msrb.gmra.mxu0 %vm721_vm6, %v2413_v47 }
0x16f4   : > { %v2489_v48 = vpop.f32.mrf.mxu0 }
0x16f5   : > { %v2492_v7 = vmul.f32 0.35355338, %v2489_v48 }
0x16f7   : > { %v2493_v50 = vsel %vm3855_vm13, %v2492_v7, -1e+30 }
0x16f8   : > { %v2494_v51 = vsel %vm1297_vm14, %v2493_v50, -inf }
0x16f9   : > { %2495 = vmax.xlane.f32.xlu2 %v2494_v51 }
0x1711   : > { %2546 = vrot.lane.b32.xlu2 %v4175_v29, %s3487_s23 }
0x1719   : > { %2795 = vrot.lane.b32.xlu2 %v2437_v28, %s4411_s26 }
0x1721   : > { %2679 = vrot.lane.b32.xlu2 %v2413_v47, %s3486_s3 }
0x176c   : > { %v2496_v56 = vpop.xlane.xlu2 %2495 }
0x176d   : > { %v2497_v58 = vsub.f32 %v2493_v50, %v2496_v56 }
0x176f   : > { %v2498_v3 = vmul.f32 1.442695, %v2497_v58 }
0x1771   : > { %3421 = vpow2.f32 %v2498_v3 }
0x1774   : > { %v2547_v61 = vpop.permute.xlu2 %2546 }
0x1775   : > { %3302 = vmatpush.xpose.msk.msra.mxu0 %vm721_vm6, %v2547_v61 }
0x1777   : > { %v3422_v63 = vpop.eup %3421 }
0x1778   : > { %v2500_v0 = vsel %vm1297_vm14, %v3422_v63, 0.0 }
0x1779   : > { %3308 = vmatpush.xpose.msk.msrb.mxu0 %vm721_vm6, %v2684_v46  ;;  %2501 = vadd.xlane.f32.xlu1 %v2500_v0 }
0x177c   : > { %v2796_v4 = vpop.permute.xlu2 %2795 }
0x177d   : > { %3309 = vmatpush.xpose.msk.msrb.mxu0 %vm721_vm6, %v2682_v2  ;;  %3314 = vmatpush.xpose.msk.msrb.mxu3 %vm721_vm6, %v2796_v4 }
0x1784   : > { %v2680_v23 = vpop.permute.xlu2 %2679 }
0x1792   : > { %2544 = vrot.lane.b32.xlu1 %v2413_v47, %s3487_s23 }
0x179a   : > { %2793 = vrot.lane.b32.xlu1 %v4175_v29, %s4411_s26  ;;  %v2792_v29 = vpop.permute.xlu0 %2791 }
0x17ec   : > { %v2502_v9 = vpop.xlane.xlu1 %2501 }
0x17ed   : > { %3423 = vrcp.f32 %v2502_v9  ;;  %v2514_v14 = vand.u32 2147483648, %v2502_v9  ;;  %v2512_v16 = vand.u32 2147483647, %v2502_v9  ;;  %vm2508_vm4 = vweird.f32 %v2502_v9 }
0x17ef   : > { %v2515_v18 = vor.u32 1.1754944e-38, %v2514_v14  ;;  %vm2513_vm8 = vcmp.eq.f32.partialorder %v2512_v16, 8.507059e+37 }
0x17f3   : > { %v3424_v10 = vpop.eup %3423 }
0x17f4   : > { %v2504_v12 = vmul.f32 %v3424_v10, %v2502_v9  ;;  %vm2509_vm11 = vweird.f32 %v3424_v10 }
0x17f5   : > { %vm2510_vm10 = vmor %vm2508_vm4, %vm2509_vm11 }
0x17f6   : > { %v2505_v13 = vsub.f32 1.0, %v2504_v12 }
0x17f8   : > { %v2506_v15 = vmul.f32 %v3424_v10, %v2505_v13 }
0x17fa   : > { %v2507_v17 = vadd.f32 %v3424_v10, %v2506_v15  ;;  %v3288_v15 = vld [vmem:[%s4382_s7 + $0xe8] sm:$0xff] }
0x17fb   : > { %2651 = vmatpush.msrb.mxu2 %v3288_v15 }
0x17fc   : > { %v2511_v1 = vsel %vm2510_vm10, %v3424_v10, %v2507_v17 }
0x17fd   : > { %v2516_v19 = vsel %vm2513_vm8, %v2515_v18, %v2511_v1 }
0x17fe   : > { %v2517_v20 = vmul.f32 %v3422_v63, %v2516_v19 }
0x1800   : > { %3300 = vmatmul.msk.f32.vlgmr.msra.gmra.mxu1 %vm1322_vm9, %v2517_v20 }
0x1804   : > { %v2545_v22 = vpop.permute.xlu1 %2544 }
0x1805   : > { %3303 = vmatmul.msk.f32.vlgmr.msra.gmra.mxu0 %vm721_vm6, %v2545_v22 }
0x180c   : > { %v2794_v25 = vpop.permute.xlu1 %2793 }
0x180d   : > { %3310 = vmatmul.msk.f32.vlgmr.msrb.gmra.mxu0 %vm721_vm6, %v2680_v23  ;;  %3315 = vmatpush.xpose.msk.msrb.mxu3 %vm721_vm6, %v2794_v25 }
0x187d   : > { %v2541_v26 = vpop.f32.mrf.mxu1 }
0x187e   : > { %3307 = vmatmul.msk.f32.vlgmr.msra.gmra.mxu3 %vm721_vm6, %v2541_v26 }
0x1882   : > { %v2573_v24 = vpop.f32.mrf.mxu0 }
0x1883   : > { %v2576_v28 = vmul.f32 0.35355338, %v2573_v24 }
0x1885   : > { %v2577_v30 = vsel %vm3855_vm13, %v2576_v28, -1e+30 }
0x1886   : > { %3316 = vmatmul.msk.f32.vlgmr.msrb.gmra.mxu3 %vm721_vm6, %v2792_v29  ;;  %v2578_v37 = vsel %vm1297_vm14, %v2577_v30, -inf }
0x1887   : > { %2579 = vmax.xlane.f32.xlu1 %v2578_v37 }
0x188a   : > { %v2708_v31 = vpop.f32.mrf.mxu0 }
0x188b   : > { %v2711_v55 = vmul.f32 0.35355338, %v2708_v31 }
0x188d   : > { %v2712_v32 = vsel %vm3855_vm13, %v2711_v55, -1e+30 }
0x188e   : > { %v2713_v33 = vsel %vm1297_vm14, %v2712_v32, -inf }
0x188f   : > { %2714 = vmax.xlane.f32.xlu2 %v2713_v33 }
0x18a0   : > { %2605 = vrot.lane.b32.xlu1 %v4228_v49, %s3487_s23 }
0x18a7   : > { %2603 = vrot.lane.b32.xlu2 %v4226_v60, %s3487_s23 }
0x18fa   : > { %v2580_v34 = vpop.xlane.xlu1 %2579 }
0x18fb   : > { %v2581_v35 = vsub.f32 %v2577_v30, %v2580_v34 }
0x18fd   : > { %v2582_v36 = vmul.f32 1.442695, %v2581_v35 }
0x18ff   : > { %3425 = vpow2.f32 %v2582_v36 }
0x1901   : > { %v4249_v38 = vpop.f32.mrf.mxu3 }
0x1902   : > { %v2715_v40 = vpop.xlane.xlu2 %2714 }
0x1903   : > { %v2716_v41 = vsub.f32 %v2712_v32, %v2715_v40 }
0x1905   : > { %v3426_v42 = vpop.eup %3425  ;;  %v2717_v43 = vmul.f32 1.442695, %v2716_v41 }
0x1906   : > { %v2584_v45 = vsel %vm1297_vm14, %v3426_v42, 0.0 }
0x1907   : > { %3427 = vpow2.f32 %v2717_v43  ;;  %2585 = vadd.xlane.f32.xlu1 %v2584_v45  ;;  %v3290_v43 = vld [vmem:[%s4382_s7 + $0xf8] sm:$0xff] }
0x1909   : > { %v2820_v47 = vpop.f32.mrf.mxu3 }
0x190a   : > { %v2823_v48 = vmul.f32 0.35355338, %v2820_v47  ;;  %v2604_v62 = vpop.permute.xlu2 %2603 }
0x190c   : > { %v2824_v7 = vsel %vm3855_vm13, %v2823_v48, -1e+30 }
0x190d   : > { %v4254_v50 = vpop.eup %3427  ;;  %v2825_v51 = vsel %vm1297_vm14, %v2824_v7, -inf }
0x190e   : > { %2826 = vmax.xlane.f32.xlu0 %v2825_v51  ;;  %v2719_v39 = vsel %vm1297_vm14, %v4254_v50, 0.0 }
0x190f   : > { %2720 = vadd.xlane.f32.xlu2 %v2719_v39  ;;  %v2903_v39 = vperm.slane %v4171_v21, 3  ;;  %v3323_v21 = vld [vmem:[%s4386_s11 + $0x38] sm:$0xff] }
0x1912   : > { %v2606_v27 = vpop.permute.xlu1 %2605 }
0x1913   : > { %3304 = vmatpush.msk.msrb.mxu1 %vm1326_vm15, %v2606_v27 }
0x1915   : > { %2628 = vmatpush.msrb.mxu1 %v2604_v62 }
0x1920   : > { %2851 = vrot.lane.b32.xlu1 %v4228_v49, %s4411_s26 }
0x1922   : > { %2739 = vrot.lane.b32.xlu0 %v4228_v49, %s3486_s3 }
0x1927   : > { %2849 = vrot.lane.b32.xlu2 %v4226_v60, %s4411_s26 }
0x197a   : > { %v2586_v44 = vpop.xlane.xlu1 %2585 }
0x197b   : > { %3429 = vrcp.f32 %v2586_v44  ;;  %v2598_v61 = vand.u32 2147483648, %v2586_v44  ;;  %v2596_v0 = vand.u32 2147483647, %v2586_v44  ;;  %vm2592_vm1 = vweird.f32 %v2586_v44 }
0x197d   : > { %v2599_v4 = vor.u32 1.1754944e-38, %v2598_v61  ;;  %vm2597_vm3 = vcmp.eq.f32.partialorder %v2596_v0, 8.507059e+37  ;;  %v3332_v0 = vld [vmem:[%s4388_s13 + $0x78] sm:$0xff] }
0x197e   : > { %2991 = vmatpush.msra.mxu3 %v3332_v0 }
0x1981   : > { %v3430_v52 = vpop.eup %3429  ;;  %v2827_v54 = vpop.xlane.xlu0 %2826 }
0x1982   : > { %v2588_v56 = vmul.f32 %v3430_v52, %v2586_v44  ;;  %v2828_v58 = vsub.f32 %v2824_v7, %v2827_v54  ;;  %vm2593_vm13 = vweird.f32 %v3430_v52  ;;  %v2721_v8 = vpop.xlane.xlu2 %2720 }
0x1983   : > { %vm2594_vm2 = vmor %vm2592_vm1, %vm2593_vm13  ;;  %v2733_v25 = vand.u32 2147483648, %v2721_v8 }
0x1984   : > { %v2589_v46 = vsub.f32 1.0, %v2588_v56  ;;  %v2829_v3 = vmul.f32 1.442695, %v2828_v58 }
0x1985   : > { %v2734_v31 = vor.u32 1.1754944e-38, %v2733_v25  ;;  %v3326_v25 = vld [vmem:[%s4388_s13 + $0x48] sm:$0xff] }
0x1986   : > { %v2590_v63 = vmul.f32 %v3430_v52, %v2589_v46  ;;  %3431 = vpow2.f32 %v2829_v3 }
0x1987   : > { %3433 = vrcp.f32 %v2721_v8 }
0x1988   : > { %v2591_v2 = vadd.f32 %v3430_v52, %v2590_v63  ;;  %v3320_v63 = vld [vmem:[%s4386_s11 + $0x20] sm:$0xff] }
0x198a   : > { %v2595_v6 = vsel %vm2594_vm2, %v3430_v52, %v2591_v2  ;;  %v2850_v13 = vpop.permute.xlu2 %2849  ;;  %v3331_v2 = vld [vmem:[%s4388_s13 + $0x70] sm:$0xff] }
0x198b   : > { %v2600_v59 = vsel %vm2597_vm3, %v2599_v4, %v2595_v6  ;;  %v3330_v4 = vld [vmem:[%s4388_s13 + $0x68] sm:$0xff]  ;;  %2992 = vmatpush.msra.mxu3 %v3331_v2 }
0x198c   : > { %v3432_v49 = vpop.eup %3431  ;;  %v2601_v9 = vmul.f32 %v3426_v42, %v2600_v59  ;;  %v3289_v42 = vld [vmem:[%s4382_s7 + $0xf0] sm:$0xff]  ;;  %v3329_v59 = vld [vmem:[%s4388_s13 + $0x60] sm:$0xff] }
0x198d   : > { %v2831_v10 = vsel %vm1297_vm14, %v3432_v49, 0.0  ;;  %v3434_v16 = vpop.eup %3433  ;;  %2785 = vmatpush.msra.mxu2 %v3289_v42  ;;  %2993 = vmatpush.msra.mxu3 %v3330_v4  ;;  %v3036_v42 = vld [vmem:[%s4392_s17] sm:$0xff] }
0x198e   : > { %3305 = vmatmul.msk.f32.vlgmr.msrb.gmra.mxu1 %vm1322_vm9, %v2601_v9  ;;  %2832 = vadd.xlane.f32.xlu0 %v2831_v10  ;;  %v2723_v17 = vmul.f32 %v3434_v16, %v2721_v8  ;;  %vm2728_vm14 = vweird.f32 %v3434_v16  ;;  %v3328_v9 = vld [vmem:[%s4388_s13 + $0x58] sm:$0xff] }
0x198f   : > { %2994 = vmatpush.msra.mxu3 %v3329_v59 }
0x1990   : > { %v2724_v1 = vsub.f32 1.0, %v2723_v17  ;;  %v2928_v17 = vperm.slane %v4039_v57, 2  ;;  %v3325_v57 = vld [vmem:[%s4388_s13 + $0x40] sm:$0xff] }
0x1991   : > { %2995 = vmatpush.msra.mxu3 %v3328_v9 }
0x1992   : > { %v2852_v12 = vpop.permute.xlu1 %2851  ;;  %v2725_v19 = vmul.f32 %v3434_v16, %v2724_v1 }
0x1993   : > { %3317 = vmatpush.msk.msra.mxu0 %vm1326_vm15, %v2852_v12 }
0x1994   : > { %v2740_v14 = vpop.permute.xlu0 %2739  ;;  %v2726_v23 = vadd.f32 %v3434_v16, %v2725_v19  ;;  %v2930_v19 = vperm.slane %v4044_v53, 2  ;;  %v3356_v53 = vld [vmem:[%s4387_s12 + $0x1] ss:$0 sm:$0xff] }
0x1995   : > { %3311 = vmatpush.msk.msra.mxu1 %vm1326_vm15, %v2740_v14  ;;  %2874 = vmatpush.msra.mxu0 %v2850_v13  ;;  %vm2727_vm15 = vweird.f32 %v2721_v8 }
0x1996   : > { %vm2729_vm11 = vmor %vm2727_vm15, %vm2728_vm14 }
0x1997   : > { %v2730_v37 = vsel %vm2729_vm11, %v3434_v16, %v2726_v23  ;;  %v3327_v23 = vld [vmem:[%s4388_s13 + $0x50] sm:$0xff] }
0x1998   : > { %2996 = vmatpush.msra.mxu3 %v3327_v23 }
0x199a   : > { %2997 = vmatpush.msra.mxu3 %v3326_v25 }
0x199c   : > { %2998 = vmatpush.msra.mxu3 %v3325_v57 }
0x19a2   : > { %2737 = vrot.lane.b32.xlu0 %v4226_v60, %s3486_s3  ;;  %v2731_v60 = vand.u32 2147483647, %v2721_v8 }
0x19a4   : > { %vm2732_vm8 = vcmp.eq.f32.partialorder %v2731_v60, 8.507059e+37 }
0x19a5   : > { %v2735_v33 = vsel %vm2732_vm8, %v2734_v31, %v2730_v37 }
0x19a6   : > { %v2736_v41 = vmul.f32 %v4254_v50, %v2735_v33 }
0x1a01   : > { %v2833_v18 = vpop.xlane.xlu0 %2832 }
0x1a02   : > { %3435 = vrcp.f32 %v2833_v18  ;;  %v2845_v28 = vand.u32 2147483648, %v2833_v18  ;;  %v2843_v30 = vand.u32 2147483647, %v2833_v18  ;;  %vm2839_vm10 = vweird.f32 %v2833_v18 }
0x1a04   : > { %v2846_v32 = vor.u32 1.1754944e-38, %v2845_v28  ;;  %vm2844_vm1 = vcmp.eq.f32.partialorder %v2843_v30, 8.507059e+37  ;;  %v3357_v28 = vld [vmem:[%s4414_s0 + $0x1] ss:$0 sm:$0xff] }
0x1a08   : > { %v3436_v20 = vpop.eup %3435 }
0x1a09   : > { %v2835_v22 = vmul.f32 %v3436_v20, %v2833_v18  ;;  %vm2840_vm4 = vweird.f32 %v3436_v20 }
0x1a0a   : > { %vm2841_vm13 = vmor %vm2839_vm10, %vm2840_vm4 }
0x1a0b   : > { %v2836_v26 = vsub.f32 1.0, %v2835_v22  ;;  %v2630_v24 = vpop.f32.mrf.mxu1 }
0x1a0c   : > { %3306 = vmatmul.msk.f32.vlgmr.msrb.gmra.mxu2 %vm721_vm6, %v2630_v24 }
0x1a0d   : > { %v2837_v29 = vmul.f32 %v3436_v20, %v2836_v26  ;;  %2968 = vmatpush.msrb.mxu2 %v3323_v21 }
0x1a0f   : > { %v2838_v55 = vadd.f32 %v3436_v20, %v2837_v29 }
0x1a11   : > { %v2842_v34 = vsel %vm2841_vm13, %v3436_v20, %v2838_v55 }
0x1a12   : > { %v2847_v35 = vsel %vm2844_vm1, %v2846_v32, %v2842_v34 }
0x1a13   : > { %v2848_v36 = vmul.f32 %v3432_v49, %v2847_v35 }
0x1a14   : > { %v2738_v40 = vpop.permute.xlu0 %2737 }
0x1a15   : > { %2762 = vmatpush.msra.mxu1 %v2738_v40  ;;  %3318 = vmatmul.msk.f32.vlgmr.msra.gmra.mxu0 %vm1322_vm9, %v2848_v36  ;;  %v3039_v36 = vld [vmem:[%s4392_s17 + $0x18] sm:$0xff]  ;;  %v3038_v40 = vld [vmem:[%s4392_s17 + $0x10] sm:$0xff] }
0x1a16   : > { %3312 = vmatmul.msk.f32.vlgmr.msra.gmra.mxu1 %vm1322_vm9, %v2736_v41  ;;  %3059 = vmatpush.msrb.mxu0 %v3039_v36  ;;  %v3037_v41 = vld [vmem:[%s4392_s17 + $0x8] sm:$0xff] }
0x1a17   : > { %2897 = vmatpush.msrb.mxu1 %v3290_v43 }
0x1a18   : > { %3060 = vmatpush.msrb.mxu0 %v3038_v40 }
0x1a1a   : > { %3061 = vmatpush.msrb.mxu0 %v3037_v41 }
0x1a1c   : > { %3062 = vmatpush.msrb.mxu0 %v3036_v42 }
0x1a8f   : > { %v2653_v48 = vpop.f32.mrf.mxu2 }
0x1a90   : > { %v2677_v7 = vadd.f32 %v4249_v38, %v2653_v48  ;;  %v3321_v38 = vld [vmem:[%s4386_s11 + $0x28] sm:$0xff] }
0x1a92   : > { %v2876_v45 = vpop.f32.mrf.mxu0 }
0x1a93   : > { %v2764_v47 = vpop.f32.mrf.mxu1  ;;  %3319 = vmatmul.msk.f32.vlgmr.msrb.gmra.mxu1 %vm721_vm6, %v2876_v45 }
0x1a94   : > { %3313 = vmatmul.msk.f32.vlgmr.msra.gmra.mxu2 %vm721_vm6, %v2764_v47 }
0x1b10   : > { %v2899_v27 = vpop.f32.mrf.mxu1 }
0x1b17   : > { %v2787_v50 = vpop.f32.mrf.mxu2 }
0x1b18   : > { %v2790_v51 = vadd.f32 %v2787_v50, %v2677_v7 }
0x1b1a   : > { %v2902_v62 = vadd.f32 %v2899_v27, %v2790_v51 }
0x1b1c   : > { %v2904_v44 = vadd.f32 %v2903_v39, %v2902_v62  ;;  %v3358_v62 = vld [vmem:[%s4390_s15] ss:$0 sm:$0xff] }
0x1b1e   : > { %v2905_v52 = vadd.f32 %v2904_v44, %v4127_v5  ;;  %v3322_v5 = vld [vmem:[%s4386_s11 + $0x30] sm:$0xff] }
0x1b1f   : > { %2969 = vmatpush.msrb.mxu2 %v3322_v5 }
0x1b20   : > { %v2906_v54 = vsel %vm601_vm0, %v2905_v52, 0.0 }
0x1b21   : > { %2907 = vadd.xlane.f32.xlu0 %v2906_v54  ;;  %2970 = vmatpush.msrb.mxu2 %v3321_v38 }
0x1b23   : > { %2971 = vmatpush.msrb.mxu2 %v3320_v63 }
0x1b94   : > { %v2908_v56 = vpop.xlane.xlu0 %2907 }
0x1b95   : > { %v2909_v58 = vmul.f32 %v2908_v56, %v3622_v11 }
0x1b97   : > { %v2910_v46 = vsub.f32 %v2905_v52, %v2909_v58  ;;  %v3360_v58 = vld [vmem:[%s4393_s18] ss:$0 sm:$0xff] }
0x1b99   : > { %v2911_v3 = vmul.f32 %v2910_v46, %v2910_v46 }
0x1b9b   : > { %v2912_v61 = vsel %vm601_vm0, %v2911_v3, 0.0 }
0x1b9c   : > { %2913 = vadd.xlane.f32.xlu1 %v2912_v61 }
0x1c0f   : > { %v2914_v6 = vpop.xlane.xlu1 %2913 }
0x1c10   : > { %v2915_v8 = vmul.f32 %v2914_v6, %v3622_v11 }
0x1c12   : > { %v2916_v49 = vadd.f32 1e-12, %v2915_v8 }
0x1c14   : > { %3437 = vrsqrt.f32 %v2916_v49  ;;  %vm2923_vm9 = vweird.f32 %v2916_v49 }
0x1c1a   : > { %v3438_v10 = vpop.eup %3437 }
0x1c1b   : > { %v2918_v12 = vmul.f32 %v3438_v10, %v2916_v49  ;;  %vm2924_vm6 = vweird.f32 %v3438_v10 }
0x1c1c   : > { %vm2925_vm2 = vmor %vm2923_vm9, %vm2924_vm6 }
0x1c1d   : > { %v2919_v13 = vmul.f32 %v3438_v10, %v2918_v12 }
0x1c1f   : > { %v2920_v14 = vmul.f32 0.5, %v2919_v13 }
0x1c21   : > { %v2921_v15 = vsub.f32 1.5, %v2920_v14 }
0x1c23   : > { %v2922_v16 = vmul.f32 %v3438_v10, %v2921_v15 }
0x1c25   : > { %v2926_v18 = vsel %vm2925_vm2, %v3438_v10, %v2922_v16 }
0x1c26   : > { %v2927_v1 = vmul.f32 %v2926_v18, %v2910_v46 }
0x1c28   : > { %v2929_v20 = vmul.f32 %v2928_v17, %v2927_v1 }
0x1c2a   : > { %v2931_v22 = vadd.f32 %v2930_v19, %v2929_v20 }
0x1c2c   : > { %3334 = vmatmul.msk.f32.vlgmr.msrb.gmra.mxu2 %vm655_vm5, %v2931_v22 }
0x1caf   : > { %v2973_v26 = vpop.f32.mrf.mxu2 }
0x1cb0   : > { %v2974_v24 = vadd.f32 %v3356_v53, %v2973_v26 }
0x1cb2   : > { %v2976_v60 = vmax.f32 %v2974_v24, 0.0 }
0x1cb4   : > { %3335 = vmatmul.msk.f32.vlgmr.msra.gmra.mxu3 %vm1782_vm12, %v2976_v60 }
0x1d37   : > { %v3000_v29 = vpop.f32.mrf.mxu3 }
0x1d38   : > { %v3001_v30 = vadd.f32 %v3357_v28, %v3000_v29 }
0x1d3a   : > { %v3003_v37 = vadd.f32 %v3001_v30, %v2905_v52 }
0x1d3c   : > { %v3006_v31 = vsel %vm601_vm0, %v3003_v37, 0.0 }
0x1d3d   : > { %3007 = vadd.xlane.f32.xlu2 %v3006_v31 }
0x1db0   : > { %v3008_v55 = vpop.xlane.xlu2 %3007 }
0x1db1   : > { %v3009_v32 = vmul.f32 %v3008_v55, %v3622_v11 }
0x1db3   : > { %v3010_v33 = vsub.f32 %v3003_v37, %v3009_v32 }
0x1db5   : > { %v3011_v34 = vmul.f32 %v3010_v33, %v3010_v33 }
0x1db7   : > { %v3012_v35 = vsel %vm601_vm0, %v3011_v34, 0.0 }
0x1db8   : > { %3013 = vadd.xlane.f32.xlu0 %v3012_v35 }
0x1e2b   : > { %v3014_v43 = vpop.xlane.xlu0 %3013 }
0x1e2c   : > { %v3015_v45 = vmul.f32 %v3014_v43, %v3622_v11  ;;  %v3359_v11 = vld [vmem:[%s4391_s16] ss:$0 sm:$0xff] }
0x1e2e   : > { %v3016_v47 = vadd.f32 1e-12, %v3015_v45 }
0x1e30   : > { %3439 = vrsqrt.f32 %v3016_v47  ;;  %vm3023_vm12 = vweird.f32 %v3016_v47 }
0x1e36   : > { %v3440_v48 = vpop.eup %3439 }
0x1e37   : > { %v3018_v7 = vmul.f32 %v3440_v48, %v3016_v47  ;;  %vm3024_vm0 = vweird.f32 %v3440_v48 }
0x1e38   : > { %vm3025_vm3 = vmor %vm3023_vm12, %vm3024_vm0 }
0x1e39   : > { %v3019_v50 = vmul.f32 %v3440_v48, %v3018_v7 }
0x1e3b   : > { %v3020_v51 = vmul.f32 0.5, %v3019_v50 }
0x1e3d   : > { %v3021_v39 = vsub.f32 1.5, %v3020_v51 }
0x1e3f   : > { %v3022_v27 = vmul.f32 %v3440_v48, %v3021_v39 }
0x1e41   : > { %v3026_v44 = vsel %vm3025_vm3, %v3440_v48, %v3022_v27 }
0x1e42   : > { %v3027_v52 = vmul.f32 %v3026_v44, %v3010_v33 }
0x1e44   : > { %v3031_v54 = vmul.f32 %v3358_v62, %v3027_v52 }
0x1e46   : > { %v3035_v56 = vadd.f32 %v3359_v11, %v3031_v54 }
0x1e48   : > { %3336 = vmatmul.msk.f32.vlgmr.msrb.gmra.mxu0 %vm655_vm5, %v3035_v56 }
0x1ec5   : > { %v3064_v46 = vpop.f32.mrf.mxu0 }
0x1ec6   : > { %v3065_v3 = vadd.f32 %v3360_v58, %v3064_v46 }
0x1ec8   : > { %v3067_v61 = vsel %vm779_vm7, %v3065_v3, -inf }
0x1ec9   : > { %3068 = vmax.xlane.f32.xlu1 %v3067_v61 }
0x1f3c   : > { %v3069_v21 = vpop.xlane.xlu1 %3068 }
0x1f3d   : > { %v3070_v5 = vsub.f32 %v3065_v3, %v3069_v21 }
0x1f3f   : > { %v3071_v38 = vmul.f32 1.442695, %v3070_v5 }
0x1f41   : > { %3441 = vpow2.f32 %v3071_v38 }
0x1f47   : > { %v3442_v63 = vpop.eup %3441 }
0x1f48   : > { %v3073_v0 = vsel %vm779_vm7, %v3442_v63, 0.0 }
0x1f49   : > { %3074 = vadd.xlane.f32.xlu2 %v3073_v0 }
0x1fbc   : > { %v3075_v2 = vpop.xlane.xlu2 %3074 }
0x1fbd   : > { %3443 = vlog2.f32 %v3075_v2 }
0x1fc3   : > { %v3444_v4 = vpop.eup %3443 }
0x1fc4   : > { %v3077_v6 = vmul.f32 0.6931472, %v3444_v4 }
0x1fc6   : > { %v3078_v8 = vsub.f32 %v3070_v5, %v3077_v6 }
0x1fc8   : > { %3079 = vst [vmem:[%s578_s29] sm:$0x7f] %v3078_v8 }
0x1fc9 PF: > { %s42_s24 = sadd.s32 1, %s3481_s24  }
0x1fca   : > { %p39_p4 = scmp.ge.s32.totalorder %s42_s24, 4  }
0x1fcc   :  { %41 = sbr.rel (!%p39_p4) target bundleno = 19 (0x13), region = 143 }

</bundles_post_ra>
